<compile_context>
chip_gen: v7x
topology: tpu7x:2x2x1
jax: 0.10.0
libtpu: 0.0.40
codegen_flags: <defaults>
</compile_context>

<pallas_src>
import functools
import math

import jax
import jax.numpy as jnp
from jax.experimental import pallas as pl
from jax.experimental.pallas import tpu as pltpu

_BN_EPS = 1e-5
LAYERS = (1, 1, 1, 1)
PLANES = (64, 128, 256, 512)


def _block_cfgs():
    cfgs = []
    inplanes = 64
    for planes, n in zip(PLANES, LAYERS):
        for bi in range(n):
            stride = 2 if bi == 0 else 1
            has_ds = (stride != 1) or (inplanes != planes)
            cfgs.append((inplanes, planes, stride, has_ds))
            inplanes = planes
    return tuple(cfgs)


BLOCK_CFGS = _block_cfgs()


# ----------------------------------------------------------------------------- fused conv kernel

def _fused_conv_kernel(x_ref, w_ref, ps_ref, pb_ref, qs_ref, qb_ref, *rest,
                       n_kh, n_kw, stride, cin, wo,
                       pre_affine, pre_relu, post_relu, has_residual):
    """One output row (n, ho) x one Cout tile; grid reduction over the kh taps.

    Prologue: per-input-channel affine (+ReLU) on the input row.
    Body:     implicit-im2col taps (static kw loop), bf16 MXU dots into f32 accumulator.
    Epilogue: per-output-channel affine (+ReLU) and optional residual add.
    """
    if has_residual:
        res_ref, o_ref, acc_ref = rest
    else:
        o_ref, acc_ref = rest
        res_ref = None

    k = pl.program_id(3)

    @pl.when(k == 0)
    def _init():
        acc_ref[...] = jnp.zeros_like(acc_ref)

    if stride == 1:
        row = x_ref[0, 0]          # (Wp, cin)
    else:
        row = x_ref[0]             # (2, Wp//2, cin)  -- parity-major packed padded row

    row = row.astype(jnp.float32)
    if pre_affine:
        row = row * ps_ref[...] + pb_ref[...]
    if pre_relu:
        row = jnp.maximum(row, 0.0)

    for t in range(n_kw):          # static kw taps (implicit im2col)
        if stride == 1:
            a = row[t:t + wo, :]
        else:
            a = row[t % 2, t // 2:t // 2 + wo, :]
        w_tap = w_ref[0, t]        # (cin, TN), bf16
        if cin == 1:
            # degenerate contraction dim: do the outer product on the VPU
            acc_ref[...] += a * w_tap.astype(jnp.float32)
        else:
            acc_ref[...] += jnp.dot(a.astype(jnp.bfloat16), w_tap,
                                    preferred_element_type=jnp.float32)

    @pl.when(k == n_kh - 1)
    def _finalize():
        y = acc_ref[...] * qs_ref[...] + qb_ref[...]
        if post_relu:
            y = jnp.maximum(y, 0.0)
        if has_residual:
            y = y + res_ref[0, 0]
        o_ref[0, 0] = y.astype(o_ref.dtype)


def fused_conv(x, w, *, stride, padding,
               pre_scale=None, pre_shift=None, pre_relu=False,
               post_scale=None, post_shift=None, post_relu=False,
               residual=None):
    """Conv2d (cross-correlation, bias-free) with fused pre/post BN-ReLU and residual add.

    x: (N, H, W, Cin) f32.   w: (KH, KW, Cin, Cout) bf16.   returns (N, Ho, Wo, Cout) f32.
    """
    N, H, W, cin = x.shape
    KH, KW, cin2, cout = w.shape
    assert cin == cin2
    Ho = (H + 2 * padding - KH) // stride + 1
    Wo = (W + 2 * padding - KW) // stride + 1
    Hp, Wp = H + 2 * padding, W + 2 * padding

    if padding:
        # NOTE: zero padding is applied before the fused pre-activation.  This matches PyTorch's
        # "pad after BN+ReLU" semantics because our BN shift is exactly 0 (relu(0*s+0) == 0).
        # TODO(synk): for general (trained) BN shifts, pad with -shift/scale instead of 0.
        x = jnp.pad(x, ((0, 0), (padding, padding), (padding, padding), (0, 0)))

    if stride == 1:
        x_in = x                                                     # (N, Hp, Wp, cin)
        x_block = (1, 1, Wp, cin)
    elif stride == 2:
        assert Wp % 2 == 0
        # Fold column parity into the row axis so every (kh, kw) tap is a unit-stride window:
        # x_in[n, 2*r + p, q, c] == x_padded[n, r, 2*q + p, c]
        x_in = jnp.transpose(x.reshape(N, Hp, Wp // 2, 2, cin), (0, 1, 3, 2, 4))
        x_in = x_in.reshape(N, 2 * Hp, Wp // 2, cin)
        x_block = (1, 2, Wp // 2, cin)
    else:
        raise NotImplementedError("stride must be 1 or 2")

    pre_affine = pre_scale is not None
    if pre_scale is None:
        pre_scale = jnp.ones((cin,), jnp.float32)
        pre_shift = jnp.zeros((cin,), jnp.float32)
    if post_scale is None:
        post_scale = jnp.ones((cout,), jnp.float32)
        post_shift = jnp.zeros((cout,), jnp.float32)

    TN = min(cout, 512)
    assert cout % TN == 0

    kernel = functools.partial(
        _fused_conv_kernel,
        n_kh=KH, n_kw=KW, stride=stride, cin=cin, wo=Wo,
        pre_affine=pre_affine, pre_relu=pre_relu, post_relu=post_relu,
        has_residual=residual is not None)

    in_specs = [
        pl.BlockSpec(x_block, lambda n, h, j, k: (n, stride * h + k, 0, 0)),
        pl.BlockSpec((1, KW, cin, TN), lambda n, h, j, k: (k, 0, 0, j)),
        pl.BlockSpec((1, cin), lambda n, h, j, k: (0, 0)),
        pl.BlockSpec((1, cin), lambda n, h, j, k: (0, 0)),
        pl.BlockSpec((1, TN), lambda n, h, j, k: (0, j)),
        pl.BlockSpec((1, TN), lambda n, h, j, k: (0, j)),
    ]
    args = [x_in, w,
            pre_scale.reshape(1, cin).astype(jnp.float32),
            pre_shift.reshape(1, cin).astype(jnp.float32),
            post_scale.reshape(1, cout).astype(jnp.float32),
            post_shift.reshape(1, cout).astype(jnp.float32)]
    if residual is not None:
        in_specs.append(pl.BlockSpec((1, 1, Wo, TN), lambda n, h, j, k: (n, h, 0, j)))
        args.append(residual)

    return pl.pallas_call(
        kernel,
        out_shape=jax.ShapeDtypeStruct((N, Ho, Wo, cout), jnp.float32),
        grid=(N, Ho, cout // TN, KH),
        in_specs=in_specs,
        out_specs=pl.BlockSpec((1, 1, Wo, TN), lambda n, h, j, k: (n, h, 0, j)),
        scratch_shapes=[pltpu.VMEM((Wo, TN), jnp.float32)],
        compiler_params=pltpu.CompilerParams(
            dimension_semantics=("parallel", "parallel", "parallel", "arbitrary")),
    )(*args)


# ----------------------------------------------------------------------------- fused avgpool + fc

def _pool_fc_kernel(x_ref, w_ref, b_ref, o_ref, *, inv_hw):
    pooled = jnp.sum(x_ref[...], axis=1) * inv_hw                    # (N, C)
    o_ref[...] = (jnp.dot(pooled, w_ref[...], preferred_element_type=jnp.float32)
                  + b_ref[...]).astype(o_ref.dtype)


def pallas_pool_fc(x_nhwc, w_io, bias):
    """AdaptiveAvgPool2d(1) + Linear(512, 512), fused in a single kernel."""
    N, H, W, C = x_nhwc.shape
    cout = w_io.shape[1]
    x3 = x_nhwc.reshape(N, H * W, C)
    return pl.pallas_call(
        functools.partial(_pool_fc_kernel, inv_hw=1.0 / float(H * W)),
        out_shape=jax.ShapeDtypeStruct((N, cout), jnp.float32),
        grid=(1,),
        in_specs=[
            pl.BlockSpec((N, H * W, C), lambda i: (0, 0, 0)),
            pl.BlockSpec((C, cout), lambda i: (0, 0)),
            pl.BlockSpec((1, cout), lambda i: (0, 0)),
        ],
        out_specs=pl.BlockSpec((N, cout), lambda i: (0, 0)),
    )(x3, w_io, bias.reshape(1, cout))


# ----------------------------------------------------------------------------- parameters

def _kaiming_conv(key, kh, kw, cin, cout):
    fan_out = cout * kh * kw
    std = math.sqrt(2.0 / fan_out)
    # stored pre-arranged as (KH, KW, Cin, Cout) and in bf16 (MXU operand dtype)
    return (jax.random.normal(key, (kh, kw, cin, cout), jnp.float32) * std).astype(jnp.bfloat16)


def _bn_scale_shift(c):
    # inference-mode BN with freshly initialized stats: gamma=1, beta=0, mean=0, var=1
    scale = jnp.full((c,), 1.0 / math.sqrt(1.0 + _BN_EPS), jnp.float32)
    shift = jnp.zeros((c,), jnp.float32)
    return scale, shift


def make_resnet_params(key):
    keys = iter(jax.random.split(key, 4 * len(BLOCK_CFGS) + 4))
    params = {"conv1_w": _kaiming_conv(next(keys), 3, 3, 1, 64)}
    blocks = []
    for (cin, cout, stride, has_ds) in BLOCK_CFGS:
        p = {}
        p["bn1_s"], p["bn1_b"] = _bn_scale_shift(cin)
        p["conv1_w"] = _kaiming_conv(next(keys), 3, 3, cin, cout)
        p["bn2_s"], p["bn2_b"] = _bn_scale_shift(cout)
        p["conv2_w"] = _kaiming_conv(next(keys), 3, 3, cout, cout)
        if has_ds:
            p["ds_w"] = _kaiming_conv(next(keys), 1, 1, cin, cout)
            p["ds_bn_s"], p["ds_bn_b"] = _bn_scale_shift(cout)
        blocks.append(p)
    params["blocks"] = blocks
    bound = 1.0 / math.sqrt(512.0)
    # fc5 weight stored pre-transposed as (in, out): no per-forward transpose needed.
    params["fc5_w"] = jax.random.uniform(next(keys), (512, 512), jnp.float32, -bound, bound)
    params["fc5_b"] = jax.random.uniform(next(keys), (512,), jnp.float32, -bound, bound)
    return params


# ----------------------------------------------------------------------------- model forward

@jax.jit
def resnet_forward(params, x_nchw):
    x = jnp.transpose(x_nchw, (0, 2, 3, 1)).astype(jnp.float32)      # NCHW -> NHWC

    # conv1 + ReLU (ReLU fused into the conv epilogue)
    x = fused_conv(x, params["conv1_w"], stride=1, padding=1, post_relu=True)

    for p, (_cin, _cout, stride, has_ds) in zip(params["blocks"], BLOCK_CFGS):
        # u = relu(bn2(conv3x3_s(relu(bn1(x)))))  -- one fused kernel (prologue + epilogue)
        u = fused_conv(x, p["conv1_w"], stride=stride, padding=1,
                       pre_scale=p["bn1_s"], pre_shift=p["bn1_b"], pre_relu=True,
                       post_scale=p["bn2_s"], post_shift=p["bn2_b"], post_relu=True)
        # residual branch: downsample(x) = BN(conv1x1_s(x)), BN fused into the epilogue
        if has_ds:
            res = fused_conv(x, p["ds_w"], stride=stride, padding=0,
                             post_scale=p["ds_bn_s"], post_shift=p["ds_bn_b"],
                             post_relu=False)
        else:
            res = x
        # conv3x3_s1(u) + residual  -- residual add fused into the matmul epilogue
        x = fused_conv(u, p["conv2_w"], stride=1, padding=1, residual=res)

    # avgpool + fc5 fused
    return pallas_pool_fc(x, params["fc5_w"], params["fc5_b"])


# ----------------------------------------------------------------------------- main

if __name__ == "__main__":
    key = jax.random.PRNGKey(0)
    pkey, xkey = jax.random.split(key)

    # ResNet(block=PreActBasicBlock, layers=[1,1,1,1]); conv1 expects 1 input channel.
    params = make_resnet_params(pkey)

    # small input: batch=2, channels=1 (as required by conv1), spatial=16x16
    x = jax.random.normal(xkey, (2, 1, 16, 16), jnp.float32)

    out = resnet_forward(params, x)
    out = jax.block_until_ready(out)
    assert out.shape == (2, 512)
    assert bool(jnp.all(jnp.isfinite(out)))
    print("KERNEL_OK")
</pallas_src>

<mosaic_0001>
module attributes {stable_mosaic.version = 11 : i64} {
  func.func @_fused_conv_kernel(%arg0: i32, %arg1: i32, %arg2: i32, %arg3: i32, %arg4: memref<1x1x18x1xf32, #tpu.memory_space<vmem>>, %arg5: memref<1x3x1x64xbf16, #tpu.memory_space<vmem>>, %arg6: memref<1x1xf32, #tpu.memory_space<vmem>>, %arg7: memref<1x1xf32, #tpu.memory_space<vmem>>, %arg8: memref<1x64xf32, #tpu.memory_space<vmem>>, %arg9: memref<1x64xf32, #tpu.memory_space<vmem>>, %arg10: memref<1x1x16x64xf32, #tpu.memory_space<vmem>>, %arg11: memref<16x64xf32, #tpu.memory_space<vmem>>) attributes {dimension_semantics = [#tpu.dimension_semantics<parallel>, #tpu.dimension_semantics<parallel>, #tpu.dimension_semantics<parallel>, #tpu.dimension_semantics<arbitrary>], iteration_bounds = array<i64: 2, 16, 1, 3>, scalar_prefetch = 0 : i64, scratch_operands = 1 : i64, tpu.core_type = #tpu.core_type<tc>, window_params = [{transform_indices = @transform_0, window_bounds = array<i64: 1, 1, 18, 1>}, {transform_indices = @transform_1, window_bounds = array<i64: 1, 3, 1, 64>}, {pipeline_mode = #tpu.pipeline_mode<synchronous>, transform_indices = @transform_2, window_bounds = array<i64: 1, 1>}, {pipeline_mode = #tpu.pipeline_mode<synchronous>, transform_indices = @transform_3, window_bounds = array<i64: 1, 1>}, {transform_indices = @transform_4, window_bounds = array<i64: 1, 64>}, {transform_indices = @transform_5, window_bounds = array<i64: 1, 64>}, {transform_indices = @transform_6, window_bounds = array<i64: 1, 1, 16, 64>}]} {
    %c0_i32 = arith.constant 0 : i32
    %0 = arith.cmpi eq, %arg3, %c0_i32 : i32
    %1 = arith.extui %0 : i1 to i32
    %c0_i32_0 = arith.constant 0 : i32
    %2 = arith.cmpi ne, %1, %c0_i32_0 : i32
    scf.if %2 {
      %cst = arith.constant 0.000000e+00 : f32
      %38 = vector.broadcast %cst : f32 to vector<16x64xf32>
      %c0_27 = arith.constant 0 : index
      %c0_28 = arith.constant 0 : index
      %39 = vector.load %arg11[%c0_27, %c0_28] : memref<16x64xf32, #tpu.memory_space<vmem>>, vector<16x64xf32>
      tpu.vector_store %arg11[%c0_27, %c0_28], %38 {strides = array<i32>} : memref<16x64xf32, #tpu.memory_space<vmem>>, vector<16x64xf32>,
    } else {
    }
    %c0 = arith.constant 0 : index
    %c0_1 = arith.constant 0 : index
    %c0_2 = arith.constant 0 : index
    %c0_3 = arith.constant 0 : index
    %3 = vector.load %arg4[%c0, %c0_1, %c0_2, %c0_3] : memref<1x1x18x1xf32, #tpu.memory_space<vmem>>, vector<1x1x18x1xf32>
    %4 = vector.shape_cast %3 : vector<1x1x18x1xf32> to vector<18x1xf32>
    %5 = vector.extract_strided_slice %4 {offsets = [0, 0], sizes = [16, 1], strides = [1, 1]} : vector<18x1xf32> to vector<16x1xf32>
    %c0_4 = arith.constant 0 : index
    %c0_5 = arith.constant 0 : index
    %c0_6 = arith.constant 0 : index
    %c0_7 = arith.constant 0 : index
    %6 = vector.load %arg5[%c0_4, %c0_5, %c0_6, %c0_7] : memref<1x3x1x64xbf16, #tpu.memory_space<vmem>>, vector<1x1x1x64xbf16>
    %7 = vector.shape_cast %6 : vector<1x1x1x64xbf16> to vector<1x64xbf16>
    %c0_8 = arith.constant 0 : index
    %c0_9 = arith.constant 0 : index
    %8 = vector.load %arg11[%c0_8, %c0_9] : memref<16x64xf32, #tpu.memory_space<vmem>>, vector<16x64xf32>
    %9 = arith.extf %7 : vector<1x64xbf16> to vector<1x64xf32>
    %10 = vector.broadcast %5 : vector<16x1xf32> to vector<16x64xf32>
    %11 = vector.broadcast %9 : vector<1x64xf32> to vector<16x64xf32>
    %12 = arith.mulf %10, %11 : vector<16x64xf32>
    %13 = arith.addf %8, %12 : vector<16x64xf32>
    %c0_10 = arith.constant 0 : index
    %c0_11 = arith.constant 0 : index
    %14 = vector.load %arg11[%c0_10, %c0_11] : memref<16x64xf32, #tpu.memory_space<vmem>>, vector<16x64xf32>
    tpu.vector_store %arg11[%c0_10, %c0_11], %13 {strides = array<i32>} : memref<16x64xf32, #tpu.memory_space<vmem>>, vector<16x64xf32>,
    %15 = vector.extract_strided_slice %4 {offsets = [1, 0], sizes = [16, 1], strides = [1, 1]} : vector<18x1xf32> to vector<16x1xf32>
    %c0_12 = arith.constant 0 : index
    %c1 = arith.constant 1 : index
    %c0_13 = arith.constant 0 : index
    %c0_14 = arith.constant 0 : index
    %16 = vector.load %arg5[%c0_12, %c1, %c0_13, %c0_14] : memref<1x3x1x64xbf16, #tpu.memory_space<vmem>>, vector<1x1x1x64xbf16>
    %17 = vector.shape_cast %16 : vector<1x1x1x64xbf16> to vector<1x64xbf16>
    %c0_15 = arith.constant 0 : index
    %c0_16 = arith.constant 0 : index
    %18 = vector.load %arg11[%c0_15, %c0_16] : memref<16x64xf32, #tpu.memory_space<vmem>>, vector<16x64xf32>
    %19 = arith.extf %17 : vector<1x64xbf16> to vector<1x64xf32>
    %20 = vector.broadcast %15 : vector<16x1xf32> to vector<16x64xf32>
    %21 = vector.broadcast %19 : vector<1x64xf32> to vector<16x64xf32>
    %22 = arith.mulf %20, %21 : vector<16x64xf32>
    %23 = arith.addf %18, %22 : vector<16x64xf32>
    %c0_17 = arith.constant 0 : index
    %c0_18 = arith.constant 0 : index
    %24 = vector.load %arg11[%c0_17, %c0_18] : memref<16x64xf32, #tpu.memory_space<vmem>>, vector<16x64xf32>
    tpu.vector_store %arg11[%c0_17, %c0_18], %23 {strides = array<i32>} : memref<16x64xf32, #tpu.memory_space<vmem>>, vector<16x64xf32>,
    %25 = vector.extract_strided_slice %4 {offsets = [2, 0], sizes = [16, 1], strides = [1, 1]} : vector<18x1xf32> to vector<16x1xf32>
    %c0_19 = arith.constant 0 : index
    %c2 = arith.constant 2 : index
    %c0_20 = arith.constant 0 : index
    %c0_21 = arith.constant 0 : index
    %26 = vector.load %arg5[%c0_19, %c2, %c0_20, %c0_21] : memref<1x3x1x64xbf16, #tpu.memory_space<vmem>>, vector<1x1x1x64xbf16>
    %27 = vector.shape_cast %26 : vector<1x1x1x64xbf16> to vector<1x64xbf16>
    %c0_22 = arith.constant 0 : index
    %c0_23 = arith.constant 0 : index
    %28 = vector.load %arg11[%c0_22, %c0_23] : memref<16x64xf32, #tpu.memory_space<vmem>>, vector<16x64xf32>
    %29 = arith.extf %27 : vector<1x64xbf16> to vector<1x64xf32>
    %30 = vector.broadcast %25 : vector<16x1xf32> to vector<16x64xf32>
    %31 = vector.broadcast %29 : vector<1x64xf32> to vector<16x64xf32>
    %32 = arith.mulf %30, %31 : vector<16x64xf32>
    %33 = arith.addf %28, %32 : vector<16x64xf32>
    %c0_24 = arith.constant 0 : index
    %c0_25 = arith.constant 0 : index
    %34 = vector.load %arg11[%c0_24, %c0_25] : memref<16x64xf32, #tpu.memory_space<vmem>>, vector<16x64xf32>
    tpu.vector_store %arg11[%c0_24, %c0_25], %33 {strides = array<i32>} : memref<16x64xf32, #tpu.memory_space<vmem>>, vector<16x64xf32>,
    %c2_i32 = arith.constant 2 : i32
    %35 = arith.cmpi eq, %arg3, %c2_i32 : i32
    %36 = arith.extui %35 : i1 to i32
    %c0_i32_26 = arith.constant 0 : i32
    %37 = arith.cmpi ne, %36, %c0_i32_26 : i32
    scf.if %37 {
      %c0_27 = arith.constant 0 : index
      %c0_28 = arith.constant 0 : index
      %38 = vector.load %arg11[%c0_27, %c0_28] : memref<16x64xf32, #tpu.memory_space<vmem>>, vector<16x64xf32>
      %c0_29 = arith.constant 0 : index
      %c0_30 = arith.constant 0 : index
      %39 = vector.load %arg8[%c0_29, %c0_30] : memref<1x64xf32, #tpu.memory_space<vmem>>, vector<1x64xf32>
      %40 = vector.broadcast %39 : vector<1x64xf32> to vector<16x64xf32>
      %41 = arith.mulf %38, %40 : vector<16x64xf32>
      %c0_31 = arith.constant 0 : index
      %c0_32 = arith.constant 0 : index
      %42 = vector.load %arg9[%c0_31, %c0_32] : memref<1x64xf32, #tpu.memory_space<vmem>>, vector<1x64xf32>
      %43 = vector.broadcast %42 : vector<1x64xf32> to vector<16x64xf32>
      %44 = arith.addf %41, %43 : vector<16x64xf32>
      %cst = arith.constant 0.000000e+00 : f32
      %45 = vector.broadcast %cst : f32 to vector<16x64xf32>
      %46 = arith.maximumf %44, %45 : vector<16x64xf32>
      %c0_33 = arith.constant 0 : index
      %c0_34 = arith.constant 0 : index
      %c0_35 = arith.constant 0 : index
      %c0_36 = arith.constant 0 : index
      %47 = vector.load %arg10[%c0_33, %c0_34, %c0_35, %c0_36] : memref<1x1x16x64xf32, #tpu.memory_space<vmem>>, vector<1x1x16x64xf32>
      %48 = vector.shape_cast %47 : vector<1x1x16x64xf32> to vector<16x64xf32>
      %49 = vector.shape_cast %46 : vector<16x64xf32> to vector<1x1x16x64xf32>
      tpu.vector_store %arg10[%c0_33, %c0_34, %c0_35, %c0_36], %49 {strides = array<i32>} : memref<1x1x16x64xf32, #tpu.memory_space<vmem>>, vector<1x1x16x64xf32>,
    } else {
    }
    return
  }
  func.func @transform_0(%arg0: i32, %arg1: i32, %arg2: i32, %arg3: i32) -> (i32, i32, i32, i32) {
    %c1_i32 = arith.constant 1 : i32
    %0 = arith.muli %c1_i32, %arg1 : i32
    %1 = arith.addi %0, %arg3 : i32
    %c0_i32 = arith.constant 0 : i32
    %c0_i32_0 = arith.constant 0 : i32
    %c0_i32_1 = arith.constant 0 : i32
    return %arg0, %1, %c0_i32, %c0_i32_0 : i32, i32, i32, i32
  }
  func.func @transform_1(%arg0: i32, %arg1: i32, %arg2: i32, %arg3: i32) -> (i32, i32, i32, i32) {
    %c0_i32 = arith.constant 0 : i32
    %c0_i32_0 = arith.constant 0 : i32
    %c0_i32_1 = arith.constant 0 : i32
    return %arg3, %c0_i32, %c0_i32_0, %arg2 : i32, i32, i32, i32
  }
  func.func @transform_2(%arg0: i32, %arg1: i32, %arg2: i32, %arg3: i32) -> (i32, i32) {
    %c0_i32 = arith.constant 0 : i32
    %c0_i32_0 = arith.constant 0 : i32
    %c0_i32_1 = arith.constant 0 : i32
    return %c0_i32, %c0_i32_0 : i32, i32
  }
  func.func @transform_3(%arg0: i32, %arg1: i32, %arg2: i32, %arg3: i32) -> (i32, i32) {
    %c0_i32 = arith.constant 0 : i32
    %c0_i32_0 = arith.constant 0 : i32
    %c0_i32_1 = arith.constant 0 : i32
    return %c0_i32, %c0_i32_0 : i32, i32
  }
  func.func @transform_4(%arg0: i32, %arg1: i32, %arg2: i32, %arg3: i32) -> (i32, i32) {
    %c0_i32 = arith.constant 0 : i32
    %c0_i32_0 = arith.constant 0 : i32
    return %c0_i32, %arg2 : i32, i32
  }
  func.func @transform_5(%arg0: i32, %arg1: i32, %arg2: i32, %arg3: i32) -> (i32, i32) {
    %c0_i32 = arith.constant 0 : i32
    %c0_i32_0 = arith.constant 0 : i32
    return %c0_i32, %arg2 : i32, i32
  }
  func.func @transform_6(%arg0: i32, %arg1: i32, %arg2: i32, %arg3: i32) -> (i32, i32, i32, i32) {
    %c0_i32 = arith.constant 0 : i32
    %c0_i32_0 = arith.constant 0 : i32
    return %arg0, %arg1, %c0_i32, %arg2 : i32, i32, i32, i32
  }
}

module attributes {stable_mosaic.version = 11 : i64} {
  func.func @_fused_conv_kernel(%arg0: i32, %arg1: i32, %arg2: i32, %arg3: i32, %arg4: memref<1x2x8x64xf32, #tpu.memory_space<vmem>>, %arg5: memref<1x1x64x64xbf16, #tpu.memory_space<vmem>>, %arg6: memref<1x64xf32, #tpu.memory_space<vmem>>, %arg7: memref<1x64xf32, #tpu.memory_space<vmem>>, %arg8: memref<1x64xf32, #tpu.memory_space<vmem>>, %arg9: memref<1x64xf32, #tpu.memory_space<vmem>>, %arg10: memref<1x1x8x64xf32, #tpu.memory_space<vmem>>, %arg11: memref<8x64xf32, #tpu.memory_space<vmem>>) attributes {dimension_semantics = [#tpu.dimension_semantics<parallel>, #tpu.dimension_semantics<parallel>, #tpu.dimension_semantics<parallel>, #tpu.dimension_semantics<arbitrary>], iteration_bounds = array<i64: 2, 8, 1, 1>, scalar_prefetch = 0 : i64, scratch_operands = 1 : i64, tpu.core_type = #tpu.core_type<tc>, window_params = [{transform_indices = @transform_0, window_bounds = array<i64: 1, 2, 8, 64>}, {transform_indices = @transform_1, window_bounds = array<i64: 1, 1, 64, 64>}, {pipeline_mode = #tpu.pipeline_mode<synchronous>, transform_indices = @transform_2, window_bounds = array<i64: 1, 64>}, {pipeline_mode = #tpu.pipeline_mode<synchronous>, transform_indices = @transform_3, window_bounds = array<i64: 1, 64>}, {transform_indices = @transform_4, window_bounds = array<i64: 1, 64>}, {transform_indices = @transform_5, window_bounds = array<i64: 1, 64>}, {transform_indices = @transform_6, window_bounds = array<i64: 1, 1, 8, 64>}]} {
    %c0_i32 = arith.constant 0 : i32
    %0 = arith.cmpi eq, %arg3, %c0_i32 : i32
    %1 = arith.extui %0 : i1 to i32
    %c0_i32_0 = arith.constant 0 : i32
    %2 = arith.cmpi ne, %1, %c0_i32_0 : i32
    scf.if %2 {
      %cst_14 = arith.constant 0.000000e+00 : f32
      %17 = vector.broadcast %cst_14 : f32 to vector<8x64xf32>
      %c0_15 = arith.constant 0 : index
      %c0_16 = arith.constant 0 : index
      %18 = vector.load %arg11[%c0_15, %c0_16] : memref<8x64xf32, #tpu.memory_space<vmem>>, vector<8x64xf32>
      tpu.vector_store %arg11[%c0_15, %c0_16], %17 {strides = array<i32>} : memref<8x64xf32, #tpu.memory_space<vmem>>, vector<8x64xf32>,
    } else {
    }
    %c0 = arith.constant 0 : index
    %c0_1 = arith.constant 0 : index
    %c0_2 = arith.constant 0 : index
    %c0_3 = arith.constant 0 : index
    %3 = vector.load %arg4[%c0, %c0_1, %c0_2, %c0_3] : memref<1x2x8x64xf32, #tpu.memory_space<vmem>>, vector<1x2x8x64xf32>
    %4 = vector.shape_cast %3 : vector<1x2x8x64xf32> to vector<2x8x64xf32>
    %5 = vector.extract_strided_slice %4 {offsets = [0, 0, 0], sizes = [1, 8, 64], strides = [1, 1, 1]} : vector<2x8x64xf32> to vector<1x8x64xf32>
    %6 = vector.shape_cast %5 : vector<1x8x64xf32> to vector<8x64xf32>
    %c0_4 = arith.constant 0 : index
    %c0_5 = arith.constant 0 : index
    %c0_6 = arith.constant 0 : index
    %c0_7 = arith.constant 0 : index
    %7 = vector.load %arg5[%c0_4, %c0_5, %c0_6, %c0_7] : memref<1x1x64x64xbf16, #tpu.memory_space<vmem>>, vector<1x1x64x64xbf16>
    %8 = vector.shape_cast %7 : vector<1x1x64x64xbf16> to vector<64x64xbf16>
    %c0_8 = arith.constant 0 : index
    %c0_9 = arith.constant 0 : index
    %9 = vector.load %arg11[%c0_8, %c0_9] : memref<8x64xf32, #tpu.memory_space<vmem>>, vector<8x64xf32>
    %10 = arith.truncf %6 : vector<8x64xf32> to vector<8x64xbf16>
    %cst = arith.constant dense<0.000000e+00> : vector<8x64xf32>
    %11 = tpu.matmul %10, %8, %cst {dimension_numbers = #tpu.dot_dimension_numbers<[1], [0], [0], [1], [0, 0, 1, 1], [], []>} : vector<8x64xbf16>, vector<64x64xbf16>, vector<8x64xf32> -> vector<8x64xf32>
    %12 = arith.addf %9, %11 : vector<8x64xf32>
    %c0_10 = arith.constant 0 : index
    %c0_11 = arith.constant 0 : index
    %13 = vector.load %arg11[%c0_10, %c0_11] : memref<8x64xf32, #tpu.memory_space<vmem>>, vector<8x64xf32>
    tpu.vector_store %arg11[%c0_10, %c0_11], %12 {strides = array<i32>} : memref<8x64xf32, #tpu.memory_space<vmem>>, vector<8x64xf32>,
    %c0_i32_12 = arith.constant 0 : i32
    %14 = arith.cmpi eq, %arg3, %c0_i32_12 : i32
    %15 = arith.extui %14 : i1 to i32
    %c0_i32_13 = arith.constant 0 : i32
    %16 = arith.cmpi ne, %15, %c0_i32_13 : i32
    scf.if %16 {
      %c0_14 = arith.constant 0 : index
      %c0_15 = arith.constant 0 : index
      %17 = vector.load %arg11[%c0_14, %c0_15] : memref<8x64xf32, #tpu.memory_space<vmem>>, vector<8x64xf32>
      %c0_16 = arith.constant 0 : index
      %c0_17 = arith.constant 0 : index
      %18 = vector.load %arg8[%c0_16, %c0_17] : memref<1x64xf32, #tpu.memory_space<vmem>>, vector<1x64xf32>
      %19 = vector.broadcast %18 : vector<1x64xf32> to vector<8x64xf32>
      %20 = arith.mulf %17, %19 : vector<8x64xf32>
      %c0_18 = arith.constant 0 : index
      %c0_19 = arith.constant 0 : index
      %21 = vector.load %arg9[%c0_18, %c0_19] : memref<1x64xf32, #tpu.memory_space<vmem>>, vector<1x64xf32>
      %22 = vector.broadcast %21 : vector<1x64xf32> to vector<8x64xf32>
      %23 = arith.addf %20, %22 : vector<8x64xf32>
      %c0_20 = arith.constant 0 : index
      %c0_21 = arith.constant 0 : index
      %c0_22 = arith.constant 0 : index
      %c0_23 = arith.constant 0 : index
      %24 = vector.load %arg10[%c0_20, %c0_21, %c0_22, %c0_23] : memref<1x1x8x64xf32, #tpu.memory_space<vmem>>, vector<1x1x8x64xf32>
      %25 = vector.shape_cast %24 : vector<1x1x8x64xf32> to vector<8x64xf32>
      %26 = vector.shape_cast %23 : vector<8x64xf32> to vector<1x1x8x64xf32>
      tpu.vector_store %arg10[%c0_20, %c0_21, %c0_22, %c0_23], %26 {strides = array<i32>} : memref<1x1x8x64xf32, #tpu.memory_space<vmem>>, vector<1x1x8x64xf32>,
    } else {
    }
    return
  }
  func.func @transform_0(%arg0: i32, %arg1: i32, %arg2: i32, %arg3: i32) -> (i32, i32, i32, i32) {
    %c2_i32 = arith.constant 2 : i32
    %0 = arith.muli %c2_i32, %arg1 : i32
    %1 = arith.addi %0, %arg3 : i32
    %c0_i32 = arith.constant 0 : i32
    %c0_i32_0 = arith.constant 0 : i32
    %c0_i32_1 = arith.constant 0 : i32
    return %arg0, %1, %c0_i32, %c0_i32_0 : i32, i32, i32, i32
  }
  func.func @transform_1(%arg0: i32, %arg1: i32, %arg2: i32, %arg3: i32) -> (i32, i32, i32, i32) {
    %c0_i32 = arith.constant 0 : i32
    %c0_i32_0 = arith.constant 0 : i32
    %c0_i32_1 = arith.constant 0 : i32
    return %arg3, %c0_i32, %c0_i32_0, %arg2 : i32, i32, i32, i32
  }
  func.func @transform_2(%arg0: i32, %arg1: i32, %arg2: i32, %arg3: i32) -> (i32, i32) {
    %c0_i32 = arith.constant 0 : i32
    %c0_i32_0 = arith.constant 0 : i32
    %c0_i32_1 = arith.constant 0 : i32
    return %c0_i32, %c0_i32_0 : i32, i32
  }
  func.func @transform_3(%arg0: i32, %arg1: i32, %arg2: i32, %arg3: i32) -> (i32, i32) {
    %c0_i32 = arith.constant 0 : i32
    %c0_i32_0 = arith.constant 0 : i32
    %c0_i32_1 = arith.constant 0 : i32
    return %c0_i32, %c0_i32_0 : i32, i32
  }
  func.func @transform_4(%arg0: i32, %arg1: i32, %arg2: i32, %arg3: i32) -> (i32, i32) {
    %c0_i32 = arith.constant 0 : i32
    %c0_i32_0 = arith.constant 0 : i32
    return %c0_i32, %arg2 : i32, i32
  }
  func.func @transform_5(%arg0: i32, %arg1: i32, %arg2: i32, %arg3: i32) -> (i32, i32) {
    %c0_i32 = arith.constant 0 : i32
    %c0_i32_0 = arith.constant 0 : i32
    return %c0_i32, %arg2 : i32, i32
  }
  func.func @transform_6(%arg0: i32, %arg1: i32, %arg2: i32, %arg3: i32) -> (i32, i32, i32, i32) {
    %c0_i32 = arith.constant 0 : i32
    %c0_i32_0 = arith.constant 0 : i32
    return %arg0, %arg1, %c0_i32, %arg2 : i32, i32, i32, i32
  }
}

module attributes {stable_mosaic.version = 11 : i64} {
  func.func @_fused_conv_kernel(%arg0: i32, %arg1: i32, %arg2: i32, %arg3: i32, %arg4: memref<1x1x10x64xf32, #tpu.memory_space<vmem>>, %arg5: memref<1x3x64x64xbf16, #tpu.memory_space<vmem>>, %arg6: memref<1x64xf32, #tpu.memory_space<vmem>>, %arg7: memref<1x64xf32, #tpu.memory_space<vmem>>, %arg8: memref<1x64xf32, #tpu.memory_space<vmem>>, %arg9: memref<1x64xf32, #tpu.memory_space<vmem>>, %arg10: memref<1x1x8x64xf32, #tpu.memory_space<vmem>>, %arg11: memref<1x1x8x64xf32, #tpu.memory_space<vmem>>, %arg12: memref<8x64xf32, #tpu.memory_space<vmem>>) attributes {dimension_semantics = [#tpu.dimension_semantics<parallel>, #tpu.dimension_semantics<parallel>, #tpu.dimension_semantics<parallel>, #tpu.dimension_semantics<arbitrary>], iteration_bounds = array<i64: 2, 8, 1, 3>, scalar_prefetch = 0 : i64, scratch_operands = 1 : i64, tpu.core_type = #tpu.core_type<tc>, window_params = [{transform_indices = @transform_0, window_bounds = array<i64: 1, 1, 10, 64>}, {transform_indices = @transform_1, window_bounds = array<i64: 1, 3, 64, 64>}, {pipeline_mode = #tpu.pipeline_mode<synchronous>, transform_indices = @transform_2, window_bounds = array<i64: 1, 64>}, {pipeline_mode = #tpu.pipeline_mode<synchronous>, transform_indices = @transform_3, window_bounds = array<i64: 1, 64>}, {transform_indices = @transform_4, window_bounds = array<i64: 1, 64>}, {transform_indices = @transform_5, window_bounds = array<i64: 1, 64>}, {transform_indices = @transform_6, window_bounds = array<i64: 1, 1, 8, 64>}, {transform_indices = @transform_7, window_bounds = array<i64: 1, 1, 8, 64>}]} {
    %c0_i32 = arith.constant 0 : i32
    %0 = arith.cmpi eq, %arg3, %c0_i32 : i32
    %1 = arith.extui %0 : i1 to i32
    %c0_i32_0 = arith.constant 0 : i32
    %2 = arith.cmpi ne, %1, %c0_i32_0 : i32
    scf.if %2 {
      %cst_29 = arith.constant 0.000000e+00 : f32
      %32 = vector.broadcast %cst_29 : f32 to vector<8x64xf32>
      %c0_30 = arith.constant 0 : index
      %c0_31 = arith.constant 0 : index
      %33 = vector.load %arg12[%c0_30, %c0_31] : memref<8x64xf32, #tpu.memory_space<vmem>>, vector<8x64xf32>
      tpu.vector_store %arg12[%c0_30, %c0_31], %32 {strides = array<i32>} : memref<8x64xf32, #tpu.memory_space<vmem>>, vector<8x64xf32>,
    } else {
    }
    %c0 = arith.constant 0 : index
    %c0_1 = arith.constant 0 : index
    %c0_2 = arith.constant 0 : index
    %c0_3 = arith.constant 0 : index
    %3 = vector.load %arg4[%c0, %c0_1, %c0_2, %c0_3] : memref<1x1x10x64xf32, #tpu.memory_space<vmem>>, vector<1x1x10x64xf32>
    %4 = vector.shape_cast %3 : vector<1x1x10x64xf32> to vector<10x64xf32>
    %5 = vector.extract_strided_slice %4 {offsets = [0, 0], sizes = [8, 64], strides = [1, 1]} : vector<10x64xf32> to vector<8x64xf32>
    %c0_4 = arith.constant 0 : index
    %c0_5 = arith.constant 0 : index
    %c0_6 = arith.constant 0 : index
    %c0_7 = arith.constant 0 : index
    %6 = vector.load %arg5[%c0_4, %c0_5, %c0_6, %c0_7] : memref<1x3x64x64xbf16, #tpu.memory_space<vmem>>, vector<1x1x64x64xbf16>
    %7 = vector.shape_cast %6 : vector<1x1x64x64xbf16> to vector<64x64xbf16>
    %c0_8 = arith.constant 0 : index
    %c0_9 = arith.constant 0 : index
    %8 = vector.load %arg12[%c0_8, %c0_9] : memref<8x64xf32, #tpu.memory_space<vmem>>, vector<8x64xf32>
    %9 = arith.truncf %5 : vector<8x64xf32> to vector<8x64xbf16>
    %cst = arith.constant dense<0.000000e+00> : vector<8x64xf32>
    %10 = tpu.matmul %9, %7, %cst {dimension_numbers = #tpu.dot_dimension_numbers<[1], [0], [0], [1], [0, 0, 1, 1], [], []>} : vector<8x64xbf16>, vector<64x64xbf16>, vector<8x64xf32> -> vector<8x64xf32>
    %11 = arith.addf %8, %10 : vector<8x64xf32>
    %c0_10 = arith.constant 0 : index
    %c0_11 = arith.constant 0 : index
    %12 = vector.load %arg12[%c0_10, %c0_11] : memref<8x64xf32, #tpu.memory_space<vmem>>, vector<8x64xf32>
    tpu.vector_store %arg12[%c0_10, %c0_11], %11 {strides = array<i32>} : memref<8x64xf32, #tpu.memory_space<vmem>>, vector<8x64xf32>,
    %13 = vector.extract_strided_slice %4 {offsets = [1, 0], sizes = [8, 64], strides = [1, 1]} : vector<10x64xf32> to vector<8x64xf32>
    %c0_12 = arith.constant 0 : index
    %c1 = arith.constant 1 : index
    %c0_13 = arith.constant 0 : index
    %c0_14 = arith.constant 0 : index
    %14 = vector.load %arg5[%c0_12, %c1, %c0_13, %c0_14] : memref<1x3x64x64xbf16, #tpu.memory_space<vmem>>, vector<1x1x64x64xbf16>
    %15 = vector.shape_cast %14 : vector<1x1x64x64xbf16> to vector<64x64xbf16>
    %c0_15 = arith.constant 0 : index
    %c0_16 = arith.constant 0 : index
    %16 = vector.load %arg12[%c0_15, %c0_16] : memref<8x64xf32, #tpu.memory_space<vmem>>, vector<8x64xf32>
    %17 = arith.truncf %13 : vector<8x64xf32> to vector<8x64xbf16>
    %cst_17 = arith.constant dense<0.000000e+00> : vector<8x64xf32>
    %18 = tpu.matmul %17, %15, %cst_17 {dimension_numbers = #tpu.dot_dimension_numbers<[1], [0], [0], [1], [0, 0, 1, 1], [], []>} : vector<8x64xbf16>, vector<64x64xbf16>, vector<8x64xf32> -> vector<8x64xf32>
    %19 = arith.addf %16, %18 : vector<8x64xf32>
    %c0_18 = arith.constant 0 : index
    %c0_19 = arith.constant 0 : index
    %20 = vector.load %arg12[%c0_18, %c0_19] : memref<8x64xf32, #tpu.memory_space<vmem>>, vector<8x64xf32>
    tpu.vector_store %arg12[%c0_18, %c0_19], %19 {strides = array<i32>} : memref<8x64xf32, #tpu.memory_space<vmem>>, vector<8x64xf32>,
    %21 = vector.extract_strided_slice %4 {offsets = [2, 0], sizes = [8, 64], strides = [1, 1]} : vector<10x64xf32> to vector<8x64xf32>
    %c0_20 = arith.constant 0 : index
    %c2 = arith.constant 2 : index
    %c0_21 = arith.constant 0 : index
    %c0_22 = arith.constant 0 : index
    %22 = vector.load %arg5[%c0_20, %c2, %c0_21, %c0_22] : memref<1x3x64x64xbf16, #tpu.memory_space<vmem>>, vector<1x1x64x64xbf16>
    %23 = vector.shape_cast %22 : vector<1x1x64x64xbf16> to vector<64x64xbf16>
    %c0_23 = arith.constant 0 : index
    %c0_24 = arith.constant 0 : index
    %24 = vector.load %arg12[%c0_23, %c0_24] : memref<8x64xf32, #tpu.memory_space<vmem>>, vector<8x64xf32>
    %25 = arith.truncf %21 : vector<8x64xf32> to vector<8x64xbf16>
    %cst_25 = arith.constant dense<0.000000e+00> : vector<8x64xf32>
    %26 = tpu.matmul %25, %23, %cst_25 {dimension_numbers = #tpu.dot_dimension_numbers<[1], [0], [0], [1], [0, 0, 1, 1], [], []>} : vector<8x64xbf16>, vector<64x64xbf16>, vector<8x64xf32> -> vector<8x64xf32>
    %27 = arith.addf %24, %26 : vector<8x64xf32>
    %c0_26 = arith.constant 0 : index
    %c0_27 = arith.constant 0 : index
    %28 = vector.load %arg12[%c0_26, %c0_27] : memref<8x64xf32, #tpu.memory_space<vmem>>, vector<8x64xf32>
    tpu.vector_store %arg12[%c0_26, %c0_27], %27 {strides = array<i32>} : memref<8x64xf32, #tpu.memory_space<vmem>>, vector<8x64xf32>,
    %c2_i32 = arith.constant 2 : i32
    %29 = arith.cmpi eq, %arg3, %c2_i32 : i32
    %30 = arith.extui %29 : i1 to i32
    %c0_i32_28 = arith.constant 0 : i32
    %31 = arith.cmpi ne, %30, %c0_i32_28 : i32
    scf.if %31 {
      %c0_29 = arith.constant 0 : index
      %c0_30 = arith.constant 0 : index
      %32 = vector.load %arg12[%c0_29, %c0_30] : memref<8x64xf32, #tpu.memory_space<vmem>>, vector<8x64xf32>
      %c0_31 = arith.constant 0 : index
      %c0_32 = arith.constant 0 : index
      %33 = vector.load %arg8[%c0_31, %c0_32] : memref<1x64xf32, #tpu.memory_space<vmem>>, vector<1x64xf32>
      %34 = vector.broadcast %33 : vector<1x64xf32> to vector<8x64xf32>
      %35 = arith.mulf %32, %34 : vector<8x64xf32>
      %c0_33 = arith.constant 0 : index
      %c0_34 = arith.constant 0 : index
      %36 = vector.load %arg9[%c0_33, %c0_34] : memref<1x64xf32, #tpu.memory_space<vmem>>, vector<1x64xf32>
      %37 = vector.broadcast %36 : vector<1x64xf32> to vector<8x64xf32>
      %38 = arith.addf %35, %37 : vector<8x64xf32>
      %c0_35 = arith.constant 0 : index
      %c0_36 = arith.constant 0 : index
      %c0_37 = arith.constant 0 : index
      %c0_38 = arith.constant 0 : index
      %39 = vector.load %arg10[%c0_35, %c0_36, %c0_37, %c0_38] : memref<1x1x8x64xf32, #tpu.memory_space<vmem>>, vector<1x1x8x64xf32>
      %40 = vector.shape_cast %39 : vector<1x1x8x64xf32> to vector<8x64xf32>
      %41 = arith.addf %38, %40 : vector<8x64xf32>
      %c0_39 = arith.constant 0 : index
      %c0_40 = arith.constant 0 : index
      %c0_41 = arith.constant 0 : index
      %c0_42 = arith.constant 0 : index
      %42 = vector.load %arg11[%c0_39, %c0_40, %c0_41, %c0_42] : memref<1x1x8x64xf32, #tpu.memory_space<vmem>>, vector<1x1x8x64xf32>
      %43 = vector.shape_cast %42 : vector<1x1x8x64xf32> to vector<8x64xf32>
      %44 = vector.shape_cast %41 : vector<8x64xf32> to vector<1x1x8x64xf32>
      tpu.vector_store %arg11[%c0_39, %c0_40, %c0_41, %c0_42], %44 {strides = array<i32>} : memref<1x1x8x64xf32, #tpu.memory_space<vmem>>, vector<1x1x8x64xf32>,
    } else {
    }
    return
  }
  func.func @transform_0(%arg0: i32, %arg1: i32, %arg2: i32, %arg3: i32) -> (i32, i32, i32, i32) {
    %c1_i32 = arith.constant 1 : i32
    %0 = arith.muli %c1_i32, %arg1 : i32
    %1 = arith.addi %0, %arg3 : i32
    %c0_i32 = arith.constant 0 : i32
    %c0_i32_0 = arith.constant 0 : i32
    %c0_i32_1 = arith.constant 0 : i32
    return %arg0, %1, %c0_i32, %c0_i32_0 : i32, i32, i32, i32
  }
  func.func @transform_1(%arg0: i32, %arg1: i32, %arg2: i32, %arg3: i32) -> (i32, i32, i32, i32) {
    %c0_i32 = arith.constant 0 : i32
    %c0_i32_0 = arith.constant 0 : i32
    %c0_i32_1 = arith.constant 0 : i32
    return %arg3, %c0_i32, %c0_i32_0, %arg2 : i32, i32, i32, i32
  }
  func.func @transform_2(%arg0: i32, %arg1: i32, %arg2: i32, %arg3: i32) -> (i32, i32) {
    %c0_i32 = arith.constant 0 : i32
    %c0_i32_0 = arith.constant 0 : i32
    %c0_i32_1 = arith.constant 0 : i32
    return %c0_i32, %c0_i32_0 : i32, i32
  }
  func.func @transform_3(%arg0: i32, %arg1: i32, %arg2: i32, %arg3: i32) -> (i32, i32) {
    %c0_i32 = arith.constant 0 : i32
    %c0_i32_0 = arith.constant 0 : i32
    %c0_i32_1 = arith.constant 0 : i32
    return %c0_i32, %c0_i32_0 : i32, i32
  }
  func.func @transform_4(%arg0: i32, %arg1: i32, %arg2: i32, %arg3: i32) -> (i32, i32) {
    %c0_i32 = arith.constant 0 : i32
    %c0_i32_0 = arith.constant 0 : i32
    return %c0_i32, %arg2 : i32, i32
  }
  func.func @transform_5(%arg0: i32, %arg1: i32, %arg2: i32, %arg3: i32) -> (i32, i32) {
    %c0_i32 = arith.constant 0 : i32
    %c0_i32_0 = arith.constant 0 : i32
    return %c0_i32, %arg2 : i32, i32
  }
  func.func @transform_6(%arg0: i32, %arg1: i32, %arg2: i32, %arg3: i32) -> (i32, i32, i32, i32) {
    %c0_i32 = arith.constant 0 : i32
    %c0_i32_0 = arith.constant 0 : i32
    return %arg0, %arg1, %c0_i32, %arg2 : i32, i32, i32, i32
  }
  func.func @transform_7(%arg0: i32, %arg1: i32, %arg2: i32, %arg3: i32) -> (i32, i32, i32, i32) {
    %c0_i32 = arith.constant 0 : i32
    %c0_i32_0 = arith.constant 0 : i32
    return %arg0, %arg1, %c0_i32, %arg2 : i32, i32, i32, i32
  }
}

module attributes {stable_mosaic.version = 11 : i64} {
  func.func @_fused_conv_kernel(%arg0: i32, %arg1: i32, %arg2: i32, %arg3: i32, %arg4: memref<1x2x9x64xf32, #tpu.memory_space<vmem>>, %arg5: memref<1x3x64x64xbf16, #tpu.memory_space<vmem>>, %arg6: memref<1x64xf32, #tpu.memory_space<vmem>>, %arg7: memref<1x64xf32, #tpu.memory_space<vmem>>, %arg8: memref<1x64xf32, #tpu.memory_space<vmem>>, %arg9: memref<1x64xf32, #tpu.memory_space<vmem>>, %arg10: memref<1x1x8x64xf32, #tpu.memory_space<vmem>>, %arg11: memref<8x64xf32, #tpu.memory_space<vmem>>) attributes {dimension_semantics = [#tpu.dimension_semantics<parallel>, #tpu.dimension_semantics<parallel>, #tpu.dimension_semantics<parallel>, #tpu.dimension_semantics<arbitrary>], iteration_bounds = array<i64: 2, 8, 1, 3>, scalar_prefetch = 0 : i64, scratch_operands = 1 : i64, tpu.core_type = #tpu.core_type<tc>, window_params = [{transform_indices = @transform_0, window_bounds = array<i64: 1, 2, 9, 64>}, {transform_indices = @transform_1, window_bounds = array<i64: 1, 3, 64, 64>}, {pipeline_mode = #tpu.pipeline_mode<synchronous>, transform_indices = @transform_2, window_bounds = array<i64: 1, 64>}, {pipeline_mode = #tpu.pipeline_mode<synchronous>, transform_indices = @transform_3, window_bounds = array<i64: 1, 64>}, {transform_indices = @transform_4, window_bounds = array<i64: 1, 64>}, {transform_indices = @transform_5, window_bounds = array<i64: 1, 64>}, {transform_indices = @transform_6, window_bounds = array<i64: 1, 1, 8, 64>}]} {
    %c0_i32 = arith.constant 0 : i32
    %0 = arith.cmpi eq, %arg3, %c0_i32 : i32
    %1 = arith.extui %0 : i1 to i32
    %c0_i32_0 = arith.constant 0 : i32
    %2 = arith.cmpi ne, %1, %c0_i32_0 : i32
    scf.if %2 {
      %cst_34 = arith.constant 0.000000e+00 : f32
      %45 = vector.broadcast %cst_34 : f32 to vector<8x64xf32>
      %c0_35 = arith.constant 0 : index
      %c0_36 = arith.constant 0 : index
      %46 = vector.load %arg11[%c0_35, %c0_36] : memref<8x64xf32, #tpu.memory_space<vmem>>, vector<8x64xf32>
      tpu.vector_store %arg11[%c0_35, %c0_36], %45 {strides = array<i32>} : memref<8x64xf32, #tpu.memory_space<vmem>>, vector<8x64xf32>,
    } else {
    }
    %c0 = arith.constant 0 : index
    %c0_1 = arith.constant 0 : index
    %c0_2 = arith.constant 0 : index
    %c0_3 = arith.constant 0 : index
    %3 = vector.load %arg4[%c0, %c0_1, %c0_2, %c0_3] : memref<1x2x9x64xf32, #tpu.memory_space<vmem>>, vector<1x2x9x64xf32>
    %4 = vector.shape_cast %3 : vector<1x2x9x64xf32> to vector<2x9x64xf32>
    %c0_4 = arith.constant 0 : index
    %c0_5 = arith.constant 0 : index
    %5 = vector.load %arg6[%c0_4, %c0_5] : memref<1x64xf32, #tpu.memory_space<vmem>>, vector<1x64xf32>
    %6 = vector.shape_cast %5 : vector<1x64xf32> to vector<1x1x64xf32>
    %7 = vector.broadcast %6 : vector<1x1x64xf32> to vector<2x9x64xf32>
    %8 = arith.mulf %4, %7 : vector<2x9x64xf32>
    %c0_6 = arith.constant 0 : index
    %c0_7 = arith.constant 0 : index
    %9 = vector.load %arg7[%c0_6, %c0_7] : memref<1x64xf32, #tpu.memory_space<vmem>>, vector<1x64xf32>
    %10 = vector.shape_cast %9 : vector<1x64xf32> to vector<1x1x64xf32>
    %11 = vector.broadcast %10 : vector<1x1x64xf32> to vector<2x9x64xf32>
    %12 = arith.addf %8, %11 : vector<2x9x64xf32>
    %cst = arith.constant 0.000000e+00 : f32
    %13 = vector.broadcast %cst : f32 to vector<2x9x64xf32>
    %14 = arith.maximumf %12, %13 : vector<2x9x64xf32>
    %15 = vector.extract_strided_slice %14 {offsets = [0, 0, 0], sizes = [1, 8, 64], strides = [1, 1, 1]} : vector<2x9x64xf32> to vector<1x8x64xf32>
    %16 = vector.shape_cast %15 : vector<1x8x64xf32> to vector<8x64xf32>
    %c0_8 = arith.constant 0 : index
    %c0_9 = arith.constant 0 : index
    %c0_10 = arith.constant 0 : index
    %c0_11 = arith.constant 0 : index
    %17 = vector.load %arg5[%c0_8, %c0_9, %c0_10, %c0_11] : memref<1x3x64x64xbf16, #tpu.memory_space<vmem>>, vector<1x1x64x64xbf16>
    %18 = vector.shape_cast %17 : vector<1x1x64x64xbf16> to vector<64x64xbf16>
    %c0_12 = arith.constant 0 : index
    %c0_13 = arith.constant 0 : index
    %19 = vector.load %arg11[%c0_12, %c0_13] : memref<8x64xf32, #tpu.memory_space<vmem>>, vector<8x64xf32>
    %20 = arith.truncf %16 : vector<8x64xf32> to vector<8x64xbf16>
    %cst_14 = arith.constant dense<0.000000e+00> : vector<8x64xf32>
    %21 = tpu.matmul %20, %18, %cst_14 {dimension_numbers = #tpu.dot_dimension_numbers<[1], [0], [0], [1], [0, 0, 1, 1], [], []>} : vector<8x64xbf16>, vector<64x64xbf16>, vector<8x64xf32> -> vector<8x64xf32>
    %22 = arith.addf %19, %21 : vector<8x64xf32>
    %c0_15 = arith.constant 0 : index
    %c0_16 = arith.constant 0 : index
    %23 = vector.load %arg11[%c0_15, %c0_16] : memref<8x64xf32, #tpu.memory_space<vmem>>, vector<8x64xf32>
    tpu.vector_store %arg11[%c0_15, %c0_16], %22 {strides = array<i32>} : memref<8x64xf32, #tpu.memory_space<vmem>>, vector<8x64xf32>,
    %24 = vector.extract_strided_slice %14 {offsets = [1, 0, 0], sizes = [1, 8, 64], strides = [1, 1, 1]} : vector<2x9x64xf32> to vector<1x8x64xf32>
    %25 = vector.shape_cast %24 : vector<1x8x64xf32> to vector<8x64xf32>
    %c0_17 = arith.constant 0 : index
    %c1 = arith.constant 1 : index
    %c0_18 = arith.constant 0 : index
    %c0_19 = arith.constant 0 : index
    %26 = vector.load %arg5[%c0_17, %c1, %c0_18, %c0_19] : memref<1x3x64x64xbf16, #tpu.memory_space<vmem>>, vector<1x1x64x64xbf16>
    %27 = vector.shape_cast %26 : vector<1x1x64x64xbf16> to vector<64x64xbf16>
    %c0_20 = arith.constant 0 : index
    %c0_21 = arith.constant 0 : index
    %28 = vector.load %arg11[%c0_20, %c0_21] : memref<8x64xf32, #tpu.memory_space<vmem>>, vector<8x64xf32>
    %29 = arith.truncf %25 : vector<8x64xf32> to vector<8x64xbf16>
    %cst_22 = arith.constant dense<0.000000e+00> : vector<8x64xf32>
    %30 = tpu.matmul %29, %27, %cst_22 {dimension_numbers = #tpu.dot_dimension_numbers<[1], [0], [0], [1], [0, 0, 1, 1], [], []>} : vector<8x64xbf16>, vector<64x64xbf16>, vector<8x64xf32> -> vector<8x64xf32>
    %31 = arith.addf %28, %30 : vector<8x64xf32>
    %c0_23 = arith.constant 0 : index
    %c0_24 = arith.constant 0 : index
    %32 = vector.load %arg11[%c0_23, %c0_24] : memref<8x64xf32, #tpu.memory_space<vmem>>, vector<8x64xf32>
    tpu.vector_store %arg11[%c0_23, %c0_24], %31 {strides = array<i32>} : memref<8x64xf32, #tpu.memory_space<vmem>>, vector<8x64xf32>,
    %33 = vector.extract_strided_slice %14 {offsets = [0, 1, 0], sizes = [1, 8, 64], strides = [1, 1, 1]} : vector<2x9x64xf32> to vector<1x8x64xf32>
    %34 = vector.shape_cast %33 : vector<1x8x64xf32> to vector<8x64xf32>
    %c0_25 = arith.constant 0 : index
    %c2 = arith.constant 2 : index
    %c0_26 = arith.constant 0 : index
    %c0_27 = arith.constant 0 : index
    %35 = vector.load %arg5[%c0_25, %c2, %c0_26, %c0_27] : memref<1x3x64x64xbf16, #tpu.memory_space<vmem>>, vector<1x1x64x64xbf16>
    %36 = vector.shape_cast %35 : vector<1x1x64x64xbf16> to vector<64x64xbf16>
    %c0_28 = arith.constant 0 : index
    %c0_29 = arith.constant 0 : index
    %37 = vector.load %arg11[%c0_28, %c0_29] : memref<8x64xf32, #tpu.memory_space<vmem>>, vector<8x64xf32>
    %38 = arith.truncf %34 : vector<8x64xf32> to vector<8x64xbf16>
    %cst_30 = arith.constant dense<0.000000e+00> : vector<8x64xf32>
    %39 = tpu.matmul %38, %36, %cst_30 {dimension_numbers = #tpu.dot_dimension_numbers<[1], [0], [0], [1], [0, 0, 1, 1], [], []>} : vector<8x64xbf16>, vector<64x64xbf16>, vector<8x64xf32> -> vector<8x64xf32>
    %40 = arith.addf %37, %39 : vector<8x64xf32>
    %c0_31 = arith.constant 0 : index
    %c0_32 = arith.constant 0 : index
    %41 = vector.load %arg11[%c0_31, %c0_32] : memref<8x64xf32, #tpu.memory_space<vmem>>, vector<8x64xf32>
    tpu.vector_store %arg11[%c0_31, %c0_32], %40 {strides = array<i32>} : memref<8x64xf32, #tpu.memory_space<vmem>>, vector<8x64xf32>,
    %c2_i32 = arith.constant 2 : i32
    %42 = arith.cmpi eq, %arg3, %c2_i32 : i32
    %43 = arith.extui %42 : i1 to i32
    %c0_i32_33 = arith.constant 0 : i32
    %44 = arith.cmpi ne, %43, %c0_i32_33 : i32
    scf.if %44 {
      %c0_34 = arith.constant 0 : index
      %c0_35 = arith.constant 0 : index
      %45 = vector.load %arg11[%c0_34, %c0_35] : memref<8x64xf32, #tpu.memory_space<vmem>>, vector<8x64xf32>
      %c0_36 = arith.constant 0 : index
      %c0_37 = arith.constant 0 : index
      %46 = vector.load %arg8[%c0_36, %c0_37] : memref<1x64xf32, #tpu.memory_space<vmem>>, vector<1x64xf32>
      %47 = vector.broadcast %46 : vector<1x64xf32> to vector<8x64xf32>
      %48 = arith.mulf %45, %47 : vector<8x64xf32>
      %c0_38 = arith.constant 0 : index
      %c0_39 = arith.constant 0 : index
      %49 = vector.load %arg9[%c0_38, %c0_39] : memref<1x64xf32, #tpu.memory_space<vmem>>, vector<1x64xf32>
      %50 = vector.broadcast %49 : vector<1x64xf32> to vector<8x64xf32>
      %51 = arith.addf %48, %50 : vector<8x64xf32>
      %cst_40 = arith.constant 0.000000e+00 : f32
      %52 = vector.broadcast %cst_40 : f32 to vector<8x64xf32>
      %53 = arith.maximumf %51, %52 : vector<8x64xf32>
      %c0_41 = arith.constant 0 : index
      %c0_42 = arith.constant 0 : index
      %c0_43 = arith.constant 0 : index
      %c0_44 = arith.constant 0 : index
      %54 = vector.load %arg10[%c0_41, %c0_42, %c0_43, %c0_44] : memref<1x1x8x64xf32, #tpu.memory_space<vmem>>, vector<1x1x8x64xf32>
      %55 = vector.shape_cast %54 : vector<1x1x8x64xf32> to vector<8x64xf32>
      %56 = vector.shape_cast %53 : vector<8x64xf32> to vector<1x1x8x64xf32>
      tpu.vector_store %arg10[%c0_41, %c0_42, %c0_43, %c0_44], %56 {strides = array<i32>} : memref<1x1x8x64xf32, #tpu.memory_space<vmem>>, vector<1x1x8x64xf32>,
    } else {
    }
    return
  }
  func.func @transform_0(%arg0: i32, %arg1: i32, %arg2: i32, %arg3: i32) -> (i32, i32, i32, i32) {
    %c2_i32 = arith.constant 2 : i32
    %0 = arith.muli %c2_i32, %arg1 : i32
    %1 = arith.addi %0, %arg3 : i32
    %c0_i32 = arith.constant 0 : i32
    %c0_i32_0 = arith.constant 0 : i32
    %c0_i32_1 = arith.constant 0 : i32
    return %arg0, %1, %c0_i32, %c0_i32_0 : i32, i32, i32, i32
  }
  func.func @transform_1(%arg0: i32, %arg1: i32, %arg2: i32, %arg3: i32) -> (i32, i32, i32, i32) {
    %c0_i32 = arith.constant 0 : i32
    %c0_i32_0 = arith.constant 0 : i32
    %c0_i32_1 = arith.constant 0 : i32
    return %arg3, %c0_i32, %c0_i32_0, %arg2 : i32, i32, i32, i32
  }
  func.func @transform_2(%arg0: i32, %arg1: i32, %arg2: i32, %arg3: i32) -> (i32, i32) {
    %c0_i32 = arith.constant 0 : i32
    %c0_i32_0 = arith.constant 0 : i32
    %c0_i32_1 = arith.constant 0 : i32
    return %c0_i32, %c0_i32_0 : i32, i32
  }
  func.func @transform_3(%arg0: i32, %arg1: i32, %arg2: i32, %arg3: i32) -> (i32, i32) {
    %c0_i32 = arith.constant 0 : i32
    %c0_i32_0 = arith.constant 0 : i32
    %c0_i32_1 = arith.constant 0 : i32
    return %c0_i32, %c0_i32_0 : i32, i32
  }
  func.func @transform_4(%arg0: i32, %arg1: i32, %arg2: i32, %arg3: i32) -> (i32, i32) {
    %c0_i32 = arith.constant 0 : i32
    %c0_i32_0 = arith.constant 0 : i32
    return %c0_i32, %arg2 : i32, i32
  }
  func.func @transform_5(%arg0: i32, %arg1: i32, %arg2: i32, %arg3: i32) -> (i32, i32) {
    %c0_i32 = arith.constant 0 : i32
    %c0_i32_0 = arith.constant 0 : i32
    return %c0_i32, %arg2 : i32, i32
  }
  func.func @transform_6(%arg0: i32, %arg1: i32, %arg2: i32, %arg3: i32) -> (i32, i32, i32, i32) {
    %c0_i32 = arith.constant 0 : i32
    %c0_i32_0 = arith.constant 0 : i32
    return %arg0, %arg1, %c0_i32, %arg2 : i32, i32, i32, i32
  }
}

module attributes {stable_mosaic.version = 11 : i64} {
  func.func @_fused_conv_kernel(%arg0: i32, %arg1: i32, %arg2: i32, %arg3: i32, %arg4: memref<1x2x4x64xf32, #tpu.memory_space<vmem>>, %arg5: memref<1x1x64x128xbf16, #tpu.memory_space<vmem>>, %arg6: memref<1x64xf32, #tpu.memory_space<vmem>>, %arg7: memref<1x64xf32, #tpu.memory_space<vmem>>, %arg8: memref<1x128xf32, #tpu.memory_space<vmem>>, %arg9: memref<1x128xf32, #tpu.memory_space<vmem>>, %arg10: memref<1x1x4x128xf32, #tpu.memory_space<vmem>>, %arg11: memref<4x128xf32, #tpu.memory_space<vmem>>) attributes {dimension_semantics = [#tpu.dimension_semantics<parallel>, #tpu.dimension_semantics<parallel>, #tpu.dimension_semantics<parallel>, #tpu.dimension_semantics<arbitrary>], iteration_bounds = array<i64: 2, 4, 1, 1>, scalar_prefetch = 0 : i64, scratch_operands = 1 : i64, tpu.core_type = #tpu.core_type<tc>, window_params = [{transform_indices = @transform_0, window_bounds = array<i64: 1, 2, 4, 64>}, {transform_indices = @transform_1, window_bounds = array<i64: 1, 1, 64, 128>}, {pipeline_mode = #tpu.pipeline_mode<synchronous>, transform_indices = @transform_2, window_bounds = array<i64: 1, 64>}, {pipeline_mode = #tpu.pipeline_mode<synchronous>, transform_indices = @transform_3, window_bounds = array<i64: 1, 64>}, {transform_indices = @transform_4, window_bounds = array<i64: 1, 128>}, {transform_indices = @transform_5, window_bounds = array<i64: 1, 128>}, {transform_indices = @transform_6, window_bounds = array<i64: 1, 1, 4, 128>}]} {
    %c0_i32 = arith.constant 0 : i32
    %0 = arith.cmpi eq, %arg3, %c0_i32 : i32
    %1 = arith.extui %0 : i1 to i32
    %c0_i32_0 = arith.constant 0 : i32
    %2 = arith.cmpi ne, %1, %c0_i32_0 : i32
    scf.if %2 {
      %cst_14 = arith.constant 0.000000e+00 : f32
      %17 = vector.broadcast %cst_14 : f32 to vector<4x128xf32>
      %c0_15 = arith.constant 0 : index
      %c0_16 = arith.constant 0 : index
      %18 = vector.load %arg11[%c0_15, %c0_16] : memref<4x128xf32, #tpu.memory_space<vmem>>, vector<4x128xf32>
      tpu.vector_store %arg11[%c0_15, %c0_16], %17 {strides = array<i32>} : memref<4x128xf32, #tpu.memory_space<vmem>>, vector<4x128xf32>,
    } else {
    }
    %c0 = arith.constant 0 : index
    %c0_1 = arith.constant 0 : index
    %c0_2 = arith.constant 0 : index
    %c0_3 = arith.constant 0 : index
    %3 = vector.load %arg4[%c0, %c0_1, %c0_2, %c0_3] : memref<1x2x4x64xf32, #tpu.memory_space<vmem>>, vector<1x2x4x64xf32>
    %4 = vector.shape_cast %3 : vector<1x2x4x64xf32> to vector<2x4x64xf32>
    %5 = vector.extract_strided_slice %4 {offsets = [0, 0, 0], sizes = [1, 4, 64], strides = [1, 1, 1]} : vector<2x4x64xf32> to vector<1x4x64xf32>
    %6 = vector.shape_cast %5 : vector<1x4x64xf32> to vector<4x64xf32>
    %c0_4 = arith.constant 0 : index
    %c0_5 = arith.constant 0 : index
    %c0_6 = arith.constant 0 : index
    %c0_7 = arith.constant 0 : index
    %7 = vector.load %arg5[%c0_4, %c0_5, %c0_6, %c0_7] : memref<1x1x64x128xbf16, #tpu.memory_space<vmem>>, vector<1x1x64x128xbf16>
    %8 = vector.shape_cast %7 : vector<1x1x64x128xbf16> to vector<64x128xbf16>
    %c0_8 = arith.constant 0 : index
    %c0_9 = arith.constant 0 : index
    %9 = vector.load %arg11[%c0_8, %c0_9] : memref<4x128xf32, #tpu.memory_space<vmem>>, vector<4x128xf32>
    %10 = arith.truncf %6 : vector<4x64xf32> to vector<4x64xbf16>
    %cst = arith.constant dense<0.000000e+00> : vector<4x128xf32>
    %11 = tpu.matmul %10, %8, %cst {dimension_numbers = #tpu.dot_dimension_numbers<[1], [0], [0], [1], [0, 0, 1, 1], [], []>} : vector<4x64xbf16>, vector<64x128xbf16>, vector<4x128xf32> -> vector<4x128xf32>
    %12 = arith.addf %9, %11 : vector<4x128xf32>
    %c0_10 = arith.constant 0 : index
    %c0_11 = arith.constant 0 : index
    %13 = vector.load %arg11[%c0_10, %c0_11] : memref<4x128xf32, #tpu.memory_space<vmem>>, vector<4x128xf32>
    tpu.vector_store %arg11[%c0_10, %c0_11], %12 {strides = array<i32>} : memref<4x128xf32, #tpu.memory_space<vmem>>, vector<4x128xf32>,
    %c0_i32_12 = arith.constant 0 : i32
    %14 = arith.cmpi eq, %arg3, %c0_i32_12 : i32
    %15 = arith.extui %14 : i1 to i32
    %c0_i32_13 = arith.constant 0 : i32
    %16 = arith.cmpi ne, %15, %c0_i32_13 : i32
    scf.if %16 {
      %c0_14 = arith.constant 0 : index
      %c0_15 = arith.constant 0 : index
      %17 = vector.load %arg11[%c0_14, %c0_15] : memref<4x128xf32, #tpu.memory_space<vmem>>, vector<4x128xf32>
      %c0_16 = arith.constant 0 : index
      %c0_17 = arith.constant 0 : index
      %18 = vector.load %arg8[%c0_16, %c0_17] : memref<1x128xf32, #tpu.memory_space<vmem>>, vector<1x128xf32>
      %19 = vector.broadcast %18 : vector<1x128xf32> to vector<4x128xf32>
      %20 = arith.mulf %17, %19 : vector<4x128xf32>
      %c0_18 = arith.constant 0 : index
      %c0_19 = arith.constant 0 : index
      %21 = vector.load %arg9[%c0_18, %c0_19] : memref<1x128xf32, #tpu.memory_space<vmem>>, vector<1x128xf32>
      %22 = vector.broadcast %21 : vector<1x128xf32> to vector<4x128xf32>
      %23 = arith.addf %20, %22 : vector<4x128xf32>
      %c0_20 = arith.constant 0 : index
      %c0_21 = arith.constant 0 : index
      %c0_22 = arith.constant 0 : index
      %c0_23 = arith.constant 0 : index
      %24 = vector.load %arg10[%c0_20, %c0_21, %c0_22, %c0_23] : memref<1x1x4x128xf32, #tpu.memory_space<vmem>>, vector<1x1x4x128xf32>
      %25 = vector.shape_cast %24 : vector<1x1x4x128xf32> to vector<4x128xf32>
      %26 = vector.shape_cast %23 : vector<4x128xf32> to vector<1x1x4x128xf32>
      tpu.vector_store %arg10[%c0_20, %c0_21, %c0_22, %c0_23], %26 {strides = array<i32>} : memref<1x1x4x128xf32, #tpu.memory_space<vmem>>, vector<1x1x4x128xf32>,
    } else {
    }
    return
  }
  func.func @transform_0(%arg0: i32, %arg1: i32, %arg2: i32, %arg3: i32) -> (i32, i32, i32, i32) {
    %c2_i32 = arith.constant 2 : i32
    %0 = arith.muli %c2_i32, %arg1 : i32
    %1 = arith.addi %0, %arg3 : i32
    %c0_i32 = arith.constant 0 : i32
    %c0_i32_0 = arith.constant 0 : i32
    %c0_i32_1 = arith.constant 0 : i32
    return %arg0, %1, %c0_i32, %c0_i32_0 : i32, i32, i32, i32
  }
  func.func @transform_1(%arg0: i32, %arg1: i32, %arg2: i32, %arg3: i32) -> (i32, i32, i32, i32) {
    %c0_i32 = arith.constant 0 : i32
    %c0_i32_0 = arith.constant 0 : i32
    %c0_i32_1 = arith.constant 0 : i32
    return %arg3, %c0_i32, %c0_i32_0, %arg2 : i32, i32, i32, i32
  }
  func.func @transform_2(%arg0: i32, %arg1: i32, %arg2: i32, %arg3: i32) -> (i32, i32) {
    %c0_i32 = arith.constant 0 : i32
    %c0_i32_0 = arith.constant 0 : i32
    %c0_i32_1 = arith.constant 0 : i32
    return %c0_i32, %c0_i32_0 : i32, i32
  }
  func.func @transform_3(%arg0: i32, %arg1: i32, %arg2: i32, %arg3: i32) -> (i32, i32) {
    %c0_i32 = arith.constant 0 : i32
    %c0_i32_0 = arith.constant 0 : i32
    %c0_i32_1 = arith.constant 0 : i32
    return %c0_i32, %c0_i32_0 : i32, i32
  }
  func.func @transform_4(%arg0: i32, %arg1: i32, %arg2: i32, %arg3: i32) -> (i32, i32) {
    %c0_i32 = arith.constant 0 : i32
    %c0_i32_0 = arith.constant 0 : i32
    return %c0_i32, %arg2 : i32, i32
  }
  func.func @transform_5(%arg0: i32, %arg1: i32, %arg2: i32, %arg3: i32) -> (i32, i32) {
    %c0_i32 = arith.constant 0 : i32
    %c0_i32_0 = arith.constant 0 : i32
    return %c0_i32, %arg2 : i32, i32
  }
  func.func @transform_6(%arg0: i32, %arg1: i32, %arg2: i32, %arg3: i32) -> (i32, i32, i32, i32) {
    %c0_i32 = arith.constant 0 : i32
    %c0_i32_0 = arith.constant 0 : i32
    return %arg0, %arg1, %c0_i32, %arg2 : i32, i32, i32, i32
  }
}

module attributes {stable_mosaic.version = 11 : i64} {
  func.func @_fused_conv_kernel(%arg0: i32, %arg1: i32, %arg2: i32, %arg3: i32, %arg4: memref<1x2x5x64xf32, #tpu.memory_space<vmem>>, %arg5: memref<1x3x64x128xbf16, #tpu.memory_space<vmem>>, %arg6: memref<1x64xf32, #tpu.memory_space<vmem>>, %arg7: memref<1x64xf32, #tpu.memory_space<vmem>>, %arg8: memref<1x128xf32, #tpu.memory_space<vmem>>, %arg9: memref<1x128xf32, #tpu.memory_space<vmem>>, %arg10: memref<1x1x4x128xf32, #tpu.memory_space<vmem>>, %arg11: memref<4x128xf32, #tpu.memory_space<vmem>>) attributes {dimension_semantics = [#tpu.dimension_semantics<parallel>, #tpu.dimension_semantics<parallel>, #tpu.dimension_semantics<parallel>, #tpu.dimension_semantics<arbitrary>], iteration_bounds = array<i64: 2, 4, 1, 3>, scalar_prefetch = 0 : i64, scratch_operands = 1 : i64, tpu.core_type = #tpu.core_type<tc>, window_params = [{transform_indices = @transform_0, window_bounds = array<i64: 1, 2, 5, 64>}, {transform_indices = @transform_1, window_bounds = array<i64: 1, 3, 64, 128>}, {pipeline_mode = #tpu.pipeline_mode<synchronous>, transform_indices = @transform_2, window_bounds = array<i64: 1, 64>}, {pipeline_mode = #tpu.pipeline_mode<synchronous>, transform_indices = @transform_3, window_bounds = array<i64: 1, 64>}, {transform_indices = @transform_4, window_bounds = array<i64: 1, 128>}, {transform_indices = @transform_5, window_bounds = array<i64: 1, 128>}, {transform_indices = @transform_6, window_bounds = array<i64: 1, 1, 4, 128>}]} {
    %c0_i32 = arith.constant 0 : i32
    %0 = arith.cmpi eq, %arg3, %c0_i32 : i32
    %1 = arith.extui %0 : i1 to i32
    %c0_i32_0 = arith.constant 0 : i32
    %2 = arith.cmpi ne, %1, %c0_i32_0 : i32
    scf.if %2 {
      %cst_34 = arith.constant 0.000000e+00 : f32
      %45 = vector.broadcast %cst_34 : f32 to vector<4x128xf32>
      %c0_35 = arith.constant 0 : index
      %c0_36 = arith.constant 0 : index
      %46 = vector.load %arg11[%c0_35, %c0_36] : memref<4x128xf32, #tpu.memory_space<vmem>>, vector<4x128xf32>
      tpu.vector_store %arg11[%c0_35, %c0_36], %45 {strides = array<i32>} : memref<4x128xf32, #tpu.memory_space<vmem>>, vector<4x128xf32>,
    } else {
    }
    %c0 = arith.constant 0 : index
    %c0_1 = arith.constant 0 : index
    %c0_2 = arith.constant 0 : index
    %c0_3 = arith.constant 0 : index
    %3 = vector.load %arg4[%c0, %c0_1, %c0_2, %c0_3] : memref<1x2x5x64xf32, #tpu.memory_space<vmem>>, vector<1x2x5x64xf32>
    %4 = vector.shape_cast %3 : vector<1x2x5x64xf32> to vector<2x5x64xf32>
    %c0_4 = arith.constant 0 : index
    %c0_5 = arith.constant 0 : index
    %5 = vector.load %arg6[%c0_4, %c0_5] : memref<1x64xf32, #tpu.memory_space<vmem>>, vector<1x64xf32>
    %6 = vector.shape_cast %5 : vector<1x64xf32> to vector<1x1x64xf32>
    %7 = vector.broadcast %6 : vector<1x1x64xf32> to vector<2x5x64xf32>
    %8 = arith.mulf %4, %7 : vector<2x5x64xf32>
    %c0_6 = arith.constant 0 : index
    %c0_7 = arith.constant 0 : index
    %9 = vector.load %arg7[%c0_6, %c0_7] : memref<1x64xf32, #tpu.memory_space<vmem>>, vector<1x64xf32>
    %10 = vector.shape_cast %9 : vector<1x64xf32> to vector<1x1x64xf32>
    %11 = vector.broadcast %10 : vector<1x1x64xf32> to vector<2x5x64xf32>
    %12 = arith.addf %8, %11 : vector<2x5x64xf32>
    %cst = arith.constant 0.000000e+00 : f32
    %13 = vector.broadcast %cst : f32 to vector<2x5x64xf32>
    %14 = arith.maximumf %12, %13 : vector<2x5x64xf32>
    %15 = vector.extract_strided_slice %14 {offsets = [0, 0, 0], sizes = [1, 4, 64], strides = [1, 1, 1]} : vector<2x5x64xf32> to vector<1x4x64xf32>
    %16 = vector.shape_cast %15 : vector<1x4x64xf32> to vector<4x64xf32>
    %c0_8 = arith.constant 0 : index
    %c0_9 = arith.constant 0 : index
    %c0_10 = arith.constant 0 : index
    %c0_11 = arith.constant 0 : index
    %17 = vector.load %arg5[%c0_8, %c0_9, %c0_10, %c0_11] : memref<1x3x64x128xbf16, #tpu.memory_space<vmem>>, vector<1x1x64x128xbf16>
    %18 = vector.shape_cast %17 : vector<1x1x64x128xbf16> to vector<64x128xbf16>
    %c0_12 = arith.constant 0 : index
    %c0_13 = arith.constant 0 : index
    %19 = vector.load %arg11[%c0_12, %c0_13] : memref<4x128xf32, #tpu.memory_space<vmem>>, vector<4x128xf32>
    %20 = arith.truncf %16 : vector<4x64xf32> to vector<4x64xbf16>
    %cst_14 = arith.constant dense<0.000000e+00> : vector<4x128xf32>
    %21 = tpu.matmul %20, %18, %cst_14 {dimension_numbers = #tpu.dot_dimension_numbers<[1], [0], [0], [1], [0, 0, 1, 1], [], []>} : vector<4x64xbf16>, vector<64x128xbf16>, vector<4x128xf32> -> vector<4x128xf32>
    %22 = arith.addf %19, %21 : vector<4x128xf32>
    %c0_15 = arith.constant 0 : index
    %c0_16 = arith.constant 0 : index
    %23 = vector.load %arg11[%c0_15, %c0_16] : memref<4x128xf32, #tpu.memory_space<vmem>>, vector<4x128xf32>
    tpu.vector_store %arg11[%c0_15, %c0_16], %22 {strides = array<i32>} : memref<4x128xf32, #tpu.memory_space<vmem>>, vector<4x128xf32>,
    %24 = vector.extract_strided_slice %14 {offsets = [1, 0, 0], sizes = [1, 4, 64], strides = [1, 1, 1]} : vector<2x5x64xf32> to vector<1x4x64xf32>
    %25 = vector.shape_cast %24 : vector<1x4x64xf32> to vector<4x64xf32>
    %c0_17 = arith.constant 0 : index
    %c1 = arith.constant 1 : index
    %c0_18 = arith.constant 0 : index
    %c0_19 = arith.constant 0 : index
    %26 = vector.load %arg5[%c0_17, %c1, %c0_18, %c0_19] : memref<1x3x64x128xbf16, #tpu.memory_space<vmem>>, vector<1x1x64x128xbf16>
    %27 = vector.shape_cast %26 : vector<1x1x64x128xbf16> to vector<64x128xbf16>
    %c0_20 = arith.constant 0 : index
    %c0_21 = arith.constant 0 : index
    %28 = vector.load %arg11[%c0_20, %c0_21] : memref<4x128xf32, #tpu.memory_space<vmem>>, vector<4x128xf32>
    %29 = arith.truncf %25 : vector<4x64xf32> to vector<4x64xbf16>
    %cst_22 = arith.constant dense<0.000000e+00> : vector<4x128xf32>
    %30 = tpu.matmul %29, %27, %cst_22 {dimension_numbers = #tpu.dot_dimension_numbers<[1], [0], [0], [1], [0, 0, 1, 1], [], []>} : vector<4x64xbf16>, vector<64x128xbf16>, vector<4x128xf32> -> vector<4x128xf32>
    %31 = arith.addf %28, %30 : vector<4x128xf32>
    %c0_23 = arith.constant 0 : index
    %c0_24 = arith.constant 0 : index
    %32 = vector.load %arg11[%c0_23, %c0_24] : memref<4x128xf32, #tpu.memory_space<vmem>>, vector<4x128xf32>
    tpu.vector_store %arg11[%c0_23, %c0_24], %31 {strides = array<i32>} : memref<4x128xf32, #tpu.memory_space<vmem>>, vector<4x128xf32>,
    %33 = vector.extract_strided_slice %14 {offsets = [0, 1, 0], sizes = [1, 4, 64], strides = [1, 1, 1]} : vector<2x5x64xf32> to vector<1x4x64xf32>
    %34 = vector.shape_cast %33 : vector<1x4x64xf32> to vector<4x64xf32>
    %c0_25 = arith.constant 0 : index
    %c2 = arith.constant 2 : index
    %c0_26 = arith.constant 0 : index
    %c0_27 = arith.constant 0 : index
    %35 = vector.load %arg5[%c0_25, %c2, %c0_26, %c0_27] : memref<1x3x64x128xbf16, #tpu.memory_space<vmem>>, vector<1x1x64x128xbf16>
    %36 = vector.shape_cast %35 : vector<1x1x64x128xbf16> to vector<64x128xbf16>
    %c0_28 = arith.constant 0 : index
    %c0_29 = arith.constant 0 : index
    %37 = vector.load %arg11[%c0_28, %c0_29] : memref<4x128xf32, #tpu.memory_space<vmem>>, vector<4x128xf32>
    %38 = arith.truncf %34 : vector<4x64xf32> to vector<4x64xbf16>
    %cst_30 = arith.constant dense<0.000000e+00> : vector<4x128xf32>
    %39 = tpu.matmul %38, %36, %cst_30 {dimension_numbers = #tpu.dot_dimension_numbers<[1], [0], [0], [1], [0, 0, 1, 1], [], []>} : vector<4x64xbf16>, vector<64x128xbf16>, vector<4x128xf32> -> vector<4x128xf32>
    %40 = arith.addf %37, %39 : vector<4x128xf32>
    %c0_31 = arith.constant 0 : index
    %c0_32 = arith.constant 0 : index
    %41 = vector.load %arg11[%c0_31, %c0_32] : memref<4x128xf32, #tpu.memory_space<vmem>>, vector<4x128xf32>
    tpu.vector_store %arg11[%c0_31, %c0_32], %40 {strides = array<i32>} : memref<4x128xf32, #tpu.memory_space<vmem>>, vector<4x128xf32>,
    %c2_i32 = arith.constant 2 : i32
    %42 = arith.cmpi eq, %arg3, %c2_i32 : i32
    %43 = arith.extui %42 : i1 to i32
    %c0_i32_33 = arith.constant 0 : i32
    %44 = arith.cmpi ne, %43, %c0_i32_33 : i32
    scf.if %44 {
      %c0_34 = arith.constant 0 : index
      %c0_35 = arith.constant 0 : index
      %45 = vector.load %arg11[%c0_34, %c0_35] : memref<4x128xf32, #tpu.memory_space<vmem>>, vector<4x128xf32>
      %c0_36 = arith.constant 0 : index
      %c0_37 = arith.constant 0 : index
      %46 = vector.load %arg8[%c0_36, %c0_37] : memref<1x128xf32, #tpu.memory_space<vmem>>, vector<1x128xf32>
      %47 = vector.broadcast %46 : vector<1x128xf32> to vector<4x128xf32>
      %48 = arith.mulf %45, %47 : vector<4x128xf32>
      %c0_38 = arith.constant 0 : index
      %c0_39 = arith.constant 0 : index
      %49 = vector.load %arg9[%c0_38, %c0_39] : memref<1x128xf32, #tpu.memory_space<vmem>>, vector<1x128xf32>
      %50 = vector.broadcast %49 : vector<1x128xf32> to vector<4x128xf32>
      %51 = arith.addf %48, %50 : vector<4x128xf32>
      %cst_40 = arith.constant 0.000000e+00 : f32
      %52 = vector.broadcast %cst_40 : f32 to vector<4x128xf32>
      %53 = arith.maximumf %51, %52 : vector<4x128xf32>
      %c0_41 = arith.constant 0 : index
      %c0_42 = arith.constant 0 : index
      %c0_43 = arith.constant 0 : index
      %c0_44 = arith.constant 0 : index
      %54 = vector.load %arg10[%c0_41, %c0_42, %c0_43, %c0_44] : memref<1x1x4x128xf32, #tpu.memory_space<vmem>>, vector<1x1x4x128xf32>
      %55 = vector.shape_cast %54 : vector<1x1x4x128xf32> to vector<4x128xf32>
      %56 = vector.shape_cast %53 : vector<4x128xf32> to vector<1x1x4x128xf32>
      tpu.vector_store %arg10[%c0_41, %c0_42, %c0_43, %c0_44], %56 {strides = array<i32>} : memref<1x1x4x128xf32, #tpu.memory_space<vmem>>, vector<1x1x4x128xf32>,
    } else {
    }
    return
  }
  func.func @transform_0(%arg0: i32, %arg1: i32, %arg2: i32, %arg3: i32) -> (i32, i32, i32, i32) {
    %c2_i32 = arith.constant 2 : i32
    %0 = arith.muli %c2_i32, %arg1 : i32
    %1 = arith.addi %0, %arg3 : i32
    %c0_i32 = arith.constant 0 : i32
    %c0_i32_0 = arith.constant 0 : i32
    %c0_i32_1 = arith.constant 0 : i32
    return %arg0, %1, %c0_i32, %c0_i32_0 : i32, i32, i32, i32
  }
  func.func @transform_1(%arg0: i32, %arg1: i32, %arg2: i32, %arg3: i32) -> (i32, i32, i32, i32) {
    %c0_i32 = arith.constant 0 : i32
    %c0_i32_0 = arith.constant 0 : i32
    %c0_i32_1 = arith.constant 0 : i32
    return %arg3, %c0_i32, %c0_i32_0, %arg2 : i32, i32, i32, i32
  }
  func.func @transform_2(%arg0: i32, %arg1: i32, %arg2: i32, %arg3: i32) -> (i32, i32) {
    %c0_i32 = arith.constant 0 : i32
    %c0_i32_0 = arith.constant 0 : i32
    %c0_i32_1 = arith.constant 0 : i32
    return %c0_i32, %c0_i32_0 : i32, i32
  }
  func.func @transform_3(%arg0: i32, %arg1: i32, %arg2: i32, %arg3: i32) -> (i32, i32) {
    %c0_i32 = arith.constant 0 : i32
    %c0_i32_0 = arith.constant 0 : i32
    %c0_i32_1 = arith.constant 0 : i32
    return %c0_i32, %c0_i32_0 : i32, i32
  }
  func.func @transform_4(%arg0: i32, %arg1: i32, %arg2: i32, %arg3: i32) -> (i32, i32) {
    %c0_i32 = arith.constant 0 : i32
    %c0_i32_0 = arith.constant 0 : i32
    return %c0_i32, %arg2 : i32, i32
  }
  func.func @transform_5(%arg0: i32, %arg1: i32, %arg2: i32, %arg3: i32) -> (i32, i32) {
    %c0_i32 = arith.constant 0 : i32
    %c0_i32_0 = arith.constant 0 : i32
    return %c0_i32, %arg2 : i32, i32
  }
  func.func @transform_6(%arg0: i32, %arg1: i32, %arg2: i32, %arg3: i32) -> (i32, i32, i32, i32) {
    %c0_i32 = arith.constant 0 : i32
    %c0_i32_0 = arith.constant 0 : i32
    return %arg0, %arg1, %c0_i32, %arg2 : i32, i32, i32, i32
  }
}

module attributes {stable_mosaic.version = 11 : i64} {
  func.func @_fused_conv_kernel(%arg0: i32, %arg1: i32, %arg2: i32, %arg3: i32, %arg4: memref<1x1x6x128xf32, #tpu.memory_space<vmem>>, %arg5: memref<1x3x128x128xbf16, #tpu.memory_space<vmem>>, %arg6: memref<1x128xf32, #tpu.memory_space<vmem>>, %arg7: memref<1x128xf32, #tpu.memory_space<vmem>>, %arg8: memref<1x128xf32, #tpu.memory_space<vmem>>, %arg9: memref<1x128xf32, #tpu.memory_space<vmem>>, %arg10: memref<1x1x4x128xf32, #tpu.memory_space<vmem>>, %arg11: memref<1x1x4x128xf32, #tpu.memory_space<vmem>>, %arg12: memref<4x128xf32, #tpu.memory_space<vmem>>) attributes {dimension_semantics = [#tpu.dimension_semantics<parallel>, #tpu.dimension_semantics<parallel>, #tpu.dimension_semantics<parallel>, #tpu.dimension_semantics<arbitrary>], iteration_bounds = array<i64: 2, 4, 1, 3>, scalar_prefetch = 0 : i64, scratch_operands = 1 : i64, tpu.core_type = #tpu.core_type<tc>, window_params = [{transform_indices = @transform_0, window_bounds = array<i64: 1, 1, 6, 128>}, {transform_indices = @transform_1, window_bounds = array<i64: 1, 3, 128, 128>}, {pipeline_mode = #tpu.pipeline_mode<synchronous>, transform_indices = @transform_2, window_bounds = array<i64: 1, 128>}, {pipeline_mode = #tpu.pipeline_mode<synchronous>, transform_indices = @transform_3, window_bounds = array<i64: 1, 128>}, {transform_indices = @transform_4, window_bounds = array<i64: 1, 128>}, {transform_indices = @transform_5, window_bounds = array<i64: 1, 128>}, {transform_indices = @transform_6, window_bounds = array<i64: 1, 1, 4, 128>}, {transform_indices = @transform_7, window_bounds = array<i64: 1, 1, 4, 128>}]} {
    %c0_i32 = arith.constant 0 : i32
    %0 = arith.cmpi eq, %arg3, %c0_i32 : i32
    %1 = arith.extui %0 : i1 to i32
    %c0_i32_0 = arith.constant 0 : i32
    %2 = arith.cmpi ne, %1, %c0_i32_0 : i32
    scf.if %2 {
      %cst_29 = arith.constant 0.000000e+00 : f32
      %32 = vector.broadcast %cst_29 : f32 to vector<4x128xf32>
      %c0_30 = arith.constant 0 : index
      %c0_31 = arith.constant 0 : index
      %33 = vector.load %arg12[%c0_30, %c0_31] : memref<4x128xf32, #tpu.memory_space<vmem>>, vector<4x128xf32>
      tpu.vector_store %arg12[%c0_30, %c0_31], %32 {strides = array<i32>} : memref<4x128xf32, #tpu.memory_space<vmem>>, vector<4x128xf32>,
    } else {
    }
    %c0 = arith.constant 0 : index
    %c0_1 = arith.constant 0 : index
    %c0_2 = arith.constant 0 : index
    %c0_3 = arith.constant 0 : index
    %3 = vector.load %arg4[%c0, %c0_1, %c0_2, %c0_3] : memref<1x1x6x128xf32, #tpu.memory_space<vmem>>, vector<1x1x6x128xf32>
    %4 = vector.shape_cast %3 : vector<1x1x6x128xf32> to vector<6x128xf32>
    %5 = vector.extract_strided_slice %4 {offsets = [0, 0], sizes = [4, 128], strides = [1, 1]} : vector<6x128xf32> to vector<4x128xf32>
    %c0_4 = arith.constant 0 : index
    %c0_5 = arith.constant 0 : index
    %c0_6 = arith.constant 0 : index
    %c0_7 = arith.constant 0 : index
    %6 = vector.load %arg5[%c0_4, %c0_5, %c0_6, %c0_7] : memref<1x3x128x128xbf16, #tpu.memory_space<vmem>>, vector<1x1x128x128xbf16>
    %7 = vector.shape_cast %6 : vector<1x1x128x128xbf16> to vector<128x128xbf16>
    %c0_8 = arith.constant 0 : index
    %c0_9 = arith.constant 0 : index
    %8 = vector.load %arg12[%c0_8, %c0_9] : memref<4x128xf32, #tpu.memory_space<vmem>>, vector<4x128xf32>
    %9 = arith.truncf %5 : vector<4x128xf32> to vector<4x128xbf16>
    %cst = arith.constant dense<0.000000e+00> : vector<4x128xf32>
    %10 = tpu.matmul %9, %7, %cst {dimension_numbers = #tpu.dot_dimension_numbers<[1], [0], [0], [1], [0, 0, 1, 1], [], []>} : vector<4x128xbf16>, vector<128x128xbf16>, vector<4x128xf32> -> vector<4x128xf32>
    %11 = arith.addf %8, %10 : vector<4x128xf32>
    %c0_10 = arith.constant 0 : index
    %c0_11 = arith.constant 0 : index
    %12 = vector.load %arg12[%c0_10, %c0_11] : memref<4x128xf32, #tpu.memory_space<vmem>>, vector<4x128xf32>
    tpu.vector_store %arg12[%c0_10, %c0_11], %11 {strides = array<i32>} : memref<4x128xf32, #tpu.memory_space<vmem>>, vector<4x128xf32>,
    %13 = vector.extract_strided_slice %4 {offsets = [1, 0], sizes = [4, 128], strides = [1, 1]} : vector<6x128xf32> to vector<4x128xf32>
    %c0_12 = arith.constant 0 : index
    %c1 = arith.constant 1 : index
    %c0_13 = arith.constant 0 : index
    %c0_14 = arith.constant 0 : index
    %14 = vector.load %arg5[%c0_12, %c1, %c0_13, %c0_14] : memref<1x3x128x128xbf16, #tpu.memory_space<vmem>>, vector<1x1x128x128xbf16>
    %15 = vector.shape_cast %14 : vector<1x1x128x128xbf16> to vector<128x128xbf16>
    %c0_15 = arith.constant 0 : index
    %c0_16 = arith.constant 0 : index
    %16 = vector.load %arg12[%c0_15, %c0_16] : memref<4x128xf32, #tpu.memory_space<vmem>>, vector<4x128xf32>
    %17 = arith.truncf %13 : vector<4x128xf32> to vector<4x128xbf16>
    %cst_17 = arith.constant dense<0.000000e+00> : vector<4x128xf32>
    %18 = tpu.matmul %17, %15, %cst_17 {dimension_numbers = #tpu.dot_dimension_numbers<[1], [0], [0], [1], [0, 0, 1, 1], [], []>} : vector<4x128xbf16>, vector<128x128xbf16>, vector<4x128xf32> -> vector<4x128xf32>
    %19 = arith.addf %16, %18 : vector<4x128xf32>
    %c0_18 = arith.constant 0 : index
    %c0_19 = arith.constant 0 : index
    %20 = vector.load %arg12[%c0_18, %c0_19] : memref<4x128xf32, #tpu.memory_space<vmem>>, vector<4x128xf32>
    tpu.vector_store %arg12[%c0_18, %c0_19], %19 {strides = array<i32>} : memref<4x128xf32, #tpu.memory_space<vmem>>, vector<4x128xf32>,
    %21 = vector.extract_strided_slice %4 {offsets = [2, 0], sizes = [4, 128], strides = [1, 1]} : vector<6x128xf32> to vector<4x128xf32>
    %c0_20 = arith.constant 0 : index
    %c2 = arith.constant 2 : index
    %c0_21 = arith.constant 0 : index
    %c0_22 = arith.constant 0 : index
    %22 = vector.load %arg5[%c0_20, %c2, %c0_21, %c0_22] : memref<1x3x128x128xbf16, #tpu.memory_space<vmem>>, vector<1x1x128x128xbf16>
    %23 = vector.shape_cast %22 : vector<1x1x128x128xbf16> to vector<128x128xbf16>
    %c0_23 = arith.constant 0 : index
    %c0_24 = arith.constant 0 : index
    %24 = vector.load %arg12[%c0_23, %c0_24] : memref<4x128xf32, #tpu.memory_space<vmem>>, vector<4x128xf32>
    %25 = arith.truncf %21 : vector<4x128xf32> to vector<4x128xbf16>
    %cst_25 = arith.constant dense<0.000000e+00> : vector<4x128xf32>
    %26 = tpu.matmul %25, %23, %cst_25 {dimension_numbers = #tpu.dot_dimension_numbers<[1], [0], [0], [1], [0, 0, 1, 1], [], []>} : vector<4x128xbf16>, vector<128x128xbf16>, vector<4x128xf32> -> vector<4x128xf32>
    %27 = arith.addf %24, %26 : vector<4x128xf32>
    %c0_26 = arith.constant 0 : index
    %c0_27 = arith.constant 0 : index
    %28 = vector.load %arg12[%c0_26, %c0_27] : memref<4x128xf32, #tpu.memory_space<vmem>>, vector<4x128xf32>
    tpu.vector_store %arg12[%c0_26, %c0_27], %27 {strides = array<i32>} : memref<4x128xf32, #tpu.memory_space<vmem>>, vector<4x128xf32>,
    %c2_i32 = arith.constant 2 : i32
    %29 = arith.cmpi eq, %arg3, %c2_i32 : i32
    %30 = arith.extui %29 : i1 to i32
    %c0_i32_28 = arith.constant 0 : i32
    %31 = arith.cmpi ne, %30, %c0_i32_28 : i32
    scf.if %31 {
      %c0_29 = arith.constant 0 : index
      %c0_30 = arith.constant 0 : index
      %32 = vector.load %arg12[%c0_29, %c0_30] : memref<4x128xf32, #tpu.memory_space<vmem>>, vector<4x128xf32>
      %c0_31 = arith.constant 0 : index
      %c0_32 = arith.constant 0 : index
      %33 = vector.load %arg8[%c0_31, %c0_32] : memref<1x128xf32, #tpu.memory_space<vmem>>, vector<1x128xf32>
      %34 = vector.broadcast %33 : vector<1x128xf32> to vector<4x128xf32>
      %35 = arith.mulf %32, %34 : vector<4x128xf32>
      %c0_33 = arith.constant 0 : index
      %c0_34 = arith.constant 0 : index
      %36 = vector.load %arg9[%c0_33, %c0_34] : memref<1x128xf32, #tpu.memory_space<vmem>>, vector<1x128xf32>
      %37 = vector.broadcast %36 : vector<1x128xf32> to vector<4x128xf32>
      %38 = arith.addf %35, %37 : vector<4x128xf32>
      %c0_35 = arith.constant 0 : index
      %c0_36 = arith.constant 0 : index
      %c0_37 = arith.constant 0 : index
      %c0_38 = arith.constant 0 : index
      %39 = vector.load %arg10[%c0_35, %c0_36, %c0_37, %c0_38] : memref<1x1x4x128xf32, #tpu.memory_space<vmem>>, vector<1x1x4x128xf32>
      %40 = vector.shape_cast %39 : vector<1x1x4x128xf32> to vector<4x128xf32>
      %41 = arith.addf %38, %40 : vector<4x128xf32>
      %c0_39 = arith.constant 0 : index
      %c0_40 = arith.constant 0 : index
      %c0_41 = arith.constant 0 : index
      %c0_42 = arith.constant 0 : index
      %42 = vector.load %arg11[%c0_39, %c0_40, %c0_41, %c0_42] : memref<1x1x4x128xf32, #tpu.memory_space<vmem>>, vector<1x1x4x128xf32>
      %43 = vector.shape_cast %42 : vector<1x1x4x128xf32> to vector<4x128xf32>
      %44 = vector.shape_cast %41 : vector<4x128xf32> to vector<1x1x4x128xf32>
      tpu.vector_store %arg11[%c0_39, %c0_40, %c0_41, %c0_42], %44 {strides = array<i32>} : memref<1x1x4x128xf32, #tpu.memory_space<vmem>>, vector<1x1x4x128xf32>,
    } else {
    }
    return
  }
  func.func @transform_0(%arg0: i32, %arg1: i32, %arg2: i32, %arg3: i32) -> (i32, i32, i32, i32) {
    %c1_i32 = arith.constant 1 : i32
    %0 = arith.muli %c1_i32, %arg1 : i32
    %1 = arith.addi %0, %arg3 : i32
    %c0_i32 = arith.constant 0 : i32
    %c0_i32_0 = arith.constant 0 : i32
    %c0_i32_1 = arith.constant 0 : i32
    return %arg0, %1, %c0_i32, %c0_i32_0 : i32, i32, i32, i32
  }
  func.func @transform_1(%arg0: i32, %arg1: i32, %arg2: i32, %arg3: i32) -> (i32, i32, i32, i32) {
    %c0_i32 = arith.constant 0 : i32
    %c0_i32_0 = arith.constant 0 : i32
    %c0_i32_1 = arith.constant 0 : i32
    return %arg3, %c0_i32, %c0_i32_0, %arg2 : i32, i32, i32, i32
  }
  func.func @transform_2(%arg0: i32, %arg1: i32, %arg2: i32, %arg3: i32) -> (i32, i32) {
    %c0_i32 = arith.constant 0 : i32
    %c0_i32_0 = arith.constant 0 : i32
    %c0_i32_1 = arith.constant 0 : i32
    return %c0_i32, %c0_i32_0 : i32, i32
  }
  func.func @transform_3(%arg0: i32, %arg1: i32, %arg2: i32, %arg3: i32) -> (i32, i32) {
    %c0_i32 = arith.constant 0 : i32
    %c0_i32_0 = arith.constant 0 : i32
    %c0_i32_1 = arith.constant 0 : i32
    return %c0_i32, %c0_i32_0 : i32, i32
  }
  func.func @transform_4(%arg0: i32, %arg1: i32, %arg2: i32, %arg3: i32) -> (i32, i32) {
    %c0_i32 = arith.constant 0 : i32
    %c0_i32_0 = arith.constant 0 : i32
    return %c0_i32, %arg2 : i32, i32
  }
  func.func @transform_5(%arg0: i32, %arg1: i32, %arg2: i32, %arg3: i32) -> (i32, i32) {
    %c0_i32 = arith.constant 0 : i32
    %c0_i32_0 = arith.constant 0 : i32
    return %c0_i32, %arg2 : i32, i32
  }
  func.func @transform_6(%arg0: i32, %arg1: i32, %arg2: i32, %arg3: i32) -> (i32, i32, i32, i32) {
    %c0_i32 = arith.constant 0 : i32
    %c0_i32_0 = arith.constant 0 : i32
    return %arg0, %arg1, %c0_i32, %arg2 : i32, i32, i32, i32
  }
  func.func @transform_7(%arg0: i32, %arg1: i32, %arg2: i32, %arg3: i32) -> (i32, i32, i32, i32) {
    %c0_i32 = arith.constant 0 : i32
    %c0_i32_0 = arith.constant 0 : i32
    return %arg0, %arg1, %c0_i32, %arg2 : i32, i32, i32, i32
  }
}

module attributes {stable_mosaic.version = 11 : i64} {
  func.func @_fused_conv_kernel(%arg0: i32, %arg1: i32, %arg2: i32, %arg3: i32, %arg4: memref<1x2x2x128xf32, #tpu.memory_space<vmem>>, %arg5: memref<1x1x128x256xbf16, #tpu.memory_space<vmem>>, %arg6: memref<1x128xf32, #tpu.memory_space<vmem>>, %arg7: memref<1x128xf32, #tpu.memory_space<vmem>>, %arg8: memref<1x256xf32, #tpu.memory_space<vmem>>, %arg9: memref<1x256xf32, #tpu.memory_space<vmem>>, %arg10: memref<1x1x2x256xf32, #tpu.memory_space<vmem>>, %arg11: memref<2x256xf32, #tpu.memory_space<vmem>>) attributes {dimension_semantics = [#tpu.dimension_semantics<parallel>, #tpu.dimension_semantics<parallel>, #tpu.dimension_semantics<parallel>, #tpu.dimension_semantics<arbitrary>], iteration_bounds = array<i64: 2, 2, 1, 1>, scalar_prefetch = 0 : i64, scratch_operands = 1 : i64, tpu.core_type = #tpu.core_type<tc>, window_params = [{transform_indices = @transform_0, window_bounds = array<i64: 1, 2, 2, 128>}, {transform_indices = @transform_1, window_bounds = array<i64: 1, 1, 128, 256>}, {pipeline_mode = #tpu.pipeline_mode<synchronous>, transform_indices = @transform_2, window_bounds = array<i64: 1, 128>}, {pipeline_mode = #tpu.pipeline_mode<synchronous>, transform_indices = @transform_3, window_bounds = array<i64: 1, 128>}, {transform_indices = @transform_4, window_bounds = array<i64: 1, 256>}, {transform_indices = @transform_5, window_bounds = array<i64: 1, 256>}, {transform_indices = @transform_6, window_bounds = array<i64: 1, 1, 2, 256>}]} {
    %c0_i32 = arith.constant 0 : i32
    %0 = arith.cmpi eq, %arg3, %c0_i32 : i32
    %1 = arith.extui %0 : i1 to i32
    %c0_i32_0 = arith.constant 0 : i32
    %2 = arith.cmpi ne, %1, %c0_i32_0 : i32
    scf.if %2 {
      %cst_14 = arith.constant 0.000000e+00 : f32
      %17 = vector.broadcast %cst_14 : f32 to vector<2x256xf32>
      %c0_15 = arith.constant 0 : index
      %c0_16 = arith.constant 0 : index
      %18 = vector.load %arg11[%c0_15, %c0_16] : memref<2x256xf32, #tpu.memory_space<vmem>>, vector<2x256xf32>
      tpu.vector_store %arg11[%c0_15, %c0_16], %17 {strides = array<i32>} : memref<2x256xf32, #tpu.memory_space<vmem>>, vector<2x256xf32>,
    } else {
    }
    %c0 = arith.constant 0 : index
    %c0_1 = arith.constant 0 : index
    %c0_2 = arith.constant 0 : index
    %c0_3 = arith.constant 0 : index
    %3 = vector.load %arg4[%c0, %c0_1, %c0_2, %c0_3] : memref<1x2x2x128xf32, #tpu.memory_space<vmem>>, vector<1x2x2x128xf32>
    %4 = vector.shape_cast %3 : vector<1x2x2x128xf32> to vector<2x2x128xf32>
    %5 = vector.extract_strided_slice %4 {offsets = [0, 0, 0], sizes = [1, 2, 128], strides = [1, 1, 1]} : vector<2x2x128xf32> to vector<1x2x128xf32>
    %6 = vector.shape_cast %5 : vector<1x2x128xf32> to vector<2x128xf32>
    %c0_4 = arith.constant 0 : index
    %c0_5 = arith.constant 0 : index
    %c0_6 = arith.constant 0 : index
    %c0_7 = arith.constant 0 : index
    %7 = vector.load %arg5[%c0_4, %c0_5, %c0_6, %c0_7] : memref<1x1x128x256xbf16, #tpu.memory_space<vmem>>, vector<1x1x128x256xbf16>
    %8 = vector.shape_cast %7 : vector<1x1x128x256xbf16> to vector<128x256xbf16>
    %c0_8 = arith.constant 0 : index
    %c0_9 = arith.constant 0 : index
    %9 = vector.load %arg11[%c0_8, %c0_9] : memref<2x256xf32, #tpu.memory_space<vmem>>, vector<2x256xf32>
    %10 = arith.truncf %6 : vector<2x128xf32> to vector<2x128xbf16>
    %cst = arith.constant dense<0.000000e+00> : vector<2x256xf32>
    %11 = tpu.matmul %10, %8, %cst {dimension_numbers = #tpu.dot_dimension_numbers<[1], [0], [0], [1], [0, 0, 1, 1], [], []>} : vector<2x128xbf16>, vector<128x256xbf16>, vector<2x256xf32> -> vector<2x256xf32>
    %12 = arith.addf %9, %11 : vector<2x256xf32>
    %c0_10 = arith.constant 0 : index
    %c0_11 = arith.constant 0 : index
    %13 = vector.load %arg11[%c0_10, %c0_11] : memref<2x256xf32, #tpu.memory_space<vmem>>, vector<2x256xf32>
    tpu.vector_store %arg11[%c0_10, %c0_11], %12 {strides = array<i32>} : memref<2x256xf32, #tpu.memory_space<vmem>>, vector<2x256xf32>,
    %c0_i32_12 = arith.constant 0 : i32
    %14 = arith.cmpi eq, %arg3, %c0_i32_12 : i32
    %15 = arith.extui %14 : i1 to i32
    %c0_i32_13 = arith.constant 0 : i32
    %16 = arith.cmpi ne, %15, %c0_i32_13 : i32
    scf.if %16 {
      %c0_14 = arith.constant 0 : index
      %c0_15 = arith.constant 0 : index
      %17 = vector.load %arg11[%c0_14, %c0_15] : memref<2x256xf32, #tpu.memory_space<vmem>>, vector<2x256xf32>
      %c0_16 = arith.constant 0 : index
      %c0_17 = arith.constant 0 : index
      %18 = vector.load %arg8[%c0_16, %c0_17] : memref<1x256xf32, #tpu.memory_space<vmem>>, vector<1x256xf32>
      %19 = vector.broadcast %18 : vector<1x256xf32> to vector<2x256xf32>
      %20 = arith.mulf %17, %19 : vector<2x256xf32>
      %c0_18 = arith.constant 0 : index
      %c0_19 = arith.constant 0 : index
      %21 = vector.load %arg9[%c0_18, %c0_19] : memref<1x256xf32, #tpu.memory_space<vmem>>, vector<1x256xf32>
      %22 = vector.broadcast %21 : vector<1x256xf32> to vector<2x256xf32>
      %23 = arith.addf %20, %22 : vector<2x256xf32>
      %c0_20 = arith.constant 0 : index
      %c0_21 = arith.constant 0 : index
      %c0_22 = arith.constant 0 : index
      %c0_23 = arith.constant 0 : index
      %24 = vector.load %arg10[%c0_20, %c0_21, %c0_22, %c0_23] : memref<1x1x2x256xf32, #tpu.memory_space<vmem>>, vector<1x1x2x256xf32>
      %25 = vector.shape_cast %24 : vector<1x1x2x256xf32> to vector<2x256xf32>
      %26 = vector.shape_cast %23 : vector<2x256xf32> to vector<1x1x2x256xf32>
      tpu.vector_store %arg10[%c0_20, %c0_21, %c0_22, %c0_23], %26 {strides = array<i32>} : memref<1x1x2x256xf32, #tpu.memory_space<vmem>>, vector<1x1x2x256xf32>,
    } else {
    }
    return
  }
  func.func @transform_0(%arg0: i32, %arg1: i32, %arg2: i32, %arg3: i32) -> (i32, i32, i32, i32) {
    %c2_i32 = arith.constant 2 : i32
    %0 = arith.muli %c2_i32, %arg1 : i32
    %1 = arith.addi %0, %arg3 : i32
    %c0_i32 = arith.constant 0 : i32
    %c0_i32_0 = arith.constant 0 : i32
    %c0_i32_1 = arith.constant 0 : i32
    return %arg0, %1, %c0_i32, %c0_i32_0 : i32, i32, i32, i32
  }
  func.func @transform_1(%arg0: i32, %arg1: i32, %arg2: i32, %arg3: i32) -> (i32, i32, i32, i32) {
    %c0_i32 = arith.constant 0 : i32
    %c0_i32_0 = arith.constant 0 : i32
    %c0_i32_1 = arith.constant 0 : i32
    return %arg3, %c0_i32, %c0_i32_0, %arg2 : i32, i32, i32, i32
  }
  func.func @transform_2(%arg0: i32, %arg1: i32, %arg2: i32, %arg3: i32) -> (i32, i32) {
    %c0_i32 = arith.constant 0 : i32
    %c0_i32_0 = arith.constant 0 : i32
    %c0_i32_1 = arith.constant 0 : i32
    return %c0_i32, %c0_i32_0 : i32, i32
  }
  func.func @transform_3(%arg0: i32, %arg1: i32, %arg2: i32, %arg3: i32) -> (i32, i32) {
    %c0_i32 = arith.constant 0 : i32
    %c0_i32_0 = arith.constant 0 : i32
    %c0_i32_1 = arith.constant 0 : i32
    return %c0_i32, %c0_i32_0 : i32, i32
  }
  func.func @transform_4(%arg0: i32, %arg1: i32, %arg2: i32, %arg3: i32) -> (i32, i32) {
    %c0_i32 = arith.constant 0 : i32
    %c0_i32_0 = arith.constant 0 : i32
    return %c0_i32, %arg2 : i32, i32
  }
  func.func @transform_5(%arg0: i32, %arg1: i32, %arg2: i32, %arg3: i32) -> (i32, i32) {
    %c0_i32 = arith.constant 0 : i32
    %c0_i32_0 = arith.constant 0 : i32
    return %c0_i32, %arg2 : i32, i32
  }
  func.func @transform_6(%arg0: i32, %arg1: i32, %arg2: i32, %arg3: i32) -> (i32, i32, i32, i32) {
    %c0_i32 = arith.constant 0 : i32
    %c0_i32_0 = arith.constant 0 : i32
    return %arg0, %arg1, %c0_i32, %arg2 : i32, i32, i32, i32
  }
}

module attributes {stable_mosaic.version = 11 : i64} {
  func.func @_fused_conv_kernel(%arg0: i32, %arg1: i32, %arg2: i32, %arg3: i32, %arg4: memref<1x2x3x128xf32, #tpu.memory_space<vmem>>, %arg5: memref<1x3x128x256xbf16, #tpu.memory_space<vmem>>, %arg6: memref<1x128xf32, #tpu.memory_space<vmem>>, %arg7: memref<1x128xf32, #tpu.memory_space<vmem>>, %arg8: memref<1x256xf32, #tpu.memory_space<vmem>>, %arg9: memref<1x256xf32, #tpu.memory_space<vmem>>, %arg10: memref<1x1x2x256xf32, #tpu.memory_space<vmem>>, %arg11: memref<2x256xf32, #tpu.memory_space<vmem>>) attributes {dimension_semantics = [#tpu.dimension_semantics<parallel>, #tpu.dimension_semantics<parallel>, #tpu.dimension_semantics<parallel>, #tpu.dimension_semantics<arbitrary>], iteration_bounds = array<i64: 2, 2, 1, 3>, scalar_prefetch = 0 : i64, scratch_operands = 1 : i64, tpu.core_type = #tpu.core_type<tc>, window_params = [{transform_indices = @transform_0, window_bounds = array<i64: 1, 2, 3, 128>}, {transform_indices = @transform_1, window_bounds = array<i64: 1, 3, 128, 256>}, {pipeline_mode = #tpu.pipeline_mode<synchronous>, transform_indices = @transform_2, window_bounds = array<i64: 1, 128>}, {pipeline_mode = #tpu.pipeline_mode<synchronous>, transform_indices = @transform_3, window_bounds = array<i64: 1, 128>}, {transform_indices = @transform_4, window_bounds = array<i64: 1, 256>}, {transform_indices = @transform_5, window_bounds = array<i64: 1, 256>}, {transform_indices = @transform_6, window_bounds = array<i64: 1, 1, 2, 256>}]} {
    %c0_i32 = arith.constant 0 : i32
    %0 = arith.cmpi eq, %arg3, %c0_i32 : i32
    %1 = arith.extui %0 : i1 to i32
    %c0_i32_0 = arith.constant 0 : i32
    %2 = arith.cmpi ne, %1, %c0_i32_0 : i32
    scf.if %2 {
      %cst_34 = arith.constant 0.000000e+00 : f32
      %45 = vector.broadcast %cst_34 : f32 to vector<2x256xf32>
      %c0_35 = arith.constant 0 : index
      %c0_36 = arith.constant 0 : index
      %46 = vector.load %arg11[%c0_35, %c0_36] : memref<2x256xf32, #tpu.memory_space<vmem>>, vector<2x256xf32>
      tpu.vector_store %arg11[%c0_35, %c0_36], %45 {strides = array<i32>} : memref<2x256xf32, #tpu.memory_space<vmem>>, vector<2x256xf32>,
    } else {
    }
    %c0 = arith.constant 0 : index
    %c0_1 = arith.constant 0 : index
    %c0_2 = arith.constant 0 : index
    %c0_3 = arith.constant 0 : index
    %3 = vector.load %arg4[%c0, %c0_1, %c0_2, %c0_3] : memref<1x2x3x128xf32, #tpu.memory_space<vmem>>, vector<1x2x3x128xf32>
    %4 = vector.shape_cast %3 : vector<1x2x3x128xf32> to vector<2x3x128xf32>
    %c0_4 = arith.constant 0 : index
    %c0_5 = arith.constant 0 : index
    %5 = vector.load %arg6[%c0_4, %c0_5] : memref<1x128xf32, #tpu.memory_space<vmem>>, vector<1x128xf32>
    %6 = vector.shape_cast %5 : vector<1x128xf32> to vector<1x1x128xf32>
    %7 = vector.broadcast %6 : vector<1x1x128xf32> to vector<2x3x128xf32>
    %8 = arith.mulf %4, %7 : vector<2x3x128xf32>
    %c0_6 = arith.constant 0 : index
    %c0_7 = arith.constant 0 : index
    %9 = vector.load %arg7[%c0_6, %c0_7] : memref<1x128xf32, #tpu.memory_space<vmem>>, vector<1x128xf32>
    %10 = vector.shape_cast %9 : vector<1x128xf32> to vector<1x1x128xf32>
    %11 = vector.broadcast %10 : vector<1x1x128xf32> to vector<2x3x128xf32>
    %12 = arith.addf %8, %11 : vector<2x3x128xf32>
    %cst = arith.constant 0.000000e+00 : f32
    %13 = vector.broadcast %cst : f32 to vector<2x3x128xf32>
    %14 = arith.maximumf %12, %13 : vector<2x3x128xf32>
    %15 = vector.extract_strided_slice %14 {offsets = [0, 0, 0], sizes = [1, 2, 128], strides = [1, 1, 1]} : vector<2x3x128xf32> to vector<1x2x128xf32>
    %16 = vector.shape_cast %15 : vector<1x2x128xf32> to vector<2x128xf32>
    %c0_8 = arith.constant 0 : index
    %c0_9 = arith.constant 0 : index
    %c0_10 = arith.constant 0 : index
    %c0_11 = arith.constant 0 : index
    %17 = vector.load %arg5[%c0_8, %c0_9, %c0_10, %c0_11] : memref<1x3x128x256xbf16, #tpu.memory_space<vmem>>, vector<1x1x128x256xbf16>
    %18 = vector.shape_cast %17 : vector<1x1x128x256xbf16> to vector<128x256xbf16>
    %c0_12 = arith.constant 0 : index
    %c0_13 = arith.constant 0 : index
    %19 = vector.load %arg11[%c0_12, %c0_13] : memref<2x256xf32, #tpu.memory_space<vmem>>, vector<2x256xf32>
    %20 = arith.truncf %16 : vector<2x128xf32> to vector<2x128xbf16>
    %cst_14 = arith.constant dense<0.000000e+00> : vector<2x256xf32>
    %21 = tpu.matmul %20, %18, %cst_14 {dimension_numbers = #tpu.dot_dimension_numbers<[1], [0], [0], [1], [0, 0, 1, 1], [], []>} : vector<2x128xbf16>, vector<128x256xbf16>, vector<2x256xf32> -> vector<2x256xf32>
    %22 = arith.addf %19, %21 : vector<2x256xf32>
    %c0_15 = arith.constant 0 : index
    %c0_16 = arith.constant 0 : index
    %23 = vector.load %arg11[%c0_15, %c0_16] : memref<2x256xf32, #tpu.memory_space<vmem>>, vector<2x256xf32>
    tpu.vector_store %arg11[%c0_15, %c0_16], %22 {strides = array<i32>} : memref<2x256xf32, #tpu.memory_space<vmem>>, vector<2x256xf32>,
    %24 = vector.extract_strided_slice %14 {offsets = [1, 0, 0], sizes = [1, 2, 128], strides = [1, 1, 1]} : vector<2x3x128xf32> to vector<1x2x128xf32>
    %25 = vector.shape_cast %24 : vector<1x2x128xf32> to vector<2x128xf32>
    %c0_17 = arith.constant 0 : index
    %c1 = arith.constant 1 : index
    %c0_18 = arith.constant 0 : index
    %c0_19 = arith.constant 0 : index
    %26 = vector.load %arg5[%c0_17, %c1, %c0_18, %c0_19] : memref<1x3x128x256xbf16, #tpu.memory_space<vmem>>, vector<1x1x128x256xbf16>
    %27 = vector.shape_cast %26 : vector<1x1x128x256xbf16> to vector<128x256xbf16>
    %c0_20 = arith.constant 0 : index
    %c0_21 = arith.constant 0 : index
    %28 = vector.load %arg11[%c0_20, %c0_21] : memref<2x256xf32, #tpu.memory_space<vmem>>, vector<2x256xf32>
    %29 = arith.truncf %25 : vector<2x128xf32> to vector<2x128xbf16>
    %cst_22 = arith.constant dense<0.000000e+00> : vector<2x256xf32>
    %30 = tpu.matmul %29, %27, %cst_22 {dimension_numbers = #tpu.dot_dimension_numbers<[1], [0], [0], [1], [0, 0, 1, 1], [], []>} : vector<2x128xbf16>, vector<128x256xbf16>, vector<2x256xf32> -> vector<2x256xf32>
    %31 = arith.addf %28, %30 : vector<2x256xf32>
    %c0_23 = arith.constant 0 : index
    %c0_24 = arith.constant 0 : index
    %32 = vector.load %arg11[%c0_23, %c0_24] : memref<2x256xf32, #tpu.memory_space<vmem>>, vector<2x256xf32>
    tpu.vector_store %arg11[%c0_23, %c0_24], %31 {strides = array<i32>} : memref<2x256xf32, #tpu.memory_space<vmem>>, vector<2x256xf32>,
    %33 = vector.extract_strided_slice %14 {offsets = [0, 1, 0], sizes = [1, 2, 128], strides = [1, 1, 1]} : vector<2x3x128xf32> to vector<1x2x128xf32>
    %34 = vector.shape_cast %33 : vector<1x2x128xf32> to vector<2x128xf32>
    %c0_25 = arith.constant 0 : index
    %c2 = arith.constant 2 : index
    %c0_26 = arith.constant 0 : index
    %c0_27 = arith.constant 0 : index
    %35 = vector.load %arg5[%c0_25, %c2, %c0_26, %c0_27] : memref<1x3x128x256xbf16, #tpu.memory_space<vmem>>, vector<1x1x128x256xbf16>
    %36 = vector.shape_cast %35 : vector<1x1x128x256xbf16> to vector<128x256xbf16>
    %c0_28 = arith.constant 0 : index
    %c0_29 = arith.constant 0 : index
    %37 = vector.load %arg11[%c0_28, %c0_29] : memref<2x256xf32, #tpu.memory_space<vmem>>, vector<2x256xf32>
    %38 = arith.truncf %34 : vector<2x128xf32> to vector<2x128xbf16>
    %cst_30 = arith.constant dense<0.000000e+00> : vector<2x256xf32>
    %39 = tpu.matmul %38, %36, %cst_30 {dimension_numbers = #tpu.dot_dimension_numbers<[1], [0], [0], [1], [0, 0, 1, 1], [], []>} : vector<2x128xbf16>, vector<128x256xbf16>, vector<2x256xf32> -> vector<2x256xf32>
    %40 = arith.addf %37, %39 : vector<2x256xf32>
    %c0_31 = arith.constant 0 : index
    %c0_32 = arith.constant 0 : index
    %41 = vector.load %arg11[%c0_31, %c0_32] : memref<2x256xf32, #tpu.memory_space<vmem>>, vector<2x256xf32>
    tpu.vector_store %arg11[%c0_31, %c0_32], %40 {strides = array<i32>} : memref<2x256xf32, #tpu.memory_space<vmem>>, vector<2x256xf32>,
    %c2_i32 = arith.constant 2 : i32
    %42 = arith.cmpi eq, %arg3, %c2_i32 : i32
    %43 = arith.extui %42 : i1 to i32
    %c0_i32_33 = arith.constant 0 : i32
    %44 = arith.cmpi ne, %43, %c0_i32_33 : i32
    scf.if %44 {
      %c0_34 = arith.constant 0 : index
      %c0_35 = arith.constant 0 : index
      %45 = vector.load %arg11[%c0_34, %c0_35] : memref<2x256xf32, #tpu.memory_space<vmem>>, vector<2x256xf32>
      %c0_36 = arith.constant 0 : index
      %c0_37 = arith.constant 0 : index
      %46 = vector.load %arg8[%c0_36, %c0_37] : memref<1x256xf32, #tpu.memory_space<vmem>>, vector<1x256xf32>
      %47 = vector.broadcast %46 : vector<1x256xf32> to vector<2x256xf32>
      %48 = arith.mulf %45, %47 : vector<2x256xf32>
      %c0_38 = arith.constant 0 : index
      %c0_39 = arith.constant 0 : index
      %49 = vector.load %arg9[%c0_38, %c0_39] : memref<1x256xf32, #tpu.memory_space<vmem>>, vector<1x256xf32>
      %50 = vector.broadcast %49 : vector<1x256xf32> to vector<2x256xf32>
      %51 = arith.addf %48, %50 : vector<2x256xf32>
      %cst_40 = arith.constant 0.000000e+00 : f32
      %52 = vector.broadcast %cst_40 : f32 to vector<2x256xf32>
      %53 = arith.maximumf %51, %52 : vector<2x256xf32>
      %c0_41 = arith.constant 0 : index
      %c0_42 = arith.constant 0 : index
      %c0_43 = arith.constant 0 : index
      %c0_44 = arith.constant 0 : index
      %54 = vector.load %arg10[%c0_41, %c0_42, %c0_43, %c0_44] : memref<1x1x2x256xf32, #tpu.memory_space<vmem>>, vector<1x1x2x256xf32>
      %55 = vector.shape_cast %54 : vector<1x1x2x256xf32> to vector<2x256xf32>
      %56 = vector.shape_cast %53 : vector<2x256xf32> to vector<1x1x2x256xf32>
      tpu.vector_store %arg10[%c0_41, %c0_42, %c0_43, %c0_44], %56 {strides = array<i32>} : memref<1x1x2x256xf32, #tpu.memory_space<vmem>>, vector<1x1x2x256xf32>,
    } else {
    }
    return
  }
  func.func @transform_0(%arg0: i32, %arg1: i32, %arg2: i32, %arg3: i32) -> (i32, i32, i32, i32) {
    %c2_i32 = arith.constant 2 : i32
    %0 = arith.muli %c2_i32, %arg1 : i32
    %1 = arith.addi %0, %arg3 : i32
    %c0_i32 = arith.constant 0 : i32
    %c0_i32_0 = arith.constant 0 : i32
    %c0_i32_1 = arith.constant 0 : i32
    return %arg0, %1, %c0_i32, %c0_i32_0 : i32, i32, i32, i32
  }
  func.func @transform_1(%arg0: i32, %arg1: i32, %arg2: i32, %arg3: i32) -> (i32, i32, i32, i32) {
    %c0_i32 = arith.constant 0 : i32
    %c0_i32_0 = arith.constant 0 : i32
    %c0_i32_1 = arith.constant 0 : i32
    return %arg3, %c0_i32, %c0_i32_0, %arg2 : i32, i32, i32, i32
  }
  func.func @transform_2(%arg0: i32, %arg1: i32, %arg2: i32, %arg3: i32) -> (i32, i32) {
    %c0_i32 = arith.constant 0 : i32
    %c0_i32_0 = arith.constant 0 : i32
    %c0_i32_1 = arith.constant 0 : i32
    return %c0_i32, %c0_i32_0 : i32, i32
  }
  func.func @transform_3(%arg0: i32, %arg1: i32, %arg2: i32, %arg3: i32) -> (i32, i32) {
    %c0_i32 = arith.constant 0 : i32
    %c0_i32_0 = arith.constant 0 : i32
    %c0_i32_1 = arith.constant 0 : i32
    return %c0_i32, %c0_i32_0 : i32, i32
  }
  func.func @transform_4(%arg0: i32, %arg1: i32, %arg2: i32, %arg3: i32) -> (i32, i32) {
    %c0_i32 = arith.constant 0 : i32
    %c0_i32_0 = arith.constant 0 : i32
    return %c0_i32, %arg2 : i32, i32
  }
  func.func @transform_5(%arg0: i32, %arg1: i32, %arg2: i32, %arg3: i32) -> (i32, i32) {
    %c0_i32 = arith.constant 0 : i32
    %c0_i32_0 = arith.constant 0 : i32
    return %c0_i32, %arg2 : i32, i32
  }
  func.func @transform_6(%arg0: i32, %arg1: i32, %arg2: i32, %arg3: i32) -> (i32, i32, i32, i32) {
    %c0_i32 = arith.constant 0 : i32
    %c0_i32_0 = arith.constant 0 : i32
    return %arg0, %arg1, %c0_i32, %arg2 : i32, i32, i32, i32
  }
}

module attributes {stable_mosaic.version = 11 : i64} {
  func.func @_fused_conv_kernel(%arg0: i32, %arg1: i32, %arg2: i32, %arg3: i32, %arg4: memref<1x2x2x256xf32, #tpu.memory_space<vmem>>, %arg5: memref<1x3x256x512xbf16, #tpu.memory_space<vmem>>, %arg6: memref<1x256xf32, #tpu.memory_space<vmem>>, %arg7: memref<1x256xf32, #tpu.memory_space<vmem>>, %arg8: memref<1x512xf32, #tpu.memory_space<vmem>>, %arg9: memref<1x512xf32, #tpu.memory_space<vmem>>, %arg10: memref<1x1x1x512xf32, #tpu.memory_space<vmem>>, %arg11: memref<1x512xf32, #tpu.memory_space<vmem>>) attributes {dimension_semantics = [#tpu.dimension_semantics<parallel>, #tpu.dimension_semantics<parallel>, #tpu.dimension_semantics<parallel>, #tpu.dimension_semantics<arbitrary>], iteration_bounds = array<i64: 2, 1, 1, 3>, scalar_prefetch = 0 : i64, scratch_operands = 1 : i64, tpu.core_type = #tpu.core_type<tc>, window_params = [{transform_indices = @transform_0, window_bounds = array<i64: 1, 2, 2, 256>}, {transform_indices = @transform_1, window_bounds = array<i64: 1, 3, 256, 512>}, {pipeline_mode = #tpu.pipeline_mode<synchronous>, transform_indices = @transform_2, window_bounds = array<i64: 1, 256>}, {pipeline_mode = #tpu.pipeline_mode<synchronous>, transform_indices = @transform_3, window_bounds = array<i64: 1, 256>}, {transform_indices = @transform_4, window_bounds = array<i64: 1, 512>}, {transform_indices = @transform_5, window_bounds = array<i64: 1, 512>}, {transform_indices = @transform_6, window_bounds = array<i64: 1, 1, 1, 512>}]} {
    %c0_i32 = arith.constant 0 : i32
    %0 = arith.cmpi eq, %arg3, %c0_i32 : i32
    %1 = arith.extui %0 : i1 to i32
    %c0_i32_0 = arith.constant 0 : i32
    %2 = arith.cmpi ne, %1, %c0_i32_0 : i32
    scf.if %2 {
      %cst_34 = arith.constant 0.000000e+00 : f32
      %45 = vector.broadcast %cst_34 : f32 to vector<1x512xf32>
      %c0_35 = arith.constant 0 : index
      %c0_36 = arith.constant 0 : index
      %46 = vector.load %arg11[%c0_35, %c0_36] : memref<1x512xf32, #tpu.memory_space<vmem>>, vector<1x512xf32>
      tpu.vector_store %arg11[%c0_35, %c0_36], %45 {strides = array<i32>} : memref<1x512xf32, #tpu.memory_space<vmem>>, vector<1x512xf32>,
    } else {
    }
    %c0 = arith.constant 0 : index
    %c0_1 = arith.constant 0 : index
    %c0_2 = arith.constant 0 : index
    %c0_3 = arith.constant 0 : index
    %3 = vector.load %arg4[%c0, %c0_1, %c0_2, %c0_3] : memref<1x2x2x256xf32, #tpu.memory_space<vmem>>, vector<1x2x2x256xf32>
    %4 = vector.shape_cast %3 : vector<1x2x2x256xf32> to vector<2x2x256xf32>
    %c0_4 = arith.constant 0 : index
    %c0_5 = arith.constant 0 : index
    %5 = vector.load %arg6[%c0_4, %c0_5] : memref<1x256xf32, #tpu.memory_space<vmem>>, vector<1x256xf32>
    %6 = vector.shape_cast %5 : vector<1x256xf32> to vector<1x1x256xf32>
    %7 = vector.broadcast %6 : vector<1x1x256xf32> to vector<2x2x256xf32>
    %8 = arith.mulf %4, %7 : vector<2x2x256xf32>
    %c0_6 = arith.constant 0 : index
    %c0_7 = arith.constant 0 : index
    %9 = vector.load %arg7[%c0_6, %c0_7] : memref<1x256xf32, #tpu.memory_space<vmem>>, vector<1x256xf32>
    %10 = vector.shape_cast %9 : vector<1x256xf32> to vector<1x1x256xf32>
    %11 = vector.broadcast %10 : vector<1x1x256xf32> to vector<2x2x256xf32>
    %12 = arith.addf %8, %11 : vector<2x2x256xf32>
    %cst = arith.constant 0.000000e+00 : f32
    %13 = vector.broadcast %cst : f32 to vector<2x2x256xf32>
    %14 = arith.maximumf %12, %13 : vector<2x2x256xf32>
    %15 = vector.extract_strided_slice %14 {offsets = [0, 0, 0], sizes = [1, 1, 256], strides = [1, 1, 1]} : vector<2x2x256xf32> to vector<1x1x256xf32>
    %16 = vector.shape_cast %15 : vector<1x1x256xf32> to vector<1x256xf32>
    %c0_8 = arith.constant 0 : index
    %c0_9 = arith.constant 0 : index
    %c0_10 = arith.constant 0 : index
    %c0_11 = arith.constant 0 : index
    %17 = vector.load %arg5[%c0_8, %c0_9, %c0_10, %c0_11] : memref<1x3x256x512xbf16, #tpu.memory_space<vmem>>, vector<1x1x256x512xbf16>
    %18 = vector.shape_cast %17 : vector<1x1x256x512xbf16> to vector<256x512xbf16>
    %c0_12 = arith.constant 0 : index
    %c0_13 = arith.constant 0 : index
    %19 = vector.load %arg11[%c0_12, %c0_13] : memref<1x512xf32, #tpu.memory_space<vmem>>, vector<1x512xf32>
    %20 = arith.truncf %16 : vector<1x256xf32> to vector<1x256xbf16>
    %cst_14 = arith.constant dense<0.000000e+00> : vector<1x512xf32>
    %21 = tpu.matmul %20, %18, %cst_14 {dimension_numbers = #tpu.dot_dimension_numbers<[1], [0], [0], [1], [0, 0, 1, 1], [], []>} : vector<1x256xbf16>, vector<256x512xbf16>, vector<1x512xf32> -> vector<1x512xf32>
    %22 = arith.addf %19, %21 : vector<1x512xf32>
    %c0_15 = arith.constant 0 : index
    %c0_16 = arith.constant 0 : index
    %23 = vector.load %arg11[%c0_15, %c0_16] : memref<1x512xf32, #tpu.memory_space<vmem>>, vector<1x512xf32>
    tpu.vector_store %arg11[%c0_15, %c0_16], %22 {strides = array<i32>} : memref<1x512xf32, #tpu.memory_space<vmem>>, vector<1x512xf32>,
    %24 = vector.extract_strided_slice %14 {offsets = [1, 0, 0], sizes = [1, 1, 256], strides = [1, 1, 1]} : vector<2x2x256xf32> to vector<1x1x256xf32>
    %25 = vector.shape_cast %24 : vector<1x1x256xf32> to vector<1x256xf32>
    %c0_17 = arith.constant 0 : index
    %c1 = arith.constant 1 : index
    %c0_18 = arith.constant 0 : index
    %c0_19 = arith.constant 0 : index
    %26 = vector.load %arg5[%c0_17, %c1, %c0_18, %c0_19] : memref<1x3x256x512xbf16, #tpu.memory_space<vmem>>, vector<1x1x256x512xbf16>
    %27 = vector.shape_cast %26 : vector<1x1x256x512xbf16> to vector<256x512xbf16>
    %c0_20 = arith.constant 0 : index
    %c0_21 = arith.constant 0 : index
    %28 = vector.load %arg11[%c0_20, %c0_21] : memref<1x512xf32, #tpu.memory_space<vmem>>, vector<1x512xf32>
    %29 = arith.truncf %25 : vector<1x256xf32> to vector<1x256xbf16>
    %cst_22 = arith.constant dense<0.000000e+00> : vector<1x512xf32>
    %30 = tpu.matmul %29, %27, %cst_22 {dimension_numbers = #tpu.dot_dimension_numbers<[1], [0], [0], [1], [0, 0, 1, 1], [], []>} : vector<1x256xbf16>, vector<256x512xbf16>, vector<1x512xf32> -> vector<1x512xf32>
    %31 = arith.addf %28, %30 : vector<1x512xf32>
    %c0_23 = arith.constant 0 : index
    %c0_24 = arith.constant 0 : index
    %32 = vector.load %arg11[%c0_23, %c0_24] : memref<1x512xf32, #tpu.memory_space<vmem>>, vector<1x512xf32>
    tpu.vector_store %arg11[%c0_23, %c0_24], %31 {strides = array<i32>} : memref<1x512xf32, #tpu.memory_space<vmem>>, vector<1x512xf32>,
    %33 = vector.extract_strided_slice %14 {offsets = [0, 1, 0], sizes = [1, 1, 256], strides = [1, 1, 1]} : vector<2x2x256xf32> to vector<1x1x256xf32>
    %34 = vector.shape_cast %33 : vector<1x1x256xf32> to vector<1x256xf32>
    %c0_25 = arith.constant 0 : index
    %c2 = arith.constant 2 : index
    %c0_26 = arith.constant 0 : index
    %c0_27 = arith.constant 0 : index
    %35 = vector.load %arg5[%c0_25, %c2, %c0_26, %c0_27] : memref<1x3x256x512xbf16, #tpu.memory_space<vmem>>, vector<1x1x256x512xbf16>
    %36 = vector.shape_cast %35 : vector<1x1x256x512xbf16> to vector<256x512xbf16>
    %c0_28 = arith.constant 0 : index
    %c0_29 = arith.constant 0 : index
    %37 = vector.load %arg11[%c0_28, %c0_29] : memref<1x512xf32, #tpu.memory_space<vmem>>, vector<1x512xf32>
    %38 = arith.truncf %34 : vector<1x256xf32> to vector<1x256xbf16>
    %cst_30 = arith.constant dense<0.000000e+00> : vector<1x512xf32>
    %39 = tpu.matmul %38, %36, %cst_30 {dimension_numbers = #tpu.dot_dimension_numbers<[1], [0], [0], [1], [0, 0, 1, 1], [], []>} : vector<1x256xbf16>, vector<256x512xbf16>, vector<1x512xf32> -> vector<1x512xf32>
    %40 = arith.addf %37, %39 : vector<1x512xf32>
    %c0_31 = arith.constant 0 : index
    %c0_32 = arith.constant 0 : index
    %41 = vector.load %arg11[%c0_31, %c0_32] : memref<1x512xf32, #tpu.memory_space<vmem>>, vector<1x512xf32>
    tpu.vector_store %arg11[%c0_31, %c0_32], %40 {strides = array<i32>} : memref<1x512xf32, #tpu.memory_space<vmem>>, vector<1x512xf32>,
    %c2_i32 = arith.constant 2 : i32
    %42 = arith.cmpi eq, %arg3, %c2_i32 : i32
    %43 = arith.extui %42 : i1 to i32
    %c0_i32_33 = arith.constant 0 : i32
    %44 = arith.cmpi ne, %43, %c0_i32_33 : i32
    scf.if %44 {
      %c0_34 = arith.constant 0 : index
      %c0_35 = arith.constant 0 : index
      %45 = vector.load %arg11[%c0_34, %c0_35] : memref<1x512xf32, #tpu.memory_space<vmem>>, vector<1x512xf32>
      %c0_36 = arith.constant 0 : index
      %c0_37 = arith.constant 0 : index
      %46 = vector.load %arg8[%c0_36, %c0_37] : memref<1x512xf32, #tpu.memory_space<vmem>>, vector<1x512xf32>
      %47 = arith.mulf %45, %46 : vector<1x512xf32>
      %c0_38 = arith.constant 0 : index
      %c0_39 = arith.constant 0 : index
      %48 = vector.load %arg9[%c0_38, %c0_39] : memref<1x512xf32, #tpu.memory_space<vmem>>, vector<1x512xf32>
      %49 = arith.addf %47, %48 : vector<1x512xf32>
      %cst_40 = arith.constant 0.000000e+00 : f32
      %50 = vector.broadcast %cst_40 : f32 to vector<1x512xf32>
      %51 = arith.maximumf %49, %50 : vector<1x512xf32>
      %c0_41 = arith.constant 0 : index
      %c0_42 = arith.constant 0 : index
      %c0_43 = arith.constant 0 : index
      %c0_44 = arith.constant 0 : index
      %52 = vector.load %arg10[%c0_41, %c0_42, %c0_43, %c0_44] : memref<1x1x1x512xf32, #tpu.memory_space<vmem>>, vector<1x1x1x512xf32>
      %53 = vector.shape_cast %52 : vector<1x1x1x512xf32> to vector<1x512xf32>
      %54 = vector.shape_cast %51 : vector<1x512xf32> to vector<1x1x1x512xf32>
      tpu.vector_store %arg10[%c0_41, %c0_42, %c0_43, %c0_44], %54 {strides = array<i32>} : memref<1x1x1x512xf32, #tpu.memory_space<vmem>>, vector<1x1x1x512xf32>,
    } else {
    }
    return
  }
  func.func @transform_0(%arg0: i32, %arg1: i32, %arg2: i32, %arg3: i32) -> (i32, i32, i32, i32) {
    %c2_i32 = arith.constant 2 : i32
    %0 = arith.muli %c2_i32, %arg1 : i32
    %1 = arith.addi %0, %arg3 : i32
    %c0_i32 = arith.constant 0 : i32
    %c0_i32_0 = arith.constant 0 : i32
    %c0_i32_1 = arith.constant 0 : i32
    return %arg0, %1, %c0_i32, %c0_i32_0 : i32, i32, i32, i32
  }
  func.func @transform_1(%arg0: i32, %arg1: i32, %arg2: i32, %arg3: i32) -> (i32, i32, i32, i32) {
    %c0_i32 = arith.constant 0 : i32
    %c0_i32_0 = arith.constant 0 : i32
    %c0_i32_1 = arith.constant 0 : i32
    return %arg3, %c0_i32, %c0_i32_0, %arg2 : i32, i32, i32, i32
  }
  func.func @transform_2(%arg0: i32, %arg1: i32, %arg2: i32, %arg3: i32) -> (i32, i32) {
    %c0_i32 = arith.constant 0 : i32
    %c0_i32_0 = arith.constant 0 : i32
    %c0_i32_1 = arith.constant 0 : i32
    return %c0_i32, %c0_i32_0 : i32, i32
  }
  func.func @transform_3(%arg0: i32, %arg1: i32, %arg2: i32, %arg3: i32) -> (i32, i32) {
    %c0_i32 = arith.constant 0 : i32
    %c0_i32_0 = arith.constant 0 : i32
    %c0_i32_1 = arith.constant 0 : i32
    return %c0_i32, %c0_i32_0 : i32, i32
  }
  func.func @transform_4(%arg0: i32, %arg1: i32, %arg2: i32, %arg3: i32) -> (i32, i32) {
    %c0_i32 = arith.constant 0 : i32
    %c0_i32_0 = arith.constant 0 : i32
    return %c0_i32, %arg2 : i32, i32
  }
  func.func @transform_5(%arg0: i32, %arg1: i32, %arg2: i32, %arg3: i32) -> (i32, i32) {
    %c0_i32 = arith.constant 0 : i32
    %c0_i32_0 = arith.constant 0 : i32
    return %c0_i32, %arg2 : i32, i32
  }
  func.func @transform_6(%arg0: i32, %arg1: i32, %arg2: i32, %arg3: i32) -> (i32, i32, i32, i32) {
    %c0_i32 = arith.constant 0 : i32
    %c0_i32_0 = arith.constant 0 : i32
    return %arg0, %arg1, %c0_i32, %arg2 : i32, i32, i32, i32
  }
}

module attributes {stable_mosaic.version = 11 : i64} {
  func.func @_fused_conv_kernel(%arg0: i32, %arg1: i32, %arg2: i32, %arg3: i32, %arg4: memref<1x2x1x256xf32, #tpu.memory_space<vmem>>, %arg5: memref<1x1x256x512xbf16, #tpu.memory_space<vmem>>, %arg6: memref<1x256xf32, #tpu.memory_space<vmem>>, %arg7: memref<1x256xf32, #tpu.memory_space<vmem>>, %arg8: memref<1x512xf32, #tpu.memory_space<vmem>>, %arg9: memref<1x512xf32, #tpu.memory_space<vmem>>, %arg10: memref<1x1x1x512xf32, #tpu.memory_space<vmem>>, %arg11: memref<1x512xf32, #tpu.memory_space<vmem>>) attributes {dimension_semantics = [#tpu.dimension_semantics<parallel>, #tpu.dimension_semantics<parallel>, #tpu.dimension_semantics<parallel>, #tpu.dimension_semantics<arbitrary>], iteration_bounds = array<i64: 2, 1, 1, 1>, scalar_prefetch = 0 : i64, scratch_operands = 1 : i64, tpu.core_type = #tpu.core_type<tc>, window_params = [{transform_indices = @transform_0, window_bounds = array<i64: 1, 2, 1, 256>}, {transform_indices = @transform_1, window_bounds = array<i64: 1, 1, 256, 512>}, {pipeline_mode = #tpu.pipeline_mode<synchronous>, transform_indices = @transform_2, window_bounds = array<i64: 1, 256>}, {pipeline_mode = #tpu.pipeline_mode<synchronous>, transform_indices = @transform_3, window_bounds = array<i64: 1, 256>}, {transform_indices = @transform_4, window_bounds = array<i64: 1, 512>}, {transform_indices = @transform_5, window_bounds = array<i64: 1, 512>}, {transform_indices = @transform_6, window_bounds = array<i64: 1, 1, 1, 512>}]} {
    %c0_i32 = arith.constant 0 : i32
    %0 = arith.cmpi eq, %arg3, %c0_i32 : i32
    %1 = arith.extui %0 : i1 to i32
    %c0_i32_0 = arith.constant 0 : i32
    %2 = arith.cmpi ne, %1, %c0_i32_0 : i32
    scf.if %2 {
      %cst_14 = arith.constant 0.000000e+00 : f32
      %17 = vector.broadcast %cst_14 : f32 to vector<1x512xf32>
      %c0_15 = arith.constant 0 : index
      %c0_16 = arith.constant 0 : index
      %18 = vector.load %arg11[%c0_15, %c0_16] : memref<1x512xf32, #tpu.memory_space<vmem>>, vector<1x512xf32>
      tpu.vector_store %arg11[%c0_15, %c0_16], %17 {strides = array<i32>} : memref<1x512xf32, #tpu.memory_space<vmem>>, vector<1x512xf32>,
    } else {
    }
    %c0 = arith.constant 0 : index
    %c0_1 = arith.constant 0 : index
    %c0_2 = arith.constant 0 : index
    %c0_3 = arith.constant 0 : index
    %3 = vector.load %arg4[%c0, %c0_1, %c0_2, %c0_3] : memref<1x2x1x256xf32, #tpu.memory_space<vmem>>, vector<1x2x1x256xf32>
    %4 = vector.shape_cast %3 : vector<1x2x1x256xf32> to vector<2x1x256xf32>
    %5 = vector.extract_strided_slice %4 {offsets = [0, 0, 0], sizes = [1, 1, 256], strides = [1, 1, 1]} : vector<2x1x256xf32> to vector<1x1x256xf32>
    %6 = vector.shape_cast %5 : vector<1x1x256xf32> to vector<1x256xf32>
    %c0_4 = arith.constant 0 : index
    %c0_5 = arith.constant 0 : index
    %c0_6 = arith.constant 0 : index
    %c0_7 = arith.constant 0 : index
    %7 = vector.load %arg5[%c0_4, %c0_5, %c0_6, %c0_7] : memref<1x1x256x512xbf16, #tpu.memory_space<vmem>>, vector<1x1x256x512xbf16>
    %8 = vector.shape_cast %7 : vector<1x1x256x512xbf16> to vector<256x512xbf16>
    %c0_8 = arith.constant 0 : index
    %c0_9 = arith.constant 0 : index
    %9 = vector.load %arg11[%c0_8, %c0_9] : memref<1x512xf32, #tpu.memory_space<vmem>>, vector<1x512xf32>
    %10 = arith.truncf %6 : vector<1x256xf32> to vector<1x256xbf16>
    %cst = arith.constant dense<0.000000e+00> : vector<1x512xf32>
    %11 = tpu.matmul %10, %8, %cst {dimension_numbers = #tpu.dot_dimension_numbers<[1], [0], [0], [1], [0, 0, 1, 1], [], []>} : vector<1x256xbf16>, vector<256x512xbf16>, vector<1x512xf32> -> vector<1x512xf32>
    %12 = arith.addf %9, %11 : vector<1x512xf32>
    %c0_10 = arith.constant 0 : index
    %c0_11 = arith.constant 0 : index
    %13 = vector.load %arg11[%c0_10, %c0_11] : memref<1x512xf32, #tpu.memory_space<vmem>>, vector<1x512xf32>
    tpu.vector_store %arg11[%c0_10, %c0_11], %12 {strides = array<i32>} : memref<1x512xf32, #tpu.memory_space<vmem>>, vector<1x512xf32>,
    %c0_i32_12 = arith.constant 0 : i32
    %14 = arith.cmpi eq, %arg3, %c0_i32_12 : i32
    %15 = arith.extui %14 : i1 to i32
    %c0_i32_13 = arith.constant 0 : i32
    %16 = arith.cmpi ne, %15, %c0_i32_13 : i32
    scf.if %16 {
      %c0_14 = arith.constant 0 : index
      %c0_15 = arith.constant 0 : index
      %17 = vector.load %arg11[%c0_14, %c0_15] : memref<1x512xf32, #tpu.memory_space<vmem>>, vector<1x512xf32>
      %c0_16 = arith.constant 0 : index
      %c0_17 = arith.constant 0 : index
      %18 = vector.load %arg8[%c0_16, %c0_17] : memref<1x512xf32, #tpu.memory_space<vmem>>, vector<1x512xf32>
      %19 = arith.mulf %17, %18 : vector<1x512xf32>
      %c0_18 = arith.constant 0 : index
      %c0_19 = arith.constant 0 : index
      %20 = vector.load %arg9[%c0_18, %c0_19] : memref<1x512xf32, #tpu.memory_space<vmem>>, vector<1x512xf32>
      %21 = arith.addf %19, %20 : vector<1x512xf32>
      %c0_20 = arith.constant 0 : index
      %c0_21 = arith.constant 0 : index
      %c0_22 = arith.constant 0 : index
      %c0_23 = arith.constant 0 : index
      %22 = vector.load %arg10[%c0_20, %c0_21, %c0_22, %c0_23] : memref<1x1x1x512xf32, #tpu.memory_space<vmem>>, vector<1x1x1x512xf32>
      %23 = vector.shape_cast %22 : vector<1x1x1x512xf32> to vector<1x512xf32>
      %24 = vector.shape_cast %21 : vector<1x512xf32> to vector<1x1x1x512xf32>
      tpu.vector_store %arg10[%c0_20, %c0_21, %c0_22, %c0_23], %24 {strides = array<i32>} : memref<1x1x1x512xf32, #tpu.memory_space<vmem>>, vector<1x1x1x512xf32>,
    } else {
    }
    return
  }
  func.func @transform_0(%arg0: i32, %arg1: i32, %arg2: i32, %arg3: i32) -> (i32, i32, i32, i32) {
    %c2_i32 = arith.constant 2 : i32
    %0 = arith.muli %c2_i32, %arg1 : i32
    %1 = arith.addi %0, %arg3 : i32
    %c0_i32 = arith.constant 0 : i32
    %c0_i32_0 = arith.constant 0 : i32
    %c0_i32_1 = arith.constant 0 : i32
    return %arg0, %1, %c0_i32, %c0_i32_0 : i32, i32, i32, i32
  }
  func.func @transform_1(%arg0: i32, %arg1: i32, %arg2: i32, %arg3: i32) -> (i32, i32, i32, i32) {
    %c0_i32 = arith.constant 0 : i32
    %c0_i32_0 = arith.constant 0 : i32
    %c0_i32_1 = arith.constant 0 : i32
    return %arg3, %c0_i32, %c0_i32_0, %arg2 : i32, i32, i32, i32
  }
  func.func @transform_2(%arg0: i32, %arg1: i32, %arg2: i32, %arg3: i32) -> (i32, i32) {
    %c0_i32 = arith.constant 0 : i32
    %c0_i32_0 = arith.constant 0 : i32
    %c0_i32_1 = arith.constant 0 : i32
    return %c0_i32, %c0_i32_0 : i32, i32
  }
  func.func @transform_3(%arg0: i32, %arg1: i32, %arg2: i32, %arg3: i32) -> (i32, i32) {
    %c0_i32 = arith.constant 0 : i32
    %c0_i32_0 = arith.constant 0 : i32
    %c0_i32_1 = arith.constant 0 : i32
    return %c0_i32, %c0_i32_0 : i32, i32
  }
  func.func @transform_4(%arg0: i32, %arg1: i32, %arg2: i32, %arg3: i32) -> (i32, i32) {
    %c0_i32 = arith.constant 0 : i32
    %c0_i32_0 = arith.constant 0 : i32
    return %c0_i32, %arg2 : i32, i32
  }
  func.func @transform_5(%arg0: i32, %arg1: i32, %arg2: i32, %arg3: i32) -> (i32, i32) {
    %c0_i32 = arith.constant 0 : i32
    %c0_i32_0 = arith.constant 0 : i32
    return %c0_i32, %arg2 : i32, i32
  }
  func.func @transform_6(%arg0: i32, %arg1: i32, %arg2: i32, %arg3: i32) -> (i32, i32, i32, i32) {
    %c0_i32 = arith.constant 0 : i32
    %c0_i32_0 = arith.constant 0 : i32
    return %arg0, %arg1, %c0_i32, %arg2 : i32, i32, i32, i32
  }
}

module attributes {stable_mosaic.version = 11 : i64} {
  func.func @_fused_conv_kernel(%arg0: i32, %arg1: i32, %arg2: i32, %arg3: i32, %arg4: memref<1x1x4x256xf32, #tpu.memory_space<vmem>>, %arg5: memref<1x3x256x256xbf16, #tpu.memory_space<vmem>>, %arg6: memref<1x256xf32, #tpu.memory_space<vmem>>, %arg7: memref<1x256xf32, #tpu.memory_space<vmem>>, %arg8: memref<1x256xf32, #tpu.memory_space<vmem>>, %arg9: memref<1x256xf32, #tpu.memory_space<vmem>>, %arg10: memref<1x1x2x256xf32, #tpu.memory_space<vmem>>, %arg11: memref<1x1x2x256xf32, #tpu.memory_space<vmem>>, %arg12: memref<2x256xf32, #tpu.memory_space<vmem>>) attributes {dimension_semantics = [#tpu.dimension_semantics<parallel>, #tpu.dimension_semantics<parallel>, #tpu.dimension_semantics<parallel>, #tpu.dimension_semantics<arbitrary>], iteration_bounds = array<i64: 2, 2, 1, 3>, scalar_prefetch = 0 : i64, scratch_operands = 1 : i64, tpu.core_type = #tpu.core_type<tc>, window_params = [{transform_indices = @transform_0, window_bounds = array<i64: 1, 1, 4, 256>}, {transform_indices = @transform_1, window_bounds = array<i64: 1, 3, 256, 256>}, {pipeline_mode = #tpu.pipeline_mode<synchronous>, transform_indices = @transform_2, window_bounds = array<i64: 1, 256>}, {pipeline_mode = #tpu.pipeline_mode<synchronous>, transform_indices = @transform_3, window_bounds = array<i64: 1, 256>}, {transform_indices = @transform_4, window_bounds = array<i64: 1, 256>}, {transform_indices = @transform_5, window_bounds = array<i64: 1, 256>}, {transform_indices = @transform_6, window_bounds = array<i64: 1, 1, 2, 256>}, {transform_indices = @transform_7, window_bounds = array<i64: 1, 1, 2, 256>}]} {
    %c0_i32 = arith.constant 0 : i32
    %0 = arith.cmpi eq, %arg3, %c0_i32 : i32
    %1 = arith.extui %0 : i1 to i32
    %c0_i32_0 = arith.constant 0 : i32
    %2 = arith.cmpi ne, %1, %c0_i32_0 : i32
    scf.if %2 {
      %cst_29 = arith.constant 0.000000e+00 : f32
      %32 = vector.broadcast %cst_29 : f32 to vector<2x256xf32>
      %c0_30 = arith.constant 0 : index
      %c0_31 = arith.constant 0 : index
      %33 = vector.load %arg12[%c0_30, %c0_31] : memref<2x256xf32, #tpu.memory_space<vmem>>, vector<2x256xf32>
      tpu.vector_store %arg12[%c0_30, %c0_31], %32 {strides = array<i32>} : memref<2x256xf32, #tpu.memory_space<vmem>>, vector<2x256xf32>,
    } else {
    }
    %c0 = arith.constant 0 : index
    %c0_1 = arith.constant 0 : index
    %c0_2 = arith.constant 0 : index
    %c0_3 = arith.constant 0 : index
    %3 = vector.load %arg4[%c0, %c0_1, %c0_2, %c0_3] : memref<1x1x4x256xf32, #tpu.memory_space<vmem>>, vector<1x1x4x256xf32>
    %4 = vector.shape_cast %3 : vector<1x1x4x256xf32> to vector<4x256xf32>
    %5 = vector.extract_strided_slice %4 {offsets = [0, 0], sizes = [2, 256], strides = [1, 1]} : vector<4x256xf32> to vector<2x256xf32>
    %c0_4 = arith.constant 0 : index
    %c0_5 = arith.constant 0 : index
    %c0_6 = arith.constant 0 : index
    %c0_7 = arith.constant 0 : index
    %6 = vector.load %arg5[%c0_4, %c0_5, %c0_6, %c0_7] : memref<1x3x256x256xbf16, #tpu.memory_space<vmem>>, vector<1x1x256x256xbf16>
    %7 = vector.shape_cast %6 : vector<1x1x256x256xbf16> to vector<256x256xbf16>
    %c0_8 = arith.constant 0 : index
    %c0_9 = arith.constant 0 : index
    %8 = vector.load %arg12[%c0_8, %c0_9] : memref<2x256xf32, #tpu.memory_space<vmem>>, vector<2x256xf32>
    %9 = arith.truncf %5 : vector<2x256xf32> to vector<2x256xbf16>
    %cst = arith.constant dense<0.000000e+00> : vector<2x256xf32>
    %10 = tpu.matmul %9, %7, %cst {dimension_numbers = #tpu.dot_dimension_numbers<[1], [0], [0], [1], [0, 0, 1, 1], [], []>} : vector<2x256xbf16>, vector<256x256xbf16>, vector<2x256xf32> -> vector<2x256xf32>
    %11 = arith.addf %8, %10 : vector<2x256xf32>
    %c0_10 = arith.constant 0 : index
    %c0_11 = arith.constant 0 : index
    %12 = vector.load %arg12[%c0_10, %c0_11] : memref<2x256xf32, #tpu.memory_space<vmem>>, vector<2x256xf32>
    tpu.vector_store %arg12[%c0_10, %c0_11], %11 {strides = array<i32>} : memref<2x256xf32, #tpu.memory_space<vmem>>, vector<2x256xf32>,
    %13 = vector.extract_strided_slice %4 {offsets = [1, 0], sizes = [2, 256], strides = [1, 1]} : vector<4x256xf32> to vector<2x256xf32>
    %c0_12 = arith.constant 0 : index
    %c1 = arith.constant 1 : index
    %c0_13 = arith.constant 0 : index
    %c0_14 = arith.constant 0 : index
    %14 = vector.load %arg5[%c0_12, %c1, %c0_13, %c0_14] : memref<1x3x256x256xbf16, #tpu.memory_space<vmem>>, vector<1x1x256x256xbf16>
    %15 = vector.shape_cast %14 : vector<1x1x256x256xbf16> to vector<256x256xbf16>
    %c0_15 = arith.constant 0 : index
    %c0_16 = arith.constant 0 : index
    %16 = vector.load %arg12[%c0_15, %c0_16] : memref<2x256xf32, #tpu.memory_space<vmem>>, vector<2x256xf32>
    %17 = arith.truncf %13 : vector<2x256xf32> to vector<2x256xbf16>
    %cst_17 = arith.constant dense<0.000000e+00> : vector<2x256xf32>
    %18 = tpu.matmul %17, %15, %cst_17 {dimension_numbers = #tpu.dot_dimension_numbers<[1], [0], [0], [1], [0, 0, 1, 1], [], []>} : vector<2x256xbf16>, vector<256x256xbf16>, vector<2x256xf32> -> vector<2x256xf32>
    %19 = arith.addf %16, %18 : vector<2x256xf32>
    %c0_18 = arith.constant 0 : index
    %c0_19 = arith.constant 0 : index
    %20 = vector.load %arg12[%c0_18, %c0_19] : memref<2x256xf32, #tpu.memory_space<vmem>>, vector<2x256xf32>
    tpu.vector_store %arg12[%c0_18, %c0_19], %19 {strides = array<i32>} : memref<2x256xf32, #tpu.memory_space<vmem>>, vector<2x256xf32>,
    %21 = vector.extract_strided_slice %4 {offsets = [2, 0], sizes = [2, 256], strides = [1, 1]} : vector<4x256xf32> to vector<2x256xf32>
    %c0_20 = arith.constant 0 : index
    %c2 = arith.constant 2 : index
    %c0_21 = arith.constant 0 : index
    %c0_22 = arith.constant 0 : index
    %22 = vector.load %arg5[%c0_20, %c2, %c0_21, %c0_22] : memref<1x3x256x256xbf16, #tpu.memory_space<vmem>>, vector<1x1x256x256xbf16>
    %23 = vector.shape_cast %22 : vector<1x1x256x256xbf16> to vector<256x256xbf16>
    %c0_23 = arith.constant 0 : index
    %c0_24 = arith.constant 0 : index
    %24 = vector.load %arg12[%c0_23, %c0_24] : memref<2x256xf32, #tpu.memory_space<vmem>>, vector<2x256xf32>
    %25 = arith.truncf %21 : vector<2x256xf32> to vector<2x256xbf16>
    %cst_25 = arith.constant dense<0.000000e+00> : vector<2x256xf32>
    %26 = tpu.matmul %25, %23, %cst_25 {dimension_numbers = #tpu.dot_dimension_numbers<[1], [0], [0], [1], [0, 0, 1, 1], [], []>} : vector<2x256xbf16>, vector<256x256xbf16>, vector<2x256xf32> -> vector<2x256xf32>
    %27 = arith.addf %24, %26 : vector<2x256xf32>
    %c0_26 = arith.constant 0 : index
    %c0_27 = arith.constant 0 : index
    %28 = vector.load %arg12[%c0_26, %c0_27] : memref<2x256xf32, #tpu.memory_space<vmem>>, vector<2x256xf32>
    tpu.vector_store %arg12[%c0_26, %c0_27], %27 {strides = array<i32>} : memref<2x256xf32, #tpu.memory_space<vmem>>, vector<2x256xf32>,
    %c2_i32 = arith.constant 2 : i32
    %29 = arith.cmpi eq, %arg3, %c2_i32 : i32
    %30 = arith.extui %29 : i1 to i32
    %c0_i32_28 = arith.constant 0 : i32
    %31 = arith.cmpi ne, %30, %c0_i32_28 : i32
    scf.if %31 {
      %c0_29 = arith.constant 0 : index
      %c0_30 = arith.constant 0 : index
      %32 = vector.load %arg12[%c0_29, %c0_30] : memref<2x256xf32, #tpu.memory_space<vmem>>, vector<2x256xf32>
      %c0_31 = arith.constant 0 : index
      %c0_32 = arith.constant 0 : index
      %33 = vector.load %arg8[%c0_31, %c0_32] : memref<1x256xf32, #tpu.memory_space<vmem>>, vector<1x256xf32>
      %34 = vector.broadcast %33 : vector<1x256xf32> to vector<2x256xf32>
      %35 = arith.mulf %32, %34 : vector<2x256xf32>
      %c0_33 = arith.constant 0 : index
      %c0_34 = arith.constant 0 : index
      %36 = vector.load %arg9[%c0_33, %c0_34] : memref<1x256xf32, #tpu.memory_space<vmem>>, vector<1x256xf32>
      %37 = vector.broadcast %36 : vector<1x256xf32> to vector<2x256xf32>
      %38 = arith.addf %35, %37 : vector<2x256xf32>
      %c0_35 = arith.constant 0 : index
      %c0_36 = arith.constant 0 : index
      %c0_37 = arith.constant 0 : index
      %c0_38 = arith.constant 0 : index
      %39 = vector.load %arg10[%c0_35, %c0_36, %c0_37, %c0_38] : memref<1x1x2x256xf32, #tpu.memory_space<vmem>>, vector<1x1x2x256xf32>
      %40 = vector.shape_cast %39 : vector<1x1x2x256xf32> to vector<2x256xf32>
      %41 = arith.addf %38, %40 : vector<2x256xf32>
      %c0_39 = arith.constant 0 : index
      %c0_40 = arith.constant 0 : index
      %c0_41 = arith.constant 0 : index
      %c0_42 = arith.constant 0 : index
      %42 = vector.load %arg11[%c0_39, %c0_40, %c0_41, %c0_42] : memref<1x1x2x256xf32, #tpu.memory_space<vmem>>, vector<1x1x2x256xf32>
      %43 = vector.shape_cast %42 : vector<1x1x2x256xf32> to vector<2x256xf32>
      %44 = vector.shape_cast %41 : vector<2x256xf32> to vector<1x1x2x256xf32>
      tpu.vector_store %arg11[%c0_39, %c0_40, %c0_41, %c0_42], %44 {strides = array<i32>} : memref<1x1x2x256xf32, #tpu.memory_space<vmem>>, vector<1x1x2x256xf32>,
    } else {
    }
    return
  }
  func.func @transform_0(%arg0: i32, %arg1: i32, %arg2: i32, %arg3: i32) -> (i32, i32, i32, i32) {
    %c1_i32 = arith.constant 1 : i32
    %0 = arith.muli %c1_i32, %arg1 : i32
    %1 = arith.addi %0, %arg3 : i32
    %c0_i32 = arith.constant 0 : i32
    %c0_i32_0 = arith.constant 0 : i32
    %c0_i32_1 = arith.constant 0 : i32
    return %arg0, %1, %c0_i32, %c0_i32_0 : i32, i32, i32, i32
  }
  func.func @transform_1(%arg0: i32, %arg1: i32, %arg2: i32, %arg3: i32) -> (i32, i32, i32, i32) {
    %c0_i32 = arith.constant 0 : i32
    %c0_i32_0 = arith.constant 0 : i32
    %c0_i32_1 = arith.constant 0 : i32
    return %arg3, %c0_i32, %c0_i32_0, %arg2 : i32, i32, i32, i32
  }
  func.func @transform_2(%arg0: i32, %arg1: i32, %arg2: i32, %arg3: i32) -> (i32, i32) {
    %c0_i32 = arith.constant 0 : i32
    %c0_i32_0 = arith.constant 0 : i32
    %c0_i32_1 = arith.constant 0 : i32
    return %c0_i32, %c0_i32_0 : i32, i32
  }
  func.func @transform_3(%arg0: i32, %arg1: i32, %arg2: i32, %arg3: i32) -> (i32, i32) {
    %c0_i32 = arith.constant 0 : i32
    %c0_i32_0 = arith.constant 0 : i32
    %c0_i32_1 = arith.constant 0 : i32
    return %c0_i32, %c0_i32_0 : i32, i32
  }
  func.func @transform_4(%arg0: i32, %arg1: i32, %arg2: i32, %arg3: i32) -> (i32, i32) {
    %c0_i32 = arith.constant 0 : i32
    %c0_i32_0 = arith.constant 0 : i32
    return %c0_i32, %arg2 : i32, i32
  }
  func.func @transform_5(%arg0: i32, %arg1: i32, %arg2: i32, %arg3: i32) -> (i32, i32) {
    %c0_i32 = arith.constant 0 : i32
    %c0_i32_0 = arith.constant 0 : i32
    return %c0_i32, %arg2 : i32, i32
  }
  func.func @transform_6(%arg0: i32, %arg1: i32, %arg2: i32, %arg3: i32) -> (i32, i32, i32, i32) {
    %c0_i32 = arith.constant 0 : i32
    %c0_i32_0 = arith.constant 0 : i32
    return %arg0, %arg1, %c0_i32, %arg2 : i32, i32, i32, i32
  }
  func.func @transform_7(%arg0: i32, %arg1: i32, %arg2: i32, %arg3: i32) -> (i32, i32, i32, i32) {
    %c0_i32 = arith.constant 0 : i32
    %c0_i32_0 = arith.constant 0 : i32
    return %arg0, %arg1, %c0_i32, %arg2 : i32, i32, i32, i32
  }
}

module attributes {stable_mosaic.version = 11 : i64} {
  func.func @_fused_conv_kernel(%arg0: i32, %arg1: i32, %arg2: i32, %arg3: i32, %arg4: memref<1x1x3x512xf32, #tpu.memory_space<vmem>>, %arg5: memref<1x3x512x512xbf16, #tpu.memory_space<vmem>>, %arg6: memref<1x512xf32, #tpu.memory_space<vmem>>, %arg7: memref<1x512xf32, #tpu.memory_space<vmem>>, %arg8: memref<1x512xf32, #tpu.memory_space<vmem>>, %arg9: memref<1x512xf32, #tpu.memory_space<vmem>>, %arg10: memref<1x1x1x512xf32, #tpu.memory_space<vmem>>, %arg11: memref<1x1x1x512xf32, #tpu.memory_space<vmem>>, %arg12: memref<1x512xf32, #tpu.memory_space<vmem>>) attributes {dimension_semantics = [#tpu.dimension_semantics<parallel>, #tpu.dimension_semantics<parallel>, #tpu.dimension_semantics<parallel>, #tpu.dimension_semantics<arbitrary>], iteration_bounds = array<i64: 2, 1, 1, 3>, scalar_prefetch = 0 : i64, scratch_operands = 1 : i64, tpu.core_type = #tpu.core_type<tc>, window_params = [{transform_indices = @transform_0, window_bounds = array<i64: 1, 1, 3, 512>}, {transform_indices = @transform_1, window_bounds = array<i64: 1, 3, 512, 512>}, {pipeline_mode = #tpu.pipeline_mode<synchronous>, transform_indices = @transform_2, window_bounds = array<i64: 1, 512>}, {pipeline_mode = #tpu.pipeline_mode<synchronous>, transform_indices = @transform_3, window_bounds = array<i64: 1, 512>}, {transform_indices = @transform_4, window_bounds = array<i64: 1, 512>}, {transform_indices = @transform_5, window_bounds = array<i64: 1, 512>}, {transform_indices = @transform_6, window_bounds = array<i64: 1, 1, 1, 512>}, {transform_indices = @transform_7, window_bounds = array<i64: 1, 1, 1, 512>}]} {
    %c0_i32 = arith.constant 0 : i32
    %0 = arith.cmpi eq, %arg3, %c0_i32 : i32
    %1 = arith.extui %0 : i1 to i32
    %c0_i32_0 = arith.constant 0 : i32
    %2 = arith.cmpi ne, %1, %c0_i32_0 : i32
    scf.if %2 {
      %cst_29 = arith.constant 0.000000e+00 : f32
      %32 = vector.broadcast %cst_29 : f32 to vector<1x512xf32>
      %c0_30 = arith.constant 0 : index
      %c0_31 = arith.constant 0 : index
      %33 = vector.load %arg12[%c0_30, %c0_31] : memref<1x512xf32, #tpu.memory_space<vmem>>, vector<1x512xf32>
      tpu.vector_store %arg12[%c0_30, %c0_31], %32 {strides = array<i32>} : memref<1x512xf32, #tpu.memory_space<vmem>>, vector<1x512xf32>,
    } else {
    }
    %c0 = arith.constant 0 : index
    %c0_1 = arith.constant 0 : index
    %c0_2 = arith.constant 0 : index
    %c0_3 = arith.constant 0 : index
    %3 = vector.load %arg4[%c0, %c0_1, %c0_2, %c0_3] : memref<1x1x3x512xf32, #tpu.memory_space<vmem>>, vector<1x1x3x512xf32>
    %4 = vector.shape_cast %3 : vector<1x1x3x512xf32> to vector<3x512xf32>
    %5 = vector.extract_strided_slice %4 {offsets = [0, 0], sizes = [1, 512], strides = [1, 1]} : vector<3x512xf32> to vector<1x512xf32>
    %c0_4 = arith.constant 0 : index
    %c0_5 = arith.constant 0 : index
    %c0_6 = arith.constant 0 : index
    %c0_7 = arith.constant 0 : index
    %6 = vector.load %arg5[%c0_4, %c0_5, %c0_6, %c0_7] : memref<1x3x512x512xbf16, #tpu.memory_space<vmem>>, vector<1x1x512x512xbf16>
    %7 = vector.shape_cast %6 : vector<1x1x512x512xbf16> to vector<512x512xbf16>
    %c0_8 = arith.constant 0 : index
    %c0_9 = arith.constant 0 : index
    %8 = vector.load %arg12[%c0_8, %c0_9] : memref<1x512xf32, #tpu.memory_space<vmem>>, vector<1x512xf32>
    %9 = arith.truncf %5 : vector<1x512xf32> to vector<1x512xbf16>
    %cst = arith.constant dense<0.000000e+00> : vector<1x512xf32>
    %10 = tpu.matmul %9, %7, %cst {dimension_numbers = #tpu.dot_dimension_numbers<[1], [0], [0], [1], [0, 0, 1, 1], [], []>} : vector<1x512xbf16>, vector<512x512xbf16>, vector<1x512xf32> -> vector<1x512xf32>
    %11 = arith.addf %8, %10 : vector<1x512xf32>
    %c0_10 = arith.constant 0 : index
    %c0_11 = arith.constant 0 : index
    %12 = vector.load %arg12[%c0_10, %c0_11] : memref<1x512xf32, #tpu.memory_space<vmem>>, vector<1x512xf32>
    tpu.vector_store %arg12[%c0_10, %c0_11], %11 {strides = array<i32>} : memref<1x512xf32, #tpu.memory_space<vmem>>, vector<1x512xf32>,
    %13 = vector.extract_strided_slice %4 {offsets = [1, 0], sizes = [1, 512], strides = [1, 1]} : vector<3x512xf32> to vector<1x512xf32>
    %c0_12 = arith.constant 0 : index
    %c1 = arith.constant 1 : index
    %c0_13 = arith.constant 0 : index
    %c0_14 = arith.constant 0 : index
    %14 = vector.load %arg5[%c0_12, %c1, %c0_13, %c0_14] : memref<1x3x512x512xbf16, #tpu.memory_space<vmem>>, vector<1x1x512x512xbf16>
    %15 = vector.shape_cast %14 : vector<1x1x512x512xbf16> to vector<512x512xbf16>
    %c0_15 = arith.constant 0 : index
    %c0_16 = arith.constant 0 : index
    %16 = vector.load %arg12[%c0_15, %c0_16] : memref<1x512xf32, #tpu.memory_space<vmem>>, vector<1x512xf32>
    %17 = arith.truncf %13 : vector<1x512xf32> to vector<1x512xbf16>
    %cst_17 = arith.constant dense<0.000000e+00> : vector<1x512xf32>
    %18 = tpu.matmul %17, %15, %cst_17 {dimension_numbers = #tpu.dot_dimension_numbers<[1], [0], [0], [1], [0, 0, 1, 1], [], []>} : vector<1x512xbf16>, vector<512x512xbf16>, vector<1x512xf32> -> vector<1x512xf32>
    %19 = arith.addf %16, %18 : vector<1x512xf32>
    %c0_18 = arith.constant 0 : index
    %c0_19 = arith.constant 0 : index
    %20 = vector.load %arg12[%c0_18, %c0_19] : memref<1x512xf32, #tpu.memory_space<vmem>>, vector<1x512xf32>
    tpu.vector_store %arg12[%c0_18, %c0_19], %19 {strides = array<i32>} : memref<1x512xf32, #tpu.memory_space<vmem>>, vector<1x512xf32>,
    %21 = vector.extract_strided_slice %4 {offsets = [2, 0], sizes = [1, 512], strides = [1, 1]} : vector<3x512xf32> to vector<1x512xf32>
    %c0_20 = arith.constant 0 : index
    %c2 = arith.constant 2 : index
    %c0_21 = arith.constant 0 : index
    %c0_22 = arith.constant 0 : index
    %22 = vector.load %arg5[%c0_20, %c2, %c0_21, %c0_22] : memref<1x3x512x512xbf16, #tpu.memory_space<vmem>>, vector<1x1x512x512xbf16>
    %23 = vector.shape_cast %22 : vector<1x1x512x512xbf16> to vector<512x512xbf16>
    %c0_23 = arith.constant 0 : index
    %c0_24 = arith.constant 0 : index
    %24 = vector.load %arg12[%c0_23, %c0_24] : memref<1x512xf32, #tpu.memory_space<vmem>>, vector<1x512xf32>
    %25 = arith.truncf %21 : vector<1x512xf32> to vector<1x512xbf16>
    %cst_25 = arith.constant dense<0.000000e+00> : vector<1x512xf32>
    %26 = tpu.matmul %25, %23, %cst_25 {dimension_numbers = #tpu.dot_dimension_numbers<[1], [0], [0], [1], [0, 0, 1, 1], [], []>} : vector<1x512xbf16>, vector<512x512xbf16>, vector<1x512xf32> -> vector<1x512xf32>
    %27 = arith.addf %24, %26 : vector<1x512xf32>
    %c0_26 = arith.constant 0 : index
    %c0_27 = arith.constant 0 : index
    %28 = vector.load %arg12[%c0_26, %c0_27] : memref<1x512xf32, #tpu.memory_space<vmem>>, vector<1x512xf32>
    tpu.vector_store %arg12[%c0_26, %c0_27], %27 {strides = array<i32>} : memref<1x512xf32, #tpu.memory_space<vmem>>, vector<1x512xf32>,
    %c2_i32 = arith.constant 2 : i32
    %29 = arith.cmpi eq, %arg3, %c2_i32 : i32
    %30 = arith.extui %29 : i1 to i32
    %c0_i32_28 = arith.constant 0 : i32
    %31 = arith.cmpi ne, %30, %c0_i32_28 : i32
    scf.if %31 {
      %c0_29 = arith.constant 0 : index
      %c0_30 = arith.constant 0 : index
      %32 = vector.load %arg12[%c0_29, %c0_30] : memref<1x512xf32, #tpu.memory_space<vmem>>, vector<1x512xf32>
      %c0_31 = arith.constant 0 : index
      %c0_32 = arith.constant 0 : index
      %33 = vector.load %arg8[%c0_31, %c0_32] : memref<1x512xf32, #tpu.memory_space<vmem>>, vector<1x512xf32>
      %34 = arith.mulf %32, %33 : vector<1x512xf32>
      %c0_33 = arith.constant 0 : index
      %c0_34 = arith.constant 0 : index
      %35 = vector.load %arg9[%c0_33, %c0_34] : memref<1x512xf32, #tpu.memory_space<vmem>>, vector<1x512xf32>
      %36 = arith.addf %34, %35 : vector<1x512xf32>
      %c0_35 = arith.constant 0 : index
      %c0_36 = arith.constant 0 : index
      %c0_37 = arith.constant 0 : index
      %c0_38 = arith.constant 0 : index
      %37 = vector.load %arg10[%c0_35, %c0_36, %c0_37, %c0_38] : memref<1x1x1x512xf32, #tpu.memory_space<vmem>>, vector<1x1x1x512xf32>
      %38 = vector.shape_cast %37 : vector<1x1x1x512xf32> to vector<1x512xf32>
      %39 = arith.addf %36, %38 : vector<1x512xf32>
      %c0_39 = arith.constant 0 : index
      %c0_40 = arith.constant 0 : index
      %c0_41 = arith.constant 0 : index
      %c0_42 = arith.constant 0 : index
      %40 = vector.load %arg11[%c0_39, %c0_40, %c0_41, %c0_42] : memref<1x1x1x512xf32, #tpu.memory_space<vmem>>, vector<1x1x1x512xf32>
      %41 = vector.shape_cast %40 : vector<1x1x1x512xf32> to vector<1x512xf32>
      %42 = vector.shape_cast %39 : vector<1x512xf32> to vector<1x1x1x512xf32>
      tpu.vector_store %arg11[%c0_39, %c0_40, %c0_41, %c0_42], %42 {strides = array<i32>} : memref<1x1x1x512xf32, #tpu.memory_space<vmem>>, vector<1x1x1x512xf32>,
    } else {
    }
    return
  }
  func.func @transform_0(%arg0: i32, %arg1: i32, %arg2: i32, %arg3: i32) -> (i32, i32, i32, i32) {
    %c1_i32 = arith.constant 1 : i32
    %0 = arith.muli %c1_i32, %arg1 : i32
    %1 = arith.addi %0, %arg3 : i32
    %c0_i32 = arith.constant 0 : i32
    %c0_i32_0 = arith.constant 0 : i32
    %c0_i32_1 = arith.constant 0 : i32
    return %arg0, %1, %c0_i32, %c0_i32_0 : i32, i32, i32, i32
  }
  func.func @transform_1(%arg0: i32, %arg1: i32, %arg2: i32, %arg3: i32) -> (i32, i32, i32, i32) {
    %c0_i32 = arith.constant 0 : i32
    %c0_i32_0 = arith.constant 0 : i32
    %c0_i32_1 = arith.constant 0 : i32
    return %arg3, %c0_i32, %c0_i32_0, %arg2 : i32, i32, i32, i32
  }
  func.func @transform_2(%arg0: i32, %arg1: i32, %arg2: i32, %arg3: i32) -> (i32, i32) {
    %c0_i32 = arith.constant 0 : i32
    %c0_i32_0 = arith.constant 0 : i32
    %c0_i32_1 = arith.constant 0 : i32
    return %c0_i32, %c0_i32_0 : i32, i32
  }
  func.func @transform_3(%arg0: i32, %arg1: i32, %arg2: i32, %arg3: i32) -> (i32, i32) {
    %c0_i32 = arith.constant 0 : i32
    %c0_i32_0 = arith.constant 0 : i32
    %c0_i32_1 = arith.constant 0 : i32
    return %c0_i32, %c0_i32_0 : i32, i32
  }
  func.func @transform_4(%arg0: i32, %arg1: i32, %arg2: i32, %arg3: i32) -> (i32, i32) {
    %c0_i32 = arith.constant 0 : i32
    %c0_i32_0 = arith.constant 0 : i32
    return %c0_i32, %arg2 : i32, i32
  }
  func.func @transform_5(%arg0: i32, %arg1: i32, %arg2: i32, %arg3: i32) -> (i32, i32) {
    %c0_i32 = arith.constant 0 : i32
    %c0_i32_0 = arith.constant 0 : i32
    return %c0_i32, %arg2 : i32, i32
  }
  func.func @transform_6(%arg0: i32, %arg1: i32, %arg2: i32, %arg3: i32) -> (i32, i32, i32, i32) {
    %c0_i32 = arith.constant 0 : i32
    %c0_i32_0 = arith.constant 0 : i32
    return %arg0, %arg1, %c0_i32, %arg2 : i32, i32, i32, i32
  }
  func.func @transform_7(%arg0: i32, %arg1: i32, %arg2: i32, %arg3: i32) -> (i32, i32, i32, i32) {
    %c0_i32 = arith.constant 0 : i32
    %c0_i32_0 = arith.constant 0 : i32
    return %arg0, %arg1, %c0_i32, %arg2 : i32, i32, i32, i32
  }
}

module attributes {stable_mosaic.version = 11 : i64} {
  func.func @_pool_fc_kernel(%arg0: i32, %arg1: memref<2x1x512xf32, #tpu.memory_space<vmem>>, %arg2: memref<512x512xf32, #tpu.memory_space<vmem>>, %arg3: memref<1x512xf32, #tpu.memory_space<vmem>>, %arg4: memref<2x512xf32, #tpu.memory_space<vmem>>) attributes {dimension_semantics = [#tpu.dimension_semantics<arbitrary>], iteration_bounds = array<i64: 1>, scalar_prefetch = 0 : i64, scratch_operands = 0 : i64, tpu.core_type = #tpu.core_type<tc>, window_params = [{pipeline_mode = #tpu.pipeline_mode<synchronous>, transform_indices = @transform_0, window_bounds = array<i64: 2, 1, 512>}, {pipeline_mode = #tpu.pipeline_mode<synchronous>, transform_indices = @transform_1, window_bounds = array<i64: 512, 512>}, {pipeline_mode = #tpu.pipeline_mode<synchronous>, transform_indices = @transform_2, window_bounds = array<i64: 1, 512>}, {pipeline_mode = #tpu.pipeline_mode<synchronous>, transform_indices = @transform_3, window_bounds = array<i64: 2, 512>}]} {
    %c0 = arith.constant 0 : index
    %c0_0 = arith.constant 0 : index
    %c0_1 = arith.constant 0 : index
    %0 = vector.load %arg1[%c0, %c0_0, %c0_1] : memref<2x1x512xf32, #tpu.memory_space<vmem>>, vector<2x1x512xf32>
    %cst = arith.constant dense<0.000000e+00> : vector<2x512xf32>
    %1 = vector.multi_reduction <add>, %0, %cst [1] : vector<2x1x512xf32> to vector<2x512xf32>
    %cst_2 = arith.constant 1.000000e+00 : f32
    %2 = vector.broadcast %cst_2 : f32 to vector<2x512xf32>
    %3 = arith.mulf %1, %2 : vector<2x512xf32>
    %c0_3 = arith.constant 0 : index
    %c0_4 = arith.constant 0 : index
    %4 = vector.load %arg2[%c0_3, %c0_4] : memref<512x512xf32, #tpu.memory_space<vmem>>, vector<512x512xf32>
    %cst_5 = arith.constant dense<0.000000e+00> : vector<2x512xf32>
    %5 = tpu.matmul %3, %4, %cst_5 {dimension_numbers = #tpu.dot_dimension_numbers<[1], [0], [0], [1], [0, 0, 1, 1], [], []>} : vector<2x512xf32>, vector<512x512xf32>, vector<2x512xf32> -> vector<2x512xf32>
    %c0_6 = arith.constant 0 : index
    %c0_7 = arith.constant 0 : index
    %6 = vector.load %arg3[%c0_6, %c0_7] : memref<1x512xf32, #tpu.memory_space<vmem>>, vector<1x512xf32>
    %7 = vector.broadcast %6 : vector<1x512xf32> to vector<2x512xf32>
    %8 = arith.addf %5, %7 : vector<2x512xf32>
    %c0_8 = arith.constant 0 : index
    %c0_9 = arith.constant 0 : index
    %9 = vector.load %arg4[%c0_8, %c0_9] : memref<2x512xf32, #tpu.memory_space<vmem>>, vector<2x512xf32>
    tpu.vector_store %arg4[%c0_8, %c0_9], %8 {strides = array<i32>} : memref<2x512xf32, #tpu.memory_space<vmem>>, vector<2x512xf32>,
    return
  }
  func.func @transform_0(%arg0: i32) -> (i32, i32, i32) {
    %c0_i32 = arith.constant 0 : i32
    %c0_i32_0 = arith.constant 0 : i32
    %c0_i32_1 = arith.constant 0 : i32
    %c0_i32_2 = arith.constant 0 : i32
    return %c0_i32, %c0_i32_0, %c0_i32_1 : i32, i32, i32
  }
  func.func @transform_1(%arg0: i32) -> (i32, i32) {
    %c0_i32 = arith.constant 0 : i32
    %c0_i32_0 = arith.constant 0 : i32
    %c0_i32_1 = arith.constant 0 : i32
    return %c0_i32, %c0_i32_0 : i32, i32
  }
  func.func @transform_2(%arg0: i32) -> (i32, i32) {
    %c0_i32 = arith.constant 0 : i32
    %c0_i32_0 = arith.constant 0 : i32
    %c0_i32_1 = arith.constant 0 : i32
    return %c0_i32, %c0_i32_0 : i32, i32
  }
  func.func @transform_3(%arg0: i32) -> (i32, i32) {
    %c0_i32 = arith.constant 0 : i32
    %c0_i32_0 = arith.constant 0 : i32
    %c0_i32_1 = arith.constant 0 : i32
    return %c0_i32, %c0_i32_0 : i32, i32
  }
}

</mosaic_0001>

<bundles_post_ra>
// kernel: resnet_forward.16
= control target key start
LH: loop header
LB: loop body
LE: loop exit
PB: predicated region body
PF: predicated region fallthrough
CT: control target
= control target key end

     0   :  { %11 = vsyncpa [#allocation4], 0  ;;  %s1102_s0 = inlined_call_operand.vmem [shape: f32[2,32,8,64], index: 0, kind: input, shape index: {}]   ;;  %s1103_s1 = inlined_call_operand.hbm [shape: bf16[1,1,64,64], index: 1, kind: input, shape index: {}]   ;;  %s1104_s2 = inlined_call_operand.vmem [shape: f32[1,64], index: 2, kind: input, shape index: {}]   ;;  %s1105_s3 = inlined_call_operand.vmem [shape: f32[1,64], index: 3, kind: input, shape index: {}]   ;;  %s1106_s4 = inlined_call_operand.hbm [shape: f32[1,64], index: 4, kind: input, shape index: {}]   ;;  %s1107_s5 = inlined_call_operand.hbm [shape: f32[1,64], index: 5, kind: input, shape index: {}]   ;;  %s1108_s6 = inlined_call_operand.vmem [shape: f32[2,8,8,64], index: 6, kind: output, shape index: {}]  }
   0x1   :  { %12 = vsyncpa [#allocation6], 0  ;;  %s939_s21 = smov 0   ;;  %s941_s22 = smov 0  }
   0x2   :  { %s943_s23 = smov 0   ;;  %s945_s2 = smov 0  }
   0x3   :  { %s947_s3 = smov 0  }
   0x4 LB: > { %s897_s24 = smov [#allocation5]   ;;  %s640_s26 = sadd.s32 4294967295, %s895_s3   ;;  %s895_s3 = sphi %s947_s3, %s18_s3   ;;  %s891_s2 = sphi %s945_s2, %s1124_s2   ;;  %s887_s23 = sphi %s943_s23, %s1123_s23   ;;  %s883_s22 = sphi %s941_s22, %s1122_s22   ;;  %s879_s21 = sphi %s939_s21, %s1121_s21  }
   0x5   : > { %s271_s25 = sshll.u32 %s897_s24, 4  ;;  %p644_p0 = scmp.ge.s32.totalorder %s895_s3, 1  ;;  %s272_s25 = int_to_ptr.vmem [resolvable:$true] %s271_s25 }
   0x6   : > { %p233_p1 = scmp.lt.s32.totalorder %s895_s3, 17  ;;  %p967_p2 = scmp.eq.s32.totalorder %s640_s26, 0 }
   0x7   : > { %s40_s30 = sadd.s32 1, %s887_s23  ;;  %s765_s10 = scalar_lea.hbm %s1106_s4, 16 }
   0x8   : > { %s1113_s27 = scalar_select %p967_p2, 1, 0 }
   0x9   : > { %p971_p3 = pnand %p644_p0, %p233_p1  ;;  %p984_p6 = scmp.ge.s32.totalorder %s40_s30, 8 }
   0xa   : > { %p766_p7 = scmp.ne.s32.totalorder %s1106_s4, %s765_s10  ;;  %p772_p11 = scmp.lt.u32.totalorder %s765_s10, %s1106_s4 }
   0xb   : > { %s1114_s28 = scalar_select %p971_p3, 1, 0 }
   0xc   : > { %p698_p4 = pneg %p971_p3 }
   0xd   : > { %s1116_s7 = scalar_select %p984_p6, 1, 0 }
   0xe   : > { %p979_p5 = pnand %p967_p2, %p698_p4 }
  0x10   : > { %p996_p8 = pneg %p979_p5 }
  0x12   : > { %p768_p9 = pnand %p996_p8, %p766_p7 }
  0x14   : > { %p769_p10 = pneg %p768_p9 }
  0x16   : > { %p774_p12 = pnand %p772_p11, %p769_p10 }
  0x18   : > { %777 = shalt.err (!%p774_p12)
}
  0x19   : > { %s778_s16 = scalar_lea.vmem %s272_s25, 16  ;;  %s785_s17 = scalar_lea.vmem %s272_s25, 32 }
  0x1a   : > { %p779_p13 = scmp.ne.s32.totalorder %s272_s25, %s778_s16  ;;  %p786_p4 = scmp.lt.s32.totalorder %s272_s25, %s272_s25 }
  0x1b   : > { %p787_p2 = scmp.lt.s32.totalorder %s785_s17, %s778_s16 }
  0x1c   : > { %p781_p0 = pnand %p779_p13, %p996_p8 }
  0x1d   : > { %p788_p3 = por %p787_p2, %p786_p4 }
  0x1e   : > { %p782_p1 = pneg %p781_p0 }
  0x20   : > { %p789_p6 = pnand %p788_p3, %p782_p1 }
  0x22   : > { %792 = shalt.err (!%p789_p6)
}
  0x23   : > { %704 = dma.hbm_to_vmem [thread:$0]  (!%p979_p5), %s1106_s4, 16, %s272_s25, [#allocation6]  }
  0x24   : > { %p1118_p7 = scmp.ne.s32.totalorder %s1116_s7, 0  ;;  %s44_s20 = sadd.s32 1, %s891_s2 }
  0x25   : > { %s898_s24 = smov [#allocation3]   ;;  %s793_s10 = scalar_lea.hbm %s1103_s1, 512 }
  0x26   : > { %s1126_s30 = smov (%p1118_p7, %s40_s30), 0  ;;  %s1128_s20 = smov (!%p1118_p7, %s44_s20), %s891_s2 }
  0x27   : > { %s249_s26 = sshll.u32 %s898_s24, 4  ;;  %p46_p2 = scmp.ge.s32.totalorder %s1128_s20, 2  ;;  %s250_s26 = int_to_ptr.vmem [resolvable:$true] %s249_s26 }
  0x28   : > { %p794_p3 = scmp.ne.s32.totalorder %s1103_s1, %s793_s10  ;;  %p800_p10 = scmp.lt.u32.totalorder %s793_s10, %s1103_s1 }
  0x29   : > { %s1130_s20 = smov (%p46_p2, %s1128_s20), 0 }
  0x2a   : > { %p796_p6 = pnand %p794_p3, %p996_p8 }
  0x2c   : > { %p797_p9 = pneg %p796_p6 }
  0x2e   : > { %p802_p11 = pnand %p800_p10, %p797_p9 }
  0x30   : > { %805 = shalt.err (!%p802_p11)
}
  0x31   : > { %s806_s14 = scalar_lea.vmem %s250_s26, 512  ;;  %p814_p1 = scmp.lt.s32.totalorder %s250_s26, %s250_s26 }
  0x32   : > { %p807_p12 = scmp.ne.s32.totalorder %s250_s26, %s806_s14  ;;  %p815_p4 = scmp.lt.s32.totalorder %s806_s14, %s806_s14 }
  0x34   : > { %p809_p13 = pnand %p807_p12, %p996_p8  ;;  %p816_p7 = por %p815_p4, %p814_p1 }
  0x36   : > { %p810_p0 = pneg %p809_p13 }
  0x38   : > { %p817_p2 = pnand %p816_p7, %p810_p0 }
  0x3a   : > { %820 = shalt.err (!%p817_p2)
}
  0x3b   : > { %s899_s15 = smov 64   ;;  %s900_s16 = smov 4  }
  0x3c   : > { %701 = dma.hbm_to_vmem [thread:$0]  (!%p979_p5), %s1103_s1, 512, %s250_s26, [#allocation4], %s899_s15, %s899_s15, %s900_s16  }
  0x3d   : > { %s901_s19 = smov [#allocation7]   ;;  %s821_s10 = scalar_lea.hbm %s1107_s5, 16 }
  0x3e   : > { %s284_s24 = sshll.u32 %s901_s19, 4  ;;  %p822_p3 = scmp.ne.s32.totalorder %s1107_s5, %s821_s10  ;;  %s285_s24 = int_to_ptr.vmem [resolvable:$true] %s284_s24 }
  0x3f   : > { %p828_p10 = scmp.lt.u32.totalorder %s821_s10, %s1107_s5 }
  0x40   : > { %p824_p6 = pnand %p822_p3, %p996_p8 }
  0x42   : > { %p825_p9 = pneg %p824_p6 }
  0x44   : > { %p830_p11 = pnand %p828_p10, %p825_p9 }
  0x46   : > { %833 = shalt.err (!%p830_p11)
}
  0x47   : > { %s834_s26 = scalar_lea.vmem %s285_s24, 16  ;;  %s841_s14 = scalar_lea.vmem %s285_s24, 32 }
  0x48   : > { %p835_p12 = scmp.ne.s32.totalorder %s285_s24, %s834_s26  ;;  %p842_p1 = scmp.lt.s32.totalorder %s285_s24, %s285_s24 }
  0x49   : > { %p843_p4 = scmp.lt.s32.totalorder %s841_s14, %s834_s26 }
  0x4a   : > { %p837_p13 = pnand %p835_p12, %p996_p8 }
  0x4b   : > { %p844_p7 = por %p843_p4, %p842_p1 }
  0x4c   : > { %p838_p0 = pneg %p837_p13 }
  0x4e   : > { %p845_p2 = pnand %p844_p7, %p838_p0 }
  0x50   : > { %848 = shalt.err (!%p845_p2)
}
  0x51   : > { %707 = dma.hbm_to_vmem [thread:$0]  (!%p979_p5), %s1107_s5, 16, %s285_s24, [#allocation6]  }
  0x52   : > { %p1119_p3 = scmp.ne.s32.totalorder %s1114_s28, 0 }
  0x53   : > { %p1120_p6 = scmp.ne.s32.totalorder (!%p1119_p3), %s1113_s27, 0 }
  0x54   : > { %314 = sbr.rel (%p1119_p3) target bundleno = 338 (0x152), region = 44 }
  0x5b   : > { %870 = dma.done.wait (%p1120_p6), [#allocation4], 512  }
  0x5c   : > { %872 = vsyncadd (%p1120_p6), [#allocation4], 4294966784 }
  0x5d   : > { %874 = dma.done.wait (%p1120_p6), [#allocation6], 32  }
  0x5e   : > { %876 = vsyncadd (%p1120_p6), [#allocation6], 4294967264  ;;  %s668_s29 = sshll.u32 %s879_s21, 2  ;;  %p367_p5 = scmp.lt.s32.totalorder %s883_s22, 1  ;;  %v902_v0 = vmov 0.0   ;;  %vm903_vm0 = vmmov 0  }
  0x5f   : > { %674 = vmatprep.subr.bf16.mxu0 %v902_v0  ;;  %682 = vmatprep.mubr.msk.bf16.mxu0 %vm903_vm0, %v902_v0  ;;  %p369_p8 = scmp.lt.s32.totalorder %s668_s29, 31  ;;  %vm394_vm1 = vcmask 523264   ;;  %v761_v1 = vld [vmem:[#allocation3] sm:$0xff]   ;;  %v762_v2 = vld [vmem:[#allocation3 + $0x8] sm:$0xff]   ;;  %v763_v3 = vld [vmem:[#allocation3 + $0x10] sm:$0xff]   ;;  %p380_p9 = scmp.lt.s32.totalorder %s879_s21, 7 }
  0x60   : > { %s1132_s22 = smov (!%p367_p5, %s883_s22), 1  ;;  %395 = vst.msk [vmem:[#allocation2] sm:$0xff] %vm394_vm1, %v902_v0  ;;  %675 = vmatpush3.bf16.msra.mxu0 %v761_v1  ;;  %v764_v4 = vld [vmem:[#allocation3 + $0x18] sm:$0xff]   ;;  %v664_v13 = vld [vmem:[#allocation5] ss:$0 sm:$0xff] }
  0x61   : > { %s1134_s29 = smov (!%p369_p8, %s668_s29), 31  ;;  %s655_s28 = sshll.u32 %s1132_s22, 5  ;;  %676 = vmatprep.subr.bf16.mxu0 %v902_v0  ;;  %v665_v15 = vld [vmem:[#allocation7] ss:$0 sm:$0xff] }
  0x62   : > { %s372_s27 = sadd.s32 %s655_s28, %s1134_s29  ;;  %s1136_s21 = smov (!%p380_p9, %s879_s21), 7 }
  0x63   : > { %s656_s13 = sshll.u32 %s372_s27, 3  ;;  %s657_s24 = sshll.u32 %s1132_s22, 3 }
  0x64   : > { %677 = vmatpush3.bf16.msra.mxu0 %v762_v2  ;;  %s374_s19 = scalar_lea.vmem %s1102_s0, %s656_s13  ;;  %s386_s8 = sadd.s32 %s657_s24, %s1136_s21 }
  0x65   : > { %678 = vmatprep.subr.bf16.mxu0 %v902_v0  ;;  %v396_v5 = vld [vmem:[%s374_s19] sm:$0xff]  ;;  %s658_s9 = sshll.u32 %s386_s8, 3 }
  0x66   : > { %v406_v6 = vpack.c.bf16 %v396_v5, %v396_v5  ;;  %s388_s12 = scalar_lea.vmem %s1108_s6, %s658_s9 }
  0x67   : > { %v405_v7 = vld [vmem:[#allocation2] sm:$0xff] }
  0x68   : > { %679 = vmatpush3.bf16.msra.mxu0 %v763_v3 }
  0x69   : > { %680 = vmatprep.subr.bf16.mxu0 %v902_v0 }
  0x6c   : > { %681 = vmatpush3.bf16.msra.mxu0 %v764_v4 }
  0x6f   : > { %683 = vmatmul.mubr.msk.bf16.vlgmr.msra.gmra.mrb[0].mxu0 %vm394_vm1, %v406_v6 }
 0x142   : > { %v469_v8 = vpop.f32.mrb[0].mxu0 }
 0x143   : > { %v475_v9 = vadd.f32 %v469_v8, %v405_v7  ;;  %v684_v10 = vpop.f32.mrb[1].mxu0 }
 0x144   : > { %v472_v11 = vpop.f32.mrb[2].mxu0 }
 0x145   : > { %476 = vst.msk [vmem:[#allocation2] sm:$0xff] %vm394_vm1, %v475_v9  ;;  %v685_v12 = vpop.f32.mrb[3].mxu0 }
 0x14c   : > { %v480_v14 = vld [vmem:[#allocation2] sm:$0xff] }
 0x14d   : > { %v488_v16 = vmul.f32 %v664_v13, %v480_v14 }
 0x14f   : > { %v496_v17 = vadd.f32 %v665_v15, %v488_v16 }
 0x151   : > { %497 = vst.msk [vmem:[%s388_s12] sm:$0xff] %vm394_vm1, %v496_v17 }
 0x152 PF: > { %s18_s3 = sadd.s32 1, %s895_s3   ;;  %s1121_s21 = smov %s887_s23 }
 0x153   : > { %p15_p10 = scmp.ge.s32.totalorder %s18_s3, 18   ;;  %s1122_s22 = smov %s891_s2 }
 0x154   : > { %s1123_s23 = smov %s1126_s30  ;;  %s1124_s2 = smov %s1130_s20 }
 0x155   :  { %17 = sbr.rel (!%p15_p10) target bundleno = 4 (0x4), region = 98 }
 0x15c   :  { %531 = vsyncpa [#allocation4], 1 }
 0x15d   :  { %533 = vsyncpa [#allocation4 + $0x1], 1 }
 0x15e   :  { %534 = vsyncpa [#allocation6], 1 }

// kernel: resnet_forward.14
= control target key start
LH: loop header
LB: loop body
LE: loop exit
PB: predicated region body
PF: predicated region fallthrough
CT: control target
= control target key end

     0   :  { %s828_s21 = smov 0   ;;  %s830_s22 = smov 0   ;;  %s935_s0 = inlined_call_operand.vmem [shape: f32[2,18,18,1], index: 0, kind: input, shape index: {}]   ;;  %s936_s1 = inlined_call_operand.vmem [shape: bf16[3,3,1,64], index: 1, kind: input, shape index: {}]   ;;  %s937_s2 = inlined_call_operand.<no memory space> [shape: f32[1,1], index: 2, kind: input, shape index: {}]   ;;  %s938_s4 = inlined_call_operand.vmem [shape: f32[1,64], index: 4, kind: input, shape index: {}]   ;;  %s939_s5 = inlined_call_operand.vmem [shape: f32[1,64], index: 5, kind: input, shape index: {}]   ;;  %s940_s6 = inlined_call_operand.vmem [shape: f32[2,16,16,64], index: 6, kind: output, shape index: {}]   ;;  %s941_s3 = inlined_call_operand.<no memory space> [shape: f32[1,1], index: 3, kind: input, shape index: {}]  }
   0x1   :  { %s832_s23 = smov 0   ;;  %s834_s24 = smov 0  }
   0x2   :  { %s836_s2 = smov 0   ;;  %s838_s25 = smov 0  }
   0x3   :  { %s840_s26 = smov 0  }
   0x4 LB: > { %s35_s3 = sadd.s32 1, %s777_s24  ;;  %s42_s27 = sadd.s32 1, %s781_s2  ;;  %s789_s26 = sphi %s840_s26, %s20_s26   ;;  %s785_s25 = sphi %s838_s25, %s951_s25   ;;  %s781_s2 = sphi %s836_s2, %s950_s2   ;;  %s777_s24 = sphi %s834_s24, %s949_s24   ;;  %s773_s23 = sphi %s832_s23, %s948_s23   ;;  %s769_s22 = sphi %s830_s22, %s947_s22   ;;  %s765_s21 = sphi %s828_s21, %s946_s21  }
   0x5   : > { %p36_p0 = scmp.ge.s32.totalorder %s35_s3, 3  ;;  %p659_p1 = scmp.ge.s32.totalorder %s789_s26, 1 }
   0x6   : > { %p286_p2 = scmp.lt.s32.totalorder %s789_s26, 97  ;;  %s46_s28 = sadd.s32 1, %s785_s25 }
   0x7   : > { %s953_s3 = smov (%p36_p0, %s35_s3), 0  ;;  %s955_s27 = smov (!%p36_p0, %s42_s27), %s781_s2 }
   0x8   : > { %p287_p3 = pnand %p659_p1, %p286_p2  ;;  %p44_p4 = scmp.ge.s32.totalorder %s955_s27, 16 }
   0x9   : > { %s341_s29 = sadd.s32 (!%p287_p3), %s765_s21, %s769_s22  ;;  %p342_p6 = scmp.lt.s32.totalorder (!%p287_p3), %s773_s23, 1 }
   0xa   : > { %s957_s27 = smov (%p44_p4, %s955_s27), 0  ;;  %s959_s28 = smov (!%p44_p4, %s46_s28), %s785_s25 }
   0xb   : > { %942 = sst [smem:[#allocation5_spill]] %s957_s27  ;;  %p48_p5 = scmp.ge.s32.totalorder %s959_s28, 2 }
   0xc   : > { %290 = sbr.rel (%p287_p3) target bundleno = 207 (0xcf), region = 44  ;;  %p344_p7 = scmp.lt.s32.totalorder (!%p287_p3), %s341_s29, 17 }
   0xd   : > { %s961_s28 = smov (%p48_p5, %s959_s28), 0  ;;  %p352_p8 = scmp.lt.s32.totalorder (!%p287_p3), %s765_s21, 2 }
   0xe   : > { %943 = sst [smem:[#allocation6_spill]] %s961_s28  ;;  %p367_p9 = scmp.lt.s32.totalorder (!%p287_p3), %s769_s22, 15 }
   0xf   : > { %p664_p10 = scmp.ne.s32.totalorder (!%p287_p3), %s765_s21, 0 }
  0x13   : > { %s963_s23 = smov (!%p342_p6, %s773_s23), 1  ;;  %s965_s29 = smov (!%p344_p7, %s341_s29), 17 }
  0x14   : > { %s673_s30 = smul.u32 54, %s963_s23  ;;  %s662_s18 = sshll.u32 %s963_s23, 5  ;;  %vm381_vm0 = vcmask (!%p664_p10), 523264   ;;  %v791_v0 = vmov (!%p664_p10), 0.0  }
  0x15   : > { %s672_s7 = smul.u32 3, %s965_s29  ;;  %s967_s22 = smov (!%p367_p9, %s769_s22), 15  ;;  %382 = vst.msk [vmem:[#allocation2] sm:$0xff] (!%p664_p10), %vm381_vm0, %v791_v0  ;;  %383 = vst.msk [vmem:[#allocation2 + $0x8] sm:$0xff] (!%p664_p10), %vm381_vm0, %v791_v0 }
  0x16   : > { %s353_s8 = scalar_select %p352_p8, %s765_s21, 2 }
  0x17   : > { %s348_s9 = sadd.s32 %s673_s30, %s672_s7  ;;  %s661_s19 = sshll.u32 %s967_s22, 1 }
  0x18   : > { %s660_s10 = sshll.u32 %s348_s9, 3  ;;  %s674_s11 = smul.u32 3, %s353_s8 }
  0x19   : > { %s350_s14 = scalar_lea.vmem %s935_s0, %s660_s10  ;;  %s374_s20 = sadd.s32 %s662_s18, %s661_s19 }
  0x1a   : > { %s885_s17 = scalar_lea.vmem %s936_s1, %s674_s11  ;;  %s663_s28 = sshll.u32 %s374_s20, 3 }
  0x1b   : > { %s891_s30 = scalar_lea.vmem %s940_s6, %s663_s28  ;;  %380 = sbr.rel (%p664_p10) target bundleno = 34 (0x22), region = 48 }
  0x22 PF: > { %v384_v1 = vld [vmem:[%s350_s14] sm:$0xff]  ;;  %v386_v2 = vld [vmem:[%s350_s14 + $0x10] sm:$0x3]  ;;  %v792_v3 = vmov 0   ;;  %v385_v4 = vld [vmem:[%s350_s14 + $0x8] sm:$0xff]  ;;  %v401_v5 = vlaneseq  ;;  %vm409_vm1 = vcmask 523264  }
  0x23   : > { %733 = vset.pattern.permute.xlu0 %v792_v3  ;;  %734 = vset.pattern.permute.xlu1 %v792_v3  ;;  %v387_v7 = vld [vmem:[%s885_s17] sm:$0x1]  ;;  %v665_v10 = vld [vmem:[%s885_s17 + $0x1] sm:$0x1]  ;;  %v389_v18 = vld [vmem:[#allocation2 + $0x8] sm:$0xff]  ;;  %vm432_vm2 = vcmask 1046528  }
  0x24   : > { %393 = vperm.xlu0 %733, %v384_v1   ;;  %419 = vperm.xlu1 %734, %v386_v2   ;;  %v402_v6 = vshrl.u32 %v401_v5, 7  ;;  %v390_v8 = vunpack.c.l.bf16 %v387_v7  ;;  %v416_v12 = vunpack.c.l.bf16 %v665_v10  ;;  %v388_v13 = vld [vmem:[#allocation2] sm:$0xff]  ;;  %vm459_vm3 = vcmask 1045504   ;;  %p667_p11 = scmp.ne.s32.totalorder %s765_s21, 2 }
  0x25   : > { %v666_v20 = vld [vmem:[%s885_s17 + $0x2] sm:$0x1]  ;;  %v668_v51 = vld [vmem:[%s938_s4] ss:$0 sm:$0xff] (!%p667_p11) }
  0x26   : > { %v403_v9 = vsub.s32 0, %v402_v6  ;;  %v448_v26 = vunpack.c.l.bf16 %v666_v20  ;;  %v669_v52 = vld [vmem:[%s939_s5] ss:$0 sm:$0xff] (!%p667_p11) }
  0x28   : > { %398 = vperm.xlu0 %733, %v385_v4   ;;  %v404_v11 = vrot.slane %v390_v8, %v403_v9  ;;  %v425_v16 = vrot.slane %v416_v12, %v403_v9  ;;  %v452_v30 = vrot.slane %v448_v26, %v403_v9 }
  0xa3   : > { %v394_v14 = vpop.permute.xlu0 %393  ;;  %v420_v21 = vpop.permute.xlu1 %419 }
  0xa4   : > { %v405_v15 = vmul.f32 %v404_v11, %v394_v14  ;;  %v426_v24 = vmul.f32 %v425_v16, %v394_v14  ;;  %v428_v27 = vmul.f32 %v425_v16, %v420_v21  ;;  %v453_v36 = vmul.f32 %v452_v30, %v394_v14 }
  0xa5   : > { %v455_v40 = vmul.f32 %v452_v30, %v420_v21 }
  0xa6   : > { %v407_v17 = vadd.f32 %v405_v15, %v388_v13  ;;  %v433_v29 = vrot.slane %v426_v24, 1  ;;  %v436_v31 = vrot.slane %v428_v27, 1  ;;  %v460_v42 = vrot.slane %v453_v36, 2 }
  0xa7   : > { %v399_v19 = vpop.permute.xlu0 %398  ;;  %v463_v43 = vrot.slane %v455_v40, 2 }
  0xa8   : > { %410 = vst.msk [vmem:[#allocation2] sm:$0xff] %vm409_vm1, %v407_v17  ;;  %v406_v22 = vmul.f32 %v404_v11, %v399_v19  ;;  %v427_v23 = vmul.f32 %v425_v16, %v399_v19  ;;  %v454_v35 = vmul.f32 %v452_v30, %v399_v19 }
  0xaa   : > { %v408_v25 = vadd.f32 %v406_v22, %v389_v18  ;;  %v434_v28 = vrot.slane %v427_v23, 1  ;;  %v461_v41 = vrot.slane %v454_v35, 2 }
  0xac   : > { %411 = vst.msk [vmem:[#allocation2 + $0x8] sm:$0xff] %vm409_vm1, %v408_v25  ;;  %v435_v33 = vsel %vm432_vm2, %v433_v29, %v434_v28  ;;  %v437_v38 = vsel %vm432_vm2, %v434_v28, %v436_v31  ;;  %v462_v45 = vsel %vm459_vm3, %v460_v42, %v461_v41  ;;  %v464_v48 = vsel %vm459_vm3, %v461_v41, %v463_v43 }
  0xaf   : > { %v414_v32 = vld [vmem:[#allocation2] sm:$0xff] }
  0xb0   : > { %v440_v34 = vadd.f32 %v435_v33, %v414_v32 }
  0xb2   : > { %442 = vst.msk [vmem:[#allocation2] sm:$0xff] %vm409_vm1, %v440_v34 }
  0xb3   : > { %v415_v37 = vld [vmem:[#allocation2 + $0x8] sm:$0xff] }
  0xb4   : > { %v441_v39 = vadd.f32 %v437_v38, %v415_v37 }
  0xb6   : > { %443 = vst.msk [vmem:[#allocation2 + $0x8] sm:$0xff] %vm409_vm1, %v441_v39 }
  0xb9   : > { %v446_v44 = vld [vmem:[#allocation2] sm:$0xff] }
  0xba   : > { %v467_v46 = vadd.f32 %v462_v45, %v446_v44  ;;  %474 = sbr.rel (%p667_p11) target bundleno = 207 (0xcf), region = 52 }
  0xbc   : > { %469 = vst.msk [vmem:[#allocation2] sm:$0xff] %vm409_vm1, %v467_v46 }
  0xbd   : > { %v447_v47 = vld [vmem:[#allocation2 + $0x8] sm:$0xff] }
  0xbe   : > { %v468_v49 = vadd.f32 %v464_v48, %v447_v47 }
  0xc0   : > { %470 = vst.msk [vmem:[#allocation2 + $0x8] sm:$0xff] %vm409_vm1, %v468_v49 }
  0xc3   : > { %v475_v50 = vld [vmem:[#allocation2] sm:$0xff] }
  0xc4   : > { %v484_v53 = vmul.f32 %v668_v51, %v475_v50 }
  0xc6   : > { %v493_v56 = vadd.f32 %v669_v52, %v484_v53 }
  0xc7   : > { %v476_v54 = vld [vmem:[#allocation2 + $0x8] sm:$0xff] }
  0xc8   : > { %v485_v55 = vmul.f32 %v668_v51, %v476_v54  ;;  %v495_v58 = vmax.f32 %v493_v56, 0.0 }
  0xca   : > { %v494_v57 = vadd.f32 %v669_v52, %v485_v55  ;;  %497 = vst.msk [vmem:[%s891_s30] sm:$0xff] %vm409_vm1, %v495_v58 }
  0xcc   : > { %v496_v59 = vmax.f32 %v494_v57, 0.0 }
  0xce   : > { %498 = vst.msk [vmem:[%s891_s30 + $0x8] sm:$0xff] %vm409_vm1, %v496_v59 }
  0xcf PF: > { %s20_s26 = sadd.s32 1, %s789_s26   ;;  %s944_s7 = sld [smem:[#allocation5_spill]] }
  0xd0   : > { %p17_p12 = scmp.ge.s32.totalorder %s20_s26, 98   ;;  %s945_s8 = sld [smem:[#allocation6_spill]] }
  0xd1   : > { %s946_s21 = smov %s777_s24  ;;  %s947_s22 = smov %s781_s2 }
  0xd2   : > { %s948_s23 = smov %s785_s25  ;;  %s949_s24 = smov %s953_s3 }
  0xd3   :  { %19 = sbr.rel (!%p17_p12) target bundleno = 4 (0x4), region = 93 }
  0xd5   : > { %s950_s2 = smov %s944_s7 }
  0xd6   : > { %s951_s25 = smov %s945_s8 }

// kernel: resnet_forward.17
= control target key start
LH: loop header
LB: loop body
LE: loop exit
PB: predicated region body
PF: predicated region fallthrough
CT: control target
= control target key end

     0   :  { %s1170_s24 = smov 0   ;;  %s1172_s25 = smov 0   ;;  %s1297_s0 = inlined_call_operand.vmem [shape: f32[2,10,10,64], index: 0, kind: input, shape index: {}]   ;;  %s1298_s1 = inlined_call_operand.vmem [shape: bf16[3,3,64,64], index: 1, kind: input, shape index: {}]   ;;  %s1299_s2 = inlined_call_operand.vmem [shape: f32[1,64], index: 2, kind: input, shape index: {}, may-alias: {2,4}]   ;;  %s1300_s3 = inlined_call_operand.vmem [shape: f32[1,64], index: 3, kind: input, shape index: {}, may-alias: {3,5}]   ;;  %s1301_s4 = inlined_call_operand.vmem [shape: f32[1,64], index: 4, kind: input, shape index: {}, may-alias: {2,4}]   ;;  %s1302_s5 = inlined_call_operand.vmem [shape: f32[1,64], index: 5, kind: input, shape index: {}, may-alias: {3,5}]   ;;  %s1303_s6 = inlined_call_operand.vmem [shape: f32[2,8,8,64], index: 6, kind: input, shape index: {}]   ;;  %s1304_s7 = inlined_call_operand.vmem [shape: f32[2,8,8,64], index: 7, kind: output, shape index: {}]  }
   0x1   :  { %s1174_s2 = smov 0   ;;  %s1176_s26 = smov 0  }
   0x2   :  { %s1178_s3 = smov 0   ;;  %s1180_s27 = smov 0  }
   0x3   :  { %s1182_s28 = smov 0  }
   0x4 LB: > { %s32_s29 = sadd.s32 1, %s1113_s26  ;;  %s39_s30 = sadd.s32 1, %s1117_s3  ;;  %s1125_s28 = sphi %s1182_s28, %s17_s28   ;;  %s1121_s27 = sphi %s1180_s27, %s1312_s27   ;;  %s1117_s3 = sphi %s1178_s3, %s1311_s3   ;;  %s1113_s26 = sphi %s1176_s26, %s1310_s26   ;;  %s1109_s2 = sphi %s1174_s2, %s1309_s2   ;;  %s1105_s25 = sphi %s1172_s25, %s1308_s25   ;;  %s1101_s24 = sphi %s1170_s24, %s1307_s24  }
   0x5   : > { %p33_p0 = scmp.ge.s32.totalorder %s32_s29, 3  ;;  %p902_p1 = scmp.ge.s32.totalorder %s1125_s28, 1 }
   0x6   : > { %p328_p2 = scmp.lt.s32.totalorder %s1125_s28, 49  ;;  %s43_s8 = sadd.s32 1, %s1121_s27 }
   0x7   : > { %s1314_s29 = smov (%p33_p0, %s32_s29), 0  ;;  %s1316_s30 = smov (!%p33_p0, %s39_s30), %s1117_s3 }
   0x8   : > { %p329_p3 = pnand %p902_p1, %p328_p2  ;;  %p41_p4 = scmp.ge.s32.totalorder %s1316_s30, 8 }
   0x9   : > { %s396_s9 = sadd.s32 (!%p329_p3), %s1101_s24, %s1105_s25  ;;  %p397_p6 = scmp.lt.s32.totalorder (!%p329_p3), %s1109_s2, 1 }
   0xa   : > { %s1318_s30 = smov (%p41_p4, %s1316_s30), 0  ;;  %s1320_s8 = smov (!%p41_p4, %s43_s8), %s1121_s27 }
   0xb   : > { %p45_p5 = scmp.ge.s32.totalorder %s1320_s8, 2  ;;  %332 = sbr.rel (%p329_p3) target bundleno = 298 (0x12a), region = 48 }
   0xc   : > { %p399_p7 = scmp.lt.s32.totalorder (!%p329_p3), %s396_s9, 9  ;;  %p407_p8 = scmp.lt.s32.totalorder (!%p329_p3), %s1101_s24, 2 }
   0xd   : > { %s1322_s8 = smov (%p45_p5, %s1320_s8), 0  ;;  %p423_p9 = scmp.lt.s32.totalorder (!%p329_p3), %s1105_s25, 7 }
   0xe   : > { %1305 = sst [smem:[#allocation3_spill]] %s1322_s8  ;;  %p910_p10 = scmp.ne.s32.totalorder (!%p329_p3), %s1101_s24, 0 }
  0x12   : > { %s1324_s2 = smov (!%p397_p6, %s1109_s2), 1  ;;  %s1326_s9 = smov (!%p399_p7, %s396_s9), 9 }
  0x13   : > { %s998_s10 = smul.u32 20, %s1324_s2  ;;  %s903_s11 = sshll.u32 %s1326_s9, 1  ;;  %vm448_vm0 = vcmask (!%p910_p10), 523264   ;;  %v1127_v0 = vmov (!%p910_p10), 0.0  }
  0x14   : > { %s906_s17 = sshll.u32 %s1324_s2, 3  ;;  %s1328_s25 = smov (!%p423_p9, %s1105_s25), 7  ;;  %449 = vst.msk [vmem:[#allocation2] sm:$0xff] (!%p910_p10), %vm448_vm0, %v1127_v0 }
  0x15   : > { %s403_s12 = sadd.s32 %s998_s10, %s903_s11  ;;  %s429_s20 = sadd.s32 %s906_s17, %s1328_s25 }
  0x16   : > { %s904_s13 = sshll.u32 %s403_s12, 3  ;;  %s907_s9 = sshll.u32 %s429_s20, 3 }
  0x17   : > { %s1223_s16 = scalar_lea.vmem %s1297_s0, %s904_s13  ;;  %s1235_s11 = scalar_lea.vmem %s1303_s6, %s907_s9 }
  0x18   : > { %s408_s18 = scalar_select %p407_p8, %s1101_s24, 2 }
  0x19   : > { %s1240_s13 = scalar_lea.vmem %s1304_s7, %s907_s9  ;;  %447 = sbr.rel (%p910_p10) target bundleno = 32 (0x20), region = 52 }
  0x1a   : > { %s999_s19 = smul.u32 96, %s408_s18 }
  0x1c   : > { %s1230_s23 = scalar_lea.vmem %s1298_s1, %s999_s19 }
  0x20 PF: > { %v1059_v1 = vld [vmem:[%s1230_s23] sm:$0xff]   ;;  %v1128_v2 = vmov 0.0   ;;  %v1060_v3 = vld [vmem:[%s1230_s23 + $0x8] sm:$0xff]   ;;  %vm1129_vm1 = vmmov 0   ;;  %v1062_v6 = vld [vmem:[%s1230_s23 + $0x10] sm:$0xff]   ;;  %vm486_vm2 = vcmask 523264  }
  0x21   : > { %962 = vmatprep.subr.bf16.mxu0 %v1128_v2  ;;  %974 = vmatprep.subr.bf16.mxu1 %v1128_v2  ;;  %v1061_v4 = vld [vmem:[%s1230_s23 + $0x20] sm:$0xff]   ;;  %v1063_v5 = vld [vmem:[%s1230_s23 + $0x28] sm:$0xff]   ;;  %v1065_v10 = vld [vmem:[%s1230_s23 + $0x30] sm:$0xff]   ;;  %p942_p11 = scmp.ne.s32.totalorder %s1101_s24, 2 }
  0x22   : > { %963 = vmatpush3.bf16.msra.mxu0 %v1059_v1  ;;  %970 = vmatprep.mubr.msk.bf16.mxu0 %vm1129_vm1, %v1128_v2  ;;  %v450_v7 = vld [vmem:[%s1223_s16] sm:$0xff]  ;;  %v451_v8 = vld [vmem:[%s1223_s16 + $0x8] sm:$0x3]  ;;  %v1064_v11 = vld [vmem:[%s1230_s23 + $0x18] sm:$0xff]  }
  0x23   : > { %964 = vmatprep.subr.bf16.mxu0 %v1128_v2  ;;  %982 = vmatprep.mubr.msk.bf16.mxu1 %vm1129_vm1, %v1128_v2  ;;  %v542_v9 = vpack.c.bf16 %v451_v8, %v450_v7  ;;  %v1067_v14 = vld [vmem:[%s1230_s23 + $0x38] sm:$0xff]   ;;  %v461_v16 = vpack.c.bf16 %v450_v7, %v450_v7  ;;  %v1066_v17 = vld [vmem:[%s1230_s23 + $0x40] sm:$0xff]   ;;  %v1068_v19 = vld [vmem:[%s1230_s23 + $0x48] sm:$0xff]  }
  0x24   : > { %975 = vmatpush3.bf16.msra.mxu1 %v1061_v4  ;;  %v1069_v20 = vld [vmem:[%s1230_s23 + $0x50] sm:$0xff]   ;;  %v1070_v21 = vld [vmem:[%s1230_s23 + $0x58] sm:$0xff]   ;;  %v460_v23 = vld [vmem:[#allocation2] sm:$0xff] }
  0x25   : > { %976 = vmatprep.subr.bf16.mxu1 %v1128_v2  ;;  %v546_v12 = vshll.u32 %v542_v9, 16  ;;  %v544_v13 = vshrl.u32 %v542_v9, 16  ;;  %v630_v22 = vrot.slane %v542_v9, 1  ;;  %v943_v42 = vld [vmem:[%s1301_s4] ss:$0 sm:$0xff] (!%p942_p11) }
  0x26   : > { %965 = vmatpush3.bf16.msra.mxu0 %v1060_v3  ;;  %v944_v43 = vld [vmem:[%s1302_s5] ss:$0 sm:$0xff] (!%p942_p11) }
  0x27   : > { %966 = vmatprep.subr.bf16.mxu0 %v1128_v2  ;;  %v548_v15 = vrot.slane %v546_v12, 1  ;;  %v721_v45 = vld [vmem:[%s1235_s11] sm:$0xff] (!%p942_p11) }
  0x28   : > { %977 = vmatpush3.bf16.msra.mxu1 %v1063_v5 }
  0x29   : > { %978 = vmatprep.subr.bf16.mxu1 %v1128_v2  ;;  %v549_v18 = vor.u32 %v548_v15, %v544_v13 }
  0x2a   : > { %967 = vmatpush3.bf16.msra.mxu0 %v1062_v6 }
  0x2b   : > { %968 = vmatprep.subr.bf16.mxu0 %v1128_v2 }
  0x2c   : > { %979 = vmatpush3.bf16.msra.mxu1 %v1065_v10 }
  0x2d   : > { %980 = vmatprep.subr.bf16.mxu1 %v1128_v2 }
  0x2e   : > { %969 = vmatpush3.bf16.msra.mxu0 %v1064_v11 }
  0x2f   : > { %986 = vmatprep.subr.bf16.mxu0 %v1128_v2 }
  0x30   : > { %981 = vmatpush3.bf16.msra.mxu1 %v1067_v14 }
  0x31   : > { %971 = vmatmul.mubr.msk.bf16.vlgmr.msra.gmra.mrb[0].mxu0 %vm486_vm2, %v461_v16 }
  0x32   : > { %987 = vmatpush3.bf16.msra.mxu0 %v1066_v17  ;;  %994 = vmatprep.mubr.msk.bf16.mxu0 %vm1129_vm1, %v1128_v2 }
  0x33   : > { %988 = vmatprep.subr.bf16.mxu0 %v1128_v2  ;;  %983 = vmatmul.mubr.msk.bf16.vlgmr.msra.gmra.mrb[0].mxu1 %vm486_vm2, %v549_v18 }
  0x36   : > { %989 = vmatpush3.bf16.msra.mxu0 %v1068_v19 }
  0x37   : > { %990 = vmatprep.subr.bf16.mxu0 %v1128_v2 }
  0x3a   : > { %991 = vmatpush3.bf16.msra.mxu0 %v1069_v20 }
  0x3b   : > { %992 = vmatprep.subr.bf16.mxu0 %v1128_v2 }
  0x3e   : > { %993 = vmatpush3.bf16.msra.mxu0 %v1070_v21 }
  0x41   : > { %995 = vmatmul.mubr.msk.bf16.vlgmr.msra.gmra.mrb[4].mxu0 %vm486_vm2, %v630_v22 }
 0x104   : > { %v524_v24 = vpop.f32.mrb[0].mxu0 }
 0x105   : > { %v530_v25 = vadd.f32 %v524_v24, %v460_v23  ;;  %v972_v26 = vpop.f32.mrb[1].mxu0 }
 0x106   : > { %v527_v27 = vpop.f32.mrb[2].mxu0  ;;  %v611_v28 = vpop.f32.mrb[0].mxu1 }
 0x107   : > { %531 = vst.msk [vmem:[#allocation2] sm:$0xff] %vm486_vm2, %v530_v25  ;;  %v973_v29 = vpop.f32.mrb[3].mxu0  ;;  %v984_v30 = vpop.f32.mrb[1].mxu1 }
 0x108   : > { %v614_v31 = vpop.f32.mrb[2].mxu1 }
 0x109   : > { %v985_v32 = vpop.f32.mrb[3].mxu1 }
 0x10e   : > { %v541_v33 = vld [vmem:[#allocation2] sm:$0xff] }
 0x10f   : > { %v617_v34 = vadd.f32 %v611_v28, %v541_v33 }
 0x111   : > { %618 = vst.msk [vmem:[#allocation2] sm:$0xff] %vm486_vm2, %v617_v34 }
 0x114   : > { %v692_v35 = vpop.f32.mrb[4].mxu0 }
 0x115   : > { %v996_v36 = vpop.f32.mrb[5].mxu0  ;;  %703 = sbr.rel (%p942_p11) target bundleno = 298 (0x12a), region = 56 }
 0x116   : > { %v695_v37 = vpop.f32.mrb[6].mxu0 }
 0x117   : > { %v997_v38 = vpop.f32.mrb[7].mxu0 }
 0x118   : > { %v628_v39 = vld [vmem:[#allocation2] sm:$0xff] }
 0x119   : > { %v698_v40 = vadd.f32 %v692_v35, %v628_v39 }
 0x11b   : > { %699 = vst.msk [vmem:[#allocation2] sm:$0xff] %vm486_vm2, %v698_v40 }
 0x122   : > { %v704_v41 = vld [vmem:[#allocation2] sm:$0xff] }
 0x123   : > { %v712_v44 = vmul.f32 %v943_v42, %v704_v41 }
 0x125   : > { %v720_v46 = vadd.f32 %v944_v43, %v712_v44 }
 0x127   : > { %v722_v47 = vadd.f32 %v721_v45, %v720_v46 }
 0x129   : > { %723 = vst.msk [vmem:[%s1240_s13] sm:$0xff] %vm486_vm2, %v722_v47 }
 0x12a PF: > { %s17_s28 = sadd.s32 1, %s1125_s28   ;;  %s1306_s16 = sld [smem:[#allocation3_spill]] }
 0x12b   : > { %p14_p12 = scmp.ge.s32.totalorder %s17_s28, 50   ;;  %s1307_s24 = smov %s1113_s26 }
 0x12c   : > { %s1308_s25 = smov %s1117_s3  ;;  %s1309_s2 = smov %s1121_s27 }
 0x12d   : > { %s1310_s26 = smov %s1314_s29  ;;  %s1311_s3 = smov %s1318_s30 }
 0x12e   :  { %16 = sbr.rel (!%p14_p12) target bundleno = 4 (0x4), region = 100 }
 0x130   : > { %s1312_s27 = smov %s1306_s16 }

// kernel: resnet_forward.15
= control target key start
LH: loop header
LB: loop body
LE: loop exit
PB: predicated region body
PF: predicated region fallthrough
CT: control target
= control target key end

     0   :  { %s1113_s21 = smov 0   ;;  %s1115_s22 = smov 0   ;;  %s1241_s0 = inlined_call_operand.vmem [shape: f32[2,36,9,64], index: 0, kind: input, shape index: {}]   ;;  %s1242_s1 = inlined_call_operand.vmem [shape: bf16[3,3,64,64], index: 1, kind: input, shape index: {}]   ;;  %s1243_s2 = inlined_call_operand.vmem [shape: f32[1,64], index: 2, kind: input, shape index: {}]   ;;  %s1244_s3 = inlined_call_operand.vmem [shape: f32[1,64], index: 3, kind: input, shape index: {}]   ;;  %s1245_s4 = inlined_call_operand.vmem [shape: f32[1,64], index: 4, kind: input, shape index: {}]   ;;  %s1246_s5 = inlined_call_operand.vmem [shape: f32[1,64], index: 5, kind: input, shape index: {}]   ;;  %s1247_s6 = inlined_call_operand.vmem [shape: f32[2,8,8,64], index: 6, kind: output, shape index: {}]  }
   0x1   :  { %s1117_s23 = smov 0   ;;  %s1119_s24 = smov 0  }
   0x2   :  { %s1121_s25 = smov 0   ;;  %s1123_s26 = smov 0  }
   0x3   :  { %s1125_s27 = smov 0  }
   0x4 LB: > { %s31_s28 = sadd.s32 1, %s1061_s24  ;;  %s38_s29 = sadd.s32 1, %s1065_s25  ;;  %s1073_s27 = sphi %s1125_s27, %s16_s27   ;;  %s1069_s26 = sphi %s1123_s26, %s1259_s26   ;;  %s1065_s25 = sphi %s1121_s25, %s1258_s25   ;;  %s1061_s24 = sphi %s1119_s24, %s1257_s24   ;;  %s1057_s23 = sphi %s1117_s23, %s1256_s23   ;;  %s1053_s22 = sphi %s1115_s22, %s1255_s22   ;;  %s1049_s21 = sphi %s1113_s21, %s1254_s21  }
   0x5   : > { %p32_p0 = scmp.ge.s32.totalorder %s31_s28, 3  ;;  %p848_p1 = scmp.ge.s32.totalorder %s1073_s27, 1 }
   0x6   : > { %p289_p2 = scmp.lt.s32.totalorder %s1073_s27, 49  ;;  %s42_s30 = sadd.s32 1, %s1069_s26 }
   0x7   : > { %s1261_s28 = smov (%p32_p0, %s31_s28), 0  ;;  %s1263_s29 = smov (!%p32_p0, %s38_s29), %s1065_s25 }
   0x8   : > { %1248 = sst [smem:[#allocation3_spill]] %s1261_s28  ;;  %p290_p3 = pnand %p848_p1, %p289_p2 }
   0x9   : > { %p40_p4 = scmp.ge.s32.totalorder %s1263_s29, 8  ;;  %s849_s7 = sshll.u32 (!%p290_p3), %s1053_s22, 1 }
   0xa   : > { %293 = sbr.rel (%p290_p3) target bundleno = 297 (0x129), region = 44  ;;  %p349_p6 = scmp.lt.s32.totalorder (!%p290_p3), %s1057_s23, 1 }
   0xb   : > { %s1265_s29 = smov (%p40_p4, %s1263_s29), 0  ;;  %s1267_s30 = smov (!%p40_p4, %s42_s30), %s1069_s26 }
   0xc   : > { %1249 = sst [smem:[#allocation4_spill]] %s1265_s29  ;;  %p44_p5 = scmp.ge.s32.totalorder %s1267_s30, 2 }
   0xd   : > { %s347_s8 = sadd.s32 (!%p290_p3), %s1049_s21, %s849_s7  ;;  %p361_p7 = scmp.lt.s32.totalorder (!%p290_p3), %s1049_s21, 2 }
   0xe   : > { %s1269_s30 = smov (%p44_p5, %s1267_s30), 0  ;;  %s850_s9 = sshll.u32 (!%p290_p3), %s347_s8, 1 }
   0xf   : > { %1250 = sst [smem:[#allocation5_spill]] %s1269_s30  ;;  %p351_p8 = scmp.lt.s32.totalorder (!%p290_p3), %s850_s9, 35 }
  0x10   : > { %p377_p9 = scmp.lt.s32.totalorder (!%p290_p3), %s1053_s22, 7  ;;  %p856_p10 = scmp.ne.s32.totalorder (!%p290_p3), %s1049_s21, 0 }
  0x11   : > { %s1271_s23 = smov (!%p349_p6, %s1057_s23), 1  ;;  %s1273_s9 = smov (!%p351_p8, %s850_s9), 35 }
  0x12   : > { %s946_s10 = smul.u32 72, %s1271_s23  ;;  %s851_s12 = sshll.u32 %s1273_s9, 1  ;;  %vm391_vm0 = vcmask (!%p856_p10), 523264   ;;  %v1075_v0 = vmov (!%p856_p10), 0.0  }
  0x13   : > { %s362_s11 = scalar_select %p361_p7, %s1049_s21, 2 }
  0x14   : > { %s355_s13 = sadd.s32 %s946_s10, %s851_s12  ;;  %s854_s16 = sshll.u32 %s1271_s23, 3  ;;  %392 = vst.msk [vmem:[#allocation2] sm:$0xff] (!%p856_p10), %vm391_vm0, %v1075_v0 }
  0x15   : > { %s947_s14 = smul.u32 96, %s362_s11  ;;  %s852_s15 = sshll.u32 %s355_s13, 3 }
  0x16   : > { %s1167_s19 = scalar_lea.vmem %s1241_s0, %s852_s15  ;;  %s1275_s22 = smov (!%p377_p9, %s1053_s22), 7 }
  0x17   : > { %s1172_s8 = scalar_lea.vmem %s1242_s1, %s947_s14  ;;  %s383_s30 = sadd.s32 %s854_s16, %s1275_s22 }
  0x18   : > { %s855_s29 = sshll.u32 %s383_s30, 3  ;;  %390 = sbr.rel (%p856_p10) target bundleno = 31 (0x1f), region = 48 }
  0x19   : > { %s1178_s10 = scalar_lea.vmem %s1247_s6, %s855_s29 }
  0x1f PF: > { %v1007_v1 = vld [vmem:[%s1172_s8] sm:$0xff]   ;;  %v1076_v2 = vmov 0.0   ;;  %v1008_v3 = vld [vmem:[%s1172_s8 + $0x8] sm:$0xff]   ;;  %vm1077_vm1 = vmmov 0   ;;  %v1010_v6 = vld [vmem:[%s1172_s8 + $0x10] sm:$0xff]   ;;  %vm453_vm2 = vcmask 523264  }
  0x20   : > { %910 = vmatprep.subr.bf16.mxu0 %v1076_v2  ;;  %922 = vmatprep.subr.bf16.mxu1 %v1076_v2  ;;  %v1009_v4 = vld [vmem:[%s1172_s8 + $0x20] sm:$0xff]   ;;  %v1011_v5 = vld [vmem:[%s1172_s8 + $0x28] sm:$0xff]   ;;  %v1013_v13 = vld [vmem:[%s1172_s8 + $0x30] sm:$0xff]   ;;  %p890_p11 = scmp.ne.s32.totalorder %s1049_s21, 2 }
  0x21   : > { %911 = vmatpush3.bf16.msra.mxu0 %v1007_v1  ;;  %918 = vmatprep.mubr.msk.bf16.mxu0 %vm1077_vm1, %v1076_v2  ;;  %v393_v7 = vld [vmem:[%s1167_s19] sm:$0xff]  ;;  %v394_v8 = vld [vmem:[%s1167_s19 + $0x8] sm:$0x1]  ;;  %v1012_v16 = vld [vmem:[%s1172_s8 + $0x18] sm:$0xff]  }
  0x22   : > { %912 = vmatprep.subr.bf16.mxu0 %v1076_v2  ;;  %930 = vmatprep.mubr.msk.bf16.mxu1 %vm1077_vm1, %v1076_v2  ;;  %v857_v9 = vld [vmem:[%s1243_s2] ss:$0 sm:$0xff]  ;;  %v395_v18 = vld [vmem:[%s1167_s19 + $0x10] sm:$0xff]  ;;  %v1015_v19 = vld [vmem:[%s1172_s8 + $0x38] sm:$0xff]  }
  0x23   : > { %923 = vmatpush3.bf16.msra.mxu1 %v1009_v4  ;;  %v403_v10 = vmul.f32 %v857_v9, %v393_v7  ;;  %v404_v11 = vmul.f32 %v857_v9, %v394_v8  ;;  %v858_v12 = vld [vmem:[%s1244_s3] ss:$0 sm:$0xff]  ;;  %v405_v20 = vmul.f32 %v857_v9, %v395_v18  ;;  %v1016_v27 = vld [vmem:[%s1172_s8 + $0x48] sm:$0xff]   ;;  %v1017_v30 = vld [vmem:[%s1172_s8 + $0x50] sm:$0xff]  }
  0x24   : > { %924 = vmatprep.subr.bf16.mxu1 %v1076_v2  ;;  %v1014_v23 = vld [vmem:[%s1172_s8 + $0x40] sm:$0xff]   ;;  %v1018_v33 = vld [vmem:[%s1172_s8 + $0x58] sm:$0xff]  }
  0x25   : > { %913 = vmatpush3.bf16.msra.mxu0 %v1008_v3  ;;  %v413_v14 = vadd.f32 %v858_v12, %v403_v10  ;;  %v414_v15 = vadd.f32 %v858_v12, %v404_v11  ;;  %v415_v24 = vadd.f32 %v858_v12, %v405_v20  ;;  %v427_v35 = vld [vmem:[#allocation2] sm:$0xff] }
  0x26   : > { %914 = vmatprep.subr.bf16.mxu0 %v1076_v2  ;;  %v891_v54 = vld [vmem:[%s1245_s4] ss:$0 sm:$0xff] (!%p890_p11) }
  0x27   : > { %925 = vmatpush3.bf16.msra.mxu1 %v1011_v5  ;;  %v416_v17 = vmax.f32 %v413_v14, 0.0  ;;  %v417_v21 = vmax.f32 %v414_v15, 0.0  ;;  %v418_v25 = vmax.f32 %v415_v24, 0.0  ;;  %v892_v55 = vld [vmem:[%s1246_s5] ss:$0 sm:$0xff] (!%p890_p11) }
  0x28   : > { %926 = vmatprep.subr.bf16.mxu1 %v1076_v2 }
  0x29   : > { %915 = vmatpush3.bf16.msra.mxu0 %v1010_v6  ;;  %v428_v22 = vpack.c.bf16 %v416_v17, %v416_v17  ;;  %v589_v26 = vpack.c.bf16 %v417_v21, %v416_v17  ;;  %v509_v28 = vpack.c.bf16 %v418_v25, %v418_v25 }
  0x2a   : > { %916 = vmatprep.subr.bf16.mxu0 %v1076_v2 }
  0x2b   : > { %927 = vmatpush3.bf16.msra.mxu1 %v1013_v13  ;;  %v593_v29 = vshll.u32 %v589_v26, 16  ;;  %v591_v31 = vshrl.u32 %v589_v26, 16 }
  0x2c   : > { %928 = vmatprep.subr.bf16.mxu1 %v1076_v2 }
  0x2d   : > { %917 = vmatpush3.bf16.msra.mxu0 %v1012_v16  ;;  %v595_v32 = vrot.slane %v593_v29, 1 }
  0x2e   : > { %934 = vmatprep.subr.bf16.mxu0 %v1076_v2 }
  0x2f   : > { %929 = vmatpush3.bf16.msra.mxu1 %v1015_v19  ;;  %v596_v34 = vor.u32 %v595_v32, %v591_v31 }
  0x30   : > { %919 = vmatmul.mubr.msk.bf16.vlgmr.msra.gmra.mrb[0].mxu0 %vm453_vm2, %v428_v22 }
  0x31   : > { %935 = vmatpush3.bf16.msra.mxu0 %v1014_v23  ;;  %942 = vmatprep.mubr.msk.bf16.mxu0 %vm1077_vm1, %v1076_v2 }
  0x32   : > { %936 = vmatprep.subr.bf16.mxu0 %v1076_v2  ;;  %931 = vmatmul.mubr.msk.bf16.vlgmr.msra.gmra.mrb[0].mxu1 %vm453_vm2, %v509_v28 }
  0x35   : > { %937 = vmatpush3.bf16.msra.mxu0 %v1016_v27 }
  0x36   : > { %938 = vmatprep.subr.bf16.mxu0 %v1076_v2 }
  0x39   : > { %939 = vmatpush3.bf16.msra.mxu0 %v1017_v30 }
  0x3a   : > { %940 = vmatprep.subr.bf16.mxu0 %v1076_v2 }
  0x3d   : > { %941 = vmatpush3.bf16.msra.mxu0 %v1018_v33 }
  0x40   : > { %943 = vmatmul.mubr.msk.bf16.vlgmr.msra.gmra.mrb[4].mxu0 %vm453_vm2, %v596_v34 }
 0x103   : > { %v491_v36 = vpop.f32.mrb[0].mxu0 }
 0x104   : > { %v497_v37 = vadd.f32 %v491_v36, %v427_v35  ;;  %v920_v38 = vpop.f32.mrb[1].mxu0 }
 0x105   : > { %v494_v39 = vpop.f32.mrb[2].mxu0  ;;  %v571_v41 = vpop.f32.mrb[0].mxu1 }
 0x106   : > { %498 = vst.msk [vmem:[#allocation2] sm:$0xff] %vm453_vm2, %v497_v37  ;;  %v921_v40 = vpop.f32.mrb[3].mxu0  ;;  %v932_v42 = vpop.f32.mrb[1].mxu1 }
 0x107   : > { %v574_v43 = vpop.f32.mrb[2].mxu1 }
 0x108   : > { %v933_v44 = vpop.f32.mrb[3].mxu1 }
 0x10d   : > { %v508_v45 = vld [vmem:[#allocation2] sm:$0xff] }
 0x10e   : > { %v577_v46 = vadd.f32 %v571_v41, %v508_v45 }
 0x110   : > { %578 = vst.msk [vmem:[#allocation2] sm:$0xff] %vm453_vm2, %v577_v46 }
 0x113   : > { %v658_v47 = vpop.f32.mrb[4].mxu0 }
 0x114   : > { %v944_v48 = vpop.f32.mrb[5].mxu0  ;;  %669 = sbr.rel (%p890_p11) target bundleno = 297 (0x129), region = 52 }
 0x115   : > { %v661_v49 = vpop.f32.mrb[6].mxu0 }
 0x116   : > { %v945_v50 = vpop.f32.mrb[7].mxu0 }
 0x117   : > { %v588_v51 = vld [vmem:[#allocation2] sm:$0xff] }
 0x118   : > { %v664_v52 = vadd.f32 %v658_v47, %v588_v51 }
 0x11a   : > { %665 = vst.msk [vmem:[#allocation2] sm:$0xff] %vm453_vm2, %v664_v52 }
 0x121   : > { %v670_v53 = vld [vmem:[#allocation2] sm:$0xff] }
 0x122   : > { %v678_v56 = vmul.f32 %v891_v54, %v670_v53 }
 0x124   : > { %v686_v57 = vadd.f32 %v892_v55, %v678_v56 }
 0x126   : > { %v687_v58 = vmax.f32 %v686_v57, 0.0 }
 0x128   : > { %688 = vst.msk [vmem:[%s1178_s10] sm:$0xff] %vm453_vm2, %v687_v58 }
 0x129 PF: > { %s16_s27 = sadd.s32 1, %s1073_s27   ;;  %s1251_s14 = sld [smem:[#allocation3_spill]] }
 0x12a   : > { %p13_p12 = scmp.ge.s32.totalorder %s16_s27, 50   ;;  %s1252_s15 = sld [smem:[#allocation4_spill]] }
 0x12b   : > { %s1253_s16 = sld [smem:[#allocation5_spill]]  ;;  %s1254_s21 = smov %s1061_s24 }
 0x12c   : > { %s1255_s22 = smov %s1065_s25  ;;  %s1256_s23 = smov %s1069_s26 }
 0x12d   :  { %15 = sbr.rel (!%p13_p12) target bundleno = 4 (0x4), region = 93 }
 0x12f   : > { %s1257_s24 = smov %s1251_s14 }
 0x130   : > { %s1258_s25 = smov %s1252_s15 }
 0x131   : > { %s1259_s26 = smov %s1253_s16 }

// kernel: resnet_forward.19
= control target key start
LH: loop header
LB: loop body
LE: loop exit
PB: predicated region body
PF: predicated region fallthrough
CT: control target
= control target key end

     0   :  { %s805_s21 = smov 0   ;;  %s807_s22 = smov 0   ;;  %s879_s0 = inlined_call_operand.vmem [shape: f32[2,16,4,64], index: 0, kind: input, shape index: {}]   ;;  %s880_s1 = inlined_call_operand.vmem [shape: bf16[1,1,64,128], index: 1, kind: input, shape index: {}]   ;;  %s881_s2 = inlined_call_operand.vmem [shape: f32[1,64], index: 2, kind: input, shape index: {}]   ;;  %s882_s3 = inlined_call_operand.vmem [shape: f32[1,64], index: 3, kind: input, shape index: {}]   ;;  %s883_s4 = inlined_call_operand.vmem [shape: f32[1,128], index: 4, kind: input, shape index: {}]   ;;  %s884_s5 = inlined_call_operand.vmem [shape: f32[1,128], index: 5, kind: input, shape index: {}]   ;;  %s885_s6 = inlined_call_operand.vmem [shape: f32[2,4,4,128], index: 6, kind: output, shape index: {}]  }
   0x1   :  { %s809_s23 = smov 0   ;;  %s811_s24 = smov 0  }
   0x2   :  { %s813_s2 = smov 0  }
   0x3 LB: > { %s38_s3 = sadd.s32 1, %s758_s23  ;;  %s42_s25 = sadd.s32 1, %s762_s24  ;;  %s766_s2 = sphi %s813_s2, %s16_s2   ;;  %s762_s24 = sphi %s811_s24, %s889_s24   ;;  %s758_s23 = sphi %s809_s23, %s888_s23   ;;  %s754_s22 = sphi %s807_s22, %s887_s22   ;;  %s750_s21 = sphi %s805_s21, %s886_s21  }
   0x4   : > { %p40_p0 = scmp.ge.s32.totalorder %s38_s3, 4  ;;  %p648_p1 = scmp.ge.s32.totalorder %s766_s2, 1 }
   0x5   : > { %p288_p2 = scmp.lt.s32.totalorder %s766_s2, 9 }
   0x6   : > { %s891_s3 = smov (%p40_p0, %s38_s3), 0  ;;  %s893_s25 = smov (!%p40_p0, %s42_s25), %s762_s24 }
   0x7   : > { %p289_p3 = pnand %p648_p1, %p288_p2  ;;  %p44_p4 = scmp.ge.s32.totalorder %s893_s25, 2 }
   0x8   : > { %v724_v0 = vld [vmem:[%s880_s1] sm:$0xff] (!%p289_p3)   ;;  %v768_v1 = vmov (!%p289_p3), 0.0   ;;  %v725_v2 = vld [vmem:[%s880_s1 + $0x8] sm:$0xff] (!%p289_p3)   ;;  %vm769_vm0 = vmmov (!%p289_p3), 0   ;;  %s664_s30 = sshll.u32 (!%p289_p3), %s750_s21, 2  ;;  %p347_p5 = scmp.lt.s32.totalorder (!%p289_p3), %s754_s22, 1 }
   0x9   : > { %s895_s25 = smov (%p44_p4, %s893_s25), 0  ;;  %292 = sbr.rel (%p289_p3) target bundleno = 253 (0xfd), region = 44 }
   0xa   : > { %670 = vmatprep.subr.bf16.mxu0 (!%p289_p3), %v768_v1  ;;  %388 = vst [vmem:[#allocation2] sm:$0xf] (!%p289_p3), %v768_v1  ;;  %678 = vmatprep.mubr.msk.bf16.mxu0 (!%p289_p3), %vm769_vm0, %v768_v1  ;;  %p349_p6 = scmp.lt.s32.totalorder (!%p289_p3), %s664_s30, 15  ;;  %v726_v3 = vld [vmem:[%s880_s1 + $0x10] sm:$0xff] (!%p289_p3)   ;;  %v727_v4 = vld [vmem:[%s880_s1 + $0x18] sm:$0xff] (!%p289_p3)   ;;  %vm424_vm1 = vcmask (!%p289_p3), 523264  }
   0xb   : > { %671 = vmatpush3.bf16.msra.mxu0 (!%p289_p3), %v724_v0  ;;  %p374_p7 = scmp.lt.s32.totalorder (!%p289_p3), %s750_s21, 3  ;;  %v660_v13 = vld [vmem:[%s883_s4] ss:$0 sm:$0xff] (!%p289_p3) }
   0xc   : > { %672 = vmatprep.subr.bf16.mxu0 (!%p289_p3), %v768_v1  ;;  %v661_v15 = vld [vmem:[%s884_s5] ss:$0 sm:$0xff] (!%p289_p3) }
   0xf   : > { %673 = vmatpush3.bf16.msra.mxu0 (!%p289_p3), %v725_v2 }
  0x10   : > { %s897_s22 = smov (!%p347_p5, %s754_s22), 1  ;;  %s899_s30 = smov (!%p349_p6, %s664_s30), 15  ;;  %674 = vmatprep.subr.bf16.mxu0 %v768_v1 }
  0x11   : > { %s651_s9 = sshll.u32 %s897_s22, 4  ;;  %v398_v7 = vld [vmem:[#allocation2] sm:$0xf]  ;;  %s901_s21 = smov (!%p374_p7, %s750_s21), 3 }
  0x12   : > { %s352_s10 = sadd.s32 %s651_s9, %s899_s30  ;;  %s653_s17 = sshll.u32 %s897_s22, 2 }
  0x13   : > { %s652_s11 = sshll.u32 %s352_s10, 2  ;;  %675 = vmatpush3.bf16.msra.mxu0 %v726_v3  ;;  %s380_s18 = sadd.s32 %s653_s17, %s901_s21 }
  0x14   : > { %s354_s16 = scalar_lea.vmem %s879_s0, %s652_s11  ;;  %676 = vmatprep.subr.bf16.mxu0 %v768_v1  ;;  %s654_s26 = sshll.u32 %s380_s18, 2 }
  0x15   : > { %v389_v5 = vld [vmem:[%s354_s16] sm:$0xf]  ;;  %s382_s7 = scalar_lea.vmem %s885_s6, %s654_s26 }
  0x16   : > { %v399_v6 = vpack.c.bf16 %v389_v5, %v389_v5 }
  0x17   : > { %677 = vmatpush3.bf16.msra.mxu0 %v727_v4 }
  0x1a   : > { %679 = vmatmul.mubr.msk.bf16.vlgmr.msra.gmra.mrb[0].mxu0 %vm424_vm1, %v399_v6 }
  0xed   : > { %v462_v8 = vpop.f32.mrb[0].mxu0 }
  0xee   : > { %v468_v9 = vadd.f32 %v462_v8, %v398_v7  ;;  %v680_v10 = vpop.f32.mrb[1].mxu0 }
  0xef   : > { %v465_v11 = vpop.f32.mrb[2].mxu0 }
  0xf0   : > { %469 = vst [vmem:[#allocation2] sm:$0xf] %v468_v9  ;;  %v681_v12 = vpop.f32.mrb[3].mxu0 }
  0xf7   : > { %v473_v14 = vld [vmem:[#allocation2] sm:$0xf] }
  0xf8   : > { %v481_v16 = vmul.f32 %v660_v13, %v473_v14 }
  0xfa   : > { %v489_v17 = vadd.f32 %v661_v15, %v481_v16 }
  0xfc   : > { %490 = vst [vmem:[%s382_s7] sm:$0xf] %v489_v17 }
  0xfd PF: > { %s16_s2 = sadd.s32 1, %s766_s2   ;;  %s886_s21 = smov %s758_s23 }
  0xfe   : > { %p13_p8 = scmp.ge.s32.totalorder %s16_s2, 10   ;;  %s887_s22 = smov %s762_s24 }
  0xff   : > { %s888_s23 = smov %s891_s3  ;;  %s889_s24 = smov %s895_s25 }
 0x100   :  { %15 = sbr.rel (!%p13_p8) target bundleno = 3 (0x3), region = 91 }

// kernel: resnet_forward.22
= control target key start
LH: loop header
LB: loop body
LE: loop exit
PB: predicated region body
PF: predicated region fallthrough
CT: control target
= control target key end

     0   :  { %s945_s21 = smov 0   ;;  %s947_s22 = smov 0   ;;  %s1063_s0 = inlined_call_operand.vmem [shape: f32[2,8,2,128], index: 0, kind: input, shape index: {}]   ;;  %s1064_s1 = inlined_call_operand.vmem [shape: bf16[1,1,128,256], index: 1, kind: input, shape index: {}]   ;;  %s1065_s2 = inlined_call_operand.vmem [shape: f32[1,128], index: 2, kind: input, shape index: {}]   ;;  %s1066_s3 = inlined_call_operand.vmem [shape: f32[1,128], index: 3, kind: input, shape index: {}]   ;;  %s1067_s4 = inlined_call_operand.vmem [shape: f32[1,256], index: 4, kind: input, shape index: {}]   ;;  %s1068_s5 = inlined_call_operand.vmem [shape: f32[1,256], index: 5, kind: input, shape index: {}]   ;;  %s1069_s6 = inlined_call_operand.vmem [shape: f32[2,2,2,256], index: 6, kind: output, shape index: {}]  }
   0x1   :  { %s949_s23 = smov 0   ;;  %s951_s24 = smov 0  }
   0x2   :  { %s953_s2 = smov 0  }
   0x3 LB: > { %s38_s3 = sadd.s32 1, %s897_s23  ;;  %s42_s25 = sadd.s32 1, %s901_s24  ;;  %s905_s2 = sphi %s953_s2, %s16_s2   ;;  %s901_s24 = sphi %s951_s24, %s1073_s24   ;;  %s897_s23 = sphi %s949_s23, %s1072_s23   ;;  %s893_s22 = sphi %s947_s22, %s1071_s22   ;;  %s889_s21 = sphi %s945_s21, %s1070_s21  }
   0x4   : > { %p40_p0 = scmp.ge.s32.totalorder %s38_s3, 2  ;;  %p773_p1 = scmp.ge.s32.totalorder %s905_s2, 1 }
   0x5   : > { %p294_p2 = scmp.lt.s32.totalorder %s905_s2, 5 }
   0x6   : > { %s1075_s3 = smov (%p40_p0, %s38_s3), 0  ;;  %s1077_s25 = smov (!%p40_p0, %s42_s25), %s901_s24 }
   0x7   : > { %p295_p3 = pnand %p773_p1, %p294_p2  ;;  %p44_p4 = scmp.ge.s32.totalorder %s1077_s25, 2 }
   0x8   : > { %v843_v0 = vld [vmem:[%s1064_s1 + $0x4] ss:$8 sps:$4 sm:$0xff] (!%p295_p3)   ;;  %v845_v1 = vld [vmem:[%s1064_s1] ss:$8 sps:$4 sm:$0xff] (!%p295_p3)   ;;  %v907_v2 = vmov (!%p295_p3), 0   ;;  %s799_s14 = sshll.u32 (!%p295_p3), %s889_s21, 2  ;;  %v555_v22 = vlaneseq (!%p295_p3) }
   0x9   : > { %s1079_s25 = smov (%p44_p4, %s1077_s25), 0  ;;  %298 = sbr.rel (%p295_p3) target bundleno = 274 (0x112), region = 44 }
   0xa   : > { %540 = vmatprep.mubr.bf16.mxu0 (!%p295_p3), %v907_v2  ;;  %508 = vmatprep.subr.bf16.mxu0 (!%p295_p3), %v843_v0  ;;  %v846_v3 = vld [vmem:[%s1064_s1 + $0x14] ss:$8 sps:$4 sm:$0xff] (!%p295_p3)   ;;  %v848_v4 = vld [vmem:[%s1064_s1 + $0x10] ss:$8 sps:$4 sm:$0xff] (!%p295_p3)   ;;  %v849_v5 = vld [vmem:[%s1064_s1 + $0x24] ss:$8 sps:$4 sm:$0xff] (!%p295_p3)  }
   0xb   : > { %509 = vmatpush1.bf16.msra.mxu0 (!%p295_p3), %v845_v1  ;;  %v851_v6 = vld [vmem:[%s1064_s1 + $0x20] ss:$8 sps:$4 sm:$0xff] (!%p295_p3)   ;;  %p358_p5 = scmp.lt.s32.totalorder (!%p295_p3), %s893_s22, 1  ;;  %v852_v7 = vld [vmem:[%s1064_s1 + $0x34] ss:$8 sps:$4 sm:$0xff] (!%p295_p3)   ;;  %p360_p6 = scmp.lt.s32.totalorder (!%p295_p3), %s799_s14, 7 }
   0xc   : > { %510 = vmatprep.subr.bf16.mxu0 (!%p295_p3), %v846_v3  ;;  %v854_v8 = vld [vmem:[%s1064_s1 + $0x30] ss:$8 sps:$4 sm:$0xff] (!%p295_p3)   ;;  %v855_v9 = vld [vmem:[%s1064_s1 + $0x44] ss:$8 sps:$4 sm:$0xff] (!%p295_p3)   ;;  %v857_v10 = vld [vmem:[%s1064_s1 + $0x40] ss:$8 sps:$4 sm:$0xff] (!%p295_p3)  }
   0xd   : > { %v858_v11 = vld [vmem:[%s1064_s1 + $0x54] ss:$8 sps:$4 sm:$0xff] (!%p295_p3)   ;;  %v860_v12 = vld [vmem:[%s1064_s1 + $0x50] ss:$8 sps:$4 sm:$0xff] (!%p295_p3)   ;;  %v861_v13 = vld [vmem:[%s1064_s1 + $0x64] ss:$8 sps:$4 sm:$0xff] (!%p295_p3)  }
   0xe   : > { %v863_v14 = vld [vmem:[%s1064_s1 + $0x60] ss:$8 sps:$4 sm:$0xff] (!%p295_p3)   ;;  %v864_v15 = vld [vmem:[%s1064_s1 + $0x74] ss:$8 sps:$4 sm:$0xff] (!%p295_p3)   ;;  %v866_v16 = vld [vmem:[%s1064_s1 + $0x70] ss:$8 sps:$4 sm:$0xff] (!%p295_p3)  }
   0xf   : > { %511 = vmatpush1.bf16.msra.mxu0 (!%p295_p3), %v848_v4  ;;  %v908_v19 = vmov (!%p295_p3), 0.0   ;;  %v909_v20 = vmov (!%p295_p3), 1983009808   ;;  %v556_v24 = vshrl.u32 (!%p295_p3), %v555_v22, 7  ;;  %p392_p7 = scmp.lt.s32.totalorder (!%p295_p3), %s889_s21, 1 }
  0x10   : > { %512 = vmatprep.subr.bf16.mxu0 %v849_v5  ;;  %s1081_s22 = smov (!%p358_p5, %s893_s22), 1  ;;  %s1083_s14 = smov (!%p360_p6, %s799_s14), 7  ;;  %408 = vst [vmem:[#allocation2] sm:$0xf] %v908_v19  ;;  %v553_v21 = vunpack.c.l.s4 %v909_v20  ;;  %v566_v30 = vld [vmem:[%s1067_s4] sm:$0x3] }
  0x11   : > { %s776_s28 = sshll.u32 %s1081_s22, 3  ;;  %v570_v27 = vsub.s32 0, %v556_v24  ;;  %v574_v28 = vsub.s32 1, %v556_v24  ;;  %v586_v34 = vld [vmem:[%s1068_s5] sm:$0x3]  ;;  %s1085_s21 = smov (!%p392_p7, %s889_s21), 1 }
  0x12   : > { %s363_s7 = sadd.s32 %s776_s28, %s1083_s14  ;;  %v554_v23 = vunpack.c.0.s8 %v553_v21  ;;  %s779_s8 = sshll.u32 %s1081_s22, 2 }
  0x13   : > { %513 = vmatpush1.bf16.msra.mxu0 %v851_v6  ;;  %s777_s12 = sshll.u32 %s363_s7, 1  ;;  %v571_v37 = vrot.slane %v566_v30, %v570_v27  ;;  %v575_v38 = vrot.slane %v566_v30, %v574_v28  ;;  %v591_v40 = vrot.slane %v586_v34, %v570_v27  ;;  %v595_v41 = vrot.slane %v586_v34, %v574_v28  ;;  %s778_s7 = sshll.u32 %s1085_s21, 1 }
  0x14   : > { %514 = vmatprep.subr.bf16.mxu0 %v852_v7  ;;  %s365_s19 = scalar_lea.vmem %s1063_s0, %s777_s12  ;;  %v557_v26 = vsub.s32 %v554_v23, %v556_v24  ;;  %s399_s9 = sadd.s32 %s779_s8, %s778_s7 }
  0x15   : > { %v409_v17 = vld [vmem:[%s365_s19] sm:$0x3]  ;;  %v576_v42 = vcombine.low %v571_v37, %v575_v38  ;;  %v596_v43 = vcombine.low %v591_v40, %v595_v41  ;;  %s780_s10 = sshll.u32 %s399_s9, 1 }
  0x16   : > { %v427_v18 = vpack.c.bf16 %v409_v17, %v409_v17  ;;  %s401_s13 = scalar_lea.vmem %s1069_s6, %s780_s10 }
  0x17   : > { %515 = vmatpush1.bf16.msra.mxu0 %v854_v8  ;;  %v426_v33 = vld [vmem:[#allocation2] sm:$0xf]  ;;  %v583_v44 = vrot.slane %v576_v42, %v557_v26  ;;  %v603_v45 = vrot.slane %v596_v43, %v557_v26 }
  0x18   : > { %516 = vmatprep.subr.bf16.mxu0 %v855_v9 }
  0x1b   : > { %517 = vmatpush1.bf16.msra.mxu0 %v857_v10 }
  0x1c   : > { %518 = vmatprep.subr.bf16.mxu0 %v858_v11 }
  0x1f   : > { %519 = vmatpush1.bf16.msra.mxu0 %v860_v12 }
  0x20   : > { %520 = vmatprep.subr.bf16.mxu0 %v861_v13 }
  0x23   : > { %521 = vmatpush1.bf16.msra.mxu0 %v863_v14 }
  0x24   : > { %522 = vmatprep.subr.bf16.mxu0 %v864_v15 }
  0x27   : > { %523 = vmatpush1.bf16.msra.mxu0 %v866_v16 }
  0x2a   : > { %541 = vmatmul.mubr.bf16.vlgmr.msra.gmra.mrb[0].mxu0 %v427_v18 }
  0xfd   : > { %v542_v25 = vpop.f32.mrb[0].mxu0 }
  0xfe   : > { %v544_v29 = vpop.f32.mrb[1].mxu0 }
  0xff   : > { %v551_v31 = vcombine.low %v542_v25, %v544_v29  ;;  %v546_v32 = vpop.f32.mrb[2].mxu0 }
 0x100   : > { %v547_v35 = vpop.f32.mrb[3].mxu0 }
 0x101   : > { %v558_v36 = vrot.slane %v551_v31, %v557_v26 }
 0x103   : > { %v560_v39 = vadd.f32 %v558_v36, %v426_v33 }
 0x105   : > { %561 = vst [vmem:[#allocation2] sm:$0xf] %v560_v39 }
 0x10c   : > { %v565_v46 = vld [vmem:[#allocation2] sm:$0xf] }
 0x10d   : > { %v585_v47 = vmul.f32 %v583_v44, %v565_v46 }
 0x10f   : > { %v605_v48 = vadd.f32 %v603_v45, %v585_v47 }
 0x111   : > { %606 = vst [vmem:[%s401_s13] sm:$0xf] %v605_v48 }
 0x112 PF: > { %s16_s2 = sadd.s32 1, %s905_s2   ;;  %s1070_s21 = smov %s897_s23 }
 0x113   : > { %p13_p8 = scmp.ge.s32.totalorder %s16_s2, 6   ;;  %s1071_s22 = smov %s901_s24 }
 0x114   : > { %s1072_s23 = smov %s1075_s3  ;;  %s1073_s24 = smov %s1079_s25 }
 0x115   :  { %15 = sbr.rel (!%p13_p8) target bundleno = 3 (0x3), region = 91 }

// kernel: resnet_forward.18
= control target key start
LH: loop header
LB: loop body
LE: loop exit
PB: predicated region body
PF: predicated region fallthrough
CT: control target
= control target key end

     0   :  { %s1099_s21 = smov 0   ;;  %s1101_s22 = smov 0   ;;  %s1222_s0 = inlined_call_operand.vmem [shape: f32[2,20,5,64], index: 0, kind: input, shape index: {}]   ;;  %s1223_s1 = inlined_call_operand.vmem [shape: bf16[3,3,64,128], index: 1, kind: input, shape index: {}]   ;;  %s1224_s2 = inlined_call_operand.vmem [shape: f32[1,64], index: 2, kind: input, shape index: {}]   ;;  %s1225_s3 = inlined_call_operand.vmem [shape: f32[1,64], index: 3, kind: input, shape index: {}]   ;;  %s1226_s4 = inlined_call_operand.vmem [shape: f32[1,128], index: 4, kind: input, shape index: {}]   ;;  %s1227_s5 = inlined_call_operand.vmem [shape: f32[1,128], index: 5, kind: input, shape index: {}]   ;;  %s1228_s6 = inlined_call_operand.vmem [shape: f32[2,4,4,128], index: 6, kind: output, shape index: {}]  }
   0x1   :  { %s1103_s23 = smov 0   ;;  %s1105_s24 = smov 0  }
   0x2   :  { %s1107_s25 = smov 0   ;;  %s1109_s26 = smov 0  }
   0x3   :  { %s1111_s27 = smov 0  }
   0x4 LB: > { %s31_s28 = sadd.s32 1, %s1047_s24  ;;  %s38_s29 = sadd.s32 1, %s1051_s25  ;;  %s1059_s27 = sphi %s1111_s27, %s16_s27   ;;  %s1055_s26 = sphi %s1109_s26, %s1240_s26   ;;  %s1051_s25 = sphi %s1107_s25, %s1239_s25   ;;  %s1047_s24 = sphi %s1105_s24, %s1238_s24   ;;  %s1043_s23 = sphi %s1103_s23, %s1237_s23   ;;  %s1039_s22 = sphi %s1101_s22, %s1236_s22   ;;  %s1035_s21 = sphi %s1099_s21, %s1235_s21  }
   0x5   : > { %p32_p0 = scmp.ge.s32.totalorder %s31_s28, 3  ;;  %p835_p1 = scmp.ge.s32.totalorder %s1059_s27, 1 }
   0x6   : > { %p288_p2 = scmp.lt.s32.totalorder %s1059_s27, 25  ;;  %s42_s30 = sadd.s32 1, %s1055_s26 }
   0x7   : > { %s1242_s28 = smov (%p32_p0, %s31_s28), 0  ;;  %s1244_s29 = smov (!%p32_p0, %s38_s29), %s1051_s25 }
   0x8   : > { %1229 = sst [smem:[#allocation3_spill]] %s1242_s28  ;;  %p289_p3 = pnand %p835_p1, %p288_p2 }
   0x9   : > { %p40_p4 = scmp.ge.s32.totalorder %s1244_s29, 4  ;;  %s836_s7 = sshll.u32 (!%p289_p3), %s1039_s22, 1 }
   0xa   : > { %292 = sbr.rel (%p289_p3) target bundleno = 297 (0x129), region = 44  ;;  %p347_p6 = scmp.lt.s32.totalorder (!%p289_p3), %s1043_s23, 1 }
   0xb   : > { %s1246_s29 = smov (%p40_p4, %s1244_s29), 0  ;;  %s1248_s30 = smov (!%p40_p4, %s42_s30), %s1055_s26 }
   0xc   : > { %1230 = sst [smem:[#allocation4_spill]] %s1246_s29  ;;  %p44_p5 = scmp.ge.s32.totalorder %s1248_s30, 2 }
   0xd   : > { %s345_s8 = sadd.s32 (!%p289_p3), %s1035_s21, %s836_s7  ;;  %p358_p7 = scmp.lt.s32.totalorder (!%p289_p3), %s1035_s21, 2 }
   0xe   : > { %s1250_s30 = smov (%p44_p5, %s1248_s30), 0  ;;  %s837_s9 = sshll.u32 (!%p289_p3), %s345_s8, 1 }
   0xf   : > { %1231 = sst [smem:[#allocation5_spill]] %s1250_s30  ;;  %p349_p8 = scmp.lt.s32.totalorder (!%p289_p3), %s837_s9, 19 }
  0x10   : > { %p374_p9 = scmp.lt.s32.totalorder (!%p289_p3), %s1039_s22, 3  ;;  %p842_p10 = scmp.ne.s32.totalorder (!%p289_p3), %s1035_s21, 0 }
  0x11   : > { %s1252_s23 = smov (!%p347_p6, %s1043_s23), 1  ;;  %s1254_s9 = smov (!%p349_p8, %s837_s9), 19 }
  0x12   : > { %s932_s10 = smul.u32 20, %s1252_s23  ;;  %s840_s7 = sshll.u32 %s1252_s23, 2  ;;  %v1061_v0 = vmov (!%p842_p10), 0.0  }
  0x13   : > { %s359_s11 = scalar_select %p358_p7, %s1035_s21, 2 }
  0x14   : > { %s352_s12 = sadd.s32 %s932_s10, %s1254_s9  ;;  %s1256_s22 = smov (!%p374_p9, %s1039_s22), 3  ;;  %388 = vst [vmem:[#allocation2] sm:$0xf] (!%p842_p10), %v1061_v0 }
  0x15   : > { %s838_s13 = sshll.u32 %s352_s12, 3  ;;  %s933_s14 = smul.u32 96, %s359_s11 }
  0x16   : > { %s1153_s17 = scalar_lea.vmem %s1222_s0, %s838_s13  ;;  %s380_s8 = sadd.s32 %s840_s7, %s1256_s22 }
  0x17   : > { %s1158_s20 = scalar_lea.vmem %s1223_s1, %s933_s14  ;;  %s841_s30 = sshll.u32 %s380_s8, 2 }
  0x18   : > { %s1164_s9 = scalar_lea.vmem %s1228_s6, %s841_s30  ;;  %387 = sbr.rel (%p842_p10) target bundleno = 31 (0x1f), region = 48 }
  0x1f PF: > { %v993_v1 = vld [vmem:[%s1158_s20] sm:$0xff]   ;;  %v1062_v2 = vmov 0.0   ;;  %v994_v3 = vld [vmem:[%s1158_s20 + $0x8] sm:$0xff]   ;;  %vm1063_vm0 = vmmov 0   ;;  %v996_v6 = vld [vmem:[%s1158_s20 + $0x10] sm:$0xff]   ;;  %vm445_vm1 = vcmask 523264  }
  0x20   : > { %896 = vmatprep.subr.bf16.mxu0 %v1062_v2  ;;  %908 = vmatprep.subr.bf16.mxu1 %v1062_v2  ;;  %v995_v4 = vld [vmem:[%s1158_s20 + $0x20] sm:$0xff]   ;;  %v997_v5 = vld [vmem:[%s1158_s20 + $0x28] sm:$0xff]   ;;  %v999_v11 = vld [vmem:[%s1158_s20 + $0x30] sm:$0xff]   ;;  %p876_p11 = scmp.ne.s32.totalorder %s1035_s21, 2 }
  0x21   : > { %897 = vmatpush3.bf16.msra.mxu0 %v993_v1  ;;  %904 = vmatprep.mubr.msk.bf16.mxu0 %vm1063_vm0, %v1062_v2  ;;  %v389_v7 = vld [vmem:[%s1153_s17] sm:$0x1f]  ;;  %v998_v13 = vld [vmem:[%s1158_s20 + $0x18] sm:$0xff]   ;;  %v390_v16 = vld [vmem:[%s1153_s17 + $0x8] sm:$0x1f] }
  0x22   : > { %898 = vmatprep.subr.bf16.mxu0 %v1062_v2  ;;  %916 = vmatprep.mubr.msk.bf16.mxu1 %vm1063_vm0, %v1062_v2  ;;  %v843_v8 = vld [vmem:[%s1224_s2] ss:$0 sm:$0xff]  ;;  %v1001_v15 = vld [vmem:[%s1158_s20 + $0x38] sm:$0xff]   ;;  %v1002_v22 = vld [vmem:[%s1158_s20 + $0x48] sm:$0xff]  }
  0x23   : > { %909 = vmatpush3.bf16.msra.mxu1 %v995_v4  ;;  %v844_v9 = vld [vmem:[%s1225_s3] ss:$0 sm:$0xff]  ;;  %v398_v10 = vmul.f32 %v843_v8, %v389_v7  ;;  %v399_v17 = vmul.f32 %v843_v8, %v390_v16  ;;  %v1003_v25 = vld [vmem:[%s1158_s20 + $0x50] sm:$0xff]   ;;  %v1004_v28 = vld [vmem:[%s1158_s20 + $0x58] sm:$0xff]  }
  0x24   : > { %910 = vmatprep.subr.bf16.mxu1 %v1062_v2  ;;  %v1000_v19 = vld [vmem:[%s1158_s20 + $0x40] sm:$0xff]  }
  0x25   : > { %899 = vmatpush3.bf16.msra.mxu0 %v994_v3  ;;  %v407_v12 = vadd.f32 %v844_v9, %v398_v10  ;;  %v408_v20 = vadd.f32 %v844_v9, %v399_v17  ;;  %v419_v30 = vld [vmem:[#allocation2] sm:$0xf] }
  0x26   : > { %900 = vmatprep.subr.bf16.mxu0 %v1062_v2  ;;  %v877_v49 = vld [vmem:[%s1226_s4] ss:$0 sm:$0xff] (!%p876_p11) }
  0x27   : > { %911 = vmatpush3.bf16.msra.mxu1 %v997_v5  ;;  %v409_v14 = vmax.f32 %v407_v12, 0.0  ;;  %v410_v21 = vmax.f32 %v408_v20, 0.0  ;;  %v878_v50 = vld [vmem:[%s1227_s5] ss:$0 sm:$0xff] (!%p876_p11) }
  0x28   : > { %912 = vmatprep.subr.bf16.mxu1 %v1062_v2 }
  0x29   : > { %901 = vmatpush3.bf16.msra.mxu0 %v996_v6  ;;  %v420_v18 = vpack.c.bf16 %v409_v14, %v409_v14  ;;  %v501_v23 = vpack.c.bf16 %v410_v21, %v410_v21 }
  0x2a   : > { %902 = vmatprep.subr.bf16.mxu0 %v1062_v2 }
  0x2b   : > { %913 = vmatpush3.bf16.msra.mxu1 %v999_v11  ;;  %v583_v24 = vshll.u32 %v420_v18, 16  ;;  %v581_v26 = vshrl.u32 %v420_v18, 16 }
  0x2c   : > { %914 = vmatprep.subr.bf16.mxu1 %v1062_v2 }
  0x2d   : > { %903 = vmatpush3.bf16.msra.mxu0 %v998_v13  ;;  %v585_v27 = vrot.slane %v583_v24, 1 }
  0x2e   : > { %920 = vmatprep.subr.bf16.mxu0 %v1062_v2 }
  0x2f   : > { %915 = vmatpush3.bf16.msra.mxu1 %v1001_v15  ;;  %v586_v29 = vor.u32 %v585_v27, %v581_v26 }
  0x30   : > { %905 = vmatmul.mubr.msk.bf16.vlgmr.msra.gmra.mrb[0].mxu0 %vm445_vm1, %v420_v18 }
  0x31   : > { %921 = vmatpush3.bf16.msra.mxu0 %v1000_v19  ;;  %928 = vmatprep.mubr.msk.bf16.mxu0 %vm1063_vm0, %v1062_v2 }
  0x32   : > { %922 = vmatprep.subr.bf16.mxu0 %v1062_v2  ;;  %917 = vmatmul.mubr.msk.bf16.vlgmr.msra.gmra.mrb[0].mxu1 %vm445_vm1, %v501_v23 }
  0x35   : > { %923 = vmatpush3.bf16.msra.mxu0 %v1002_v22 }
  0x36   : > { %924 = vmatprep.subr.bf16.mxu0 %v1062_v2 }
  0x39   : > { %925 = vmatpush3.bf16.msra.mxu0 %v1003_v25 }
  0x3a   : > { %926 = vmatprep.subr.bf16.mxu0 %v1062_v2 }
  0x3d   : > { %927 = vmatpush3.bf16.msra.mxu0 %v1004_v28 }
  0x40   : > { %929 = vmatmul.mubr.msk.bf16.vlgmr.msra.gmra.mrb[4].mxu0 %vm445_vm1, %v586_v29 }
 0x103   : > { %v483_v31 = vpop.f32.mrb[0].mxu0 }
 0x104   : > { %v489_v32 = vadd.f32 %v483_v31, %v419_v30  ;;  %v906_v33 = vpop.f32.mrb[1].mxu0 }
 0x105   : > { %v486_v34 = vpop.f32.mrb[2].mxu0  ;;  %v563_v36 = vpop.f32.mrb[0].mxu1 }
 0x106   : > { %490 = vst [vmem:[#allocation2] sm:$0xf] %v489_v32  ;;  %v907_v35 = vpop.f32.mrb[3].mxu0  ;;  %v918_v37 = vpop.f32.mrb[1].mxu1 }
 0x107   : > { %v566_v38 = vpop.f32.mrb[2].mxu1 }
 0x108   : > { %v919_v39 = vpop.f32.mrb[3].mxu1 }
 0x10d   : > { %v500_v40 = vld [vmem:[#allocation2] sm:$0xf] }
 0x10e   : > { %v569_v41 = vadd.f32 %v563_v36, %v500_v40 }
 0x110   : > { %570 = vst [vmem:[#allocation2] sm:$0xf] %v569_v41 }
 0x113   : > { %v648_v42 = vpop.f32.mrb[4].mxu0 }
 0x114   : > { %v930_v43 = vpop.f32.mrb[5].mxu0  ;;  %659 = sbr.rel (%p876_p11) target bundleno = 297 (0x129), region = 52 }
 0x115   : > { %v651_v44 = vpop.f32.mrb[6].mxu0 }
 0x116   : > { %v931_v45 = vpop.f32.mrb[7].mxu0 }
 0x117   : > { %v580_v46 = vld [vmem:[#allocation2] sm:$0xf] }
 0x118   : > { %v654_v47 = vadd.f32 %v648_v42, %v580_v46 }
 0x11a   : > { %655 = vst [vmem:[#allocation2] sm:$0xf] %v654_v47 }
 0x121   : > { %v660_v48 = vld [vmem:[#allocation2] sm:$0xf] }
 0x122   : > { %v668_v51 = vmul.f32 %v877_v49, %v660_v48 }
 0x124   : > { %v676_v52 = vadd.f32 %v878_v50, %v668_v51 }
 0x126   : > { %v677_v53 = vmax.f32 %v676_v52, 0.0 }
 0x128   : > { %678 = vst [vmem:[%s1164_s9] sm:$0xf] %v677_v53 }
 0x129 PF: > { %s16_s27 = sadd.s32 1, %s1059_s27   ;;  %s1232_s13 = sld [smem:[#allocation3_spill]] }
 0x12a   : > { %p13_p12 = scmp.ge.s32.totalorder %s16_s27, 26   ;;  %s1233_s14 = sld [smem:[#allocation4_spill]] }
 0x12b   : > { %s1234_s15 = sld [smem:[#allocation5_spill]]  ;;  %s1235_s21 = smov %s1047_s24 }
 0x12c   : > { %s1236_s22 = smov %s1051_s25  ;;  %s1237_s23 = smov %s1055_s26 }
 0x12d   :  { %15 = sbr.rel (!%p13_p12) target bundleno = 4 (0x4), region = 93 }
 0x12f   : > { %s1238_s24 = smov %s1232_s13 }
 0x130   : > { %s1239_s25 = smov %s1233_s14 }
 0x131   : > { %s1240_s26 = smov %s1234_s15 }

// kernel: resnet_forward.20
= control target key start
LH: loop header
LB: loop body
LE: loop exit
PB: predicated region body
PF: predicated region fallthrough
CT: control target
= control target key end

     0   :  { %s1321_s24 = smov 0   ;;  %s1323_s25 = smov 0   ;;  %s1479_s0 = inlined_call_operand.vmem [shape: f32[2,6,6,128], index: 0, kind: input, shape index: {}]   ;;  %s1480_s1 = inlined_call_operand.vmem [shape: bf16[3,3,128,128], index: 1, kind: input, shape index: {}]   ;;  %s1481_s2 = inlined_call_operand.vmem [shape: f32[1,128], index: 2, kind: input, shape index: {}, may-alias: {2,4}]   ;;  %s1482_s3 = inlined_call_operand.vmem [shape: f32[1,128], index: 3, kind: input, shape index: {}, may-alias: {3,5}]   ;;  %s1483_s4 = inlined_call_operand.vmem [shape: f32[1,128], index: 4, kind: input, shape index: {}, may-alias: {2,4}]   ;;  %s1484_s5 = inlined_call_operand.vmem [shape: f32[1,128], index: 5, kind: input, shape index: {}, may-alias: {3,5}]   ;;  %s1485_s6 = inlined_call_operand.vmem [shape: f32[2,4,4,128], index: 6, kind: input, shape index: {}]   ;;  %s1486_s7 = inlined_call_operand.vmem [shape: f32[2,4,4,128], index: 7, kind: output, shape index: {}]  }
   0x1   :  { %s1325_s2 = smov 0   ;;  %s1327_s26 = smov 0  }
   0x2   :  { %s1329_s3 = smov 0   ;;  %s1331_s27 = smov 0  }
   0x3   :  { %s1333_s28 = smov 0  }
   0x4 LB: > { %s32_s29 = sadd.s32 1, %s1264_s26  ;;  %s39_s30 = sadd.s32 1, %s1268_s3  ;;  %s1276_s28 = sphi %s1333_s28, %s17_s28   ;;  %s1272_s27 = sphi %s1331_s27, %s1496_s27   ;;  %s1268_s3 = sphi %s1329_s3, %s1495_s3   ;;  %s1264_s26 = sphi %s1327_s26, %s1494_s26   ;;  %s1260_s2 = sphi %s1325_s2, %s1493_s2   ;;  %s1256_s25 = sphi %s1323_s25, %s1492_s25   ;;  %s1252_s24 = sphi %s1321_s24, %s1491_s24  }
   0x5   : > { %p33_p0 = scmp.ge.s32.totalorder %s32_s29, 3  ;;  %p981_p1 = scmp.ge.s32.totalorder %s1276_s28, 1 }
   0x6   : > { %p327_p2 = scmp.lt.s32.totalorder %s1276_s28, 25  ;;  %s43_s8 = sadd.s32 1, %s1272_s27 }
   0x7   : > { %s1498_s29 = smov (%p33_p0, %s32_s29), 0  ;;  %s1500_s30 = smov (!%p33_p0, %s39_s30), %s1268_s3 }
   0x8   : > { %p328_p3 = pnand %p981_p1, %p327_p2  ;;  %p41_p4 = scmp.ge.s32.totalorder %s1500_s30, 4 }
   0x9   : > { %s394_s9 = sadd.s32 (!%p328_p3), %s1252_s24, %s1256_s25  ;;  %p395_p6 = scmp.lt.s32.totalorder (!%p328_p3), %s1260_s2, 1 }
   0xa   : > { %s1502_s30 = smov (%p41_p4, %s1500_s30), 0  ;;  %s1504_s8 = smov (!%p41_p4, %s43_s8), %s1272_s27 }
   0xb   : > { %1487 = sst [smem:[#allocation3_spill]] %s1502_s30  ;;  %p45_p5 = scmp.ge.s32.totalorder %s1504_s8, 2 }
   0xc   : > { %331 = sbr.rel (%p328_p3) target bundleno = 328 (0x148), region = 48  ;;  %p397_p7 = scmp.lt.s32.totalorder (!%p328_p3), %s394_s9, 5 }
   0xd   : > { %s1506_s8 = smov (%p45_p5, %s1504_s8), 0  ;;  %p404_p8 = scmp.lt.s32.totalorder (!%p328_p3), %s1252_s24, 2 }
   0xe   : > { %1488 = sst [smem:[#allocation4_spill]] %s1506_s8  ;;  %p420_p9 = scmp.lt.s32.totalorder (!%p328_p3), %s1256_s25, 3 }
   0xf   : > { %p988_p10 = scmp.ne.s32.totalorder (!%p328_p3), %s1252_s24, 0 }
  0x13   : > { %s1508_s2 = smov (!%p395_p6, %s1260_s2), 1  ;;  %s1510_s9 = smov (!%p397_p7, %s394_s9), 5 }
  0x14   : > { %s1137_s10 = smul.u32 6, %s1508_s2  ;;  %s984_s21 = sshll.u32 %s1508_s2, 2  ;;  %v1278_v0 = vmov (!%p988_p10), 0.0  }
  0x15   : > { %s405_s11 = scalar_select %p404_p8, %s1252_s24, 2 }
  0x16   : > { %s400_s12 = sadd.s32 %s1137_s10, %s1510_s9  ;;  %s1512_s25 = smov (!%p420_p9, %s1256_s25), 3  ;;  %445 = vst [vmem:[#allocation2] sm:$0xf] (!%p988_p10), %v1278_v0 }
  0x17   : > { %s982_s13 = sshll.u32 %s400_s12, 3  ;;  %s1138_s14 = smul.u32 192, %s405_s11 }
  0x18   : > { %s1375_s17 = scalar_lea.vmem %s1479_s0, %s982_s13  ;;  %s426_s22 = sadd.s32 %s984_s21, %s1512_s25 }
  0x19   : > { %s1380_s20 = scalar_lea.vmem %s1480_s1, %s1138_s14  ;;  %s985_s23 = sshll.u32 %s426_s22, 2 }
  0x1a   : > { %s1386_s9 = scalar_lea.vmem %s1485_s6, %s985_s23  ;;  %s1391_s12 = scalar_lea.vmem %s1486_s7, %s985_s23 }
  0x1b   : > { %444 = sbr.rel (%p988_p10) target bundleno = 34 (0x22), region = 52 }
  0x22 PF: > { %v1198_v1 = vld [vmem:[%s1380_s20] sm:$0xff]   ;;  %v1279_v2 = vmov 0.0   ;;  %v1199_v3 = vld [vmem:[%s1380_s20 + $0x8] sm:$0xff]   ;;  %vm1280_vm0 = vmmov 0   ;;  %v1200_v6 = vld [vmem:[%s1380_s20 + $0x10] sm:$0xff]   ;;  %p1045_p11 = scmp.ne.s32.totalorder %s1252_s24, 2 }
  0x23   : > { %1077 = vmatprep.subr.bf16.mxu0 %v1279_v2  ;;  %1097 = vmatprep.subr.bf16.mxu1 %v1279_v2  ;;  %v1201_v4 = vld [vmem:[%s1380_s20 + $0x40] sm:$0xff]   ;;  %v1203_v5 = vld [vmem:[%s1380_s20 + $0x48] sm:$0xff]   ;;  %v1205_v7 = vld [vmem:[%s1380_s20 + $0x50] sm:$0xff]  }
  0x24   : > { %1078 = vmatpush3.bf16.msra.mxu0 %v1198_v1  ;;  %1093 = vmatprep.mubr.msk.bf16.mxu0 %vm1280_vm0, %v1279_v2  ;;  %v1202_v8 = vld [vmem:[%s1380_s20 + $0x18] sm:$0xff]   ;;  %v1204_v10 = vld [vmem:[%s1380_s20 + $0x20] sm:$0xff]   ;;  %v1206_v12 = vld [vmem:[%s1380_s20 + $0x28] sm:$0xff]  }
  0x25   : > { %1079 = vmatprep.subr.bf16.mxu0 %v1279_v2  ;;  %1113 = vmatprep.mubr.msk.bf16.mxu1 %vm1280_vm0, %v1279_v2  ;;  %v1207_v9 = vld [vmem:[%s1380_s20 + $0x58] sm:$0xff]   ;;  %v1209_v11 = vld [vmem:[%s1380_s20 + $0x60] sm:$0xff]   ;;  %v1211_v14 = vld [vmem:[%s1380_s20 + $0x68] sm:$0xff]  }
  0x26   : > { %1098 = vmatpush3.bf16.msra.mxu1 %v1201_v4  ;;  %v446_v13 = vld [vmem:[%s1375_s17] sm:$0x3f]  ;;  %v1208_v15 = vld [vmem:[%s1380_s20 + $0x30] sm:$0xff]   ;;  %v1210_v19 = vld [vmem:[%s1380_s20 + $0x38] sm:$0xff]  }
  0x27   : > { %1099 = vmatprep.subr.bf16.mxu1 %v1279_v2  ;;  %v464_v16 = vpack.c.bf16 %v446_v13, %v446_v13  ;;  %v1213_v18 = vld [vmem:[%s1380_s20 + $0x70] sm:$0xff]   ;;  %v1215_v22 = vld [vmem:[%s1380_s20 + $0x78] sm:$0xff]   ;;  %v1212_v23 = vld [vmem:[%s1380_s20 + $0x80] sm:$0xff]  }
  0x28   : > { %1080 = vmatpush3.bf16.msra.mxu0 %v1199_v3  ;;  %v1214_v25 = vld [vmem:[%s1380_s20 + $0x88] sm:$0xff]   ;;  %v1216_v26 = vld [vmem:[%s1380_s20 + $0x90] sm:$0xff]   ;;  %v1217_v27 = vld [vmem:[%s1380_s20 + $0x98] sm:$0xff]  }
  0x29   : > { %1081 = vmatprep.subr.bf16.mxu0 %v1279_v2  ;;  %v576_v17 = vshll.u32 %v464_v16, 16  ;;  %v574_v20 = vshrl.u32 %v464_v16, 16  ;;  %v1218_v28 = vld [vmem:[%s1380_s20 + $0xa0] sm:$0xff]   ;;  %v1219_v29 = vld [vmem:[%s1380_s20 + $0xa8] sm:$0xff]   ;;  %v1220_v30 = vld [vmem:[%s1380_s20 + $0xb0] sm:$0xff]   ;;  %v690_v32 = vrot.slane %v464_v16, 1 }
  0x2a   : > { %1100 = vmatpush3.bf16.msra.mxu1 %v1203_v5  ;;  %v1221_v31 = vld [vmem:[%s1380_s20 + $0xb8] sm:$0xff]   ;;  %v463_v33 = vld [vmem:[#allocation2] sm:$0xf] }
  0x2b   : > { %1101 = vmatprep.subr.bf16.mxu1 %v1279_v2  ;;  %v578_v21 = vrot.slane %v576_v17, 1  ;;  %v1046_v52 = vld [vmem:[%s1483_s4] ss:$0 sm:$0xff] (!%p1045_p11) }
  0x2c   : > { %1082 = vmatpush3.bf16.msra.mxu0 %v1200_v6  ;;  %v1047_v53 = vld [vmem:[%s1484_s5] ss:$0 sm:$0xff] (!%p1045_p11) }
  0x2d   : > { %1083 = vmatprep.subr.bf16.mxu0 %v1279_v2  ;;  %v579_v24 = vor.u32 %v578_v21, %v574_v20  ;;  %v803_v55 = vld [vmem:[%s1386_s9] sm:$0xf] (!%p1045_p11) }
  0x2e   : > { %1102 = vmatpush3.bf16.msra.mxu1 %v1205_v7 }
  0x2f   : > { %1103 = vmatprep.subr.bf16.mxu1 %v1279_v2 }
  0x30   : > { %1084 = vmatpush3.bf16.msra.mxu0 %v1202_v8 }
  0x31   : > { %1085 = vmatprep.subr.bf16.mxu0 %v1279_v2 }
  0x32   : > { %1104 = vmatpush3.bf16.msra.mxu1 %v1207_v9 }
  0x33   : > { %1105 = vmatprep.subr.bf16.mxu1 %v1279_v2 }
  0x34   : > { %1086 = vmatpush3.bf16.msra.mxu0 %v1204_v10 }
  0x35   : > { %1087 = vmatprep.subr.bf16.mxu0 %v1279_v2 }
  0x36   : > { %1106 = vmatpush3.bf16.msra.mxu1 %v1209_v11 }
  0x37   : > { %1107 = vmatprep.subr.bf16.mxu1 %v1279_v2 }
  0x38   : > { %1088 = vmatpush3.bf16.msra.mxu0 %v1206_v12 }
  0x39   : > { %1089 = vmatprep.subr.bf16.mxu0 %v1279_v2 }
  0x3a   : > { %1108 = vmatpush3.bf16.msra.mxu1 %v1211_v14 }
  0x3b   : > { %1109 = vmatprep.subr.bf16.mxu1 %v1279_v2 }
  0x3c   : > { %1090 = vmatpush3.bf16.msra.mxu0 %v1208_v15 }
  0x3d   : > { %1091 = vmatprep.subr.bf16.mxu0 %v1279_v2 }
  0x3e   : > { %1110 = vmatpush3.bf16.msra.mxu1 %v1213_v18 }
  0x3f   : > { %1111 = vmatprep.subr.bf16.mxu1 %v1279_v2 }
  0x40   : > { %1092 = vmatpush3.bf16.msra.mxu0 %v1210_v19 }
  0x41   : > { %1117 = vmatprep.subr.bf16.mxu0 %v1279_v2 }
  0x42   : > { %1112 = vmatpush3.bf16.msra.mxu1 %v1215_v22 }
  0x43   : > { %1094 = vmatmul.mubr.bf16.vlgmr.msra.gmra.mrb[0].mxu0 %v464_v16 }
  0x44   : > { %1118 = vmatpush3.bf16.msra.mxu0 %v1212_v23  ;;  %1133 = vmatprep.mubr.msk.bf16.mxu0 %vm1280_vm0, %v1279_v2 }
  0x45   : > { %1119 = vmatprep.subr.bf16.mxu0 %v1279_v2  ;;  %1114 = vmatmul.mubr.bf16.vlgmr.msra.gmra.mrb[0].mxu1 %v579_v24 }
  0x48   : > { %1120 = vmatpush3.bf16.msra.mxu0 %v1214_v25 }
  0x49   : > { %1121 = vmatprep.subr.bf16.mxu0 %v1279_v2 }
  0x4c   : > { %1122 = vmatpush3.bf16.msra.mxu0 %v1216_v26 }
  0x4d   : > { %1123 = vmatprep.subr.bf16.mxu0 %v1279_v2 }
  0x50   : > { %1124 = vmatpush3.bf16.msra.mxu0 %v1217_v27 }
  0x51   : > { %1125 = vmatprep.subr.bf16.mxu0 %v1279_v2 }
  0x54   : > { %1126 = vmatpush3.bf16.msra.mxu0 %v1218_v28 }
  0x55   : > { %1127 = vmatprep.subr.bf16.mxu0 %v1279_v2 }
  0x58   : > { %1128 = vmatpush3.bf16.msra.mxu0 %v1219_v29 }
  0x59   : > { %1129 = vmatprep.subr.bf16.mxu0 %v1279_v2 }
  0x5c   : > { %1130 = vmatpush3.bf16.msra.mxu0 %v1220_v30 }
  0x5d   : > { %1131 = vmatprep.subr.bf16.mxu0 %v1279_v2 }
  0x60   : > { %1132 = vmatpush3.bf16.msra.mxu0 %v1221_v31 }
  0x63   : > { %1134 = vmatmul.mubr.bf16.vlgmr.msra.gmra.mrb[4].mxu0 %v690_v32 }
 0x116   : > { %v547_v34 = vpop.f32.mrb[0].mxu0 }
 0x117   : > { %v553_v35 = vadd.f32 %v547_v34, %v463_v33  ;;  %v1095_v36 = vpop.f32.mrb[1].mxu0 }
 0x118   : > { %v550_v37 = vpop.f32.mrb[2].mxu0  ;;  %v663_v39 = vpop.f32.mrb[0].mxu1 }
 0x119   : > { %554 = vst [vmem:[#allocation2] sm:$0xf] %v553_v35  ;;  %v1096_v38 = vpop.f32.mrb[3].mxu0  ;;  %v1115_v40 = vpop.f32.mrb[1].mxu1 }
 0x11a   : > { %v666_v41 = vpop.f32.mrb[2].mxu1 }
 0x11b   : > { %v1116_v42 = vpop.f32.mrb[3].mxu1 }
 0x120   : > { %v572_v43 = vld [vmem:[#allocation2] sm:$0xf] }
 0x121   : > { %v669_v44 = vadd.f32 %v663_v39, %v572_v43 }
 0x123   : > { %670 = vst [vmem:[#allocation2] sm:$0xf] %v669_v44 }
 0x12a   : > { %v688_v45 = vld [vmem:[#allocation2] sm:$0xf] }
 0x133   : > { %785 = sbr.rel (%p1045_p11) target bundleno = 328 (0x148), region = 56 }
 0x136   : > { %v774_v46 = vpop.f32.mrb[4].mxu0 }
 0x137   : > { %v780_v47 = vadd.f32 %v774_v46, %v688_v45  ;;  %v1135_v48 = vpop.f32.mrb[5].mxu0 }
 0x138   : > { %v777_v49 = vpop.f32.mrb[6].mxu0 }
 0x139   : > { %781 = vst [vmem:[#allocation2] sm:$0xf] %v780_v47  ;;  %v1136_v50 = vpop.f32.mrb[7].mxu0 }
 0x140   : > { %v786_v51 = vld [vmem:[#allocation2] sm:$0xf] }
 0x141   : > { %v794_v54 = vmul.f32 %v1046_v52, %v786_v51 }
 0x143   : > { %v802_v56 = vadd.f32 %v1047_v53, %v794_v54 }
 0x145   : > { %v804_v57 = vadd.f32 %v803_v55, %v802_v56 }
 0x147   : > { %805 = vst [vmem:[%s1391_s12] sm:$0xf] %v804_v57 }
 0x148 PF: > { %s17_s28 = sadd.s32 1, %s1276_s28   ;;  %s1489_s13 = sld [smem:[#allocation3_spill]] }
 0x149   : > { %p14_p12 = scmp.ge.s32.totalorder %s17_s28, 26   ;;  %s1490_s14 = sld [smem:[#allocation4_spill]] }
 0x14a   : > { %s1491_s24 = smov %s1264_s26  ;;  %s1492_s25 = smov %s1268_s3 }
 0x14b   : > { %s1493_s2 = smov %s1272_s27  ;;  %s1494_s26 = smov %s1498_s29 }
 0x14c   :  { %16 = sbr.rel (!%p14_p12) target bundleno = 4 (0x4), region = 100 }
 0x14e   : > { %s1495_s3 = smov %s1489_s13 }
 0x14f   : > { %s1496_s27 = smov %s1490_s14 }

// kernel: resnet_forward.21
= control target key start
LH: loop header
LB: loop body
LE: loop exit
PB: predicated region body
PF: predicated region fallthrough
CT: control target
= control target key end

     0   :  { %s1429_s21 = smov 0   ;;  %s1431_s22 = smov 0   ;;  %s1585_s0 = inlined_call_operand.vmem [shape: f32[2,12,3,128], index: 0, kind: input, shape index: {}]   ;;  %s1586_s1 = inlined_call_operand.vmem [shape: bf16[3,3,128,256], index: 1, kind: input, shape index: {}]   ;;  %s1587_s2 = inlined_call_operand.vmem [shape: f32[1,128], index: 2, kind: input, shape index: {}]   ;;  %s1588_s3 = inlined_call_operand.vmem [shape: f32[1,128], index: 3, kind: input, shape index: {}]   ;;  %s1589_s4 = inlined_call_operand.vmem [shape: f32[1,256], index: 4, kind: input, shape index: {}]   ;;  %s1590_s5 = inlined_call_operand.vmem [shape: f32[1,256], index: 5, kind: input, shape index: {}]   ;;  %s1591_s6 = inlined_call_operand.vmem [shape: f32[2,2,2,256], index: 6, kind: output, shape index: {}]  }
   0x1   :  { %s1433_s23 = smov 0   ;;  %s1435_s24 = smov 0  }
   0x2   :  { %s1437_s25 = smov 0   ;;  %s1439_s26 = smov 0  }
   0x3   :  { %s1441_s27 = smov 0  }
   0x4 LB: > { %s31_s28 = sadd.s32 1, %s1377_s24  ;;  %s38_s29 = sadd.s32 1, %s1381_s25  ;;  %s1389_s27 = sphi %s1441_s27, %s16_s27   ;;  %s1385_s26 = sphi %s1439_s26, %s1603_s26   ;;  %s1381_s25 = sphi %s1437_s25, %s1602_s25   ;;  %s1377_s24 = sphi %s1435_s24, %s1601_s24   ;;  %s1373_s23 = sphi %s1433_s23, %s1600_s23   ;;  %s1369_s22 = sphi %s1431_s22, %s1599_s22   ;;  %s1365_s21 = sphi %s1429_s21, %s1598_s21  }
   0x5   : > { %p32_p0 = scmp.ge.s32.totalorder %s31_s28, 3  ;;  %p1108_p1 = scmp.ge.s32.totalorder %s1389_s27, 1 }
   0x6   : > { %p294_p2 = scmp.lt.s32.totalorder %s1389_s27, 13  ;;  %s42_s30 = sadd.s32 1, %s1385_s26 }
   0x7   : > { %s1605_s28 = smov (%p32_p0, %s31_s28), 0  ;;  %s1607_s29 = smov (!%p32_p0, %s38_s29), %s1381_s25 }
   0x8   : > { %1592 = sst [smem:[#allocation3_spill]] %s1605_s28  ;;  %p295_p3 = pnand %p1108_p1, %p294_p2 }
   0x9   : > { %p40_p4 = scmp.ge.s32.totalorder %s1607_s29, 2  ;;  %s1109_s7 = sshll.u32 (!%p295_p3), %s1369_s22, 1 }
   0xa   : > { %298 = sbr.rel (%p295_p3) target bundleno = 331 (0x14b), region = 44  ;;  %p358_p6 = scmp.lt.s32.totalorder (!%p295_p3), %s1373_s23, 1 }
   0xb   : > { %s1609_s29 = smov (%p40_p4, %s1607_s29), 0  ;;  %s1611_s30 = smov (!%p40_p4, %s42_s30), %s1385_s26 }
   0xc   : > { %1593 = sst [smem:[#allocation4_spill]] %s1609_s29  ;;  %p44_p5 = scmp.ge.s32.totalorder %s1611_s30, 2 }
   0xd   : > { %s356_s8 = sadd.s32 (!%p295_p3), %s1365_s21, %s1109_s7  ;;  %p370_p7 = scmp.lt.s32.totalorder (!%p295_p3), %s1365_s21, 2 }
   0xe   : > { %s1613_s30 = smov (%p44_p5, %s1611_s30), 0  ;;  %s1110_s9 = sshll.u32 (!%p295_p3), %s356_s8, 1 }
   0xf   : > { %1594 = sst [smem:[#allocation5_spill]] %s1613_s30  ;;  %p360_p8 = scmp.lt.s32.totalorder (!%p295_p3), %s1110_s9, 11 }
  0x10   : > { %p392_p9 = scmp.lt.s32.totalorder (!%p295_p3), %s1369_s22, 1  ;;  %p1116_p10 = scmp.ne.s32.totalorder (!%p295_p3), %s1365_s21, 0 }
  0x11   : > { %s1615_s23 = smov (!%p358_p6, %s1373_s23), 1  ;;  %s1617_s9 = smov (!%p360_p8, %s1110_s9), 11 }
  0x12   : > { %s1202_s10 = smul.u32 12, %s1615_s23  ;;  %s1114_s7 = sshll.u32 %s1615_s23, 2  ;;  %v1391_v0 = vmov (!%p1116_p10), 0.0  }
  0x13   : > { %s371_s11 = scalar_select %p370_p7, %s1365_s21, 2 }
  0x14   : > { %s363_s12 = sadd.s32 %s1202_s10, %s1617_s9  ;;  %s1619_s22 = smov (!%p392_p9, %s1369_s22), 1  ;;  %408 = vst [vmem:[#allocation2] sm:$0xf] (!%p1116_p10), %v1391_v0 }
  0x15   : > { %s1111_s13 = sshll.u32 %s363_s12, 2  ;;  %s1203_s14 = smul.u32 384, %s371_s11 }
  0x16   : > { %s1483_s17 = scalar_lea.vmem %s1585_s0, %s1111_s13  ;;  %s1113_s8 = sshll.u32 %s1619_s22, 1 }
  0x17   : > { %s1488_s20 = scalar_lea.vmem %s1586_s1, %s1203_s14  ;;  %s399_s30 = sadd.s32 %s1114_s7, %s1113_s8 }
  0x18   : > { %s1115_s29 = sshll.u32 %s399_s30, 1  ;;  %407 = sbr.rel (%p1116_p10) target bundleno = 31 (0x1f), region = 48 }
  0x19   : > { %s1494_s10 = scalar_lea.vmem %s1591_s6, %s1115_s29 }
  0x1f PF: > { %v1263_v1 = vld [vmem:[%s1488_s20 + $0x4] ss:$8 sps:$4 sm:$0xff]   ;;  %v1265_v2 = vld [vmem:[%s1488_s20] ss:$8 sps:$4 sm:$0xff]   ;;  %v1392_v3 = vmov 0   ;;  %p1199_p11 = scmp.ne.s32.totalorder %s1365_s21, 2 }
  0x20   : > { %561 = vmatprep.mubr.bf16.mxu0 %v1392_v3  ;;  %714 = vmatprep.mubr.bf16.mxu1 %v1392_v3  ;;  %v1266_v4 = vld [vmem:[%s1488_s20 + $0x14] ss:$8 sps:$4 sm:$0xff]   ;;  %v1268_v5 = vld [vmem:[%s1488_s20 + $0x10] ss:$8 sps:$4 sm:$0xff]   ;;  %v1269_v6 = vld [vmem:[%s1488_s20 + $0x24] ss:$8 sps:$4 sm:$0xff]  }
  0x21   : > { %529 = vmatprep.subr.bf16.mxu0 %v1263_v1  ;;  %v1272_v7 = vld [vmem:[%s1488_s20 + $0x84] ss:$8 sps:$4 sm:$0xff]   ;;  %v1274_v8 = vld [vmem:[%s1488_s20 + $0x80] ss:$8 sps:$4 sm:$0xff]   ;;  %v1278_v10 = vld [vmem:[%s1488_s20 + $0x94] ss:$8 sps:$4 sm:$0xff]  }
  0x22   : > { %530 = vmatpush1.bf16.msra.mxu0 %v1265_v2  ;;  %v1271_v9 = vld [vmem:[%s1488_s20 + $0x20] ss:$8 sps:$4 sm:$0xff]   ;;  %682 = vmatprep.subr.bf16.mxu1 %v1272_v7  ;;  %v1280_v11 = vld [vmem:[%s1488_s20 + $0x90] ss:$8 sps:$4 sm:$0xff]   ;;  %v1275_v12 = vld [vmem:[%s1488_s20 + $0x34] ss:$8 sps:$4 sm:$0xff]  }
  0x23   : > { %531 = vmatprep.subr.bf16.mxu0 %v1266_v4  ;;  %683 = vmatpush1.bf16.msra.mxu1 %v1274_v8  ;;  %v1277_v13 = vld [vmem:[%s1488_s20 + $0x30] ss:$8 sps:$4 sm:$0xff]   ;;  %v1284_v14 = vld [vmem:[%s1488_s20 + $0xa4] ss:$8 sps:$4 sm:$0xff]   ;;  %v1286_v16 = vld [vmem:[%s1488_s20 + $0xa0] ss:$8 sps:$4 sm:$0xff]   ;;  %v576_v4 = vlaneseq }
  0x24   : > { %684 = vmatprep.subr.bf16.mxu1 %v1278_v10  ;;  %v1281_v15 = vld [vmem:[%s1488_s20 + $0x44] ss:$8 sps:$4 sm:$0xff]   ;;  %v1290_v17 = vld [vmem:[%s1488_s20 + $0xb4] ss:$8 sps:$4 sm:$0xff]   ;;  %v1283_v18 = vld [vmem:[%s1488_s20 + $0x40] ss:$8 sps:$4 sm:$0xff]  }
  0x25   : > { %v1287_v19 = vld [vmem:[%s1488_s20 + $0x54] ss:$8 sps:$4 sm:$0xff]   ;;  %v1292_v20 = vld [vmem:[%s1488_s20 + $0xb0] ss:$8 sps:$4 sm:$0xff]   ;;  %v1296_v21 = vld [vmem:[%s1488_s20 + $0xc4] ss:$8 sps:$4 sm:$0xff]  }
  0x26   : > { %532 = vmatpush1.bf16.msra.mxu0 %v1268_v5  ;;  %v1289_v22 = vld [vmem:[%s1488_s20 + $0x50] ss:$8 sps:$4 sm:$0xff]   ;;  %v1298_v23 = vld [vmem:[%s1488_s20 + $0xc0] ss:$8 sps:$4 sm:$0xff]   ;;  %v1293_v27 = vld [vmem:[%s1488_s20 + $0x64] ss:$8 sps:$4 sm:$0xff]  }
  0x27   : > { %533 = vmatprep.subr.bf16.mxu0 %v1269_v6  ;;  %685 = vmatpush1.bf16.msra.mxu1 %v1280_v11  ;;  %v409_v24 = vld [vmem:[%s1483_s17] sm:$0x7]  ;;  %v1302_v28 = vld [vmem:[%s1488_s20 + $0xd4] ss:$8 sps:$4 sm:$0xff]   ;;  %v1304_v32 = vld [vmem:[%s1488_s20 + $0xd0] ss:$8 sps:$4 sm:$0xff]  }
  0x28   : > { %686 = vmatprep.subr.bf16.mxu1 %v1284_v14  ;;  %v1117_v25 = vld [vmem:[%s1587_s2] ss:$0 sm:$0xff]  ;;  %v1299_v33 = vld [vmem:[%s1488_s20 + $0x74] ss:$8 sps:$4 sm:$0xff]   ;;  %v1308_v34 = vld [vmem:[%s1488_s20 + $0xe4] ss:$8 sps:$4 sm:$0xff]  }
  0x29   : > { %v1118_v26 = vld [vmem:[%s1588_s3] ss:$0 sm:$0xff]  ;;  %v418_v29 = vmul.f32 %v1117_v25, %v409_v24  ;;  %v1301_v35 = vld [vmem:[%s1488_s20 + $0x70] ss:$8 sps:$4 sm:$0xff]   ;;  %v410_v37 = vld [vmem:[%s1483_s17 + $0x4] sm:$0x7] }
  0x2a   : > { %534 = vmatpush1.bf16.msra.mxu0 %v1271_v9  ;;  %v1295_v31 = vld [vmem:[%s1488_s20 + $0x60] ss:$8 sps:$4 sm:$0xff]   ;;  %v1307_v38 = vld [vmem:[%s1488_s20 + $0x104] ss:$8 sps:$4 sm:$0xff]   ;;  %v419_v40 = vmul.f32 %v1117_v25, %v410_v37  ;;  %v1314_v41 = vld [vmem:[%s1488_s20 + $0xf4] ss:$8 sps:$4 sm:$0xff]  }
  0x2b   : > { %535 = vmatprep.subr.bf16.mxu0 %v1275_v12  ;;  %687 = vmatpush1.bf16.msra.mxu1 %v1286_v16  ;;  %v427_v30 = vadd.f32 %v1118_v26, %v418_v29  ;;  %v1310_v39 = vld [vmem:[%s1488_s20 + $0xe0] ss:$8 sps:$4 sm:$0xff]   ;;  %v1316_v45 = vld [vmem:[%s1488_s20 + $0xf0] ss:$8 sps:$4 sm:$0xff]   ;;  %v1313_v47 = vld [vmem:[%s1488_s20 + $0x114] ss:$8 sps:$4 sm:$0xff]  }
  0x2c   : > { %688 = vmatprep.subr.bf16.mxu1 %v1290_v17  ;;  %v428_v42 = vadd.f32 %v1118_v26, %v419_v40  ;;  %v1305_v44 = vld [vmem:[%s1488_s20 + $0x100] ss:$8 sps:$4 sm:$0xff]   ;;  %v1311_v49 = vld [vmem:[%s1488_s20 + $0x110] ss:$8 sps:$4 sm:$0xff]   ;;  %v1319_v50 = vld [vmem:[%s1488_s20 + $0x124] ss:$8 sps:$4 sm:$0xff]  }
  0x2d   : > { %v429_v36 = vmax.f32 %v427_v30, 0.0  ;;  %v1317_v51 = vld [vmem:[%s1488_s20 + $0x120] ss:$8 sps:$4 sm:$0xff]   ;;  %v1322_v52 = vld [vmem:[%s1488_s20 + $0x134] ss:$8 sps:$4 sm:$0xff]   ;;  %v577_v6 = vshrl.u32 %v576_v4, 7 }
  0x2e   : > { %536 = vmatpush1.bf16.msra.mxu0 %v1277_v13  ;;  %v430_v46 = vmax.f32 %v428_v42, 0.0  ;;  %v1320_v53 = vld [vmem:[%s1488_s20 + $0x130] ss:$8 sps:$4 sm:$0xff]   ;;  %v1325_v54 = vld [vmem:[%s1488_s20 + $0x144] ss:$8 sps:$4 sm:$0xff]  }
  0x2f   : > { %537 = vmatprep.subr.bf16.mxu0 %v1281_v15  ;;  %689 = vmatpush1.bf16.msra.mxu1 %v1292_v20  ;;  %v448_v43 = vpack.c.bf16 %v429_v36, %v429_v36  ;;  %v1323_v55 = vld [vmem:[%s1488_s20 + $0x140] ss:$8 sps:$4 sm:$0xff]   ;;  %v1328_v56 = vld [vmem:[%s1488_s20 + $0x154] ss:$8 sps:$4 sm:$0xff]   ;;  %v1326_v57 = vld [vmem:[%s1488_s20 + $0x150] ss:$8 sps:$4 sm:$0xff]  }
  0x30   : > { %690 = vmatprep.subr.bf16.mxu1 %v1296_v21  ;;  %v601_v48 = vpack.c.bf16 %v430_v46, %v430_v46  ;;  %v1331_v58 = vld [vmem:[%s1488_s20 + $0x164] ss:$8 sps:$4 sm:$0xff]   ;;  %v1329_v60 = vld [vmem:[%s1488_s20 + $0x160] ss:$8 sps:$4 sm:$0xff]   ;;  %v1334_v61 = vld [vmem:[%s1488_s20 + $0x174] ss:$8 sps:$4 sm:$0xff]  }
  0x31   : > { %v757_v59 = vshll.u32 %v448_v43, 16  ;;  %v755_v62 = vshrl.u32 %v448_v43, 16  ;;  %v1332_v0 = vld [vmem:[%s1488_s20 + $0x170] ss:$8 sps:$4 sm:$0xff]   ;;  %v1393_v2 = vmov 1983009808  }
  0x32   : > { %538 = vmatpush1.bf16.msra.mxu0 %v1283_v18  ;;  %v447_v12 = vld [vmem:[#allocation2] sm:$0xf] }
  0x33   : > { %539 = vmatprep.subr.bf16.mxu0 %v1287_v19  ;;  %691 = vmatpush1.bf16.msra.mxu1 %v1298_v23  ;;  %v759_v63 = vrot.slane %v757_v59, 1 }
  0x34   : > { %692 = vmatprep.subr.bf16.mxu1 %v1302_v28 }
  0x35   : > { %v760_v1 = vor.u32 %v759_v63, %v755_v62 }
  0x36   : > { %540 = vmatpush1.bf16.msra.mxu0 %v1289_v22 }
  0x37   : > { %541 = vmatprep.subr.bf16.mxu0 %v1293_v27  ;;  %693 = vmatpush1.bf16.msra.mxu1 %v1304_v32  ;;  %v901_v32 = vld [vmem:[%s1589_s4] sm:$0x3] (!%p1199_p11) }
  0x38   : > { %694 = vmatprep.subr.bf16.mxu1 %v1308_v34  ;;  %v909_v34 = vsub.s32 (!%p1199_p11), 1, %v577_v6 }
  0x3a   : > { %542 = vmatpush1.bf16.msra.mxu0 %v1295_v31  ;;  %v910_v37 = vrot.slane (!%p1199_p11), %v901_v32, %v909_v34 }
  0x3b   : > { %543 = vmatprep.subr.bf16.mxu0 %v1299_v33  ;;  %695 = vmatpush1.bf16.msra.mxu1 %v1310_v39  ;;  %v905_v33 = vsub.s32 (!%p1199_p11), 0, %v577_v6 }
  0x3c   : > { %696 = vmatprep.subr.bf16.mxu1 %v1314_v41 }
  0x3d   : > { %v906_v36 = vrot.slane (!%p1199_p11), %v901_v32, %v905_v33 }
  0x3e   : > { %544 = vmatpush1.bf16.msra.mxu0 %v1301_v35  ;;  %v921_v35 = vld [vmem:[%s1590_s5] sm:$0x3] (!%p1199_p11) }
  0x3f   : > { %842 = vmatprep.subr.bf16.mxu0 %v1307_v38  ;;  %697 = vmatpush1.bf16.msra.mxu1 %v1316_v45  ;;  %v926_v38 = vrot.slane (!%p1199_p11), %v921_v35, %v905_v33  ;;  %v930_v39 = vrot.slane (!%p1199_p11), %v921_v35, %v909_v34  ;;  %v911_v40 = vcombine.low (!%p1199_p11), %v906_v36, %v910_v37 }
  0x41   : > { %562 = vmatmul.mubr.bf16.vlgmr.msra.gmra.mrb[0].mxu0 %v448_v43  ;;  %v931_v41 = vcombine.low (!%p1199_p11), %v926_v38, %v930_v39 }
  0x42   : > { %843 = vmatpush1.bf16.msra.mxu0 %v1305_v44  ;;  %874 = vmatprep.mubr.bf16.mxu0 %v1392_v3  ;;  %v574_v3 = vunpack.c.l.s4 %v1393_v2 }
  0x43   : > { %844 = vmatprep.subr.bf16.mxu0 %v1313_v47  ;;  %715 = vmatmul.mubr.bf16.vlgmr.msra.gmra.mrb[0].mxu1 %v601_v48 }
  0x44   : > { %v575_v5 = vunpack.c.0.s8 %v574_v3 }
  0x46   : > { %845 = vmatpush1.bf16.msra.mxu0 %v1311_v49  ;;  %v578_v8 = vsub.s32 %v575_v5, %v577_v6 }
  0x47   : > { %846 = vmatprep.subr.bf16.mxu0 %v1319_v50 }
  0x48   : > { %v918_v43 = vrot.slane (!%p1199_p11), %v911_v40, %v578_v8  ;;  %v938_v44 = vrot.slane (!%p1199_p11), %v931_v41, %v578_v8 }
  0x4a   : > { %847 = vmatpush1.bf16.msra.mxu0 %v1317_v51 }
  0x4b   : > { %848 = vmatprep.subr.bf16.mxu0 %v1322_v52 }
  0x4e   : > { %849 = vmatpush1.bf16.msra.mxu0 %v1320_v53 }
  0x4f   : > { %850 = vmatprep.subr.bf16.mxu0 %v1325_v54 }
  0x52   : > { %851 = vmatpush1.bf16.msra.mxu0 %v1323_v55 }
  0x53   : > { %852 = vmatprep.subr.bf16.mxu0 %v1328_v56 }
  0x56   : > { %853 = vmatpush1.bf16.msra.mxu0 %v1326_v57 }
  0x57   : > { %854 = vmatprep.subr.bf16.mxu0 %v1331_v58 }
  0x5a   : > { %855 = vmatpush1.bf16.msra.mxu0 %v1329_v60 }
  0x5b   : > { %856 = vmatprep.subr.bf16.mxu0 %v1334_v61 }
  0x5e   : > { %857 = vmatpush1.bf16.msra.mxu0 %v1332_v0 }
  0x61   : > { %875 = vmatmul.mubr.bf16.vlgmr.msra.gmra.mrb[4].mxu0 %v760_v1 }
 0x114   : > { %v563_v7 = vpop.f32.mrb[0].mxu0 }
 0x115   : > { %v565_v9 = vpop.f32.mrb[1].mxu0 }
 0x116   : > { %v572_v10 = vcombine.low %v563_v7, %v565_v9  ;;  %v567_v11 = vpop.f32.mrb[2].mxu0  ;;  %v716_v15 = vpop.f32.mrb[0].mxu1 }
 0x117   : > { %v568_v13 = vpop.f32.mrb[3].mxu0  ;;  %v718_v16 = vpop.f32.mrb[1].mxu1 }
 0x118   : > { %v579_v14 = vrot.slane %v572_v10, %v578_v8  ;;  %v725_v18 = vcombine.low %v716_v15, %v718_v16  ;;  %v720_v19 = vpop.f32.mrb[2].mxu1 }
 0x119   : > { %v721_v20 = vpop.f32.mrb[3].mxu1 }
 0x11a   : > { %v581_v17 = vadd.f32 %v579_v14, %v447_v12  ;;  %v732_v21 = vrot.slane %v725_v18, %v578_v8 }
 0x11c   : > { %582 = vst [vmem:[#allocation2] sm:$0xf] %v581_v17 }
 0x123   : > { %v600_v22 = vld [vmem:[#allocation2] sm:$0xf] }
 0x124   : > { %v734_v23 = vadd.f32 %v732_v21, %v600_v22 }
 0x126   : > { %735 = vst [vmem:[#allocation2] sm:$0xf] %v734_v23 }
 0x12d   : > { %v753_v30 = vld [vmem:[#allocation2] sm:$0xf] }
 0x134   : > { %v876_v24 = vpop.f32.mrb[4].mxu0 }
 0x135   : > { %v878_v25 = vpop.f32.mrb[5].mxu0 }
 0x136   : > { %v885_v26 = vcombine.low %v876_v24, %v878_v25  ;;  %v880_v27 = vpop.f32.mrb[6].mxu0  ;;  %899 = sbr.rel (%p1199_p11) target bundleno = 331 (0x14b), region = 52 }
 0x137   : > { %v881_v28 = vpop.f32.mrb[7].mxu0 }
 0x138   : > { %v892_v29 = vrot.slane %v885_v26, %v578_v8 }
 0x13a   : > { %v894_v31 = vadd.f32 %v892_v29, %v753_v30 }
 0x13c   : > { %895 = vst [vmem:[#allocation2] sm:$0xf] %v894_v31 }
 0x143   : > { %v900_v42 = vld [vmem:[#allocation2] sm:$0xf] }
 0x144   : > { %v920_v45 = vmul.f32 %v918_v43, %v900_v42 }
 0x146   : > { %v940_v46 = vadd.f32 %v938_v44, %v920_v45 }
 0x148   : > { %v941_v47 = vmax.f32 %v940_v46, 0.0 }
 0x14a   : > { %942 = vst [vmem:[%s1494_s10] sm:$0xf] %v941_v47 }
 0x14b PF: > { %s16_s27 = sadd.s32 1, %s1389_s27   ;;  %s1595_s14 = sld [smem:[#allocation3_spill]] }
 0x14c   : > { %p13_p12 = scmp.ge.s32.totalorder %s16_s27, 14   ;;  %s1596_s15 = sld [smem:[#allocation4_spill]] }
 0x14d   : > { %s1597_s16 = sld [smem:[#allocation5_spill]]  ;;  %s1598_s21 = smov %s1377_s24 }
 0x14e   : > { %s1599_s22 = smov %s1381_s25  ;;  %s1600_s23 = smov %s1385_s26 }
 0x14f   :  { %15 = sbr.rel (!%p13_p12) target bundleno = 4 (0x4), region = 93 }
 0x151   : > { %s1601_s24 = smov %s1595_s14 }
 0x152   : > { %s1602_s25 = smov %s1596_s15 }
 0x153   : > { %s1603_s26 = smov %s1597_s16 }

// kernel: resnet_forward.25
= control target key start
LH: loop header
LB: loop body
LE: loop exit
PB: predicated region body
PF: predicated region fallthrough
CT: control target
= control target key end

     0   :  { %s1342_s21 = smov 0   ;;  %s1344_s22 = smov 0   ;;  %s1598_s0 = inlined_call_operand.vmem [shape: f32[2,4,1,256], index: 0, kind: input, shape index: {}]   ;;  %s1599_s1 = inlined_call_operand.vmem [shape: bf16[1,1,256,512], index: 1, kind: input, shape index: {}]   ;;  %s1600_s2 = inlined_call_operand.vmem [shape: f32[1,256], index: 2, kind: input, shape index: {}]   ;;  %s1601_s3 = inlined_call_operand.vmem [shape: f32[1,256], index: 3, kind: input, shape index: {}]   ;;  %s1602_s4 = inlined_call_operand.vmem [shape: f32[1,512], index: 4, kind: input, shape index: {}]   ;;  %s1603_s5 = inlined_call_operand.vmem [shape: f32[1,512], index: 5, kind: input, shape index: {}]   ;;  %s1604_s6 = inlined_call_operand.vmem [shape: f32[2,1,1,512], index: 6, kind: output, shape index: {}]  }
   0x1   :  { %s1346_s23 = smov 0  }
   0x2 LB: > { %s42_s2 = sadd.s32 1, %s1299_s22  ;;  %p1090_p0 = scmp.ge.s32.totalorder %s1303_s23, 1  ;;  %s1303_s23 = sphi %s1346_s23, %s16_s23   ;;  %s1299_s22 = sphi %s1344_s22, %s1608_s22   ;;  %s1295_s21 = sphi %s1342_s21, %s1607_s21  }
   0x3   : > { %p44_p1 = scmp.ge.s32.totalorder %s42_s2, 2  ;;  %p294_p2 = scmp.lt.s32.totalorder %s1303_s23, 3 }
   0x5   : > { %s1610_s2 = smov (%p44_p1, %s42_s2), 0  ;;  %p295_p3 = pnand %p1090_p0, %p294_p2 }
   0x6   : > { %v1185_v0 = vld [vmem:[%s1599_s1 + $0x4] ss:$16 sps:$4 sm:$0xff] (!%p295_p3)   ;;  %v1187_v1 = vld [vmem:[%s1599_s1 + $0xc] ss:$16 sps:$4 sm:$0xff] (!%p295_p3)   ;;  %v405_v2 = vlaneseq (!%p295_p3)  ;;  %v1189_v3 = vld [vmem:[%s1599_s1] ss:$16 sps:$4 sm:$0xff] (!%p295_p3)  }
   0x7   : > { %298 = sbr.rel (%p295_p3) target bundleno = 307 (0x133), region = 44  ;;  %809 = vmatprep.subr.bf16.mxu0 (!%p295_p3), %v1185_v0  ;;  %v1190_v4 = vld [vmem:[%s1599_s1 + $0x8] ss:$16 sps:$4 sm:$0xff] (!%p295_p3)   ;;  %850 = vmatprep.subr.bf16.mxu1 (!%p295_p3), %v1187_v1  ;;  %v1191_v5 = vld [vmem:[%s1599_s1 + $0x24] ss:$16 sps:$4 sm:$0xff] (!%p295_p3)   ;;  %v1305_v9 = vmov (!%p295_p3), 0.0  }
   0x8   : > { %vm1378_vm0 = vcmp.lt.s32.totalorder (!%p295_p3), %v405_v2, 512  ;;  %810 = vmatpush1.bf16.msra.mxu0 (!%p295_p3), %v1189_v3  ;;  %851 = vmatpush1.bf16.msra.mxu1 (!%p295_p3), %v1190_v4  ;;  %v1193_v7 = vld [vmem:[%s1599_s1 + $0x2c] ss:$16 sps:$4 sm:$0xff] (!%p295_p3)   ;;  %v1195_v8 = vld [vmem:[%s1599_s1 + $0x20] ss:$16 sps:$4 sm:$0xff] (!%p295_p3)   ;;  %p357_p4 = scmp.lt.s32.totalorder (!%p295_p3), %s1295_s21, 1 }
   0x9   : > { %409 = vst.msk [vmem:[#allocation2] sm:$0xf] (!%p295_p3), %vm1378_vm0, %v1305_v9  ;;  %811 = vmatprep.subr.bf16.mxu0 (!%p295_p3), %v1191_v5  ;;  %v1196_v10 = vld [vmem:[%s1599_s1 + $0x28] ss:$16 sps:$4 sm:$0xff] (!%p295_p3)   ;;  %852 = vmatprep.subr.bf16.mxu1 (!%p295_p3), %v1193_v7  ;;  %v1197_v11 = vld [vmem:[%s1599_s1 + $0x44] ss:$16 sps:$4 sm:$0xff] (!%p295_p3)  }
   0xa   : > { %v1199_v12 = vld [vmem:[%s1599_s1 + $0x4c] ss:$16 sps:$4 sm:$0xff] (!%p295_p3)   ;;  %v1201_v13 = vld [vmem:[%s1599_s1 + $0x40] ss:$16 sps:$4 sm:$0xff] (!%p295_p3)   ;;  %v1202_v14 = vld [vmem:[%s1599_s1 + $0x48] ss:$16 sps:$4 sm:$0xff] (!%p295_p3)  }
   0xb   : > { %v1203_v15 = vld [vmem:[%s1599_s1 + $0x64] ss:$16 sps:$4 sm:$0xff] (!%p295_p3)   ;;  %v1205_v16 = vld [vmem:[%s1599_s1 + $0x6c] ss:$16 sps:$4 sm:$0xff] (!%p295_p3)   ;;  %v1207_v17 = vld [vmem:[%s1599_s1 + $0x60] ss:$16 sps:$4 sm:$0xff] (!%p295_p3)  }
   0xc   : > { %812 = vmatpush1.bf16.msra.mxu0 (!%p295_p3), %v1195_v8  ;;  %853 = vmatpush1.bf16.msra.mxu1 (!%p295_p3), %v1196_v10  ;;  %v1208_v18 = vld [vmem:[%s1599_s1 + $0x68] ss:$16 sps:$4 sm:$0xff] (!%p295_p3)   ;;  %v1209_v19 = vld [vmem:[%s1599_s1 + $0x84] ss:$16 sps:$4 sm:$0xff] (!%p295_p3)   ;;  %v1211_v20 = vld [vmem:[%s1599_s1 + $0x8c] ss:$16 sps:$4 sm:$0xff] (!%p295_p3)  }
   0xd   : > { %813 = vmatprep.subr.bf16.mxu0 (!%p295_p3), %v1197_v11  ;;  %854 = vmatprep.subr.bf16.mxu1 (!%p295_p3), %v1199_v12  ;;  %v1213_v21 = vld [vmem:[%s1599_s1 + $0x80] ss:$16 sps:$4 sm:$0xff] (!%p295_p3)   ;;  %v1214_v22 = vld [vmem:[%s1599_s1 + $0x88] ss:$16 sps:$4 sm:$0xff] (!%p295_p3)   ;;  %v1215_v23 = vld [vmem:[%s1599_s1 + $0xa4] ss:$16 sps:$4 sm:$0xff] (!%p295_p3)  }
   0xe   : > { %v1217_v24 = vld [vmem:[%s1599_s1 + $0xac] ss:$16 sps:$4 sm:$0xff]   ;;  %v1219_v25 = vld [vmem:[%s1599_s1 + $0xa0] ss:$16 sps:$4 sm:$0xff]   ;;  %v1220_v26 = vld [vmem:[%s1599_s1 + $0xa8] ss:$16 sps:$4 sm:$0xff]  }
   0xf   : > { %v1221_v27 = vld [vmem:[%s1599_s1 + $0xc4] ss:$16 sps:$4 sm:$0xff]   ;;  %v1223_v28 = vld [vmem:[%s1599_s1 + $0xcc] ss:$16 sps:$4 sm:$0xff]   ;;  %v1225_v29 = vld [vmem:[%s1599_s1 + $0xc0] ss:$16 sps:$4 sm:$0xff]  }
  0x10   : > { %814 = vmatpush1.bf16.msra.mxu0 %v1201_v13  ;;  %855 = vmatpush1.bf16.msra.mxu1 %v1202_v14  ;;  %v1226_v30 = vld [vmem:[%s1599_s1 + $0xc8] ss:$16 sps:$4 sm:$0xff]   ;;  %v1227_v31 = vld [vmem:[%s1599_s1 + $0xe4] ss:$16 sps:$4 sm:$0xff]   ;;  %v1229_v32 = vld [vmem:[%s1599_s1 + $0xec] ss:$16 sps:$4 sm:$0xff]  }
  0x11   : > { %815 = vmatprep.subr.bf16.mxu0 %v1203_v15  ;;  %856 = vmatprep.subr.bf16.mxu1 %v1205_v16  ;;  %v1231_v33 = vld [vmem:[%s1599_s1 + $0xe0] ss:$16 sps:$4 sm:$0xff]   ;;  %v1232_v34 = vld [vmem:[%s1599_s1 + $0xe8] ss:$16 sps:$4 sm:$0xff]   ;;  %v1233_v35 = vld [vmem:[%s1599_s1 + $0x104] ss:$16 sps:$4 sm:$0xff]  }
  0x12   : > { %v1235_v36 = vld [vmem:[%s1599_s1 + $0x10c] ss:$16 sps:$4 sm:$0xff]   ;;  %v1237_v37 = vld [vmem:[%s1599_s1 + $0x100] ss:$16 sps:$4 sm:$0xff]   ;;  %v1238_v38 = vld [vmem:[%s1599_s1 + $0x108] ss:$16 sps:$4 sm:$0xff]  }
  0x13   : > { %v1239_v39 = vld [vmem:[%s1599_s1 + $0x124] ss:$16 sps:$4 sm:$0xff]   ;;  %s1612_s21 = smov (!%p357_p4, %s1295_s21), 1  ;;  %v1241_v40 = vld [vmem:[%s1599_s1 + $0x12c] ss:$16 sps:$4 sm:$0xff]   ;;  %v1491_v42 = vshrl.u32 %v405_v2, 7 }
  0x14   : > { %816 = vmatpush1.bf16.msra.mxu0 %v1207_v17  ;;  %857 = vmatpush1.bf16.msra.mxu1 %v1208_v18  ;;  %v1243_v41 = vld [vmem:[%s1599_s1 + $0x120] ss:$16 sps:$4 sm:$0xff]   ;;  %v1244_v43 = vld [vmem:[%s1599_s1 + $0x128] ss:$16 sps:$4 sm:$0xff]   ;;  %v1245_v44 = vld [vmem:[%s1599_s1 + $0x144] ss:$16 sps:$4 sm:$0xff]  }
  0x15   : > { %817 = vmatprep.subr.bf16.mxu0 %v1209_v19  ;;  %858 = vmatprep.subr.bf16.mxu1 %v1211_v20  ;;  %s1091_s15 = sshll.u32 %s1612_s21, 3  ;;  %v1247_v45 = vld [vmem:[%s1599_s1 + $0x14c] ss:$16 sps:$4 sm:$0xff]   ;;  %v1249_v46 = vld [vmem:[%s1599_s1 + $0x140] ss:$16 sps:$4 sm:$0xff]   ;;  %v483_v48 = vsub.s32 1, %v1491_v42 }
  0x16   : > { %v1250_v47 = vld [vmem:[%s1599_s1 + $0x148] ss:$16 sps:$4 sm:$0xff]   ;;  %s364_s26 = scalar_lea.vmem %s1598_s0, %s1091_s15  ;;  %v1251_v49 = vld [vmem:[%s1599_s1 + $0x164] ss:$16 sps:$4 sm:$0xff]   ;;  %v1253_v50 = vld [vmem:[%s1599_s1 + $0x16c] ss:$16 sps:$4 sm:$0xff]  }
  0x17   : > { %v410_v51 = vld [vmem:[%s364_s26] sm:$0x3]  ;;  %v1256_v54 = vld [vmem:[%s1599_s1 + $0x168] ss:$16 sps:$4 sm:$0xff]   ;;  %v1257_v55 = vld [vmem:[%s1599_s1 + $0x184] ss:$16 sps:$4 sm:$0xff]  }
  0x18   : > { %818 = vmatpush1.bf16.msra.mxu0 %v1213_v21  ;;  %859 = vmatpush1.bf16.msra.mxu1 %v1214_v22  ;;  %v484_v52 = vrot.slane %v410_v51, %v483_v48  ;;  %v1255_v53 = vld [vmem:[%s1599_s1 + $0x160] ss:$16 sps:$4 sm:$0xff]   ;;  %v1259_v56 = vld [vmem:[%s1599_s1 + $0x18c] ss:$16 sps:$4 sm:$0xff]   ;;  %v1262_v59 = vld [vmem:[%s1599_s1 + $0x188] ss:$16 sps:$4 sm:$0xff]  }
  0x19   : > { %819 = vmatprep.subr.bf16.mxu0 %v1215_v23  ;;  %860 = vmatprep.subr.bf16.mxu1 %v1217_v24  ;;  %v1261_v58 = vld [vmem:[%s1599_s1 + $0x180] ss:$16 sps:$4 sm:$0xff]   ;;  %v1263_v60 = vld [vmem:[%s1599_s1 + $0x1a4] ss:$16 sps:$4 sm:$0xff]   ;;  %v1265_v61 = vld [vmem:[%s1599_s1 + $0x1ac] ss:$16 sps:$4 sm:$0xff]  }
  0x1a   : > { %v488_v57 = vpack.c.bf16 %v484_v52, %v484_v52  ;;  %v1267_v62 = vld [vmem:[%s1599_s1 + $0x1a0] ss:$16 sps:$4 sm:$0xff]   ;;  %v1268_v63 = vld [vmem:[%s1599_s1 + $0x1a8] ss:$16 sps:$4 sm:$0xff]   ;;  %v1269_v0 = vld [vmem:[%s1599_s1 + $0x1c4] ss:$16 sps:$4 sm:$0xff]  }
  0x1b   : > { %v1271_v1 = vld [vmem:[%s1599_s1 + $0x1cc] ss:$16 sps:$4 sm:$0xff]   ;;  %v479_v2 = vsub.s32 0, %v1491_v42  ;;  %v1273_v3 = vld [vmem:[%s1599_s1 + $0x1c0] ss:$16 sps:$4 sm:$0xff]   ;;  %s1092_s25 = sshll.u32 %s1612_s21, 2 }
  0x1c   : > { %820 = vmatpush1.bf16.msra.mxu0 %v1219_v25  ;;  %861 = vmatpush1.bf16.msra.mxu1 %v1220_v26  ;;  %v1274_v4 = vld [vmem:[%s1599_s1 + $0x1c8] ss:$16 sps:$4 sm:$0xff]   ;;  %v1275_v5 = vld [vmem:[%s1599_s1 + $0x1e4] ss:$16 sps:$4 sm:$0xff]   ;;  %v1277_v7 = vld [vmem:[%s1599_s1 + $0x1ec] ss:$16 sps:$4 sm:$0xff]   ;;  %s399_s30 = scalar_lea.vmem %s1604_s6, %s1092_s25 }
  0x1d   : > { %821 = vmatprep.subr.bf16.mxu0 %v1221_v27  ;;  %862 = vmatprep.subr.bf16.mxu1 %v1223_v28  ;;  %v480_v8 = vrot.slane %v410_v51, %v479_v2  ;;  %v1279_v9 = vld [vmem:[%s1599_s1 + $0x1e0] ss:$16 sps:$4 sm:$0xff]   ;;  %v1280_v10 = vld [vmem:[%s1599_s1 + $0x1e8] ss:$16 sps:$4 sm:$0xff]   ;;  %v1306_v12 = vmov 1966171168  }
  0x1e   : > { %841 = vmatprep.mubr.bf16.mxu0 %v488_v57  ;;  %882 = vmatprep.mubr.bf16.mxu1 %v488_v57  ;;  %v898_v13 = vunpack.c.l.s4 %v1306_v12 }
  0x1f   : > { %v487_v11 = vpack.c.bf16 %v480_v8, %v480_v8 }
  0x20   : > { %822 = vmatpush1.bf16.msra.mxu0 %v1225_v29  ;;  %863 = vmatpush1.bf16.msra.mxu1 %v1226_v30  ;;  %v899_v14 = vunpack.c.0.s8 %v898_v13  ;;  %v475_v29 = vld [vmem:[#allocation2] sm:$0xf] }
  0x21   : > { %823 = vmatprep.subr.bf16.mxu0 %v1227_v31  ;;  %864 = vmatprep.subr.bf16.mxu1 %v1229_v32  ;;  %v930_v32 = vld [vmem:[%s1602_s4] sm:$0xf] }
  0x22   : > { %v902_v17 = vsub.s32 %v899_v14, %v1491_v42 }
  0x24   : > { %824 = vmatpush1.bf16.msra.mxu0 %v1231_v33  ;;  %865 = vmatpush1.bf16.msra.mxu1 %v1232_v34  ;;  %v932_v34 = vld [vmem:[%s1603_s5] sm:$0xf] }
  0x25   : > { %825 = vmatprep.subr.bf16.mxu0 %v1233_v35  ;;  %866 = vmatprep.subr.bf16.mxu1 %v1235_v36 }
  0x28   : > { %826 = vmatpush1.bf16.msra.mxu0 %v1237_v37  ;;  %867 = vmatpush1.bf16.msra.mxu1 %v1238_v38 }
  0x29   : > { %827 = vmatprep.subr.bf16.mxu0 %v1239_v39  ;;  %868 = vmatprep.subr.bf16.mxu1 %v1241_v40 }
  0x2c   : > { %828 = vmatpush1.bf16.msra.mxu0 %v1243_v41  ;;  %869 = vmatpush1.bf16.msra.mxu1 %v1244_v43 }
  0x2d   : > { %829 = vmatprep.subr.bf16.mxu0 %v1245_v44  ;;  %870 = vmatprep.subr.bf16.mxu1 %v1247_v45 }
  0x30   : > { %830 = vmatpush1.bf16.msra.mxu0 %v1249_v46  ;;  %871 = vmatpush1.bf16.msra.mxu1 %v1250_v47 }
  0x31   : > { %831 = vmatprep.subr.bf16.mxu0 %v1251_v49  ;;  %872 = vmatprep.subr.bf16.mxu1 %v1253_v50 }
  0x34   : > { %832 = vmatpush1.bf16.msra.mxu0 %v1255_v53  ;;  %873 = vmatpush1.bf16.msra.mxu1 %v1256_v54 }
  0x35   : > { %833 = vmatprep.subr.bf16.mxu0 %v1257_v55  ;;  %874 = vmatprep.subr.bf16.mxu1 %v1259_v56 }
  0x38   : > { %834 = vmatpush1.bf16.msra.mxu0 %v1261_v58  ;;  %875 = vmatpush1.bf16.msra.mxu1 %v1262_v59 }
  0x39   : > { %835 = vmatprep.subr.bf16.mxu0 %v1263_v60  ;;  %876 = vmatprep.subr.bf16.mxu1 %v1265_v61 }
  0x3c   : > { %836 = vmatpush1.bf16.msra.mxu0 %v1267_v62  ;;  %877 = vmatpush1.bf16.msra.mxu1 %v1268_v63 }
  0x3d   : > { %837 = vmatprep.subr.bf16.mxu0 %v1269_v0  ;;  %878 = vmatprep.subr.bf16.mxu1 %v1271_v1 }
  0x40   : > { %838 = vmatpush1.bf16.msra.mxu0 %v1273_v3  ;;  %879 = vmatpush1.bf16.msra.mxu1 %v1274_v4 }
  0x41   : > { %839 = vmatprep.subr.bf16.mxu0 %v1275_v5  ;;  %880 = vmatprep.subr.bf16.mxu1 %v1277_v7 }
  0x44   : > { %840 = vmatpush1.bf16.msra.mxu0 %v1279_v9  ;;  %881 = vmatpush1.bf16.msra.mxu1 %v1280_v10 }
  0x47   : > { %842 = vmatmul.mubr.bf16.vlgmr.msra.gmra.mrb[0].mxu0 %v487_v11  ;;  %883 = vmatmul.mubr.bf16.vlgmr.msra.gmra.mrb[0].mxu1 %v487_v11 }
 0x11a   : > { %v843_v15 = vpop.f32.mrb[0].mxu0  ;;  %v884_v16 = vpop.f32.mrb[0].mxu1 }
 0x11b   : > { %v845_v18 = vpop.f32.mrb[1].mxu0  ;;  %v886_v19 = vpop.f32.mrb[1].mxu1 }
 0x11c   : > { %v895_v20 = vcombine.low %v843_v15, %v845_v18  ;;  %v896_v21 = vcombine.low %v884_v16, %v886_v19  ;;  %v847_v22 = vpop.f32.mrb[2].mxu0  ;;  %v888_v23 = vpop.f32.mrb[2].mxu1 }
 0x11d   : > { %v848_v24 = vpop.f32.mrb[3].mxu0  ;;  %v889_v25 = vpop.f32.mrb[3].mxu1 }
 0x11e   : > { %v903_v26 = vrot.slane %v895_v20, %v902_v17  ;;  %v910_v27 = vrot.slane %v896_v21, %v902_v17 }
 0x120   : > { %v911_v28 = vcombine.low %v903_v26, %v910_v27 }
 0x122   : > { %v918_v30 = vrot.slane %v911_v28, %v902_v17 }
 0x124   : > { %v920_v31 = vadd.f32 %v918_v30, %v475_v29 }
 0x126   : > { %925 = vst.msk [vmem:[#allocation2] sm:$0xf] %vm1378_vm0, %v920_v31 }
 0x12d   : > { %v929_v33 = vld [vmem:[#allocation2] sm:$0xf] }
 0x12e   : > { %v931_v35 = vmul.f32 %v930_v32, %v929_v33 }
 0x130   : > { %v933_v36 = vadd.f32 %v932_v34, %v931_v35 }
 0x132   : > { %934 = vst.msk [vmem:[%s399_s30] sm:$0xf] %vm1378_vm0, %v933_v36 }
 0x133 PF: > { %s16_s23 = sadd.s32 1, %s1303_s23   ;;  %s1607_s21 = smov %s1299_s22 }
 0x134   : > { %p13_p5 = scmp.ge.s32.totalorder %s16_s23, 4   ;;  %s1608_s22 = smov %s1610_s2 }
 0x136   :  { %15 = sbr.rel (!%p13_p5) target bundleno = 2 (0x2), region = 91 }

// kernel: resnet_forward.23
= control target key start
LH: loop header
LB: loop body
LE: loop exit
PB: predicated region body
PF: predicated region fallthrough
CT: control target
= control target key end

     0   :  { %s1962_s24 = smov 0   ;;  %s1964_s25 = smov 0   ;;  %s2174_s0 = inlined_call_operand.vmem [shape: f32[2,4,4,256], index: 0, kind: input, shape index: {}]   ;;  %s2175_s1 = inlined_call_operand.vmem [shape: bf16[3,3,256,256], index: 1, kind: input, shape index: {}]   ;;  %s2176_s2 = inlined_call_operand.vmem [shape: f32[1,256], index: 2, kind: input, shape index: {}, may-alias: {2,4}]   ;;  %s2177_s3 = inlined_call_operand.vmem [shape: f32[1,256], index: 3, kind: input, shape index: {}, may-alias: {3,5}]   ;;  %s2178_s4 = inlined_call_operand.vmem [shape: f32[1,256], index: 4, kind: input, shape index: {}, may-alias: {2,4}]   ;;  %s2179_s5 = inlined_call_operand.vmem [shape: f32[1,256], index: 5, kind: input, shape index: {}, may-alias: {3,5}]   ;;  %s2180_s6 = inlined_call_operand.vmem [shape: f32[2,2,2,256], index: 6, kind: input, shape index: {}]   ;;  %s2181_s7 = inlined_call_operand.vmem [shape: f32[2,2,2,256], index: 7, kind: output, shape index: {}]  }
   0x1   :  { %s1966_s2 = smov 0   ;;  %s1968_s26 = smov 0  }
   0x2   :  { %s1970_s3 = smov 0   ;;  %s1972_s27 = smov 0  }
   0x3   :  { %s1974_s28 = smov 0  }
   0x4 LB: > { %s32_s29 = sadd.s32 1, %s1906_s26  ;;  %s39_s30 = sadd.s32 1, %s1910_s3  ;;  %s1918_s28 = sphi %s1974_s28, %s17_s28   ;;  %s1914_s27 = sphi %s1972_s27, %s2189_s27   ;;  %s1910_s3 = sphi %s1970_s3, %s2188_s3   ;;  %s1906_s26 = sphi %s1968_s26, %s2187_s26   ;;  %s1902_s2 = sphi %s1966_s2, %s2186_s2   ;;  %s1898_s25 = sphi %s1964_s25, %s2185_s25   ;;  %s1894_s24 = sphi %s1962_s24, %s2184_s24  }
   0x5   : > { %p33_p0 = scmp.ge.s32.totalorder %s32_s29, 3  ;;  %p1485_p1 = scmp.ge.s32.totalorder %s1918_s28, 1 }
   0x6   : > { %p337_p2 = scmp.lt.s32.totalorder %s1918_s28, 13  ;;  %s43_s8 = sadd.s32 1, %s1914_s27 }
   0x7   : > { %s2191_s29 = smov (%p33_p0, %s32_s29), 0  ;;  %s2193_s30 = smov (!%p33_p0, %s39_s30), %s1910_s3 }
   0x8   : > { %p338_p3 = pnand %p1485_p1, %p337_p2  ;;  %p41_p4 = scmp.ge.s32.totalorder %s2193_s30, 2 }
   0x9   : > { %s412_s9 = sadd.s32 (!%p338_p3), %s1894_s24, %s1898_s25  ;;  %p413_p6 = scmp.lt.s32.totalorder (!%p338_p3), %s1902_s2, 1 }
   0xa   : > { %s2195_s30 = smov (%p41_p4, %s2193_s30), 0  ;;  %s2197_s8 = smov (!%p41_p4, %s43_s8), %s1914_s27 }
   0xb   : > { %p45_p5 = scmp.ge.s32.totalorder %s2197_s8, 2  ;;  %341 = sbr.rel (%p338_p3) target bundleno = 394 (0x18a), region = 48 }
   0xc   : > { %p415_p7 = scmp.lt.s32.totalorder (!%p338_p3), %s412_s9, 3  ;;  %p424_p8 = scmp.lt.s32.totalorder (!%p338_p3), %s1894_s24, 2 }
   0xd   : > { %s2199_s8 = smov (%p45_p5, %s2197_s8), 0  ;;  %p446_p9 = scmp.lt.s32.totalorder (!%p338_p3), %s1898_s25, 1 }
   0xe   : > { %2182 = sst [smem:[#allocation3_spill]] %s2199_s8  ;;  %p1496_p10 = scmp.ne.s32.totalorder (!%p338_p3), %s1894_s24, 0 }
  0x12   : > { %s2201_s2 = smov (!%p413_p6, %s1902_s2), 1  ;;  %s2203_s9 = smov (!%p415_p7, %s412_s9), 3 }
  0x13   : > { %s1487_s10 = sshll.u32 %s2201_s2, 3  ;;  %s1486_s11 = sshll.u32 %s2203_s9, 1  ;;  %v1920_v0 = vmov (!%p1496_p10), 0.0  }
  0x14   : > { %s419_s12 = sadd.s32 %s1487_s10, %s1486_s11  ;;  %s1491_s17 = sshll.u32 %s2201_s2, 2  ;;  %475 = vst [vmem:[#allocation2] sm:$0xf] (!%p1496_p10), %v1920_v0 }
  0x15   : > { %s1488_s13 = sshll.u32 %s419_s12, 2  ;;  %s2205_s25 = smov (!%p446_p9, %s1898_s25), 1 }
  0x16   : > { %s2015_s16 = scalar_lea.vmem %s2174_s0, %s1488_s13  ;;  %s1490_s20 = sshll.u32 %s2205_s25, 1 }
  0x17   : > { %s425_s18 = scalar_select %p424_p8, %s1894_s24, 2 }
  0x18   : > { %s453_s9 = sadd.s32 %s1491_s17, %s1490_s20  ;;  %474 = sbr.rel (%p1496_p10) target bundleno = 31 (0x1f), region = 52 }
  0x19   : > { %s1660_s19 = smul.u32 768, %s425_s18  ;;  %s1492_s8 = sshll.u32 %s453_s9, 1 }
  0x1a   : > { %s2027_s12 = scalar_lea.vmem %s2180_s6, %s1492_s8  ;;  %s2032_s2 = scalar_lea.vmem %s2181_s7, %s1492_s8 }
  0x1b   : > { %s2022_s23 = scalar_lea.vmem %s2175_s1, %s1660_s19 }
  0x1f PF: > { %v1719_v1 = vld [vmem:[%s2022_s23 + $0x4] ss:$8 sps:$4 sm:$0xff]   ;;  %v1721_v2 = vld [vmem:[%s2022_s23] ss:$8 sps:$4 sm:$0xff]   ;;  %v1722_v3 = vld [vmem:[%s2022_s23 + $0x14] ss:$8 sps:$4 sm:$0xff]  }
  0x20   : > { %675 = vmatprep.subr.bf16.mxu0 %v1719_v1  ;;  %v1724_v4 = vld [vmem:[%s2022_s23 + $0x10] ss:$8 sps:$4 sm:$0xff]   ;;  %v1725_v5 = vld [vmem:[%s2022_s23 + $0x24] ss:$8 sps:$4 sm:$0xff]   ;;  %v1730_v7 = vld [vmem:[%s2022_s23 + $0x100] ss:$8 sps:$4 sm:$0xff]  }
  0x21   : > { %676 = vmatpush1.bf16.msra.mxu0 %v1721_v2  ;;  %v1728_v6 = vld [vmem:[%s2022_s23 + $0x104] ss:$8 sps:$4 sm:$0xff]   ;;  %v1727_v8 = vld [vmem:[%s2022_s23 + $0x20] ss:$8 sps:$4 sm:$0xff]   ;;  %v1734_v9 = vld [vmem:[%s2022_s23 + $0x114] ss:$8 sps:$4 sm:$0xff]  }
  0x22   : > { %677 = vmatprep.subr.bf16.mxu0 %v1722_v3  ;;  %939 = vmatprep.subr.bf16.mxu1 %v1728_v6  ;;  %v1736_v10 = vld [vmem:[%s2022_s23 + $0x110] ss:$8 sps:$4 sm:$0xff]   ;;  %v1731_v11 = vld [vmem:[%s2022_s23 + $0x34] ss:$8 sps:$4 sm:$0xff]   ;;  %v1740_v13 = vld [vmem:[%s2022_s23 + $0x124] ss:$8 sps:$4 sm:$0xff]  }
  0x23   : > { %940 = vmatpush1.bf16.msra.mxu1 %v1730_v7  ;;  %v1733_v12 = vld [vmem:[%s2022_s23 + $0x30] ss:$8 sps:$4 sm:$0xff]   ;;  %v1737_v14 = vld [vmem:[%s2022_s23 + $0x44] ss:$8 sps:$4 sm:$0xff]   ;;  %v1742_v15 = vld [vmem:[%s2022_s23 + $0x120] ss:$8 sps:$4 sm:$0xff]  }
  0x24   : > { %941 = vmatprep.subr.bf16.mxu1 %v1734_v9  ;;  %v1746_v16 = vld [vmem:[%s2022_s23 + $0x134] ss:$8 sps:$4 sm:$0xff]   ;;  %v1739_v17 = vld [vmem:[%s2022_s23 + $0x40] ss:$8 sps:$4 sm:$0xff]   ;;  %v1748_v19 = vld [vmem:[%s2022_s23 + $0x130] ss:$8 sps:$4 sm:$0xff]  }
  0x25   : > { %678 = vmatpush1.bf16.msra.mxu0 %v1724_v4  ;;  %v1743_v18 = vld [vmem:[%s2022_s23 + $0x54] ss:$8 sps:$4 sm:$0xff]   ;;  %v1752_v20 = vld [vmem:[%s2022_s23 + $0x144] ss:$8 sps:$4 sm:$0xff]   ;;  %v1745_v21 = vld [vmem:[%s2022_s23 + $0x50] ss:$8 sps:$4 sm:$0xff]  }
  0x26   : > { %679 = vmatprep.subr.bf16.mxu0 %v1725_v5  ;;  %v1749_v22 = vld [vmem:[%s2022_s23 + $0x64] ss:$8 sps:$4 sm:$0xff]   ;;  %v1754_v23 = vld [vmem:[%s2022_s23 + $0x140] ss:$8 sps:$4 sm:$0xff]   ;;  %v1758_v24 = vld [vmem:[%s2022_s23 + $0x154] ss:$8 sps:$4 sm:$0xff]  }
  0x27   : > { %942 = vmatpush1.bf16.msra.mxu1 %v1736_v10  ;;  %v1751_v25 = vld [vmem:[%s2022_s23 + $0x60] ss:$8 sps:$4 sm:$0xff]   ;;  %v1755_v26 = vld [vmem:[%s2022_s23 + $0x74] ss:$8 sps:$4 sm:$0xff]   ;;  %v1760_v27 = vld [vmem:[%s2022_s23 + $0x150] ss:$8 sps:$4 sm:$0xff]  }
  0x28   : > { %943 = vmatprep.subr.bf16.mxu1 %v1740_v13  ;;  %v1764_v28 = vld [vmem:[%s2022_s23 + $0x164] ss:$8 sps:$4 sm:$0xff]   ;;  %v1757_v29 = vld [vmem:[%s2022_s23 + $0x70] ss:$8 sps:$4 sm:$0xff]   ;;  %v1766_v31 = vld [vmem:[%s2022_s23 + $0x160] ss:$8 sps:$4 sm:$0xff]  }
  0x29   : > { %680 = vmatpush1.bf16.msra.mxu0 %v1727_v8  ;;  %v1761_v30 = vld [vmem:[%s2022_s23 + $0x84] ss:$8 sps:$4 sm:$0xff]   ;;  %v1770_v32 = vld [vmem:[%s2022_s23 + $0x174] ss:$8 sps:$4 sm:$0xff]   ;;  %v1763_v33 = vld [vmem:[%s2022_s23 + $0x80] ss:$8 sps:$4 sm:$0xff]  }
  0x2a   : > { %681 = vmatprep.subr.bf16.mxu0 %v1731_v11  ;;  %v1767_v34 = vld [vmem:[%s2022_s23 + $0x94] ss:$8 sps:$4 sm:$0xff]   ;;  %v1772_v35 = vld [vmem:[%s2022_s23 + $0x170] ss:$8 sps:$4 sm:$0xff]   ;;  %v1776_v36 = vld [vmem:[%s2022_s23 + $0x184] ss:$8 sps:$4 sm:$0xff]  }
  0x2b   : > { %944 = vmatpush1.bf16.msra.mxu1 %v1742_v15  ;;  %v1769_v37 = vld [vmem:[%s2022_s23 + $0x90] ss:$8 sps:$4 sm:$0xff]   ;;  %v1773_v38 = vld [vmem:[%s2022_s23 + $0xa4] ss:$8 sps:$4 sm:$0xff]   ;;  %v1778_v39 = vld [vmem:[%s2022_s23 + $0x180] ss:$8 sps:$4 sm:$0xff]  }
  0x2c   : > { %945 = vmatprep.subr.bf16.mxu1 %v1746_v16  ;;  %v1782_v40 = vld [vmem:[%s2022_s23 + $0x194] ss:$8 sps:$4 sm:$0xff]   ;;  %v1775_v41 = vld [vmem:[%s2022_s23 + $0xa0] ss:$8 sps:$4 sm:$0xff]   ;;  %v1784_v43 = vld [vmem:[%s2022_s23 + $0x190] ss:$8 sps:$4 sm:$0xff]  }
  0x2d   : > { %682 = vmatpush1.bf16.msra.mxu0 %v1733_v12  ;;  %v1779_v42 = vld [vmem:[%s2022_s23 + $0xb4] ss:$8 sps:$4 sm:$0xff]   ;;  %v476_v44 = vld [vmem:[%s2015_s16] sm:$0xff]  ;;  %v1781_v47 = vld [vmem:[%s2022_s23 + $0xb0] ss:$8 sps:$4 sm:$0xff]   ;;  %p1657_p11 = scmp.ne.s32.totalorder %s1894_s24, 2 }
  0x2e   : > { %683 = vmatprep.subr.bf16.mxu0 %v1737_v14  ;;  %v1788_v45 = vld [vmem:[%s2022_s23 + $0x1a4] ss:$8 sps:$4 sm:$0xff]   ;;  %v511_v46 = vcombine.high %v476_v44, %v476_v44  ;;  %v1790_v50 = vld [vmem:[%s2022_s23 + $0x1a0] ss:$8 sps:$4 sm:$0xff]   ;;  %v1794_v51 = vld [vmem:[%s2022_s23 + $0x1b4] ss:$8 sps:$4 sm:$0xff]   ;;  %v2100_v3 = vpack.c.bf16 %v476_v44, %v476_v44 }
  0x2f   : > { %946 = vmatpush1.bf16.msra.mxu1 %v1748_v19  ;;  %v1785_v48 = vld [vmem:[%s2022_s23 + $0xc4] ss:$8 sps:$4 sm:$0xff]   ;;  %v1787_v54 = vld [vmem:[%s2022_s23 + $0xc0] ss:$8 sps:$4 sm:$0xff]   ;;  %v1791_v55 = vld [vmem:[%s2022_s23 + $0xd4] ss:$8 sps:$4 sm:$0xff]  }
  0x30   : > { %947 = vmatprep.subr.bf16.mxu1 %v1752_v20  ;;  %v2082_v49 = vpack.c.bf16 %v511_v46, %v511_v46  ;;  %v1796_v57 = vld [vmem:[%s2022_s23 + $0x1b0] ss:$8 sps:$4 sm:$0xff]   ;;  %v1800_v58 = vld [vmem:[%s2022_s23 + $0x1c4] ss:$8 sps:$4 sm:$0xff]   ;;  %v1802_v62 = vld [vmem:[%s2022_s23 + $0x1c0] ss:$8 sps:$4 sm:$0xff]  }
  0x31   : > { %684 = vmatpush1.bf16.msra.mxu0 %v1739_v17  ;;  %v1793_v60 = vld [vmem:[%s2022_s23 + $0xd0] ss:$8 sps:$4 sm:$0xff]   ;;  %v1797_v61 = vld [vmem:[%s2022_s23 + $0xe4] ss:$8 sps:$4 sm:$0xff]   ;;  %v1806_v63 = vld [vmem:[%s2022_s23 + $0x1d4] ss:$8 sps:$4 sm:$0xff]  }
  0x32   : > { %685 = vmatprep.subr.bf16.mxu0 %v1743_v18  ;;  %v771_v52 = vshrl.u32 %v2082_v49, 16  ;;  %v773_v53 = vshll.u32 %v2082_v49, 16  ;;  %707 = vmatprep.mubr.bf16.mxu0 %v2082_v49  ;;  %v1799_v0 = vld [vmem:[%s2022_s23 + $0xe0] ss:$8 sps:$4 sm:$0xff]   ;;  %v1803_v1 = vld [vmem:[%s2022_s23 + $0xf4] ss:$8 sps:$4 sm:$0xff]  }
  0x33   : > { %948 = vmatpush1.bf16.msra.mxu1 %v1754_v23  ;;  %v1809_v2 = vld [vmem:[%s2022_s23 + $0x1d0] ss:$8 sps:$4 sm:$0xff]   ;;  %v1813_v4 = vld [vmem:[%s2022_s23 + $0x1e4] ss:$8 sps:$4 sm:$0xff]   ;;  %v766_v7 = vshll.u32 %v2100_v3, 16  ;;  %v764_v11 = vshrl.u32 %v2100_v3, 16 }
  0x34   : > { %949 = vmatprep.subr.bf16.mxu1 %v1758_v24  ;;  %v775_v56 = vrot.slane %v773_v53, 1  ;;  %v1805_v5 = vld [vmem:[%s2022_s23 + $0xf0] ss:$8 sps:$4 sm:$0xff]   ;;  %v1812_v6 = vld [vmem:[%s2022_s23 + $0x204] ss:$8 sps:$4 sm:$0xff]   ;;  %v1030_v15 = vrot.slane %v2082_v49, 1  ;;  %v722_v49 = vlaneseq }
  0x35   : > { %686 = vmatpush1.bf16.msra.mxu0 %v1745_v21  ;;  %v1815_v8 = vld [vmem:[%s2022_s23 + $0x1e0] ss:$8 sps:$4 sm:$0xff]   ;;  %v1819_v9 = vld [vmem:[%s2022_s23 + $0x1f4] ss:$8 sps:$4 sm:$0xff]   ;;  %v768_v12 = vrot.slane %v766_v7, 1  ;;  %v1029_v46 = vrot.slane %v2100_v3, 1 }
  0x36   : > { %687 = vmatprep.subr.bf16.mxu0 %v1749_v22  ;;  %v776_v59 = vor.u32 %v775_v56, %v771_v52  ;;  %v1810_v10 = vld [vmem:[%s2022_s23 + $0x200] ss:$8 sps:$4 sm:$0xff]   ;;  %v1821_v13 = vld [vmem:[%s2022_s23 + $0x1f0] ss:$8 sps:$4 sm:$0xff]   ;;  %v1818_v14 = vld [vmem:[%s2022_s23 + $0x214] ss:$8 sps:$4 sm:$0xff]  }
  0x37   : > { %950 = vmatpush1.bf16.msra.mxu1 %v1760_v27  ;;  %v769_v16 = vor.u32 %v768_v12, %v764_v11  ;;  %v1816_v17 = vld [vmem:[%s2022_s23 + $0x210] ss:$8 sps:$4 sm:$0xff]   ;;  %v1824_v18 = vld [vmem:[%s2022_s23 + $0x224] ss:$8 sps:$4 sm:$0xff]   ;;  %v1822_v19 = vld [vmem:[%s2022_s23 + $0x220] ss:$8 sps:$4 sm:$0xff]  }
  0x38   : > { %951 = vmatprep.subr.bf16.mxu1 %v1764_v28  ;;  %971 = vmatprep.mubr.bf16.mxu1 %v776_v59  ;;  %v1827_v20 = vld [vmem:[%s2022_s23 + $0x234] ss:$8 sps:$4 sm:$0xff]   ;;  %v1825_v21 = vld [vmem:[%s2022_s23 + $0x230] ss:$8 sps:$4 sm:$0xff]   ;;  %v1830_v22 = vld [vmem:[%s2022_s23 + $0x244] ss:$8 sps:$4 sm:$0xff]  }
  0x39   : > { %688 = vmatpush1.bf16.msra.mxu0 %v1751_v25  ;;  %v1828_v23 = vld [vmem:[%s2022_s23 + $0x240] ss:$8 sps:$4 sm:$0xff]   ;;  %v1833_v24 = vld [vmem:[%s2022_s23 + $0x254] ss:$8 sps:$4 sm:$0xff]   ;;  %v1831_v25 = vld [vmem:[%s2022_s23 + $0x250] ss:$8 sps:$4 sm:$0xff]  }
  0x3a   : > { %689 = vmatprep.subr.bf16.mxu0 %v1755_v26  ;;  %v1836_v26 = vld [vmem:[%s2022_s23 + $0x264] ss:$8 sps:$4 sm:$0xff]   ;;  %v1834_v27 = vld [vmem:[%s2022_s23 + $0x260] ss:$8 sps:$4 sm:$0xff]   ;;  %v1839_v28 = vld [vmem:[%s2022_s23 + $0x274] ss:$8 sps:$4 sm:$0xff]  }
  0x3b   : > { %952 = vmatpush1.bf16.msra.mxu1 %v1766_v31  ;;  %v1840_v31 = vld [vmem:[%s2022_s23 + $0x280] ss:$8 sps:$4 sm:$0xff]   ;;  %v1863_v44 = vld [vmem:[%s2022_s23 + $0x2f4] ss:$8 sps:$4 sm:$0xff]  }
  0x3c   : > { %953 = vmatprep.subr.bf16.mxu1 %v1770_v32  ;;  %v1845_v32 = vld [vmem:[%s2022_s23 + $0x294] ss:$8 sps:$4 sm:$0xff]  }
  0x3d   : > { %690 = vmatpush1.bf16.msra.mxu0 %v1757_v29  ;;  %v1837_v29 = vld [vmem:[%s2022_s23 + $0x270] ss:$8 sps:$4 sm:$0xff]  }
  0x3e   : > { %691 = vmatprep.subr.bf16.mxu0 %v1761_v30  ;;  %v1842_v30 = vld [vmem:[%s2022_s23 + $0x284] ss:$8 sps:$4 sm:$0xff]  }
  0x3f   : > { %954 = vmatpush1.bf16.msra.mxu1 %v1772_v35  ;;  %v1846_v35 = vld [vmem:[%s2022_s23 + $0x2a0] ss:$8 sps:$4 sm:$0xff]  }
  0x40   : > { %955 = vmatprep.subr.bf16.mxu1 %v1776_v36  ;;  %v1851_v36 = vld [vmem:[%s2022_s23 + $0x2b4] ss:$8 sps:$4 sm:$0xff]  }
  0x41   : > { %692 = vmatpush1.bf16.msra.mxu0 %v1763_v33  ;;  %v1843_v33 = vld [vmem:[%s2022_s23 + $0x290] ss:$8 sps:$4 sm:$0xff]  }
  0x42   : > { %693 = vmatprep.subr.bf16.mxu0 %v1767_v34  ;;  %v1848_v34 = vld [vmem:[%s2022_s23 + $0x2a4] ss:$8 sps:$4 sm:$0xff]  }
  0x43   : > { %956 = vmatpush1.bf16.msra.mxu1 %v1778_v39  ;;  %v1852_v39 = vld [vmem:[%s2022_s23 + $0x2c0] ss:$8 sps:$4 sm:$0xff]  }
  0x44   : > { %957 = vmatprep.subr.bf16.mxu1 %v1782_v40  ;;  %v1857_v40 = vld [vmem:[%s2022_s23 + $0x2d4] ss:$8 sps:$4 sm:$0xff]  }
  0x45   : > { %694 = vmatpush1.bf16.msra.mxu0 %v1769_v37  ;;  %v1849_v37 = vld [vmem:[%s2022_s23 + $0x2b0] ss:$8 sps:$4 sm:$0xff]  }
  0x46   : > { %695 = vmatprep.subr.bf16.mxu0 %v1773_v38  ;;  %v1854_v38 = vld [vmem:[%s2022_s23 + $0x2c4] ss:$8 sps:$4 sm:$0xff]  }
  0x47   : > { %958 = vmatpush1.bf16.msra.mxu1 %v1784_v43  ;;  %v1858_v43 = vld [vmem:[%s2022_s23 + $0x2e0] ss:$8 sps:$4 sm:$0xff]  }
  0x48   : > { %959 = vmatprep.subr.bf16.mxu1 %v1788_v45  ;;  %v1861_v45 = vld [vmem:[%s2022_s23 + $0x2f0] ss:$8 sps:$4 sm:$0xff]  }
  0x49   : > { %696 = vmatpush1.bf16.msra.mxu0 %v1775_v41  ;;  %v1855_v41 = vld [vmem:[%s2022_s23 + $0x2d0] ss:$8 sps:$4 sm:$0xff]  }
  0x4a   : > { %697 = vmatprep.subr.bf16.mxu0 %v1779_v42  ;;  %v1860_v42 = vld [vmem:[%s2022_s23 + $0x2e4] ss:$8 sps:$4 sm:$0xff]  }
  0x4b   : > { %960 = vmatpush1.bf16.msra.mxu1 %v1790_v50 }
  0x4c   : > { %961 = vmatprep.subr.bf16.mxu1 %v1794_v51  ;;  %v723_v51 = vshrl.u32 %v722_v49, 7 }
  0x4d   : > { %698 = vmatpush1.bf16.msra.mxu0 %v1781_v47  ;;  %v1921_v47 = vmov 1983009808  }
  0x4e   : > { %699 = vmatprep.subr.bf16.mxu0 %v1785_v48  ;;  %v720_v48 = vunpack.c.l.s4 %v1921_v47 }
  0x4f   : > { %962 = vmatpush1.bf16.msra.mxu1 %v1796_v57  ;;  %v509_v57 = vld [vmem:[#allocation2] sm:$0xf] }
  0x50   : > { %963 = vmatprep.subr.bf16.mxu1 %v1800_v58  ;;  %v721_v50 = vunpack.c.0.s8 %v720_v48 }
  0x51   : > { %700 = vmatpush1.bf16.msra.mxu0 %v1787_v54 }
  0x52   : > { %701 = vmatprep.subr.bf16.mxu0 %v1791_v55  ;;  %v724_v53 = vsub.s32 %v721_v50, %v723_v51 }
  0x53   : > { %964 = vmatpush1.bf16.msra.mxu1 %v1802_v62 }
  0x54   : > { %965 = vmatprep.subr.bf16.mxu1 %v1806_v63 }
  0x55   : > { %702 = vmatpush1.bf16.msra.mxu0 %v1793_v60 }
  0x56   : > { %703 = vmatprep.subr.bf16.mxu0 %v1797_v61 }
  0x57   : > { %966 = vmatpush1.bf16.msra.mxu1 %v1809_v2 }
  0x58   : > { %967 = vmatprep.subr.bf16.mxu1 %v1813_v4 }
  0x59   : > { %704 = vmatpush1.bf16.msra.mxu0 %v1799_v0 }
  0x5a   : > { %705 = vmatprep.subr.bf16.mxu0 %v1803_v1 }
  0x5b   : > { %968 = vmatpush1.bf16.msra.mxu1 %v1815_v8 }
  0x5c   : > { %969 = vmatprep.subr.bf16.mxu1 %v1819_v9 }
  0x5d   : > { %706 = vmatpush1.bf16.msra.mxu0 %v1805_v5 }
  0x5e   : > { %1193 = vmatprep.subr.bf16.mxu0 %v1812_v6 }
  0x5f   : > { %970 = vmatpush1.bf16.msra.mxu1 %v1821_v13  ;;  %v1252_v13 = vld [vmem:[%s2178_s4] sm:$0x3] (!%p1657_p11) }
  0x60   : > { %708 = vmatmul.mubr.bf16.vlgmr.msra.gmra.mrb[0].mxu0 %v2100_v3 }
  0x61   : > { %1194 = vmatpush1.bf16.msra.mxu0 %v1810_v10  ;;  %1225 = vmatprep.mubr.bf16.mxu0 %v1030_v15  ;;  %v1260_v15 = vsub.s32 (!%p1657_p11), 1, %v723_v51 }
  0x62   : > { %1195 = vmatprep.subr.bf16.mxu0 %v1818_v14  ;;  %972 = vmatmul.mubr.bf16.vlgmr.msra.gmra.mrb[0].mxu1 %v769_v16  ;;  %v1256_v14 = vsub.s32 (!%p1657_p11), 0, %v723_v51  ;;  %v1272_v16 = vld [vmem:[%s2179_s5] sm:$0x3] (!%p1657_p11) }
  0x65   : > { %1196 = vmatpush1.bf16.msra.mxu0 %v1816_v17  ;;  %v1257_v17 = vrot.slane (!%p1657_p11), %v1252_v13, %v1256_v14 }
  0x66   : > { %1197 = vmatprep.subr.bf16.mxu0 %v1824_v18  ;;  %v1261_v18 = vrot.slane (!%p1657_p11), %v1252_v13, %v1260_v15 }
  0x69   : > { %1198 = vmatpush1.bf16.msra.mxu0 %v1822_v19  ;;  %v1277_v19 = vrot.slane (!%p1657_p11), %v1272_v16, %v1256_v14 }
  0x6a   : > { %1199 = vmatprep.subr.bf16.mxu0 %v1827_v20  ;;  %v1281_v20 = vrot.slane (!%p1657_p11), %v1272_v16, %v1260_v15 }
  0x6d   : > { %1200 = vmatpush1.bf16.msra.mxu0 %v1825_v21  ;;  %v1262_v21 = vcombine.low (!%p1657_p11), %v1257_v17, %v1261_v18 }
  0x6e   : > { %1201 = vmatprep.subr.bf16.mxu0 %v1830_v22  ;;  %v1282_v22 = vcombine.low (!%p1657_p11), %v1277_v19, %v1281_v20 }
  0x71   : > { %1202 = vmatpush1.bf16.msra.mxu0 %v1828_v23 }
  0x72   : > { %1203 = vmatprep.subr.bf16.mxu0 %v1833_v24  ;;  %v1269_v24 = vrot.slane (!%p1657_p11), %v1262_v21, %v724_v53 }
  0x75   : > { %1204 = vmatpush1.bf16.msra.mxu0 %v1831_v25  ;;  %v1289_v25 = vrot.slane (!%p1657_p11), %v1282_v22, %v724_v53 }
  0x76   : > { %1205 = vmatprep.subr.bf16.mxu0 %v1836_v26 }
  0x79   : > { %1206 = vmatpush1.bf16.msra.mxu0 %v1834_v27  ;;  %v1292_v27 = vld [vmem:[%s2027_s12] sm:$0xf] (!%p1657_p11) }
  0x7a   : > { %1207 = vmatprep.subr.bf16.mxu0 %v1839_v28 }
  0x7d   : > { %1208 = vmatpush1.bf16.msra.mxu0 %v1837_v29 }
  0x7e   : > { %1209 = vmatprep.subr.bf16.mxu0 %v1842_v30 }
  0x81   : > { %1210 = vmatpush1.bf16.msra.mxu0 %v1840_v31 }
  0x82   : > { %1211 = vmatprep.subr.bf16.mxu0 %v1845_v32 }
  0x85   : > { %1212 = vmatpush1.bf16.msra.mxu0 %v1843_v33 }
  0x86   : > { %1213 = vmatprep.subr.bf16.mxu0 %v1848_v34 }
  0x89   : > { %1214 = vmatpush1.bf16.msra.mxu0 %v1846_v35 }
  0x8a   : > { %1215 = vmatprep.subr.bf16.mxu0 %v1851_v36 }
  0x8d   : > { %1216 = vmatpush1.bf16.msra.mxu0 %v1849_v37 }
  0x8e   : > { %1217 = vmatprep.subr.bf16.mxu0 %v1854_v38 }
  0x91   : > { %1218 = vmatpush1.bf16.msra.mxu0 %v1852_v39 }
  0x92   : > { %1219 = vmatprep.subr.bf16.mxu0 %v1857_v40 }
  0x95   : > { %1220 = vmatpush1.bf16.msra.mxu0 %v1855_v41 }
  0x96   : > { %1221 = vmatprep.subr.bf16.mxu0 %v1860_v42 }
  0x99   : > { %1222 = vmatpush1.bf16.msra.mxu0 %v1858_v43 }
  0x9a   : > { %1223 = vmatprep.subr.bf16.mxu0 %v1863_v44 }
  0x9d   : > { %1224 = vmatpush1.bf16.msra.mxu0 %v1861_v45 }
  0xa0   : > { %1226 = vmatmul.mubr.bf16.vlgmr.msra.gmra.mrb[4].mxu0 %v1029_v46 }
 0x133   : > { %v709_v52 = vpop.f32.mrb[0].mxu0 }
 0x134   : > { %v711_v54 = vpop.f32.mrb[1].mxu0 }
 0x135   : > { %v718_v55 = vcombine.low %v709_v52, %v711_v54  ;;  %v713_v56 = vpop.f32.mrb[2].mxu0  ;;  %v973_v60 = vpop.f32.mrb[0].mxu1 }
 0x136   : > { %v714_v58 = vpop.f32.mrb[3].mxu0  ;;  %v975_v61 = vpop.f32.mrb[1].mxu1 }
 0x137   : > { %v725_v59 = vrot.slane %v718_v55, %v724_v53  ;;  %v982_v63 = vcombine.low %v973_v60, %v975_v61  ;;  %v977_v0 = vpop.f32.mrb[2].mxu1 }
 0x138   : > { %v978_v1 = vpop.f32.mrb[3].mxu1 }
 0x139   : > { %v727_v62 = vadd.f32 %v725_v59, %v509_v57  ;;  %v989_v2 = vrot.slane %v982_v63, %v724_v53 }
 0x13b   : > { %728 = vst [vmem:[#allocation2] sm:$0xf] %v727_v62 }
 0x142   : > { %v762_v3 = vld [vmem:[#allocation2] sm:$0xf] }
 0x143   : > { %v991_v4 = vadd.f32 %v989_v2, %v762_v3 }
 0x145   : > { %992 = vst [vmem:[#allocation2] sm:$0xf] %v991_v4 }
 0x14c   : > { %v1026_v11 = vld [vmem:[#allocation2] sm:$0xf] }
 0x173   : > { %v1227_v5 = vpop.f32.mrb[4].mxu0 }
 0x174   : > { %v1229_v6 = vpop.f32.mrb[5].mxu0 }
 0x175   : > { %v1236_v7 = vcombine.low %v1227_v5, %v1229_v6  ;;  %v1231_v8 = vpop.f32.mrb[6].mxu0  ;;  %1250 = sbr.rel (%p1657_p11) target bundleno = 394 (0x18a), region = 56 }
 0x176   : > { %v1232_v9 = vpop.f32.mrb[7].mxu0 }
 0x177   : > { %v1243_v10 = vrot.slane %v1236_v7, %v724_v53 }
 0x179   : > { %v1245_v12 = vadd.f32 %v1243_v10, %v1026_v11 }
 0x17b   : > { %1246 = vst [vmem:[#allocation2] sm:$0xf] %v1245_v12 }
 0x182   : > { %v1251_v23 = vld [vmem:[#allocation2] sm:$0xf] }
 0x183   : > { %v1271_v26 = vmul.f32 %v1269_v24, %v1251_v23 }
 0x185   : > { %v1291_v28 = vadd.f32 %v1289_v25, %v1271_v26 }
 0x187   : > { %v1293_v29 = vadd.f32 %v1292_v27, %v1291_v28 }
 0x189   : > { %1294 = vst [vmem:[%s2032_s2] sm:$0xf] %v1293_v29 }
 0x18a PF: > { %s17_s28 = sadd.s32 1, %s1918_s28   ;;  %s2183_s17 = sld [smem:[#allocation3_spill]] }
 0x18b   : > { %p14_p12 = scmp.ge.s32.totalorder %s17_s28, 14   ;;  %s2184_s24 = smov %s1906_s26 }
 0x18c   : > { %s2185_s25 = smov %s1910_s3  ;;  %s2186_s2 = smov %s1914_s27 }
 0x18d   : > { %s2187_s26 = smov %s2191_s29  ;;  %s2188_s3 = smov %s2195_s30 }
 0x18e   :  { %16 = sbr.rel (!%p14_p12) target bundleno = 4 (0x4), region = 100 }
 0x190   : > { %s2189_s27 = smov %s2183_s17 }

// kernel: resnet_forward.24
= control target key start
LH: loop header
LB: loop body
LE: loop exit
PB: predicated region body
PF: predicated region fallthrough
CT: control target
= control target key end

     0   :  { %s2914_s21 = smov 0   ;;  %s2916_s22 = smov 0   ;;  %s3248_s0 = inlined_call_operand.vmem [shape: f32[2,8,2,256], index: 0, kind: input, shape index: {}]   ;;  %s3249_s1 = inlined_call_operand.vmem [shape: bf16[3,3,256,512], index: 1, kind: input, shape index: {}]   ;;  %s3250_s2 = inlined_call_operand.vmem [shape: f32[1,256], index: 2, kind: input, shape index: {}]   ;;  %s3251_s3 = inlined_call_operand.vmem [shape: f32[1,256], index: 3, kind: input, shape index: {}]   ;;  %s3252_s4 = inlined_call_operand.vmem [shape: f32[1,512], index: 4, kind: input, shape index: {}]   ;;  %s3253_s5 = inlined_call_operand.vmem [shape: f32[1,512], index: 5, kind: input, shape index: {}]   ;;  %s3254_s6 = inlined_call_operand.vmem [shape: f32[2,1,1,512], index: 6, kind: output, shape index: {}]  }
   0x1   :  { %s2918_s23 = smov 0   ;;  %s2920_s24 = smov 0  }
   0x2   :  { %s2922_s25 = smov 0  }
   0x3 LB: > { %s31_s26 = sadd.s32 1, %s2866_s23  ;;  %s42_s27 = sadd.s32 1, %s2870_s24  ;;  %s2874_s25 = sphi %s2922_s25, %s16_s25   ;;  %s2870_s24 = sphi %s2920_s24, %s3260_s24   ;;  %s2866_s23 = sphi %s2918_s23, %s3259_s23   ;;  %s2862_s22 = sphi %s2916_s22, %s3258_s22   ;;  %s2858_s21 = sphi %s2914_s21, %s3257_s21  }
   0x4   : > { %p32_p0 = scmp.ge.s32.totalorder %s31_s26, 3  ;;  %p2173_p1 = scmp.ge.s32.totalorder %s2874_s25, 1 }
   0x5   : > { %p295_p2 = scmp.lt.s32.totalorder %s2874_s25, 7 }
   0x6   : > { %s3262_s26 = smov (%p32_p0, %s31_s26), 0  ;;  %s3264_s27 = smov (!%p32_p0, %s42_s27), %s2870_s24 }
   0x7   : > { %p296_p3 = pnand %p2173_p1, %p295_p2  ;;  %p44_p4 = scmp.ge.s32.totalorder %s3264_s27, 2 }
   0x8   : > { %s2174_s28 = sshll.u32 (!%p296_p3), %s2858_s21, 1  ;;  %p359_p5 = scmp.lt.s32.totalorder (!%p296_p3), %s2862_s22, 1 }
   0x9   : > { %s3266_s27 = smov (%p44_p4, %s3264_s27), 0  ;;  %299 = sbr.rel (%p296_p3) target bundleno = 458 (0x1ca), region = 44 }
   0xa   : > { %p361_p6 = scmp.lt.s32.totalorder (!%p296_p3), %s2174_s28, 7  ;;  %p372_p7 = scmp.lt.s32.totalorder (!%p296_p3), %s2858_s21, 2 }
   0xb   : > { %p2180_p8 = scmp.ne.s32.totalorder (!%p296_p3), %s2858_s21, 0 }
  0x10   : > { %s3268_s22 = smov (!%p359_p5, %s2862_s22), 1  ;;  %s3270_s28 = smov (!%p361_p6, %s2174_s28), 7 }
  0x11   : > { %s2176_s29 = sshll.u32 %s3268_s22, 4  ;;  %s2179_s30 = sshll.u32 %s3268_s22, 2  ;;  %v408_v0 = vlaneseq (!%p2180_p8)  ;;  %v2876_v1 = vmov (!%p2180_p8), 0.0  }
  0x12   : > { %s2175_s7 = sshll.u32 %s3270_s28, 1  ;;  %s2951_s10 = scalar_lea.vmem %s3254_s6, %s2179_s30 }
  0x13   : > { %s365_s11 = sadd.s32 %s2176_s29, %s2175_s7  ;;  %vm410_vm0 = vcmp.lt.s32.totalorder (!%p2180_p8), %v408_v0, 512 }
  0x14   : > { %s2177_s12 = sshll.u32 %s365_s11, 1  ;;  %407 = sbr.rel (%p2180_p8) target bundleno = 27 (0x1b), region = 48  ;;  %412 = vst.msk [vmem:[#allocation2] sm:$0xf] (!%p2180_p8), %vm410_vm0, %v2876_v1 }
  0x15   : > { %s2956_s15 = scalar_lea.vmem %s3248_s0, %s2177_s12 }
  0x16   : > { %s373_s16 = scalar_select %p372_p7, %s2858_s21, 2 }
  0x18   : > { %s2504_s17 = smul.u32 1536, %s373_s16 }
  0x1a   : > { %s2962_s20 = scalar_lea.vmem %s3249_s1, %s2504_s17 }
  0x1b PF: > { %v2548_v2 = vld [vmem:[%s2962_s20 + $0x4] ss:$16 sps:$4 sm:$0xff]   ;;  %v2550_v3 = vld [vmem:[%s2962_s20 + $0xc] ss:$16 sps:$4 sm:$0xff]   ;;  %v2552_v4 = vld [vmem:[%s2962_s20] ss:$16 sps:$4 sm:$0xff]   ;;  %v417_v39 = vlaneseq }
  0x1c   : > { %857 = vmatprep.subr.bf16.mxu0 %v2548_v2  ;;  %v2553_v5 = vld [vmem:[%s2962_s20 + $0x8] ss:$16 sps:$4 sm:$0xff]   ;;  %898 = vmatprep.subr.bf16.mxu1 %v2550_v3  ;;  %v2554_v6 = vld [vmem:[%s2962_s20 + $0x24] ss:$16 sps:$4 sm:$0xff]   ;;  %v2556_v7 = vld [vmem:[%s2962_s20 + $0x2c] ss:$16 sps:$4 sm:$0xff]  }
  0x1d   : > { %858 = vmatpush1.bf16.msra.mxu0 %v2552_v4  ;;  %899 = vmatpush1.bf16.msra.mxu1 %v2553_v5  ;;  %v2558_v8 = vld [vmem:[%s2962_s20 + $0x20] ss:$16 sps:$4 sm:$0xff]   ;;  %v2559_v9 = vld [vmem:[%s2962_s20 + $0x28] ss:$16 sps:$4 sm:$0xff]   ;;  %v2560_v10 = vld [vmem:[%s2962_s20 + $0x44] ss:$16 sps:$4 sm:$0xff]  }
  0x1e   : > { %859 = vmatprep.subr.bf16.mxu0 %v2554_v6  ;;  %900 = vmatprep.subr.bf16.mxu1 %v2556_v7  ;;  %v2562_v11 = vld [vmem:[%s2962_s20 + $0x4c] ss:$16 sps:$4 sm:$0xff]   ;;  %v2564_v12 = vld [vmem:[%s2962_s20 + $0x40] ss:$16 sps:$4 sm:$0xff]   ;;  %v2565_v13 = vld [vmem:[%s2962_s20 + $0x48] ss:$16 sps:$4 sm:$0xff]  }
  0x1f   : > { %v2566_v14 = vld [vmem:[%s2962_s20 + $0x64] ss:$16 sps:$4 sm:$0xff]   ;;  %v2568_v15 = vld [vmem:[%s2962_s20 + $0x6c] ss:$16 sps:$4 sm:$0xff]   ;;  %v2570_v16 = vld [vmem:[%s2962_s20 + $0x60] ss:$16 sps:$4 sm:$0xff]  }
  0x20   : > { %v2571_v17 = vld [vmem:[%s2962_s20 + $0x68] ss:$16 sps:$4 sm:$0xff]   ;;  %v2572_v18 = vld [vmem:[%s2962_s20 + $0x84] ss:$16 sps:$4 sm:$0xff]   ;;  %v2574_v19 = vld [vmem:[%s2962_s20 + $0x8c] ss:$16 sps:$4 sm:$0xff]  }
  0x21   : > { %860 = vmatpush1.bf16.msra.mxu0 %v2558_v8  ;;  %901 = vmatpush1.bf16.msra.mxu1 %v2559_v9  ;;  %v2576_v20 = vld [vmem:[%s2962_s20 + $0x80] ss:$16 sps:$4 sm:$0xff]   ;;  %v2577_v21 = vld [vmem:[%s2962_s20 + $0x88] ss:$16 sps:$4 sm:$0xff]   ;;  %v2578_v22 = vld [vmem:[%s2962_s20 + $0xa4] ss:$16 sps:$4 sm:$0xff]  }
  0x22   : > { %861 = vmatprep.subr.bf16.mxu0 %v2560_v10  ;;  %902 = vmatprep.subr.bf16.mxu1 %v2562_v11  ;;  %v2580_v23 = vld [vmem:[%s2962_s20 + $0xac] ss:$16 sps:$4 sm:$0xff]   ;;  %v2582_v24 = vld [vmem:[%s2962_s20 + $0xa0] ss:$16 sps:$4 sm:$0xff]   ;;  %v2583_v25 = vld [vmem:[%s2962_s20 + $0xa8] ss:$16 sps:$4 sm:$0xff]  }
  0x23   : > { %v2584_v26 = vld [vmem:[%s2962_s20 + $0xc4] ss:$16 sps:$4 sm:$0xff]   ;;  %v2586_v27 = vld [vmem:[%s2962_s20 + $0xcc] ss:$16 sps:$4 sm:$0xff]   ;;  %v2588_v28 = vld [vmem:[%s2962_s20 + $0xc0] ss:$16 sps:$4 sm:$0xff]  }
  0x24   : > { %v2589_v29 = vld [vmem:[%s2962_s20 + $0xc8] ss:$16 sps:$4 sm:$0xff]   ;;  %v2590_v30 = vld [vmem:[%s2962_s20 + $0xe4] ss:$16 sps:$4 sm:$0xff]   ;;  %v2592_v31 = vld [vmem:[%s2962_s20 + $0xec] ss:$16 sps:$4 sm:$0xff]  }
  0x25   : > { %862 = vmatpush1.bf16.msra.mxu0 %v2564_v12  ;;  %903 = vmatpush1.bf16.msra.mxu1 %v2565_v13  ;;  %v2594_v32 = vld [vmem:[%s2962_s20 + $0xe0] ss:$16 sps:$4 sm:$0xff]   ;;  %v2595_v33 = vld [vmem:[%s2962_s20 + $0xe8] ss:$16 sps:$4 sm:$0xff]   ;;  %v2596_v34 = vld [vmem:[%s2962_s20 + $0x104] ss:$16 sps:$4 sm:$0xff]  }
  0x26   : > { %863 = vmatprep.subr.bf16.mxu0 %v2566_v14  ;;  %904 = vmatprep.subr.bf16.mxu1 %v2568_v15  ;;  %v2598_v35 = vld [vmem:[%s2962_s20 + $0x10c] ss:$16 sps:$4 sm:$0xff]   ;;  %v2600_v36 = vld [vmem:[%s2962_s20 + $0x100] ss:$16 sps:$4 sm:$0xff]   ;;  %v2601_v37 = vld [vmem:[%s2962_s20 + $0x108] ss:$16 sps:$4 sm:$0xff]  }
  0x27   : > { %v2602_v38 = vld [vmem:[%s2962_s20 + $0x124] ss:$16 sps:$4 sm:$0xff]   ;;  %v2604_v40 = vld [vmem:[%s2962_s20 + $0x12c] ss:$16 sps:$4 sm:$0xff]   ;;  %v2606_v41 = vld [vmem:[%s2962_s20 + $0x120] ss:$16 sps:$4 sm:$0xff]  }
  0x28   : > { %v2877_v42 = vmov 1983009808   ;;  %v2607_v44 = vld [vmem:[%s2962_s20 + $0x128] ss:$16 sps:$4 sm:$0xff]   ;;  %v2608_v45 = vld [vmem:[%s2962_s20 + $0x144] ss:$16 sps:$4 sm:$0xff]  }
  0x29   : > { %864 = vmatpush1.bf16.msra.mxu0 %v2570_v16  ;;  %905 = vmatpush1.bf16.msra.mxu1 %v2571_v17  ;;  %v427_v43 = vunpack.c.l.s4 %v2877_v42  ;;  %v3007_v46 = vshrl.u32 %v417_v39, 7  ;;  %v2610_v47 = vld [vmem:[%s2962_s20 + $0x14c] ss:$16 sps:$4 sm:$0xff]   ;;  %v2612_v48 = vld [vmem:[%s2962_s20 + $0x140] ss:$16 sps:$4 sm:$0xff]   ;;  %vm3213_vm1 = vcmp.lt.s32.totalorder %v417_v39, 512 }
  0x2a   : > { %865 = vmatprep.subr.bf16.mxu0 %v2572_v18  ;;  %906 = vmatprep.subr.bf16.mxu1 %v2574_v19  ;;  %v2613_v49 = vld [vmem:[%s2962_s20 + $0x148] ss:$16 sps:$4 sm:$0xff]   ;;  %v2614_v51 = vld [vmem:[%s2962_s20 + $0x164] ss:$16 sps:$4 sm:$0xff]   ;;  %v2616_v54 = vld [vmem:[%s2962_s20 + $0x16c] ss:$16 sps:$4 sm:$0xff]  }
  0x2b   : > { %v428_v50 = vunpack.c.0.s8 %v427_v43  ;;  %v3014_v52 = vsub.s32 0, %v3007_v46  ;;  %v3017_v53 = vsub.s32 1, %v3007_v46  ;;  %v2618_v55 = vld [vmem:[%s2962_s20 + $0x160] ss:$16 sps:$4 sm:$0xff]   ;;  %v2619_v59 = vld [vmem:[%s2962_s20 + $0x168] ss:$16 sps:$4 sm:$0xff]  }
  0x2c   : > { %v415_v56 = vld [vmem:[%s3250_s2] sm:$0x3]  ;;  %v2620_v60 = vld [vmem:[%s2962_s20 + $0x184] ss:$16 sps:$4 sm:$0xff]   ;;  %v2622_v0 = vld [vmem:[%s2962_s20 + $0x18c] ss:$16 sps:$4 sm:$0xff]  }
  0x2d   : > { %866 = vmatpush1.bf16.msra.mxu0 %v2576_v20  ;;  %907 = vmatpush1.bf16.msra.mxu1 %v2577_v21  ;;  %v431_v57 = vsub.s32 %v428_v50, %v3007_v46  ;;  %v436_v58 = vld [vmem:[%s3251_s3] sm:$0x3]  ;;  %v420_v61 = vrot.slane %v415_v56, %v3014_v52  ;;  %v424_v62 = vrot.slane %v415_v56, %v3017_v53  ;;  %v2625_v6 = vld [vmem:[%s2962_s20 + $0x188] ss:$16 sps:$4 sm:$0xff]   ;;  %v2626_v7 = vld [vmem:[%s2962_s20 + $0x1a4] ss:$16 sps:$4 sm:$0xff]  }
  0x2e   : > { %867 = vmatprep.subr.bf16.mxu0 %v2578_v22  ;;  %908 = vmatprep.subr.bf16.mxu1 %v2580_v23  ;;  %v441_v63 = vrot.slane %v436_v58, %v3014_v52  ;;  %v445_v1 = vrot.slane %v436_v58, %v3017_v53  ;;  %v2624_v3 = vld [vmem:[%s2962_s20 + $0x180] ss:$16 sps:$4 sm:$0xff]   ;;  %v2628_v9 = vld [vmem:[%s2962_s20 + $0x1ac] ss:$16 sps:$4 sm:$0xff]   ;;  %v2631_v13 = vld [vmem:[%s2962_s20 + $0x1a8] ss:$16 sps:$4 sm:$0xff]  }
  0x2f   : > { %v425_v2 = vcombine.low %v420_v61, %v424_v62  ;;  %v413_v4 = vld [vmem:[%s2956_s15] sm:$0xf]  ;;  %v2632_v14 = vld [vmem:[%s2962_s20 + $0x1c4] ss:$16 sps:$4 sm:$0xff]   ;;  %v531_v16 = vsub.s32 2, %v3007_v46  ;;  %p2501_p9 = scmp.ne.s32.totalorder %s2858_s21, 2 }
  0x30   : > { %v446_v5 = vcombine.low %v441_v63, %v445_v1  ;;  %v2630_v12 = vld [vmem:[%s2962_s20 + $0x1a0] ss:$16 sps:$4 sm:$0xff]   ;;  %v2634_v17 = vld [vmem:[%s2962_s20 + $0x1cc] ss:$16 sps:$4 sm:$0xff]   ;;  %v2637_v20 = vld [vmem:[%s2962_s20 + $0x1c8] ss:$16 sps:$4 sm:$0xff]  }
  0x31   : > { %868 = vmatpush1.bf16.msra.mxu0 %v2582_v24  ;;  %909 = vmatpush1.bf16.msra.mxu1 %v2583_v25  ;;  %v3039_v8 = vrot.slane %v425_v2, %v431_v57  ;;  %v2636_v19 = vld [vmem:[%s2962_s20 + $0x1c0] ss:$16 sps:$4 sm:$0xff]   ;;  %v2638_v21 = vld [vmem:[%s2962_s20 + $0x1e4] ss:$16 sps:$4 sm:$0xff]   ;;  %v2640_v23 = vld [vmem:[%s2962_s20 + $0x1ec] ss:$16 sps:$4 sm:$0xff]  }
  0x32   : > { %869 = vmatprep.subr.bf16.mxu0 %v2584_v26  ;;  %910 = vmatprep.subr.bf16.mxu1 %v2586_v27  ;;  %v3042_v10 = vrot.slane %v446_v5, %v431_v57  ;;  %v1558_v25 = vsub.s32 3, %v3007_v46  ;;  %v2642_v26 = vld [vmem:[%s2962_s20 + $0x1e0] ss:$16 sps:$4 sm:$0xff]   ;;  %v2661_v42 = vld [vmem:[%s2962_s20 + $0x24c] ss:$16 sps:$4 sm:$0xff]  }
  0x33   : > { %v434_v11 = vmul.f32 %v3039_v8, %v413_v4  ;;  %v2656_v43 = vld [vmem:[%s2962_s20 + $0x240] ss:$16 sps:$4 sm:$0xff]   ;;  %v2670_v50 = vld [vmem:[%s2962_s20 + $0x284] ss:$16 sps:$4 sm:$0xff]   ;;  %v2679_v56 = vld [vmem:[%s2962_s20 + $0x2ac] ss:$16 sps:$4 sm:$0xff]  }
  0x34   : > { %v2674_v57 = vld [vmem:[%s2962_s20 + $0x2a0] ss:$16 sps:$4 sm:$0xff]   ;;  %v2677_v58 = vld [vmem:[%s2962_s20 + $0x2a8] ss:$16 sps:$4 sm:$0xff]   ;;  %v414_v61 = vld [vmem:[%s2956_s15 + $0x4] sm:$0xf] }
  0x35   : > { %870 = vmatpush1.bf16.msra.mxu0 %v2588_v28  ;;  %911 = vmatpush1.bf16.msra.mxu1 %v2589_v29  ;;  %v455_v15 = vadd.f32 %v3042_v10, %v434_v11  ;;  %v2643_v28 = vld [vmem:[%s2962_s20 + $0x1e8] ss:$16 sps:$4 sm:$0xff]   ;;  %v2646_v29 = vld [vmem:[%s2962_s20 + $0x204] ss:$16 sps:$4 sm:$0xff]   ;;  %v2680_v62 = vld [vmem:[%s2962_s20 + $0x2c0] ss:$16 sps:$4 sm:$0xff]  }
  0x36   : > { %871 = vmatprep.subr.bf16.mxu0 %v2590_v30  ;;  %912 = vmatprep.subr.bf16.mxu1 %v2592_v31  ;;  %v2649_v31 = vld [vmem:[%s2962_s20 + $0x20c] ss:$16 sps:$4 sm:$0xff]   ;;  %v2683_v63 = vld [vmem:[%s2962_s20 + $0x2c8] ss:$16 sps:$4 sm:$0xff]   ;;  %v2688_v1 = vld [vmem:[%s2962_s20 + $0x2e4] ss:$16 sps:$4 sm:$0xff]  }
  0x37   : > { %v457_v18 = vmax.f32 %v455_v15, 0.0  ;;  %v2691_v2 = vld [vmem:[%s2962_s20 + $0x2ec] ss:$16 sps:$4 sm:$0xff]   ;;  %v2686_v4 = vld [vmem:[%s2962_s20 + $0x2e0] ss:$16 sps:$4 sm:$0xff]  }
  0x38   : > { %v2689_v5 = vld [vmem:[%s2962_s20 + $0x2e8] ss:$16 sps:$4 sm:$0xff]   ;;  %v2698_v15 = vld [vmem:[%s2962_s20 + $0x320] ss:$16 sps:$4 sm:$0xff]  }
  0x39   : > { %872 = vmatpush1.bf16.msra.mxu0 %v2594_v32  ;;  %913 = vmatpush1.bf16.msra.mxu1 %v2595_v33  ;;  %v532_v22 = vrot.slane %v457_v18, %v531_v16  ;;  %v528_v27 = vrot.slane %v457_v18, %v3014_v52  ;;  %v3062_v30 = vrot.slane %v457_v18, %v1558_v25  ;;  %v2695_v11 = vld [vmem:[%s2962_s20 + $0x308] ss:$16 sps:$4 sm:$0xff]   ;;  %v2718_v25 = vld [vmem:[%s2962_s20 + $0x384] ss:$16 sps:$4 sm:$0xff]  }
  0x3a   : > { %873 = vmatprep.subr.bf16.mxu0 %v2596_v34  ;;  %914 = vmatprep.subr.bf16.mxu1 %v2598_v35  ;;  %v3066_v32 = vrot.slane %v457_v18, %v3017_v53  ;;  %v2644_v34 = vld [vmem:[%s2962_s20 + $0x200] ss:$16 sps:$4 sm:$0xff]   ;;  %v2647_v35 = vld [vmem:[%s2962_s20 + $0x208] ss:$16 sps:$4 sm:$0xff]   ;;  %v2709_v18 = vld [vmem:[%s2962_s20 + $0x34c] ss:$16 sps:$4 sm:$0xff]  }
  0x3b   : > { %v536_v24 = vpack.c.bf16 %v532_v22, %v532_v22  ;;  %v535_v33 = vpack.c.bf16 %v528_v27, %v528_v27  ;;  %v2668_v53 = vld [vmem:[%s2962_s20 + $0x280] ss:$16 sps:$4 sm:$0xff]   ;;  %v2715_v22 = vld [vmem:[%s2962_s20 + $0x36c] ss:$16 sps:$4 sm:$0xff]  }
  0x3c   : > { %v2716_v27 = vld [vmem:[%s2962_s20 + $0x380] ss:$16 sps:$4 sm:$0xff]  }
  0x3d   : > { %874 = vmatpush1.bf16.msra.mxu0 %v2600_v36  ;;  %915 = vmatpush1.bf16.msra.mxu1 %v2601_v37  ;;  %v2652_v36 = vld [vmem:[%s2962_s20 + $0x224] ss:$16 sps:$4 sm:$0xff]   ;;  %v2655_v37 = vld [vmem:[%s2962_s20 + $0x22c] ss:$16 sps:$4 sm:$0xff]  }
  0x3e   : > { %875 = vmatprep.subr.bf16.mxu0 %v2602_v38  ;;  %916 = vmatprep.subr.bf16.mxu1 %v2604_v40  ;;  %v2650_v38 = vld [vmem:[%s2962_s20 + $0x220] ss:$16 sps:$4 sm:$0xff]   ;;  %v2653_v40 = vld [vmem:[%s2962_s20 + $0x228] ss:$16 sps:$4 sm:$0xff]  }
  0x3f   : > { %889 = vmatprep.mubr.bf16.mxu0 %v536_v24  ;;  %930 = vmatprep.mubr.bf16.mxu1 %v536_v24  ;;  %v2713_v24 = vld [vmem:[%s2962_s20 + $0x368] ss:$16 sps:$4 sm:$0xff]  }
  0x41   : > { %876 = vmatpush1.bf16.msra.mxu0 %v2606_v41  ;;  %917 = vmatpush1.bf16.msra.mxu1 %v2607_v44  ;;  %v2658_v41 = vld [vmem:[%s2962_s20 + $0x244] ss:$16 sps:$4 sm:$0xff]   ;;  %v2659_v44 = vld [vmem:[%s2962_s20 + $0x248] ss:$16 sps:$4 sm:$0xff]  }
  0x42   : > { %877 = vmatprep.subr.bf16.mxu0 %v2608_v45  ;;  %918 = vmatprep.subr.bf16.mxu1 %v2610_v47  ;;  %v2664_v45 = vld [vmem:[%s2962_s20 + $0x264] ss:$16 sps:$4 sm:$0xff]   ;;  %v2667_v47 = vld [vmem:[%s2962_s20 + $0x26c] ss:$16 sps:$4 sm:$0xff]  }
  0x45   : > { %878 = vmatpush1.bf16.msra.mxu0 %v2612_v48  ;;  %919 = vmatpush1.bf16.msra.mxu1 %v2613_v49  ;;  %v2662_v48 = vld [vmem:[%s2962_s20 + $0x260] ss:$16 sps:$4 sm:$0xff]   ;;  %v2665_v49 = vld [vmem:[%s2962_s20 + $0x268] ss:$16 sps:$4 sm:$0xff]  }
  0x46   : > { %879 = vmatprep.subr.bf16.mxu0 %v2614_v51  ;;  %920 = vmatprep.subr.bf16.mxu1 %v2616_v54  ;;  %v2673_v51 = vld [vmem:[%s2962_s20 + $0x28c] ss:$16 sps:$4 sm:$0xff]   ;;  %v2671_v54 = vld [vmem:[%s2962_s20 + $0x288] ss:$16 sps:$4 sm:$0xff]  }
  0x49   : > { %880 = vmatpush1.bf16.msra.mxu0 %v2618_v55  ;;  %921 = vmatpush1.bf16.msra.mxu1 %v2619_v59  ;;  %v2676_v55 = vld [vmem:[%s2962_s20 + $0x2a4] ss:$16 sps:$4 sm:$0xff]  }
  0x4a   : > { %881 = vmatprep.subr.bf16.mxu0 %v2620_v60  ;;  %922 = vmatprep.subr.bf16.mxu1 %v2622_v0  ;;  %v2682_v59 = vld [vmem:[%s2962_s20 + $0x2c4] ss:$16 sps:$4 sm:$0xff]   ;;  %v2685_v60 = vld [vmem:[%s2962_s20 + $0x2cc] ss:$16 sps:$4 sm:$0xff]   ;;  %v435_v0 = vmul.f32 %v3039_v8, %v414_v61 }
  0x4b   : > { %v2697_v8 = vld [vmem:[%s2962_s20 + $0x30c] ss:$16 sps:$4 sm:$0xff]  }
  0x4c   : > { %v2763_v61 = vld [vmem:[%s2962_s20 + $0x46c] ss:$16 sps:$4 sm:$0xff]  }
  0x4d   : > { %882 = vmatpush1.bf16.msra.mxu0 %v2624_v3  ;;  %923 = vmatpush1.bf16.msra.mxu1 %v2625_v6  ;;  %v3099_v3 = vadd.f32 %v3042_v10, %v435_v0  ;;  %v2692_v10 = vld [vmem:[%s2962_s20 + $0x300] ss:$16 sps:$4 sm:$0xff]   ;;  %v2766_v0 = vld [vmem:[%s2962_s20 + $0x484] ss:$16 sps:$4 sm:$0xff]  }
  0x4e   : > { %883 = vmatprep.subr.bf16.mxu0 %v2626_v7  ;;  %924 = vmatprep.subr.bf16.mxu1 %v2628_v9  ;;  %v2694_v7 = vld [vmem:[%s2962_s20 + $0x304] ss:$16 sps:$4 sm:$0xff]  }
  0x4f   : > { %v458_v6 = vmax.f32 %v3099_v3, 0.0  ;;  %v2767_v3 = vld [vmem:[%s2962_s20 + $0x488] ss:$16 sps:$4 sm:$0xff]  }
  0x51   : > { %884 = vmatpush1.bf16.msra.mxu0 %v2630_v12  ;;  %925 = vmatpush1.bf16.msra.mxu1 %v2631_v13  ;;  %v1048_v9 = vrot.slane %v458_v6, %v531_v16  ;;  %v2700_v13 = vld [vmem:[%s2962_s20 + $0x324] ss:$16 sps:$4 sm:$0xff]   ;;  %v2701_v16 = vld [vmem:[%s2962_s20 + $0x328] ss:$16 sps:$4 sm:$0xff]  }
  0x52   : > { %885 = vmatprep.subr.bf16.mxu0 %v2632_v14  ;;  %926 = vmatprep.subr.bf16.mxu1 %v2634_v17  ;;  %v2703_v14 = vld [vmem:[%s2962_s20 + $0x32c] ss:$16 sps:$4 sm:$0xff]   ;;  %v2706_v17 = vld [vmem:[%s2962_s20 + $0x344] ss:$16 sps:$4 sm:$0xff]  }
  0x53   : > { %v1052_v12 = vpack.c.bf16 %v1048_v9, %v1048_v9  ;;  %v2781_v9 = vld [vmem:[%s2962_s20 + $0x4cc] ss:$16 sps:$4 sm:$0xff]  }
  0x55   : > { %886 = vmatpush1.bf16.msra.mxu0 %v2636_v19  ;;  %927 = vmatpush1.bf16.msra.mxu1 %v2637_v20  ;;  %v2704_v19 = vld [vmem:[%s2962_s20 + $0x340] ss:$16 sps:$4 sm:$0xff]   ;;  %v2707_v20 = vld [vmem:[%s2962_s20 + $0x348] ss:$16 sps:$4 sm:$0xff]  }
  0x56   : > { %887 = vmatprep.subr.bf16.mxu0 %v2638_v21  ;;  %928 = vmatprep.subr.bf16.mxu1 %v2640_v23  ;;  %v2712_v21 = vld [vmem:[%s2962_s20 + $0x364] ss:$16 sps:$4 sm:$0xff]   ;;  %v2710_v23 = vld [vmem:[%s2962_s20 + $0x360] ss:$16 sps:$4 sm:$0xff]  }
  0x59   : > { %888 = vmatpush1.bf16.msra.mxu0 %v2642_v26  ;;  %929 = vmatpush1.bf16.msra.mxu1 %v2643_v28  ;;  %v2721_v26 = vld [vmem:[%s2962_s20 + $0x38c] ss:$16 sps:$4 sm:$0xff]   ;;  %v2719_v28 = vld [vmem:[%s2962_s20 + $0x388] ss:$16 sps:$4 sm:$0xff]  }
  0x5a   : > { %1373 = vmatprep.subr.bf16.mxu0 %v2646_v29  ;;  %1414 = vmatprep.subr.bf16.mxu1 %v2649_v31  ;;  %v2724_v29 = vld [vmem:[%s2962_s20 + $0x3a4] ss:$16 sps:$4 sm:$0xff]   ;;  %v2727_v31 = vld [vmem:[%s2962_s20 + $0x3ac] ss:$16 sps:$4 sm:$0xff]  }
  0x5c   : > { %890 = vmatmul.mubr.bf16.vlgmr.msra.gmra.mrb[0].mxu0 %v535_v33  ;;  %931 = vmatmul.mubr.bf16.vlgmr.msra.gmra.mrb[0].mxu1 %v535_v33  ;;  %v2722_v33 = vld [vmem:[%s2962_s20 + $0x3a0] ss:$16 sps:$4 sm:$0xff]  }
  0x5d   : > { %1374 = vmatpush1.bf16.msra.mxu0 %v2644_v34  ;;  %1415 = vmatpush1.bf16.msra.mxu1 %v2647_v35  ;;  %v2725_v34 = vld [vmem:[%s2962_s20 + $0x3a8] ss:$16 sps:$4 sm:$0xff]   ;;  %v2730_v35 = vld [vmem:[%s2962_s20 + $0x3c4] ss:$16 sps:$4 sm:$0xff]  }
  0x5e   : > { %1375 = vmatprep.subr.bf16.mxu0 %v2652_v36  ;;  %1416 = vmatprep.subr.bf16.mxu1 %v2655_v37  ;;  %v2733_v36 = vld [vmem:[%s2962_s20 + $0x3cc] ss:$16 sps:$4 sm:$0xff]   ;;  %v2728_v37 = vld [vmem:[%s2962_s20 + $0x3c0] ss:$16 sps:$4 sm:$0xff]  }
  0x5f   : > { %1405 = vmatprep.mubr.bf16.mxu0 %v1052_v12  ;;  %1446 = vmatprep.mubr.bf16.mxu1 %v1052_v12  ;;  %v2784_v12 = vld [vmem:[%s2962_s20 + $0x4e4] ss:$16 sps:$4 sm:$0xff]  }
  0x61   : > { %1376 = vmatpush1.bf16.msra.mxu0 %v2650_v38  ;;  %1417 = vmatpush1.bf16.msra.mxu1 %v2653_v40  ;;  %v2731_v38 = vld [vmem:[%s2962_s20 + $0x3c8] ss:$16 sps:$4 sm:$0xff]   ;;  %v2736_v40 = vld [vmem:[%s2962_s20 + $0x3e4] ss:$16 sps:$4 sm:$0xff]  }
  0x62   : > { %1377 = vmatprep.subr.bf16.mxu0 %v2658_v41  ;;  %1418 = vmatprep.subr.bf16.mxu1 %v2661_v42  ;;  %v2739_v41 = vld [vmem:[%s2962_s20 + $0x3ec] ss:$16 sps:$4 sm:$0xff]   ;;  %v2734_v42 = vld [vmem:[%s2962_s20 + $0x3e0] ss:$16 sps:$4 sm:$0xff]  }
  0x65   : > { %1378 = vmatpush1.bf16.msra.mxu0 %v2656_v43  ;;  %1419 = vmatpush1.bf16.msra.mxu1 %v2659_v44  ;;  %v2737_v43 = vld [vmem:[%s2962_s20 + $0x3e8] ss:$16 sps:$4 sm:$0xff]   ;;  %v1044_v44 = vrot.slane %v458_v6, %v3014_v52  ;;  %v2748_v52 = vld [vmem:[%s2962_s20 + $0x424] ss:$16 sps:$4 sm:$0xff]   ;;  %v2770_v6 = vld [vmem:[%s2962_s20 + $0x4a0] ss:$16 sps:$4 sm:$0xff]  }
  0x66   : > { %1379 = vmatprep.subr.bf16.mxu0 %v2664_v45  ;;  %1420 = vmatprep.subr.bf16.mxu1 %v2667_v47  ;;  %v2742_v45 = vld [vmem:[%s2962_s20 + $0x404] ss:$16 sps:$4 sm:$0xff]   ;;  %v2745_v47 = vld [vmem:[%s2962_s20 + $0x40c] ss:$16 sps:$4 sm:$0xff]  }
  0x69   : > { %1380 = vmatpush1.bf16.msra.mxu0 %v2662_v48  ;;  %1421 = vmatpush1.bf16.msra.mxu1 %v2665_v49  ;;  %v1563_v48 = vpack.c.bf16 %v3062_v30, %v3062_v30  ;;  %v1051_v49 = vpack.c.bf16 %v1044_v44, %v1044_v44  ;;  %v2746_v30 = vld [vmem:[%s2962_s20 + $0x420] ss:$16 sps:$4 sm:$0xff]   ;;  %v2829_v44 = vld [vmem:[%s2962_s20 + $0x5cc] ss:$16 sps:$4 sm:$0xff]  }
  0x6a   : > { %1381 = vmatprep.subr.bf16.mxu0 %v2670_v50  ;;  %1422 = vmatprep.subr.bf16.mxu1 %v2673_v51  ;;  %v2740_v50 = vld [vmem:[%s2962_s20 + $0x400] ss:$16 sps:$4 sm:$0xff]   ;;  %v2743_v51 = vld [vmem:[%s2962_s20 + $0x408] ss:$16 sps:$4 sm:$0xff]  }
  0x6d   : > { %1382 = vmatpush1.bf16.msra.mxu0 %v2668_v53  ;;  %1423 = vmatpush1.bf16.msra.mxu1 %v2671_v54  ;;  %v2751_v53 = vld [vmem:[%s2962_s20 + $0x42c] ss:$16 sps:$4 sm:$0xff]   ;;  %v1568_v54 = vshrl.u32 %v1563_v48, 16  ;;  %v2832_v48 = vld [vmem:[%s2962_s20 + $0x5e4] ss:$16 sps:$4 sm:$0xff]  }
  0x6e   : > { %1383 = vmatprep.subr.bf16.mxu0 %v2676_v55  ;;  %1424 = vmatprep.subr.bf16.mxu1 %v2679_v56  ;;  %v2749_v55 = vld [vmem:[%s2962_s20 + $0x428] ss:$16 sps:$4 sm:$0xff]   ;;  %v2754_v56 = vld [vmem:[%s2962_s20 + $0x444] ss:$16 sps:$4 sm:$0xff]  }
  0x71   : > { %1384 = vmatpush1.bf16.msra.mxu0 %v2674_v57  ;;  %1425 = vmatpush1.bf16.msra.mxu1 %v2677_v58  ;;  %v2757_v57 = vld [vmem:[%s2962_s20 + $0x44c] ss:$16 sps:$4 sm:$0xff]   ;;  %v2752_v58 = vld [vmem:[%s2962_s20 + $0x440] ss:$16 sps:$4 sm:$0xff]  }
  0x72   : > { %1385 = vmatprep.subr.bf16.mxu0 %v2682_v59  ;;  %1426 = vmatprep.subr.bf16.mxu1 %v2685_v60  ;;  %v2755_v59 = vld [vmem:[%s2962_s20 + $0x448] ss:$16 sps:$4 sm:$0xff]   ;;  %v2760_v60 = vld [vmem:[%s2962_s20 + $0x464] ss:$16 sps:$4 sm:$0xff]  }
  0x75   : > { %1386 = vmatpush1.bf16.msra.mxu0 %v2680_v62  ;;  %1427 = vmatpush1.bf16.msra.mxu1 %v2683_v63  ;;  %v2758_v62 = vld [vmem:[%s2962_s20 + $0x460] ss:$16 sps:$4 sm:$0xff]   ;;  %v2761_v63 = vld [vmem:[%s2962_s20 + $0x468] ss:$16 sps:$4 sm:$0xff]  }
  0x76   : > { %1387 = vmatprep.subr.bf16.mxu0 %v2688_v1  ;;  %1428 = vmatprep.subr.bf16.mxu1 %v2691_v2  ;;  %v2769_v1 = vld [vmem:[%s2962_s20 + $0x48c] ss:$16 sps:$4 sm:$0xff]   ;;  %v2764_v2 = vld [vmem:[%s2962_s20 + $0x480] ss:$16 sps:$4 sm:$0xff]  }
  0x79   : > { %1388 = vmatpush1.bf16.msra.mxu0 %v2686_v4  ;;  %1429 = vmatpush1.bf16.msra.mxu1 %v2689_v5  ;;  %v2772_v4 = vld [vmem:[%s2962_s20 + $0x4a4] ss:$16 sps:$4 sm:$0xff]   ;;  %v2775_v5 = vld [vmem:[%s2962_s20 + $0x4ac] ss:$16 sps:$4 sm:$0xff]  }
  0x7a   : > { %1389 = vmatprep.subr.bf16.mxu0 %v2694_v7  ;;  %1430 = vmatprep.subr.bf16.mxu1 %v2697_v8  ;;  %v2773_v7 = vld [vmem:[%s2962_s20 + $0x4a8] ss:$16 sps:$4 sm:$0xff]   ;;  %v2778_v8 = vld [vmem:[%s2962_s20 + $0x4c4] ss:$16 sps:$4 sm:$0xff]  }
  0x7d   : > { %1390 = vmatpush1.bf16.msra.mxu0 %v2692_v10  ;;  %1431 = vmatpush1.bf16.msra.mxu1 %v2695_v11  ;;  %v2776_v10 = vld [vmem:[%s2962_s20 + $0x4c0] ss:$16 sps:$4 sm:$0xff]   ;;  %v2779_v11 = vld [vmem:[%s2962_s20 + $0x4c8] ss:$16 sps:$4 sm:$0xff]  }
  0x7e   : > { %1391 = vmatprep.subr.bf16.mxu0 %v2700_v13  ;;  %1432 = vmatprep.subr.bf16.mxu1 %v2703_v14  ;;  %v2787_v13 = vld [vmem:[%s2962_s20 + $0x4ec] ss:$16 sps:$4 sm:$0xff]   ;;  %v2782_v14 = vld [vmem:[%s2962_s20 + $0x4e0] ss:$16 sps:$4 sm:$0xff]  }
  0x81   : > { %1392 = vmatpush1.bf16.msra.mxu0 %v2698_v15  ;;  %1433 = vmatpush1.bf16.msra.mxu1 %v2701_v16  ;;  %v2785_v15 = vld [vmem:[%s2962_s20 + $0x4e8] ss:$16 sps:$4 sm:$0xff]   ;;  %v2790_v16 = vld [vmem:[%s2962_s20 + $0x504] ss:$16 sps:$4 sm:$0xff]  }
  0x82   : > { %1393 = vmatprep.subr.bf16.mxu0 %v2706_v17  ;;  %1434 = vmatprep.subr.bf16.mxu1 %v2709_v18  ;;  %v2793_v17 = vld [vmem:[%s2962_s20 + $0x50c] ss:$16 sps:$4 sm:$0xff]   ;;  %v2788_v18 = vld [vmem:[%s2962_s20 + $0x500] ss:$16 sps:$4 sm:$0xff]  }
  0x85   : > { %1394 = vmatpush1.bf16.msra.mxu0 %v2704_v19  ;;  %1435 = vmatpush1.bf16.msra.mxu1 %v2707_v20  ;;  %v2791_v19 = vld [vmem:[%s2962_s20 + $0x508] ss:$16 sps:$4 sm:$0xff]   ;;  %v2796_v20 = vld [vmem:[%s2962_s20 + $0x524] ss:$16 sps:$4 sm:$0xff]  }
  0x86   : > { %1395 = vmatprep.subr.bf16.mxu0 %v2712_v21  ;;  %1436 = vmatprep.subr.bf16.mxu1 %v2715_v22  ;;  %v2799_v21 = vld [vmem:[%s2962_s20 + $0x52c] ss:$16 sps:$4 sm:$0xff]   ;;  %v2794_v22 = vld [vmem:[%s2962_s20 + $0x520] ss:$16 sps:$4 sm:$0xff]  }
  0x89   : > { %1396 = vmatpush1.bf16.msra.mxu0 %v2710_v23  ;;  %1437 = vmatpush1.bf16.msra.mxu1 %v2713_v24  ;;  %v2797_v23 = vld [vmem:[%s2962_s20 + $0x528] ss:$16 sps:$4 sm:$0xff]   ;;  %v2802_v24 = vld [vmem:[%s2962_s20 + $0x544] ss:$16 sps:$4 sm:$0xff]  }
  0x8a   : > { %1397 = vmatprep.subr.bf16.mxu0 %v2718_v25  ;;  %1438 = vmatprep.subr.bf16.mxu1 %v2721_v26  ;;  %v2805_v25 = vld [vmem:[%s2962_s20 + $0x54c] ss:$16 sps:$4 sm:$0xff]   ;;  %v2800_v26 = vld [vmem:[%s2962_s20 + $0x540] ss:$16 sps:$4 sm:$0xff]  }
  0x8d   : > { %1398 = vmatpush1.bf16.msra.mxu0 %v2716_v27  ;;  %1439 = vmatpush1.bf16.msra.mxu1 %v2719_v28  ;;  %v2803_v27 = vld [vmem:[%s2962_s20 + $0x548] ss:$16 sps:$4 sm:$0xff]   ;;  %v2808_v28 = vld [vmem:[%s2962_s20 + $0x564] ss:$16 sps:$4 sm:$0xff]  }
  0x8e   : > { %1399 = vmatprep.subr.bf16.mxu0 %v2724_v29  ;;  %1440 = vmatprep.subr.bf16.mxu1 %v2727_v31  ;;  %v2811_v29 = vld [vmem:[%s2962_s20 + $0x56c] ss:$16 sps:$4 sm:$0xff]   ;;  %v2806_v31 = vld [vmem:[%s2962_s20 + $0x560] ss:$16 sps:$4 sm:$0xff]  }
  0x91   : > { %1400 = vmatpush1.bf16.msra.mxu0 %v2722_v33  ;;  %1441 = vmatpush1.bf16.msra.mxu1 %v2725_v34  ;;  %v2809_v33 = vld [vmem:[%s2962_s20 + $0x568] ss:$16 sps:$4 sm:$0xff]   ;;  %v2814_v34 = vld [vmem:[%s2962_s20 + $0x584] ss:$16 sps:$4 sm:$0xff]  }
  0x92   : > { %1401 = vmatprep.subr.bf16.mxu0 %v2730_v35  ;;  %1442 = vmatprep.subr.bf16.mxu1 %v2733_v36  ;;  %v2817_v35 = vld [vmem:[%s2962_s20 + $0x58c] ss:$16 sps:$4 sm:$0xff]   ;;  %v2812_v36 = vld [vmem:[%s2962_s20 + $0x580] ss:$16 sps:$4 sm:$0xff]  }
  0x95   : > { %1402 = vmatpush1.bf16.msra.mxu0 %v2728_v37  ;;  %1443 = vmatpush1.bf16.msra.mxu1 %v2731_v38  ;;  %v2815_v37 = vld [vmem:[%s2962_s20 + $0x588] ss:$16 sps:$4 sm:$0xff]   ;;  %v2820_v38 = vld [vmem:[%s2962_s20 + $0x5a4] ss:$16 sps:$4 sm:$0xff]  }
  0x96   : > { %1403 = vmatprep.subr.bf16.mxu0 %v2736_v40  ;;  %1444 = vmatprep.subr.bf16.mxu1 %v2739_v41  ;;  %v2823_v40 = vld [vmem:[%s2962_s20 + $0x5ac] ss:$16 sps:$4 sm:$0xff]   ;;  %v2818_v41 = vld [vmem:[%s2962_s20 + $0x5a0] ss:$16 sps:$4 sm:$0xff]  }
  0x99   : > { %1404 = vmatpush1.bf16.msra.mxu0 %v2734_v42  ;;  %1445 = vmatpush1.bf16.msra.mxu1 %v2737_v43  ;;  %v2821_v42 = vld [vmem:[%s2962_s20 + $0x5a8] ss:$16 sps:$4 sm:$0xff]   ;;  %v2826_v43 = vld [vmem:[%s2962_s20 + $0x5c4] ss:$16 sps:$4 sm:$0xff]  }
  0x9a   : > { %1892 = vmatprep.subr.bf16.mxu0 %v2742_v45  ;;  %1933 = vmatprep.subr.bf16.mxu1 %v2745_v47  ;;  %v2824_v45 = vld [vmem:[%s2962_s20 + $0x5c0] ss:$16 sps:$4 sm:$0xff]   ;;  %v2827_v47 = vld [vmem:[%s2962_s20 + $0x5c8] ss:$16 sps:$4 sm:$0xff]  }
  0x9c   : > { %1406 = vmatmul.mubr.bf16.vlgmr.msra.gmra.mrb[4].mxu0 %v1051_v49  ;;  %1447 = vmatmul.mubr.bf16.vlgmr.msra.gmra.mrb[4].mxu1 %v1051_v49  ;;  %v2835_v49 = vld [vmem:[%s2962_s20 + $0x5ec] ss:$16 sps:$4 sm:$0xff]  }
  0x9d   : > { %1893 = vmatpush1.bf16.msra.mxu0 %v2740_v50  ;;  %1934 = vmatpush1.bf16.msra.mxu1 %v2743_v51  ;;  %v1562_v50 = vpack.c.bf16 %v3066_v32, %v3066_v32  ;;  %v2830_v51 = vld [vmem:[%s2962_s20 + $0x5e0] ss:$16 sps:$4 sm:$0xff]  }
  0x9e   : > { %1894 = vmatprep.subr.bf16.mxu0 %v2748_v52  ;;  %1935 = vmatprep.subr.bf16.mxu1 %v2751_v53  ;;  %v2833_v52 = vld [vmem:[%s2962_s20 + $0x5e8] ss:$16 sps:$4 sm:$0xff]  }
  0x9f   : > { %1924 = vmatprep.mubr.bf16.mxu0 %v1568_v54  ;;  %1965 = vmatprep.mubr.bf16.mxu1 %v1568_v54  ;;  %v1565_v53 = vshrl.u32 %v1562_v50, 16  ;;  %v2878_v54 = vmov 1966171168  }
  0xa1   : > { %1895 = vmatpush1.bf16.msra.mxu0 %v2746_v30  ;;  %1936 = vmatpush1.bf16.msra.mxu1 %v2749_v55  ;;  %v946_v30 = vunpack.c.l.s4 %v2878_v54 }
  0xa2   : > { %1896 = vmatprep.subr.bf16.mxu0 %v2754_v56  ;;  %1937 = vmatprep.subr.bf16.mxu1 %v2757_v57 }
  0xa3   : > { %v947_v55 = vunpack.c.0.s8 %v946_v30 }
  0xa5   : > { %1897 = vmatpush1.bf16.msra.mxu0 %v2752_v58  ;;  %1938 = vmatpush1.bf16.msra.mxu1 %v2755_v59  ;;  %v950_v56 = vsub.s32 %v947_v55, %v3007_v46 }
  0xa6   : > { %1898 = vmatprep.subr.bf16.mxu0 %v2760_v60  ;;  %1939 = vmatprep.subr.bf16.mxu1 %v2763_v61 }
  0xa9   : > { %1899 = vmatpush1.bf16.msra.mxu0 %v2758_v62  ;;  %1940 = vmatpush1.bf16.msra.mxu1 %v2761_v63 }
  0xaa   : > { %1900 = vmatprep.subr.bf16.mxu0 %v2766_v0  ;;  %1941 = vmatprep.subr.bf16.mxu1 %v2769_v1 }
  0xad   : > { %1901 = vmatpush1.bf16.msra.mxu0 %v2764_v2  ;;  %1942 = vmatpush1.bf16.msra.mxu1 %v2767_v3 }
  0xae   : > { %1902 = vmatprep.subr.bf16.mxu0 %v2772_v4  ;;  %1943 = vmatprep.subr.bf16.mxu1 %v2775_v5  ;;  %v523_v5 = vld [vmem:[#allocation2] sm:$0xf] }
  0xb1   : > { %1903 = vmatpush1.bf16.msra.mxu0 %v2770_v6  ;;  %1944 = vmatpush1.bf16.msra.mxu1 %v2773_v7 }
  0xb2   : > { %1904 = vmatprep.subr.bf16.mxu0 %v2778_v8  ;;  %1945 = vmatprep.subr.bf16.mxu1 %v2781_v9 }
  0xb5   : > { %1905 = vmatpush1.bf16.msra.mxu0 %v2776_v10  ;;  %1946 = vmatpush1.bf16.msra.mxu1 %v2779_v11 }
  0xb6   : > { %1906 = vmatprep.subr.bf16.mxu0 %v2784_v12  ;;  %1947 = vmatprep.subr.bf16.mxu1 %v2787_v13 }
  0xb9   : > { %1907 = vmatpush1.bf16.msra.mxu0 %v2782_v14  ;;  %1948 = vmatpush1.bf16.msra.mxu1 %v2785_v15 }
  0xba   : > { %1908 = vmatprep.subr.bf16.mxu0 %v2790_v16  ;;  %1949 = vmatprep.subr.bf16.mxu1 %v2793_v17 }
  0xbd   : > { %1909 = vmatpush1.bf16.msra.mxu0 %v2788_v18  ;;  %1950 = vmatpush1.bf16.msra.mxu1 %v2791_v19 }
  0xbe   : > { %1910 = vmatprep.subr.bf16.mxu0 %v2796_v20  ;;  %1951 = vmatprep.subr.bf16.mxu1 %v2799_v21 }
  0xc1   : > { %1911 = vmatpush1.bf16.msra.mxu0 %v2794_v22  ;;  %1952 = vmatpush1.bf16.msra.mxu1 %v2797_v23 }
  0xc2   : > { %1912 = vmatprep.subr.bf16.mxu0 %v2802_v24  ;;  %1953 = vmatprep.subr.bf16.mxu1 %v2805_v25 }
  0xc5   : > { %1913 = vmatpush1.bf16.msra.mxu0 %v2800_v26  ;;  %1954 = vmatpush1.bf16.msra.mxu1 %v2803_v27 }
  0xc6   : > { %1914 = vmatprep.subr.bf16.mxu0 %v2808_v28  ;;  %1955 = vmatprep.subr.bf16.mxu1 %v2811_v29 }
  0xc9   : > { %1915 = vmatpush1.bf16.msra.mxu0 %v2806_v31  ;;  %1956 = vmatpush1.bf16.msra.mxu1 %v2809_v33 }
  0xca   : > { %1916 = vmatprep.subr.bf16.mxu0 %v2814_v34  ;;  %1957 = vmatprep.subr.bf16.mxu1 %v2817_v35 }
  0xcd   : > { %1917 = vmatpush1.bf16.msra.mxu0 %v2812_v36  ;;  %1958 = vmatpush1.bf16.msra.mxu1 %v2815_v37 }
  0xce   : > { %1918 = vmatprep.subr.bf16.mxu0 %v2820_v38  ;;  %1959 = vmatprep.subr.bf16.mxu1 %v2823_v40 }
  0xd1   : > { %1919 = vmatpush1.bf16.msra.mxu0 %v2818_v41  ;;  %1960 = vmatpush1.bf16.msra.mxu1 %v2821_v42 }
  0xd2   : > { %1920 = vmatprep.subr.bf16.mxu0 %v2826_v43  ;;  %1961 = vmatprep.subr.bf16.mxu1 %v2829_v44  ;;  %v2010_v43 = vld [vmem:[%s3252_s4] sm:$0xf] (!%p2501_p9) }
  0xd3   : > { %v2012_v44 = vld [vmem:[%s3253_s5] sm:$0xf] (!%p2501_p9) }
  0xd5   : > { %1921 = vmatpush1.bf16.msra.mxu0 %v2824_v45  ;;  %1962 = vmatpush1.bf16.msra.mxu1 %v2827_v47 }
  0xd6   : > { %1922 = vmatprep.subr.bf16.mxu0 %v2832_v48  ;;  %1963 = vmatprep.subr.bf16.mxu1 %v2835_v49 }
  0xd9   : > { %1923 = vmatpush1.bf16.msra.mxu0 %v2830_v51  ;;  %1964 = vmatpush1.bf16.msra.mxu1 %v2833_v52 }
  0xdc   : > { %1925 = vmatmul.mubr.bf16.vlgmr.msra.gmra.mrb[8].mxu0 %v1565_v53  ;;  %1966 = vmatmul.mubr.bf16.vlgmr.msra.gmra.mrb[8].mxu1 %v1565_v53 }
 0x12f   : > { %v891_v57 = vpop.f32.mrb[0].mxu0  ;;  %v932_v58 = vpop.f32.mrb[0].mxu1 }
 0x130   : > { %v893_v59 = vpop.f32.mrb[1].mxu0  ;;  %v934_v32 = vpop.f32.mrb[1].mxu1 }
 0x131   : > { %v943_v60 = vcombine.low %v891_v57, %v893_v59  ;;  %v944_v61 = vcombine.low %v932_v58, %v934_v32  ;;  %v895_v62 = vpop.f32.mrb[2].mxu0  ;;  %v936_v63 = vpop.f32.mrb[2].mxu1 }
 0x132   : > { %v896_v0 = vpop.f32.mrb[3].mxu0  ;;  %v937_v1 = vpop.f32.mrb[3].mxu1 }
 0x133   : > { %v951_v2 = vrot.slane %v943_v60, %v950_v56  ;;  %v958_v3 = vrot.slane %v944_v61, %v950_v56 }
 0x135   : > { %v959_v4 = vcombine.low %v951_v2, %v958_v3 }
 0x137   : > { %v966_v6 = vrot.slane %v959_v4, %v950_v56 }
 0x139   : > { %v968_v46 = vadd.f32 %v966_v6, %v523_v5 }
 0x13b   : > { %973 = vst.msk [vmem:[#allocation2] sm:$0xf] %vm3213_vm1, %v968_v46 }
 0x142   : > { %v1039_v21 = vld [vmem:[#allocation2] sm:$0xf] }
 0x16f   : > { %v1407_v8 = vpop.f32.mrb[4].mxu0  ;;  %v1448_v9 = vpop.f32.mrb[4].mxu1 }
 0x170   : > { %v1409_v10 = vpop.f32.mrb[5].mxu0  ;;  %v1450_v11 = vpop.f32.mrb[5].mxu1 }
 0x171   : > { %v1459_v12 = vcombine.low %v1407_v8, %v1409_v10  ;;  %v1460_v13 = vcombine.low %v1448_v9, %v1450_v11  ;;  %v1411_v14 = vpop.f32.mrb[6].mxu0  ;;  %v1452_v15 = vpop.f32.mrb[6].mxu1 }
 0x172   : > { %v1412_v16 = vpop.f32.mrb[7].mxu0  ;;  %v1453_v17 = vpop.f32.mrb[7].mxu1 }
 0x173   : > { %v1467_v18 = vrot.slane %v1459_v12, %v950_v56  ;;  %v1474_v19 = vrot.slane %v1460_v13, %v950_v56 }
 0x175   : > { %v1475_v39 = vcombine.low %v1467_v18, %v1474_v19 }
 0x177   : > { %v1482_v20 = vrot.slane %v1475_v39, %v950_v56 }
 0x179   : > { %v1484_v22 = vadd.f32 %v1482_v20, %v1039_v21 }
 0x17b   : > { %1485 = vst.msk [vmem:[#allocation2] sm:$0xf] %vm3213_vm1, %v1484_v22 }
 0x182   : > { %v1551_v40 = vld [vmem:[#allocation2] sm:$0xf] }
 0x1af   : > { %v1926_v23 = vpop.f32.mrb[8].mxu0  ;;  %v1967_v24 = vpop.f32.mrb[8].mxu1 }
 0x1b0   : > { %v1928_v25 = vpop.f32.mrb[9].mxu0  ;;  %v1969_v26 = vpop.f32.mrb[9].mxu1 }
 0x1b1   : > { %v1978_v27 = vcombine.low %v1926_v23, %v1928_v25  ;;  %v1979_v28 = vcombine.low %v1967_v24, %v1969_v26  ;;  %v1930_v29 = vpop.f32.mrb[10].mxu0  ;;  %v1971_v31 = vpop.f32.mrb[10].mxu1 }
 0x1b2   : > { %v1931_v33 = vpop.f32.mrb[11].mxu0  ;;  %v1972_v34 = vpop.f32.mrb[11].mxu1 }
 0x1b3   : > { %v1986_v35 = vrot.slane %v1978_v27, %v950_v56  ;;  %v1993_v36 = vrot.slane %v1979_v28, %v950_v56 }
 0x1b5   : > { %v1994_v37 = vcombine.low %v1986_v35, %v1993_v36  ;;  %2008 = sbr.rel (%p2501_p9) target bundleno = 458 (0x1ca), region = 52 }
 0x1b7   : > { %v2001_v38 = vrot.slane %v1994_v37, %v950_v56 }
 0x1b9   : > { %v2003_v41 = vadd.f32 %v2001_v38, %v1551_v40 }
 0x1bb   : > { %2004 = vst.msk [vmem:[#allocation2] sm:$0xf] %vm3213_vm1, %v2003_v41 }
 0x1c2   : > { %v2009_v42 = vld [vmem:[#allocation2] sm:$0xf] }
 0x1c3   : > { %v2011_v45 = vmul.f32 %v2010_v43, %v2009_v42 }
 0x1c5   : > { %v2013_v47 = vadd.f32 %v2012_v44, %v2011_v45 }
 0x1c7   : > { %v2014_v48 = vmax.f32 %v2013_v47, 0.0 }
 0x1c9   : > { %2015 = vst.msk [vmem:[%s2951_s10] sm:$0xf] %vm3213_vm1, %v2014_v48 }
 0x1ca PF: > { %s16_s25 = sadd.s32 1, %s2874_s25   ;;  %s3257_s21 = smov %s2866_s23 }
 0x1cb   : > { %p13_p10 = scmp.ge.s32.totalorder %s16_s25, 8   ;;  %s3258_s22 = smov %s2870_s24 }
 0x1cc   : > { %s3259_s23 = smov %s3262_s26  ;;  %s3260_s24 = smov %s3266_s27 }
 0x1cd   :  { %15 = sbr.rel (!%p13_p10) target bundleno = 3 (0x3), region = 93 }

// kernel: resnet_forward.27
= control target key start
LH: loop header
LB: loop body
LE: loop exit
PB: predicated region body
PF: predicated region fallthrough
CT: control target
= control target key end

     0   :  { %s1780_s0 = inlined_call_operand.vmem [shape: f32[2,1,512], index: 0, kind: input, shape index: {}]   ;;  %s1781_s1 = inlined_call_operand.vmem [shape: f32[512,512], index: 1, kind: input, shape index: {}]   ;;  %s1782_s2 = inlined_call_operand.vmem [shape: f32[1,512], index: 2, kind: input, shape index: {}]   ;;  %s1783_s3 = inlined_call_operand.hbm [shape: f32[2,512], index: 3, kind: output, shape index: {}]  }
   0x1   :  { %v20_v0 = vld [vmem:[%s1781_s1 + $0x8] sm:$0xff]  ;;  %v22_v2 = vld [vmem:[%s1781_s1 + $0x18] sm:$0xff]  ;;  %v19_v5 = vld [vmem:[%s1781_s1] sm:$0xff] }
   0x2   :  { %v24_v1 = vld [vmem:[%s1781_s1 + $0x28] sm:$0xff]  ;;  %v26_v4 = vld [vmem:[%s1781_s1 + $0x38] sm:$0xff]  ;;  %v23_v6 = vld [vmem:[%s1781_s1 + $0x20] sm:$0xff] }
   0x3   :  { %v649_v3 = vpack.c.bf16 %v24_v1, %v20_v0  ;;  %v777_v7 = vpack.c.bf16 %v26_v4, %v22_v2  ;;  %v651_v8 = vpack.c.bf16 %v23_v6, %v19_v5  ;;  %v21_v9 = vld [vmem:[%s1781_s1 + $0x10] sm:$0xff]  ;;  %v28_v11 = vld [vmem:[%s1781_s1 + $0x48] sm:$0xff]  ;;  %v30_v14 = vld [vmem:[%s1781_s1 + $0x58] sm:$0xff] }
   0x4   :  { %v25_v10 = vld [vmem:[%s1781_s1 + $0x30] sm:$0xff]  ;;  %v32_v13 = vld [vmem:[%s1781_s1 + $0x68] sm:$0xff]  ;;  %v34_v15 = vld [vmem:[%s1781_s1 + $0x78] sm:$0xff] }
   0x5   :  { %650 = vmatprep.subr.bf16.mxu0 %v649_v3  ;;  %v779_v12 = vpack.c.bf16 %v25_v10, %v21_v9  ;;  %778 = vmatprep.subr.bf16.mxu1 %v777_v7  ;;  %v653_v16 = vpack.c.bf16 %v32_v13, %v28_v11  ;;  %v781_v17 = vpack.c.bf16 %v34_v15, %v30_v14  ;;  %v27_v18 = vld [vmem:[%s1781_s1 + $0x40] sm:$0xff]  ;;  %v29_v20 = vld [vmem:[%s1781_s1 + $0x50] sm:$0xff]  ;;  %v36_v23 = vld [vmem:[%s1781_s1 + $0x88] sm:$0xff] }
   0x6   :  { %652 = vmatpush1.bf16.msra.mxu0 %v651_v8  ;;  %v31_v19 = vld [vmem:[%s1781_s1 + $0x60] sm:$0xff]  ;;  %v33_v22 = vld [vmem:[%s1781_s1 + $0x70] sm:$0xff]  ;;  %v40_v24 = vld [vmem:[%s1781_s1 + $0xa8] sm:$0xff] }
   0x7   :  { %780 = vmatpush1.bf16.msra.mxu1 %v779_v12  ;;  %v655_v21 = vpack.c.bf16 %v31_v19, %v27_v18  ;;  %654 = vmatprep.subr.bf16.mxu0 %v653_v16  ;;  %v783_v25 = vpack.c.bf16 %v33_v22, %v29_v20  ;;  %v657_v26 = vpack.c.bf16 %v40_v24, %v36_v23  ;;  %v38_v27 = vld [vmem:[%s1781_s1 + $0x98] sm:$0xff]  ;;  %v35_v29 = vld [vmem:[%s1781_s1 + $0x80] sm:$0xff]  ;;  %v37_v32 = vld [vmem:[%s1781_s1 + $0x90] sm:$0xff] }
   0x8   :  { %782 = vmatprep.subr.bf16.mxu1 %v781_v17  ;;  %v42_v28 = vld [vmem:[%s1781_s1 + $0xb8] sm:$0xff]  ;;  %v39_v31 = vld [vmem:[%s1781_s1 + $0xa0] sm:$0xff]  ;;  %v41_v33 = vld [vmem:[%s1781_s1 + $0xb0] sm:$0xff] }
   0x9   :  { %v785_v30 = vpack.c.bf16 %v42_v28, %v38_v27  ;;  %v659_v34 = vpack.c.bf16 %v39_v31, %v35_v29  ;;  %v44_v35 = vld [vmem:[%s1781_s1 + $0xc8] sm:$0xff]  ;;  %v46_v37 = vld [vmem:[%s1781_s1 + $0xd8] sm:$0xff]  ;;  %v787_v38 = vpack.c.bf16 %v41_v33, %v37_v32  ;;  %v43_v41 = vld [vmem:[%s1781_s1 + $0xc0] sm:$0xff] }
   0xa   :  { %656 = vmatpush1.bf16.msra.mxu0 %v655_v21  ;;  %v48_v36 = vld [vmem:[%s1781_s1 + $0xe8] sm:$0xff]  ;;  %v50_v40 = vld [vmem:[%s1781_s1 + $0xf8] sm:$0xff]  ;;  %v47_v42 = vld [vmem:[%s1781_s1 + $0xe0] sm:$0xff] }
   0xb   :  { %784 = vmatpush1.bf16.msra.mxu1 %v783_v25  ;;  %658 = vmatprep.subr.bf16.mxu0 %v657_v26  ;;  %v661_v39 = vpack.c.bf16 %v48_v36, %v44_v35  ;;  %v789_v43 = vpack.c.bf16 %v50_v40, %v46_v37  ;;  %v45_v44 = vld [vmem:[%s1781_s1 + $0xd0] sm:$0xff]  ;;  %v52_v46 = vld [vmem:[%s1781_s1 + $0x108] sm:$0xff]  ;;  %v54_v48 = vld [vmem:[%s1781_s1 + $0x118] sm:$0xff]  ;;  %v663_v50 = vpack.c.bf16 %v47_v42, %v43_v41 }
   0xc   :  { %786 = vmatprep.subr.bf16.mxu1 %v785_v30  ;;  %v49_v45 = vld [vmem:[%s1781_s1 + $0xf0] sm:$0xff]  ;;  %v56_v47 = vld [vmem:[%s1781_s1 + $0x128] sm:$0xff]  ;;  %v58_v49 = vld [vmem:[%s1781_s1 + $0x138] sm:$0xff] }
   0xd   :  { %v791_v51 = vpack.c.bf16 %v49_v45, %v45_v44  ;;  %v665_v52 = vpack.c.bf16 %v56_v47, %v52_v46  ;;  %v51_v53 = vld [vmem:[%s1781_s1 + $0x100] sm:$0xff]  ;;  %v53_v55 = vld [vmem:[%s1781_s1 + $0x110] sm:$0xff]  ;;  %v793_v56 = vpack.c.bf16 %v58_v49, %v54_v48  ;;  %v60_v58 = vld [vmem:[%s1781_s1 + $0x148] sm:$0xff] }
   0xe   :  { %660 = vmatpush1.bf16.msra.mxu0 %v659_v34  ;;  %v55_v54 = vld [vmem:[%s1781_s1 + $0x120] sm:$0xff]  ;;  %v57_v57 = vld [vmem:[%s1781_s1 + $0x130] sm:$0xff]  ;;  %v64_v59 = vld [vmem:[%s1781_s1 + $0x168] sm:$0xff] }
   0xf   :  { %788 = vmatpush1.bf16.msra.mxu1 %v787_v38  ;;  %662 = vmatprep.subr.bf16.mxu0 %v661_v39  ;;  %v62_v60 = vld [vmem:[%s1781_s1 + $0x158] sm:$0xff]  ;;  %v667_v62 = vpack.c.bf16 %v55_v54, %v51_v53  ;;  %v795_v63 = vpack.c.bf16 %v57_v57, %v53_v55  ;;  %v669_v0 = vpack.c.bf16 %v64_v59, %v60_v58  ;;  %v59_v1 = vld [vmem:[%s1781_s1 + $0x140] sm:$0xff]  ;;  %v61_v3 = vld [vmem:[%s1781_s1 + $0x150] sm:$0xff]  ;;  %v942_v53 = vmov 1966171168  }
  0x10   :  { %790 = vmatprep.subr.bf16.mxu1 %v789_v43  ;;  %v66_v61 = vld [vmem:[%s1781_s1 + $0x178] sm:$0xff]  ;;  %v63_v2 = vld [vmem:[%s1781_s1 + $0x160] sm:$0xff]  ;;  %v65_v5 = vld [vmem:[%s1781_s1 + $0x170] sm:$0xff]  ;;  %v301_v54 = vunpack.c.l.s4 %v942_v53 }
  0x11   :  { %v797_v4 = vpack.c.bf16 %v66_v61, %v62_v60  ;;  %v68_v6 = vld [vmem:[%s1781_s1 + $0x188] sm:$0xff]  ;;  %v70_v8 = vld [vmem:[%s1781_s1 + $0x198] sm:$0xff]  ;;  %v671_v10 = vpack.c.bf16 %v63_v2, %v59_v1  ;;  %v799_v11 = vpack.c.bf16 %v65_v5, %v61_v3  ;;  %v67_v13 = vld [vmem:[%s1781_s1 + $0x180] sm:$0xff] }
  0x12   :  { %664 = vmatpush1.bf16.msra.mxu0 %v663_v50  ;;  %v72_v7 = vld [vmem:[%s1781_s1 + $0x1a8] sm:$0xff]  ;;  %v74_v9 = vld [vmem:[%s1781_s1 + $0x1b8] sm:$0xff]  ;;  %v71_v14 = vld [vmem:[%s1781_s1 + $0x1a0] sm:$0xff] }
  0x13   :  { %792 = vmatpush1.bf16.msra.mxu1 %v791_v51  ;;  %666 = vmatprep.subr.bf16.mxu0 %v665_v52  ;;  %v673_v12 = vpack.c.bf16 %v72_v7, %v68_v6  ;;  %v69_v15 = vld [vmem:[%s1781_s1 + $0x190] sm:$0xff]  ;;  %v801_v16 = vpack.c.bf16 %v74_v9, %v70_v8  ;;  %v76_v18 = vld [vmem:[%s1781_s1 + $0x1c8] sm:$0xff]  ;;  %v78_v20 = vld [vmem:[%s1781_s1 + $0x1d8] sm:$0xff]  ;;  %v675_v22 = vpack.c.bf16 %v71_v14, %v67_v13  ;;  %v277_v52 = vlaneseq }
  0x14   :  { %794 = vmatprep.subr.bf16.mxu1 %v793_v56  ;;  %v73_v17 = vld [vmem:[%s1781_s1 + $0x1b0] sm:$0xff]  ;;  %v80_v19 = vld [vmem:[%s1781_s1 + $0x1e8] sm:$0xff]  ;;  %v82_v21 = vld [vmem:[%s1781_s1 + $0x1f8] sm:$0xff] }
  0x15   :  { %v803_v23 = vpack.c.bf16 %v73_v17, %v69_v15  ;;  %v677_v24 = vpack.c.bf16 %v80_v19, %v76_v18  ;;  %v75_v25 = vld [vmem:[%s1781_s1 + $0x1c0] sm:$0xff]  ;;  %v77_v27 = vld [vmem:[%s1781_s1 + $0x1d0] sm:$0xff]  ;;  %v805_v28 = vpack.c.bf16 %v82_v21, %v78_v20  ;;  %v84_v30 = vld [vmem:[%s1781_s1 + $0x208] sm:$0xff]  ;;  %v1226_v3 = vshrl.u32 %v277_v52, 7 }
  0x16   :  { %668 = vmatpush1.bf16.msra.mxu0 %v667_v62  ;;  %v79_v26 = vld [vmem:[%s1781_s1 + $0x1e0] sm:$0xff]  ;;  %v81_v29 = vld [vmem:[%s1781_s1 + $0x1f0] sm:$0xff]  ;;  %v88_v31 = vld [vmem:[%s1781_s1 + $0x228] sm:$0xff] }
  0x17   :  { %796 = vmatpush1.bf16.msra.mxu1 %v795_v63  ;;  %670 = vmatprep.subr.bf16.mxu0 %v669_v0  ;;  %v86_v32 = vld [vmem:[%s1781_s1 + $0x218] sm:$0xff]  ;;  %v679_v34 = vpack.c.bf16 %v79_v26, %v75_v25  ;;  %v807_v35 = vpack.c.bf16 %v81_v29, %v77_v27  ;;  %v681_v36 = vpack.c.bf16 %v88_v31, %v84_v30  ;;  %v83_v37 = vld [vmem:[%s1781_s1 + $0x200] sm:$0xff]  ;;  %v85_v39 = vld [vmem:[%s1781_s1 + $0x210] sm:$0xff] }
  0x18   :  { %798 = vmatprep.subr.bf16.mxu1 %v797_v4  ;;  %v90_v33 = vld [vmem:[%s1781_s1 + $0x238] sm:$0xff]  ;;  %v87_v38 = vld [vmem:[%s1781_s1 + $0x220] sm:$0xff]  ;;  %v89_v41 = vld [vmem:[%s1781_s1 + $0x230] sm:$0xff]  ;;  %v302_v4 = vunpack.c.0.s8 %v301_v54 }
  0x19   :  { %v809_v40 = vpack.c.bf16 %v90_v33, %v86_v32  ;;  %v92_v42 = vld [vmem:[%s1781_s1 + $0x248] sm:$0xff]  ;;  %v94_v44 = vld [vmem:[%s1781_s1 + $0x258] sm:$0xff]  ;;  %v683_v46 = vpack.c.bf16 %v87_v38, %v83_v37  ;;  %v811_v47 = vpack.c.bf16 %v89_v41, %v85_v39  ;;  %v91_v49 = vld [vmem:[%s1781_s1 + $0x240] sm:$0xff] }
  0x1a   :  { %672 = vmatpush1.bf16.msra.mxu0 %v671_v10  ;;  %v96_v43 = vld [vmem:[%s1781_s1 + $0x268] sm:$0xff]  ;;  %v98_v45 = vld [vmem:[%s1781_s1 + $0x278] sm:$0xff]  ;;  %v95_v50 = vld [vmem:[%s1781_s1 + $0x260] sm:$0xff]  ;;  %v1259_v19 = vsub.s32 %v302_v4, %v1226_v3 }
  0x1b   :  { %800 = vmatpush1.bf16.msra.mxu1 %v799_v11  ;;  %674 = vmatprep.subr.bf16.mxu0 %v673_v12  ;;  %v685_v48 = vpack.c.bf16 %v96_v43, %v92_v42  ;;  %v93_v51 = vld [vmem:[%s1781_s1 + $0x250] sm:$0xff]  ;;  %v813_v55 = vpack.c.bf16 %v98_v45, %v94_v44  ;;  %v100_v57 = vld [vmem:[%s1781_s1 + $0x288] sm:$0xff]  ;;  %v102_v59 = vld [vmem:[%s1781_s1 + $0x298] sm:$0xff]  ;;  %v687_v61 = vpack.c.bf16 %v95_v50, %v91_v49 }
  0x1c   :  { %802 = vmatprep.subr.bf16.mxu1 %v801_v16  ;;  %v97_v56 = vld [vmem:[%s1781_s1 + $0x270] sm:$0xff]  ;;  %v104_v58 = vld [vmem:[%s1781_s1 + $0x2a8] sm:$0xff]  ;;  %v106_v60 = vld [vmem:[%s1781_s1 + $0x2b8] sm:$0xff] }
  0x1d   :  { %v815_v62 = vpack.c.bf16 %v97_v56, %v93_v51  ;;  %v689_v63 = vpack.c.bf16 %v104_v58, %v100_v57  ;;  %v99_v0 = vld [vmem:[%s1781_s1 + $0x280] sm:$0xff]  ;;  %v101_v2 = vld [vmem:[%s1781_s1 + $0x290] sm:$0xff]  ;;  %v817_v5 = vpack.c.bf16 %v106_v60, %v102_v59  ;;  %v108_v7 = vld [vmem:[%s1781_s1 + $0x2c8] sm:$0xff] }
  0x1e   :  { %676 = vmatpush1.bf16.msra.mxu0 %v675_v22  ;;  %v103_v1 = vld [vmem:[%s1781_s1 + $0x2a0] sm:$0xff]  ;;  %v105_v6 = vld [vmem:[%s1781_s1 + $0x2b0] sm:$0xff]  ;;  %v112_v8 = vld [vmem:[%s1781_s1 + $0x2e8] sm:$0xff] }
  0x1f   :  { %804 = vmatpush1.bf16.msra.mxu1 %v803_v23  ;;  %678 = vmatprep.subr.bf16.mxu0 %v677_v24  ;;  %v110_v9 = vld [vmem:[%s1781_s1 + $0x2d8] sm:$0xff]  ;;  %v691_v11 = vpack.c.bf16 %v103_v1, %v99_v0  ;;  %v107_v12 = vld [vmem:[%s1781_s1 + $0x2c0] sm:$0xff]  ;;  %v819_v14 = vpack.c.bf16 %v105_v6, %v101_v2  ;;  %v693_v15 = vpack.c.bf16 %v112_v8, %v108_v7  ;;  %v109_v16 = vld [vmem:[%s1781_s1 + $0x2d0] sm:$0xff] }
  0x20   :  { %806 = vmatprep.subr.bf16.mxu1 %v805_v28  ;;  %v114_v10 = vld [vmem:[%s1781_s1 + $0x2f8] sm:$0xff]  ;;  %v111_v13 = vld [vmem:[%s1781_s1 + $0x2e0] sm:$0xff]  ;;  %v113_v17 = vld [vmem:[%s1781_s1 + $0x2f0] sm:$0xff] }
  0x21   :  { %v116_v18 = vld [vmem:[%s1781_s1 + $0x308] sm:$0xff]  ;;  %v821_v20 = vpack.c.bf16 %v114_v10, %v110_v9  ;;  %v118_v22 = vld [vmem:[%s1781_s1 + $0x318] sm:$0xff]  ;;  %v1273_v24 = vld.sshfl [vmem:[%s1780_s0] sm:$0xff pattern:$0x75316420]  ;;  %v695_v25 = vpack.c.bf16 %v111_v13, %v107_v12  ;;  %v823_v26 = vpack.c.bf16 %v113_v17, %v109_v16 }
  0x22   :  { %680 = vmatpush1.bf16.msra.mxu0 %v679_v34  ;;  %v120_v21 = vld [vmem:[%s1781_s1 + $0x328] sm:$0xff]  ;;  %v122_v23 = vld [vmem:[%s1781_s1 + $0x338] sm:$0xff]  ;;  %v115_v28 = vld [vmem:[%s1781_s1 + $0x300] sm:$0xff]  ;;  %v307_v37 = vcombine.high %v1273_v24, %v1273_v24 }
  0x23   :  { %808 = vmatpush1.bf16.msra.mxu1 %v807_v35  ;;  %682 = vmatprep.subr.bf16.mxu0 %v681_v36  ;;  %v697_v27 = vpack.c.bf16 %v120_v21, %v116_v18  ;;  %v119_v29 = vld [vmem:[%s1781_s1 + $0x320] sm:$0xff]  ;;  %v117_v30 = vld [vmem:[%s1781_s1 + $0x310] sm:$0xff]  ;;  %v825_v31 = vpack.c.bf16 %v122_v23, %v118_v22  ;;  %v124_v33 = vld [vmem:[%s1781_s1 + $0x348] sm:$0xff]  ;;  %v1398_v23 = vrot.slane %v1273_v24, %v1259_v19 }
  0x24   :  { %810 = vmatprep.subr.bf16.mxu1 %v809_v40  ;;  %v121_v32 = vld [vmem:[%s1781_s1 + $0x330] sm:$0xff]  ;;  %v128_v34 = vld [vmem:[%s1781_s1 + $0x368] sm:$0xff]  ;;  %v126_v35 = vld [vmem:[%s1781_s1 + $0x358] sm:$0xff]  ;;  %v699_v38 = vpack.c.bf16 %v119_v29, %v115_v28  ;;  %v1311_v44 = vrot.slane %v307_v37, %v1259_v19 }
  0x25   :  { %v130_v36 = vld [vmem:[%s1781_s1 + $0x378] sm:$0xff]  ;;  %v827_v39 = vpack.c.bf16 %v121_v32, %v117_v30  ;;  %v701_v40 = vpack.c.bf16 %v128_v34, %v124_v33  ;;  %v123_v41 = vld [vmem:[%s1781_s1 + $0x340] sm:$0xff]  ;;  %v125_v43 = vld [vmem:[%s1781_s1 + $0x350] sm:$0xff] }
  0x26   :  { %684 = vmatpush1.bf16.msra.mxu0 %v683_v46  ;;  %v127_v42 = vld [vmem:[%s1781_s1 + $0x360] sm:$0xff]  ;;  %v829_v45 = vpack.c.bf16 %v130_v36, %v126_v35  ;;  %v129_v46 = vld [vmem:[%s1781_s1 + $0x370] sm:$0xff]  ;;  %v134_v49 = vld [vmem:[%s1781_s1 + $0x398] sm:$0xff]  ;;  %392 = vmatprep.mubr.f32.mxu0 %v1311_v44  ;;  %v323_v35 = vcombine.high %v1311_v44, %v1311_v44 }
  0x27   :  { %812 = vmatpush1.bf16.msra.mxu1 %v811_v47  ;;  %686 = vmatprep.subr.bf16.mxu0 %v685_v48  ;;  %v132_v47 = vld [vmem:[%s1781_s1 + $0x388] sm:$0xff]  ;;  %v138_v50 = vld [vmem:[%s1781_s1 + $0x3b8] sm:$0xff]  ;;  %v703_v51 = vpack.c.bf16 %v127_v42, %v123_v41  ;;  %v831_v52 = vpack.c.bf16 %v129_v46, %v125_v43  ;;  %v131_v54 = vld [vmem:[%s1781_s1 + $0x380] sm:$0xff] }
  0x28   :  { %814 = vmatprep.subr.bf16.mxu1 %v813_v55  ;;  %v136_v48 = vld [vmem:[%s1781_s1 + $0x3a8] sm:$0xff]  ;;  %534 = vmatprep.mubr.f32.mxu1 %v1311_v44  ;;  %v135_v55 = vld [vmem:[%s1781_s1 + $0x3a0] sm:$0xff]  ;;  %v133_v56 = vld [vmem:[%s1781_s1 + $0x390] sm:$0xff]  ;;  %v833_v57 = vpack.c.bf16 %v138_v50, %v134_v49 }
  0x29   :  { %v705_v53 = vpack.c.bf16 %v136_v48, %v132_v47  ;;  %v137_v58 = vld [vmem:[%s1781_s1 + $0x3b0] sm:$0xff]  ;;  %v140_v59 = vld [vmem:[%s1781_s1 + $0x3c8] sm:$0xff]  ;;  %v139_v2 = vld [vmem:[%s1781_s1 + $0x3c0] sm:$0xff] }
  0x2a   :  { %688 = vmatpush1.bf16.msra.mxu0 %v687_v61  ;;  %v144_v60 = vld [vmem:[%s1781_s1 + $0x3e8] sm:$0xff]  ;;  %v142_v61 = vld [vmem:[%s1781_s1 + $0x3d8] sm:$0xff]  ;;  %v835_v0 = vpack.c.bf16 %v137_v58, %v133_v56  ;;  %v143_v4 = vld [vmem:[%s1781_s1 + $0x3e0] sm:$0xff] }
  0x2b   :  { %816 = vmatpush1.bf16.msra.mxu1 %v815_v62  ;;  %690 = vmatprep.subr.bf16.mxu0 %v689_v63  ;;  %v146_v62 = vld [vmem:[%s1781_s1 + $0x3f8] sm:$0xff]  ;;  %v707_v63 = vpack.c.bf16 %v135_v55, %v131_v54  ;;  %v709_v1 = vpack.c.bf16 %v144_v60, %v140_v59  ;;  %v145_v7 = vld [vmem:[%s1781_s1 + $0x3f0] sm:$0xff]  ;;  %v148_v8 = vld [vmem:[%s1781_s1 + $0x408] sm:$0xff]  ;;  %v711_v12 = vpack.c.bf16 %v143_v4, %v139_v2 }
  0x2c   :  { %818 = vmatprep.subr.bf16.mxu1 %v817_v5  ;;  %v141_v5 = vld [vmem:[%s1781_s1 + $0x3d0] sm:$0xff]  ;;  %v837_v6 = vpack.c.bf16 %v146_v62, %v142_v61  ;;  %v152_v9 = vld [vmem:[%s1781_s1 + $0x428] sm:$0xff]  ;;  %v150_v10 = vld [vmem:[%s1781_s1 + $0x418] sm:$0xff] }
  0x2d   :  { %v839_v13 = vpack.c.bf16 %v145_v7, %v141_v5  ;;  %v151_v16 = vld [vmem:[%s1781_s1 + $0x420] sm:$0xff]  ;;  %v149_v17 = vld [vmem:[%s1781_s1 + $0x410] sm:$0xff]  ;;  %v156_v21 = vld [vmem:[%s1781_s1 + $0x448] sm:$0xff] }
  0x2e   :  { %692 = vmatpush1.bf16.msra.mxu0 %v691_v11  ;;  %v154_v11 = vld [vmem:[%s1781_s1 + $0x438] sm:$0xff]  ;;  %v160_v22 = vld [vmem:[%s1781_s1 + $0x468] sm:$0xff]  ;;  %v155_v30 = vld [vmem:[%s1781_s1 + $0x440] sm:$0xff] }
  0x2f   :  { %820 = vmatpush1.bf16.msra.mxu1 %v819_v14  ;;  %694 = vmatprep.subr.bf16.mxu0 %v693_v15  ;;  %v713_v14 = vpack.c.bf16 %v152_v9, %v148_v8  ;;  %v147_v15 = vld [vmem:[%s1781_s1 + $0x400] sm:$0xff]  ;;  %v841_v18 = vpack.c.bf16 %v154_v11, %v150_v10  ;;  %v717_v29 = vpack.c.bf16 %v160_v22, %v156_v21  ;;  %v157_v24 = vld [vmem:[%s1781_s1 + $0x450] sm:$0xff]  ;;  %v164_v33 = vld [vmem:[%s1781_s1 + $0x488] sm:$0xff] }
  0x30   :  { %822 = vmatprep.subr.bf16.mxu1 %v821_v20  ;;  %v153_v20 = vld [vmem:[%s1781_s1 + $0x430] sm:$0xff]  ;;  %v159_v19 = vld [vmem:[%s1781_s1 + $0x460] sm:$0xff]  ;;  %v168_v34 = vld [vmem:[%s1781_s1 + $0x4a8] sm:$0xff] }
  0x31   :  { %v843_v28 = vpack.c.bf16 %v153_v20, %v149_v17  ;;  %v161_v32 = vld [vmem:[%s1781_s1 + $0x470] sm:$0xff]  ;;  %v166_v36 = vld [vmem:[%s1781_s1 + $0x498] sm:$0xff]  ;;  %v163_v41 = vld [vmem:[%s1781_s1 + $0x480] sm:$0xff] }
  0x32   :  { %696 = vmatpush1.bf16.msra.mxu0 %v695_v25  ;;  %v158_v25 = vld [vmem:[%s1781_s1 + $0x458] sm:$0xff]  ;;  %v167_v42 = vld [vmem:[%s1781_s1 + $0x4a0] sm:$0xff]  ;;  %v165_v43 = vld [vmem:[%s1781_s1 + $0x490] sm:$0xff] }
  0x33   :  { %824 = vmatpush1.bf16.msra.mxu1 %v823_v26  ;;  %698 = vmatprep.subr.bf16.mxu0 %v697_v27  ;;  %v162_v26 = vld [vmem:[%s1781_s1 + $0x478] sm:$0xff]  ;;  %v715_v27 = vpack.c.bf16 %v151_v16, %v147_v15  ;;  %v172_v46 = vld [vmem:[%s1781_s1 + $0x4c8] sm:$0xff]  ;;  %v723_v50 = vpack.c.bf16 %v167_v42, %v163_v41  ;;  %v175_v54 = vld [vmem:[%s1781_s1 + $0x4e0] sm:$0xff] }
  0x34   :  { %826 = vmatprep.subr.bf16.mxu1 %v825_v31  ;;  %v845_v31 = vpack.c.bf16 %v162_v26, %v158_v25  ;;  %v170_v37 = vld [vmem:[%s1781_s1 + $0x4b8] sm:$0xff]  ;;  %v176_v47 = vld [vmem:[%s1781_s1 + $0x4e8] sm:$0xff]  ;;  %v173_v55 = vld [vmem:[%s1781_s1 + $0x4d0] sm:$0xff] }
  0x35   :  { %v849_v44 = vpack.c.bf16 %v170_v37, %v166_v36  ;;  %v174_v48 = vld [vmem:[%s1781_s1 + $0x4d8] sm:$0xff]  ;;  %v180_v58 = vld [vmem:[%s1781_s1 + $0x508] sm:$0xff]  ;;  %v183_v2 = vld [vmem:[%s1781_s1 + $0x520] sm:$0xff] }
  0x36   :  { %700 = vmatpush1.bf16.msra.mxu0 %v699_v38  ;;  %v719_v38 = vpack.c.bf16 %v159_v19, %v155_v30  ;;  %v178_v49 = vld [vmem:[%s1781_s1 + $0x4f8] sm:$0xff]  ;;  %v184_v59 = vld [vmem:[%s1781_s1 + $0x528] sm:$0xff]  ;;  %v181_v4 = vld [vmem:[%s1781_s1 + $0x510] sm:$0xff] }
  0x37   :  { %828 = vmatpush1.bf16.msra.mxu1 %v827_v39  ;;  %702 = vmatprep.subr.bf16.mxu0 %v701_v40  ;;  %v847_v39 = vpack.c.bf16 %v161_v32, %v157_v24  ;;  %v721_v40 = vpack.c.bf16 %v168_v34, %v164_v33  ;;  %v853_v56 = vpack.c.bf16 %v178_v49, %v174_v48  ;;  %v182_v60 = vld [vmem:[%s1781_s1 + $0x518] sm:$0xff]  ;;  %v188_v7 = vld [vmem:[%s1781_s1 + $0x548] sm:$0xff]  ;;  %v191_v15 = vld [vmem:[%s1781_s1 + $0x560] sm:$0xff] }
  0x38   :  { %830 = vmatprep.subr.bf16.mxu1 %v829_v45  ;;  %v169_v45 = vld [vmem:[%s1781_s1 + $0x4b0] sm:$0xff]  ;;  %v186_v61 = vld [vmem:[%s1781_s1 + $0x538] sm:$0xff]  ;;  %v192_v8 = vld [vmem:[%s1781_s1 + $0x568] sm:$0xff] }
  0x39   :  { %v857_v5 = vpack.c.bf16 %v186_v61, %v182_v60  ;;  %v190_v9 = vld [vmem:[%s1781_s1 + $0x558] sm:$0xff]  ;;  %v189_v16 = vld [vmem:[%s1781_s1 + $0x550] sm:$0xff]  ;;  %v196_v20 = vld [vmem:[%s1781_s1 + $0x588] sm:$0xff] }
  0x3a   :  { %704 = vmatpush1.bf16.msra.mxu0 %v703_v51  ;;  %v851_v51 = vpack.c.bf16 %v169_v45, %v165_v43  ;;  %v194_v10 = vld [vmem:[%s1781_s1 + $0x578] sm:$0xff]  ;;  %v200_v21 = vld [vmem:[%s1781_s1 + $0x5a8] sm:$0xff]  ;;  %v199_v30 = vld [vmem:[%s1781_s1 + $0x5a0] sm:$0xff] }
  0x3b   :  { %832 = vmatpush1.bf16.msra.mxu1 %v831_v52  ;;  %706 = vmatprep.subr.bf16.mxu0 %v705_v53  ;;  %v725_v52 = vpack.c.bf16 %v176_v47, %v172_v46  ;;  %v171_v53 = vld [vmem:[%s1781_s1 + $0x4c0] sm:$0xff]  ;;  %v861_v17 = vpack.c.bf16 %v194_v10, %v190_v9  ;;  %v198_v22 = vld [vmem:[%s1781_s1 + $0x598] sm:$0xff]  ;;  %v197_v19 = vld [vmem:[%s1781_s1 + $0x590] sm:$0xff] }
  0x3c   :  { %834 = vmatprep.subr.bf16.mxu1 %v833_v57  ;;  %v177_v57 = vld [vmem:[%s1781_s1 + $0x4f0] sm:$0xff]  ;;  %v727_v62 = vpack.c.bf16 %v175_v54, %v171_v53  ;;  %v202_v25 = vld [vmem:[%s1781_s1 + $0x5b8] sm:$0xff]  ;;  %v204_v32 = vld [vmem:[%s1781_s1 + $0x5c8] sm:$0xff] }
  0x3d   :  { %v201_v24 = vld [vmem:[%s1781_s1 + $0x5b0] sm:$0xff]  ;;  %v208_v33 = vld [vmem:[%s1781_s1 + $0x5e8] sm:$0xff] }
  0x3e   :  { %708 = vmatpush1.bf16.msra.mxu0 %v707_v63  ;;  %v855_v63 = vpack.c.bf16 %v177_v57, %v173_v55 }
  0x3f   :  { %836 = vmatpush1.bf16.msra.mxu1 %v835_v0  ;;  %710 = vmatprep.subr.bf16.mxu0 %v709_v1  ;;  %v729_v0 = vpack.c.bf16 %v184_v59, %v180_v58  ;;  %v179_v1 = vld [vmem:[%s1781_s1 + $0x500] sm:$0xff] }
  0x40   :  { %838 = vmatprep.subr.bf16.mxu1 %v837_v6  ;;  %v185_v6 = vld [vmem:[%s1781_s1 + $0x530] sm:$0xff]  ;;  %v731_v11 = vpack.c.bf16 %v183_v2, %v179_v1 }
  0x42   :  { %712 = vmatpush1.bf16.msra.mxu0 %v711_v12  ;;  %v859_v12 = vpack.c.bf16 %v185_v6, %v181_v4 }
  0x43   :  { %840 = vmatpush1.bf16.msra.mxu1 %v839_v13  ;;  %714 = vmatprep.subr.bf16.mxu0 %v713_v14  ;;  %v733_v13 = vpack.c.bf16 %v192_v8, %v188_v7  ;;  %v187_v14 = vld [vmem:[%s1781_s1 + $0x540] sm:$0xff] }
  0x44   :  { %842 = vmatprep.subr.bf16.mxu1 %v841_v18  ;;  %v193_v18 = vld [vmem:[%s1781_s1 + $0x570] sm:$0xff]  ;;  %v735_v26 = vpack.c.bf16 %v191_v15, %v187_v14 }
  0x45   :  { %393 = vmatmul.mubr.f32.vlgmr.msra.gmra.mrb[0].mxu0 %v1398_v23 }
  0x46   :  { %716 = vmatpush1.bf16.msra.mxu0 %v715_v27  ;;  %535 = vmatmul.mubr.f32.vlgmr.msra.gmra.mrb[0].mxu1 %v1398_v23  ;;  %v195_v27 = vld [vmem:[%s1781_s1 + $0x580] sm:$0xff] }
  0x47   :  { %844 = vmatpush1.bf16.msra.mxu1 %v843_v28  ;;  %718 = vmatprep.subr.bf16.mxu0 %v717_v29  ;;  %v863_v28 = vpack.c.bf16 %v193_v18, %v189_v16  ;;  %v737_v29 = vpack.c.bf16 %v200_v21, %v196_v20 }
  0x48   :  { %846 = vmatprep.subr.bf16.mxu1 %v845_v31  ;;  %463 = vmatprep.mubr.f32.mxu0 %v323_v35  ;;  %v865_v31 = vpack.c.bf16 %v202_v25, %v198_v22 }
  0x49   :  { %605 = vmatprep.mubr.f32.mxu1 %v323_v35 }
  0x4a   :  { %720 = vmatpush1.bf16.msra.mxu0 %v719_v38 }
  0x4b   :  { %848 = vmatpush1.bf16.msra.mxu1 %v847_v39  ;;  %722 = vmatprep.subr.bf16.mxu0 %v721_v40 }
  0x4c   :  { %850 = vmatprep.subr.bf16.mxu1 %v849_v44 }
  0x4e   :  { %724 = vmatpush1.bf16.msra.mxu0 %v723_v50 }
  0x4f   :  { %852 = vmatpush1.bf16.msra.mxu1 %v851_v51  ;;  %726 = vmatprep.subr.bf16.mxu0 %v725_v52 }
  0x50   :  { %854 = vmatprep.subr.bf16.mxu1 %v853_v56 }
  0x52   :  { %728 = vmatpush1.bf16.msra.mxu0 %v727_v62 }
  0x53   :  { %856 = vmatpush1.bf16.msra.mxu1 %v855_v63  ;;  %730 = vmatprep.subr.bf16.mxu0 %v729_v0 }
  0x54   :  { %858 = vmatprep.subr.bf16.mxu1 %v857_v5 }
  0x56   :  { %732 = vmatpush1.bf16.msra.mxu0 %v731_v11 }
  0x57   :  { %860 = vmatpush1.bf16.msra.mxu1 %v859_v12  ;;  %734 = vmatprep.subr.bf16.mxu0 %v733_v13 }
  0x58   :  { %862 = vmatprep.subr.bf16.mxu1 %v861_v17 }
  0x59   :  { %8 = vsyncpa [#allocation3], 0  ;;  %v206_v34 = vld [vmem:[%s1781_s1 + $0x5d8] sm:$0xff]  ;;  %v739_v36 = vpack.c.bf16 %v199_v30, %v195_v27  ;;  %v867_v37 = vpack.c.bf16 %v201_v24, %v197_v19  ;;  %v741_v38 = vpack.c.bf16 %v208_v33, %v204_v32  ;;  %v203_v39 = vld [vmem:[%s1781_s1 + $0x5c0] sm:$0xff] }
  0x5a   :  { %v210_v35 = vld [vmem:[%s1781_s1 + $0x5f8] sm:$0xff]  ;;  %736 = vmatpush1.bf16.msra.mxu0 %v735_v26  ;;  %v207_v40 = vld [vmem:[%s1781_s1 + $0x5e0] sm:$0xff]  ;;  %v205_v41 = vld [vmem:[%s1781_s1 + $0x5d0] sm:$0xff] }
  0x5b   :  { %864 = vmatpush1.bf16.msra.mxu1 %v863_v28  ;;  %738 = vmatprep.subr.bf16.mxu0 %v737_v29  ;;  %v869_v42 = vpack.c.bf16 %v210_v35, %v206_v34  ;;  %v209_v43 = vld [vmem:[%s1781_s1 + $0x5f0] sm:$0xff]  ;;  %v212_v44 = vld [vmem:[%s1781_s1 + $0x608] sm:$0xff]  ;;  %v214_v46 = vld [vmem:[%s1781_s1 + $0x618] sm:$0xff]  ;;  %v743_v48 = vpack.c.bf16 %v207_v40, %v203_v39 }
  0x5c   :  { %866 = vmatprep.subr.bf16.mxu1 %v865_v31  ;;  %v216_v45 = vld [vmem:[%s1781_s1 + $0x628] sm:$0xff]  ;;  %v218_v47 = vld [vmem:[%s1781_s1 + $0x638] sm:$0xff]  ;;  %v871_v49 = vpack.c.bf16 %v209_v43, %v205_v41  ;;  %v211_v51 = vld [vmem:[%s1781_s1 + $0x600] sm:$0xff] }
  0x5d   :  { %v745_v50 = vpack.c.bf16 %v216_v45, %v212_v44  ;;  %v215_v52 = vld [vmem:[%s1781_s1 + $0x620] sm:$0xff]  ;;  %v213_v53 = vld [vmem:[%s1781_s1 + $0x610] sm:$0xff]  ;;  %v873_v54 = vpack.c.bf16 %v218_v47, %v214_v46  ;;  %v220_v56 = vld [vmem:[%s1781_s1 + $0x648] sm:$0xff] }
  0x5e   :  { %740 = vmatpush1.bf16.msra.mxu0 %v739_v36  ;;  %v217_v55 = vld [vmem:[%s1781_s1 + $0x630] sm:$0xff]  ;;  %v224_v57 = vld [vmem:[%s1781_s1 + $0x668] sm:$0xff]  ;;  %v222_v58 = vld [vmem:[%s1781_s1 + $0x658] sm:$0xff]  ;;  %v747_v60 = vpack.c.bf16 %v215_v52, %v211_v51 }
  0x5f   :  { %868 = vmatpush1.bf16.msra.mxu1 %v867_v37  ;;  %742 = vmatprep.subr.bf16.mxu0 %v741_v38  ;;  %v226_v59 = vld [vmem:[%s1781_s1 + $0x678] sm:$0xff]  ;;  %v875_v61 = vpack.c.bf16 %v217_v55, %v213_v53  ;;  %v749_v62 = vpack.c.bf16 %v224_v57, %v220_v56  ;;  %v219_v63 = vld [vmem:[%s1781_s1 + $0x640] sm:$0xff]  ;;  %v221_v1 = vld [vmem:[%s1781_s1 + $0x650] sm:$0xff] }
  0x60   :  { %870 = vmatprep.subr.bf16.mxu1 %v869_v42  ;;  %v223_v0 = vld [vmem:[%s1781_s1 + $0x660] sm:$0xff]  ;;  %v877_v2 = vpack.c.bf16 %v226_v59, %v222_v58  ;;  %v225_v4 = vld [vmem:[%s1781_s1 + $0x670] sm:$0xff]  ;;  %v228_v5 = vld [vmem:[%s1781_s1 + $0x688] sm:$0xff] }
  0x61   :  { %v232_v6 = vld [vmem:[%s1781_s1 + $0x6a8] sm:$0xff]  ;;  %v230_v7 = vld [vmem:[%s1781_s1 + $0x698] sm:$0xff]  ;;  %v751_v9 = vpack.c.bf16 %v223_v0, %v219_v63  ;;  %v879_v10 = vpack.c.bf16 %v225_v4, %v221_v1  ;;  %v227_v12 = vld [vmem:[%s1781_s1 + $0x680] sm:$0xff] }
  0x62   :  { %744 = vmatpush1.bf16.msra.mxu0 %v743_v48  ;;  %v234_v8 = vld [vmem:[%s1781_s1 + $0x6b8] sm:$0xff]  ;;  %v753_v11 = vpack.c.bf16 %v232_v6, %v228_v5  ;;  %v231_v13 = vld [vmem:[%s1781_s1 + $0x6a0] sm:$0xff]  ;;  %v229_v14 = vld [vmem:[%s1781_s1 + $0x690] sm:$0xff] }
  0x63   :  { %872 = vmatpush1.bf16.msra.mxu1 %v871_v49  ;;  %746 = vmatprep.subr.bf16.mxu0 %v745_v50  ;;  %v881_v15 = vpack.c.bf16 %v234_v8, %v230_v7  ;;  %v233_v16 = vld [vmem:[%s1781_s1 + $0x6b0] sm:$0xff]  ;;  %v236_v17 = vld [vmem:[%s1781_s1 + $0x6c8] sm:$0xff]  ;;  %v238_v20 = vld [vmem:[%s1781_s1 + $0x6d8] sm:$0xff]  ;;  %v755_v22 = vpack.c.bf16 %v231_v13, %v227_v12 }
  0x64   :  { %874 = vmatprep.subr.bf16.mxu1 %v873_v54  ;;  %v240_v18 = vld [vmem:[%s1781_s1 + $0x6e8] sm:$0xff]  ;;  %v242_v21 = vld [vmem:[%s1781_s1 + $0x6f8] sm:$0xff]  ;;  %v883_v25 = vpack.c.bf16 %v233_v16, %v229_v14  ;;  %v235_v27 = vld [vmem:[%s1781_s1 + $0x6c0] sm:$0xff] }
  0x65   :  { %v757_v26 = vpack.c.bf16 %v240_v18, %v236_v17  ;;  %v239_v28 = vld [vmem:[%s1781_s1 + $0x6e0] sm:$0xff]  ;;  %v237_v29 = vld [vmem:[%s1781_s1 + $0x6d0] sm:$0xff]  ;;  %v885_v30 = vpack.c.bf16 %v242_v21, %v238_v20  ;;  %v244_v24 = vld [vmem:[%s1781_s1 + $0x708] sm:$0xff]  ;;  %v322_v17 = vcombine.high %v1398_v23, %v1398_v23  ;;  %v279_v18 = vsub.s32 0, %v1226_v3 }
  0x66   :  { %748 = vmatpush1.bf16.msra.mxu0 %v747_v60  ;;  %v241_v19 = vld [vmem:[%s1781_s1 + $0x6f0] sm:$0xff]  ;;  %v248_v31 = vld [vmem:[%s1781_s1 + $0x728] sm:$0xff]  ;;  %v246_v32 = vld [vmem:[%s1781_s1 + $0x718] sm:$0xff]  ;;  %v759_v34 = vpack.c.bf16 %v239_v28, %v235_v27  ;;  %v287_v21 = vsub.s32 2, %v1226_v3  ;;  %v291_v27 = vsub.s32 3, %v1226_v3 }
  0x67   :  { %876 = vmatpush1.bf16.msra.mxu1 %v875_v61  ;;  %750 = vmatprep.subr.bf16.mxu0 %v749_v62  ;;  %v250_v33 = vld [vmem:[%s1781_s1 + $0x738] sm:$0xff]  ;;  %v887_v35 = vpack.c.bf16 %v241_v19, %v237_v29  ;;  %v761_v36 = vpack.c.bf16 %v248_v31, %v244_v24  ;;  %v243_v37 = vld [vmem:[%s1781_s1 + $0x700] sm:$0xff]  ;;  %v245_v39 = vld [vmem:[%s1781_s1 + $0x710] sm:$0xff] }
  0x68   :  { %878 = vmatprep.subr.bf16.mxu1 %v877_v2  ;;  %v247_v38 = vld [vmem:[%s1781_s1 + $0x720] sm:$0xff]  ;;  %v889_v40 = vpack.c.bf16 %v250_v33, %v246_v32  ;;  %v249_v41 = vld [vmem:[%s1781_s1 + $0x730] sm:$0xff]  ;;  %v252_v42 = vld [vmem:[%s1781_s1 + $0x748] sm:$0xff] }
  0x69   :  { %v256_v43 = vld [vmem:[%s1781_s1 + $0x768] sm:$0xff]  ;;  %v254_v44 = vld [vmem:[%s1781_s1 + $0x758] sm:$0xff]  ;;  %v763_v46 = vpack.c.bf16 %v247_v38, %v243_v37  ;;  %v891_v47 = vpack.c.bf16 %v249_v41, %v245_v39  ;;  %v251_v49 = vld [vmem:[%s1781_s1 + $0x740] sm:$0xff] }
  0x6a   :  { %752 = vmatpush1.bf16.msra.mxu0 %v751_v9  ;;  %v258_v45 = vld [vmem:[%s1781_s1 + $0x778] sm:$0xff]  ;;  %v765_v48 = vpack.c.bf16 %v256_v43, %v252_v42  ;;  %v255_v50 = vld [vmem:[%s1781_s1 + $0x760] sm:$0xff]  ;;  %v253_v51 = vld [vmem:[%s1781_s1 + $0x750] sm:$0xff] }
  0x6b   :  { %880 = vmatpush1.bf16.msra.mxu1 %v879_v10  ;;  %754 = vmatprep.subr.bf16.mxu0 %v753_v11  ;;  %v893_v52 = vpack.c.bf16 %v258_v45, %v254_v44  ;;  %v257_v53 = vld [vmem:[%s1781_s1 + $0x770] sm:$0xff]  ;;  %v260_v54 = vld [vmem:[%s1781_s1 + $0x788] sm:$0xff]  ;;  %v262_v56 = vld [vmem:[%s1781_s1 + $0x798] sm:$0xff]  ;;  %v767_v58 = vpack.c.bf16 %v255_v50, %v251_v49 }
  0x6c   :  { %882 = vmatprep.subr.bf16.mxu1 %v881_v15  ;;  %v264_v55 = vld [vmem:[%s1781_s1 + $0x7a8] sm:$0xff]  ;;  %v266_v57 = vld [vmem:[%s1781_s1 + $0x7b8] sm:$0xff]  ;;  %v895_v59 = vpack.c.bf16 %v257_v53, %v253_v51  ;;  %v259_v61 = vld [vmem:[%s1781_s1 + $0x780] sm:$0xff] }
  0x6d   :  { %v769_v60 = vpack.c.bf16 %v264_v55, %v260_v54  ;;  %v263_v62 = vld [vmem:[%s1781_s1 + $0x7a0] sm:$0xff]  ;;  %v261_v63 = vld [vmem:[%s1781_s1 + $0x790] sm:$0xff]  ;;  %v897_v0 = vpack.c.bf16 %v266_v57, %v262_v56  ;;  %v268_v2 = vld [vmem:[%s1781_s1 + $0x7c8] sm:$0xff] }
  0x6e   :  { %756 = vmatpush1.bf16.msra.mxu0 %v755_v22  ;;  %v265_v1 = vld [vmem:[%s1781_s1 + $0x7b0] sm:$0xff]  ;;  %v272_v4 = vld [vmem:[%s1781_s1 + $0x7e8] sm:$0xff]  ;;  %v270_v5 = vld [vmem:[%s1781_s1 + $0x7d8] sm:$0xff]  ;;  %v771_v7 = vpack.c.bf16 %v263_v62, %v259_v61  ;;  %v283_v22 = vsub.s32 1, %v1226_v3 }
  0x6f   :  { %884 = vmatpush1.bf16.msra.mxu1 %v883_v25  ;;  %758 = vmatprep.subr.bf16.mxu0 %v757_v26  ;;  %v274_v6 = vld [vmem:[%s1781_s1 + $0x7f8] sm:$0xff]  ;;  %v899_v8 = vpack.c.bf16 %v265_v1, %v261_v63  ;;  %v773_v9 = vpack.c.bf16 %v272_v4, %v268_v2  ;;  %v267_v10 = vld [vmem:[%s1781_s1 + $0x7c0] sm:$0xff]  ;;  %v269_v13 = vld [vmem:[%s1781_s1 + $0x7d0] sm:$0xff]  ;;  %v943_v25 = vmov 1983009808  }
  0x70   :  { %886 = vmatprep.subr.bf16.mxu1 %v885_v30  ;;  %v271_v11 = vld [vmem:[%s1781_s1 + $0x7e0] sm:$0xff]  ;;  %v901_v12 = vpack.c.bf16 %v274_v6, %v270_v5  ;;  %v273_v14 = vld [vmem:[%s1781_s1 + $0x7f0] sm:$0xff]  ;;  %v619_v26 = vunpack.c.l.s4 %v943_v25  ;;  %s944_s1 = smov [#allocation2]  }
  0x71   :  { %v775_v15 = vpack.c.bf16 %v271_v11, %v267_v10  ;;  %v903_v16 = vpack.c.bf16 %v273_v14, %v269_v13  ;;  %v275_v20 = vld [vmem:[%s1782_s2] sm:$0xf]  ;;  %s641_s2 = sshll.u32 %s944_s1, 4  ;;  %s642_s2 = int_to_ptr.vmem [resolvable:$true] %s641_s2 }
  0x72   :  { %760 = vmatpush1.bf16.msra.mxu0 %v759_v34  ;;  %v280_v28 = vrot.slane %v275_v20, %v279_v18  ;;  %v288_v23 = vrot.slane %v275_v20, %v287_v21  ;;  %v284_v29 = vrot.slane %v275_v20, %v283_v22  ;;  %v620_v30 = vunpack.c.0.s8 %v619_v26  ;;  %s918_s0 = scalar_lea.vmem %s642_s2, 128  ;;  %p923_p1 = scmp.lt.s32.totalorder %s642_s2, %s642_s2 }
  0x73   :  { %888 = vmatpush1.bf16.msra.mxu1 %v887_v35  ;;  %762 = vmatprep.subr.bf16.mxu0 %v761_v36  ;;  %v292_v19 = vrot.slane %v275_v20, %v291_v27  ;;  %p919_p0 = scmp.ne.s32.totalorder %s642_s2, %s918_s0  ;;  %p924_p2 = scmp.lt.s32.totalorder %s918_s0, %s918_s0 }
  0x74   :  { %890 = vmatprep.subr.bf16.mxu1 %v889_v40  ;;  %v623_v37 = vsub.s32 %v620_v30, %v1226_v3 }
  0x75   :  { %p925_p3 = por %p924_p2, %p923_p1 }
  0x76   :  { %764 = vmatpush1.bf16.msra.mxu0 %v763_v46 }
  0x77   :  { %892 = vmatpush1.bf16.msra.mxu1 %v891_v47  ;;  %766 = vmatprep.subr.bf16.mxu0 %v765_v48  ;;  %p926_p4 = pnand %p925_p3, %p919_p0 }
  0x78   :  { %894 = vmatprep.subr.bf16.mxu1 %v893_v52 }
  0x7a   :  { %768 = vmatpush1.bf16.msra.mxu0 %v767_v58 }
  0x7b   :  { %896 = vmatpush1.bf16.msra.mxu1 %v895_v59  ;;  %770 = vmatprep.subr.bf16.mxu0 %v769_v60 }
  0x7c   :  { %898 = vmatprep.subr.bf16.mxu1 %v897_v0 }
  0x7e   :  { %772 = vmatpush1.bf16.msra.mxu0 %v771_v7 }
  0x7f   :  { %900 = vmatpush1.bf16.msra.mxu1 %v899_v8  ;;  %774 = vmatprep.subr.bf16.mxu0 %v773_v9 }
  0x80   :  { %902 = vmatprep.subr.bf16.mxu1 %v901_v12 }
  0x82   :  { %776 = vmatpush1.bf16.msra.mxu0 %v775_v15 }
  0x83   :  { %904 = vmatpush1.bf16.msra.mxu1 %v903_v16 }
  0x85   :  { %464 = vmatmul.mubr.f32.vlgmr.msra.gmra.mrb[0].mxu0 %v322_v17 }
  0x86   :  { %606 = vmatmul.mubr.f32.vlgmr.msra.gmra.mrb[0].mxu1 %v322_v17 }
 0x158   :  { %v465_v24 = vpop.f32.mrb[0].mxu0 }
 0x159   :  { %v905_v31 = vadd.f32 %v465_v24, %v280_v28  ;;  %v607_v32 = vpop.f32.mrb[0].mxu1  ;;  %v467_v33 = vpop.f32.mrb[1].mxu0 }
 0x15a   :  { %v907_v34 = vadd.f32 %v607_v32, %v288_v23  ;;  %v906_v35 = vadd.f32 %v467_v33, %v284_v29  ;;  %v609_v36 = vpop.f32.mrb[1].mxu1 }
 0x15b   :  { %v908_v38 = vadd.f32 %v609_v36, %v292_v19 }
 0x15c   :  { %v616_v39 = vcombine.low %v905_v31, %v906_v35 }
 0x15d   :  { %v617_v40 = vcombine.low %v907_v34, %v908_v38 }
 0x15e   :  { %v624_v41 = vrot.slane %v616_v39, %v623_v37 }
 0x15f   :  { %v631_v42 = vrot.slane %v617_v40, %v623_v37 }
 0x161   :  { %v632_v43 = vcombine.low %v624_v41, %v631_v42 }
 0x163   :  { %634 = vst [vmem:[#allocation2] sm:$0xff] %v632_v43 }
 0x164   :  { %929 = shalt.err (!%p926_p4)
}
 0x165   :  { %s930_s6 = scalar_lea.hbm %s1783_s3, 128 }
 0x166   :  { %p931_p5 = scmp.ne.s32.totalorder %s1783_s3, %s930_s6  ;;  %p934_p6 = scmp.lt.u32.totalorder %s930_s6, %s1783_s3 }
 0x168   :  { %p936_p7 = pnand %p934_p6, %p931_p5 }
 0x16a   :  { %939 = shalt.err (!%p936_p7)
}
 0x16b   :  { %644 = dma.vmem_to_hbm [thread:$0]  %s642_s2, 128, %s1783_s3, [#allocation3]  }
 0x16c   :  { %940 = dma.done.wait [#allocation3], 128  }
 0x16d   :  { %941 = vsyncadd [#allocation3], 4294967168 }
 0x16e   :  { %648 = vsyncpa [#allocation3], 1 }

// kernel: resnet_forward.26
= control target key start
LH: loop header
LB: loop body
LE: loop exit
PB: predicated region body
PF: predicated region fallthrough
CT: control target
= control target key end

     0   :  { %s5045_s24 = smov 0   ;;  %s5047_s25 = smov 0   ;;  %s5590_s0 = inlined_call_operand.vmem [shape: f32[2,3,3,512], index: 0, kind: input, shape index: {}]   ;;  %s5591_s1 = inlined_call_operand.vmem [shape: bf16[3,3,512,512], index: 1, kind: input, shape index: {}]   ;;  %s5592_s2 = inlined_call_operand.vmem [shape: f32[1,512], index: 2, kind: input, shape index: {}, may-alias: {2,4}]   ;;  %s5593_s3 = inlined_call_operand.vmem [shape: f32[1,512], index: 3, kind: input, shape index: {}, may-alias: {3,5}]   ;;  %s5594_s4 = inlined_call_operand.vmem [shape: f32[1,512], index: 4, kind: input, shape index: {}, may-alias: {2,4}]   ;;  %s5595_s5 = inlined_call_operand.vmem [shape: f32[1,512], index: 5, kind: input, shape index: {}, may-alias: {3,5}]   ;;  %s5596_s6 = inlined_call_operand.vmem [shape: f32[2,1,1,512], index: 6, kind: input, shape index: {}]   ;;  %s5597_s7 = inlined_call_operand.vmem [shape: f32[2,1,1,512], index: 7, kind: output, shape index: {}]  }
   0x1   :  { %s5049_s2 = smov 0   ;;  %s5051_s26 = smov 0  }
   0x2   :  { %s5053_s3 = smov 0  }
   0x3 LB: > { %s32_s27 = sadd.s32 1, %s4993_s2  ;;  %s43_s28 = sadd.s32 1, %s4997_s26  ;;  %s5001_s3 = sphi %s5053_s3, %s17_s3   ;;  %s4997_s26 = sphi %s5051_s26, %s5603_s26   ;;  %s4993_s2 = sphi %s5049_s2, %s5602_s2   ;;  %s4989_s25 = sphi %s5047_s25, %s5601_s25   ;;  %s4985_s24 = sphi %s5045_s24, %s5600_s24  }
   0x4   : > { %p33_p0 = scmp.ge.s32.totalorder %s32_s27, 3  ;;  %p3667_p1 = scmp.ge.s32.totalorder %s5001_s3, 1 }
   0x5   : > { %p336_p2 = scmp.lt.s32.totalorder %s5001_s3, 7 }
   0x6   : > { %s5605_s27 = smov (%p33_p0, %s32_s27), 0  ;;  %s5607_s28 = smov (!%p33_p0, %s43_s28), %s4997_s26 }
   0x7   : > { %p337_p3 = pnand %p3667_p1, %p336_p2  ;;  %p45_p4 = scmp.ge.s32.totalorder %s5607_s28, 2 }
   0x8   : > { %p410_p5 = scmp.lt.s32.totalorder (!%p337_p3), %s4989_s25, 1  ;;  %p412_p6 = scmp.lt.s32.totalorder (!%p337_p3), %s4985_s24, 2 }
   0x9   : > { %s5609_s28 = smov (%p45_p4, %s5607_s28), 0  ;;  %340 = sbr.rel (%p337_p3) target bundleno = 646 (0x286), region = 48 }
   0xa   : > { %p3673_p7 = scmp.ne.s32.totalorder (!%p337_p3), %s4985_s24, 0 }
  0x10   : > { %s5611_s25 = smov (!%p410_p5, %s4989_s25), 1  ;;  %469 = sbr.rel (%p3673_p7) target bundleno = 23 (0x17), region = 52 }
  0x11   : > { %s413_s29 = scalar_select %p412_p6, %s4985_s24, 2 }
  0x12   : > { %s4341_s30 = smul.u32 12, %s5611_s25  ;;  %s3671_s8 = sshll.u32 %s5611_s25, 2  ;;  %v470_v0 = vlaneseq (!%p3673_p7)  ;;  %v5003_v1 = vmov (!%p3673_p7), 0.0  }
  0x13   : > { %s3668_s9 = sshll.u32 %s413_s29, 2  ;;  %s4342_s10 = smul.u32 3072, %s413_s29 }
  0x14   : > { %s416_s11 = sadd.s32 %s4341_s30, %s3668_s9  ;;  %s5082_s14 = scalar_lea.vmem %s5596_s6, %s3671_s8  ;;  %vm472_vm0 = vcmp.lt.s32.totalorder (!%p3673_p7), %v470_v0, 512 }
  0x15   : > { %s3669_s15 = sshll.u32 %s416_s11, 2  ;;  %s5087_s18 = scalar_lea.vmem %s5591_s1, %s4342_s10  ;;  %474 = vst.msk [vmem:[#allocation2] sm:$0xf] (!%p3673_p7), %vm472_vm0, %v5003_v1 }
  0x16   : > { %s5092_s21 = scalar_lea.vmem %s5590_s0, %s3669_s15  ;;  %s5097_s25 = scalar_lea.vmem %s5597_s7, %s3671_s8 }
  0x17 PF: > { %v4385_v2 = vld [vmem:[%s5087_s18 + $0x4] ss:$16 sps:$4 sm:$0xff]   ;;  %v4387_v3 = vld [vmem:[%s5087_s18 + $0xc] ss:$16 sps:$4 sm:$0xff]   ;;  %v4389_v4 = vld [vmem:[%s5087_s18] ss:$16 sps:$4 sm:$0xff]   ;;  %v608_v38 = vlaneseq }
  0x18   : > { %1272 = vmatprep.subr.bf16.mxu0 %v4385_v2  ;;  %v4390_v5 = vld [vmem:[%s5087_s18 + $0x8] ss:$16 sps:$4 sm:$0xff]   ;;  %1354 = vmatprep.subr.bf16.mxu1 %v4387_v3  ;;  %v4391_v6 = vld [vmem:[%s5087_s18 + $0x24] ss:$16 sps:$4 sm:$0xff]   ;;  %v4393_v7 = vld [vmem:[%s5087_s18 + $0x2c] ss:$16 sps:$4 sm:$0xff]  }
  0x19   : > { %1273 = vmatpush1.bf16.msra.mxu0 %v4389_v4  ;;  %1355 = vmatpush1.bf16.msra.mxu1 %v4390_v5  ;;  %v4395_v8 = vld [vmem:[%s5087_s18 + $0x20] ss:$16 sps:$4 sm:$0xff]   ;;  %v4396_v9 = vld [vmem:[%s5087_s18 + $0x28] ss:$16 sps:$4 sm:$0xff]   ;;  %v4397_v10 = vld [vmem:[%s5087_s18 + $0x44] ss:$16 sps:$4 sm:$0xff]  }
  0x1a   : > { %1274 = vmatprep.subr.bf16.mxu0 %v4391_v6  ;;  %1356 = vmatprep.subr.bf16.mxu1 %v4393_v7  ;;  %v4399_v11 = vld [vmem:[%s5087_s18 + $0x4c] ss:$16 sps:$4 sm:$0xff]   ;;  %v4401_v12 = vld [vmem:[%s5087_s18 + $0x40] ss:$16 sps:$4 sm:$0xff]   ;;  %v4402_v13 = vld [vmem:[%s5087_s18 + $0x48] ss:$16 sps:$4 sm:$0xff]  }
  0x1b   : > { %v4403_v14 = vld [vmem:[%s5087_s18 + $0x64] ss:$16 sps:$4 sm:$0xff]   ;;  %v4405_v15 = vld [vmem:[%s5087_s18 + $0x6c] ss:$16 sps:$4 sm:$0xff]   ;;  %v4407_v16 = vld [vmem:[%s5087_s18 + $0x60] ss:$16 sps:$4 sm:$0xff]  }
  0x1c   : > { %v4408_v17 = vld [vmem:[%s5087_s18 + $0x68] ss:$16 sps:$4 sm:$0xff]   ;;  %v4409_v18 = vld [vmem:[%s5087_s18 + $0x84] ss:$16 sps:$4 sm:$0xff]   ;;  %v4411_v19 = vld [vmem:[%s5087_s18 + $0x8c] ss:$16 sps:$4 sm:$0xff]  }
  0x1d   : > { %1275 = vmatpush1.bf16.msra.mxu0 %v4395_v8  ;;  %1357 = vmatpush1.bf16.msra.mxu1 %v4396_v9  ;;  %v4413_v20 = vld [vmem:[%s5087_s18 + $0x80] ss:$16 sps:$4 sm:$0xff]   ;;  %v4414_v21 = vld [vmem:[%s5087_s18 + $0x88] ss:$16 sps:$4 sm:$0xff]   ;;  %v4415_v22 = vld [vmem:[%s5087_s18 + $0xa4] ss:$16 sps:$4 sm:$0xff]  }
  0x1e   : > { %1276 = vmatprep.subr.bf16.mxu0 %v4397_v10  ;;  %1358 = vmatprep.subr.bf16.mxu1 %v4399_v11  ;;  %v4417_v23 = vld [vmem:[%s5087_s18 + $0xac] ss:$16 sps:$4 sm:$0xff]   ;;  %v4419_v24 = vld [vmem:[%s5087_s18 + $0xa0] ss:$16 sps:$4 sm:$0xff]   ;;  %v4420_v25 = vld [vmem:[%s5087_s18 + $0xa8] ss:$16 sps:$4 sm:$0xff]  }
  0x1f   : > { %v4421_v26 = vld [vmem:[%s5087_s18 + $0xc4] ss:$16 sps:$4 sm:$0xff]   ;;  %v4423_v27 = vld [vmem:[%s5087_s18 + $0xcc] ss:$16 sps:$4 sm:$0xff]   ;;  %v4425_v28 = vld [vmem:[%s5087_s18 + $0xc0] ss:$16 sps:$4 sm:$0xff]  }
  0x20   : > { %v4426_v29 = vld [vmem:[%s5087_s18 + $0xc8] ss:$16 sps:$4 sm:$0xff]   ;;  %v4427_v30 = vld [vmem:[%s5087_s18 + $0xe4] ss:$16 sps:$4 sm:$0xff]   ;;  %v4429_v31 = vld [vmem:[%s5087_s18 + $0xec] ss:$16 sps:$4 sm:$0xff]  }
  0x21   : > { %1277 = vmatpush1.bf16.msra.mxu0 %v4401_v12  ;;  %1359 = vmatpush1.bf16.msra.mxu1 %v4402_v13  ;;  %v4431_v32 = vld [vmem:[%s5087_s18 + $0xe0] ss:$16 sps:$4 sm:$0xff]   ;;  %v4432_v33 = vld [vmem:[%s5087_s18 + $0xe8] ss:$16 sps:$4 sm:$0xff]   ;;  %v4433_v34 = vld [vmem:[%s5087_s18 + $0x104] ss:$16 sps:$4 sm:$0xff]  }
  0x22   : > { %1278 = vmatprep.subr.bf16.mxu0 %v4403_v14  ;;  %1360 = vmatprep.subr.bf16.mxu1 %v4405_v15  ;;  %v4435_v35 = vld [vmem:[%s5087_s18 + $0x10c] ss:$16 sps:$4 sm:$0xff]   ;;  %v4437_v36 = vld [vmem:[%s5087_s18 + $0x100] ss:$16 sps:$4 sm:$0xff]   ;;  %v4438_v37 = vld [vmem:[%s5087_s18 + $0x108] ss:$16 sps:$4 sm:$0xff]  }
  0x23   : > { %v4439_v39 = vld [vmem:[%s5087_s18 + $0x124] ss:$16 sps:$4 sm:$0xff]   ;;  %v4441_v40 = vld [vmem:[%s5087_s18 + $0x12c] ss:$16 sps:$4 sm:$0xff]   ;;  %v4443_v41 = vld [vmem:[%s5087_s18 + $0x120] ss:$16 sps:$4 sm:$0xff]  }
  0x24   : > { %v5140_v42 = vshrl.u32 %v608_v38, 7  ;;  %v4444_v43 = vld [vmem:[%s5087_s18 + $0x128] ss:$16 sps:$4 sm:$0xff]   ;;  %v4445_v44 = vld [vmem:[%s5087_s18 + $0x144] ss:$16 sps:$4 sm:$0xff]   ;;  %vm5515_vm1 = vcmp.lt.s32.totalorder %v608_v38, 512 }
  0x25   : > { %1279 = vmatpush1.bf16.msra.mxu0 %v4407_v16  ;;  %1361 = vmatpush1.bf16.msra.mxu1 %v4408_v17  ;;  %v4447_v45 = vld [vmem:[%s5087_s18 + $0x14c] ss:$16 sps:$4 sm:$0xff]   ;;  %v4449_v46 = vld [vmem:[%s5087_s18 + $0x140] ss:$16 sps:$4 sm:$0xff]   ;;  %v4450_v47 = vld [vmem:[%s5087_s18 + $0x148] ss:$16 sps:$4 sm:$0xff]  }
  0x26   : > { %1280 = vmatprep.subr.bf16.mxu0 %v4409_v18  ;;  %1362 = vmatprep.subr.bf16.mxu1 %v4411_v19  ;;  %v614_v48 = vsub.s32 4, %v5140_v42  ;;  %v4451_v49 = vld [vmem:[%s5087_s18 + $0x164] ss:$16 sps:$4 sm:$0xff]   ;;  %v4453_v50 = vld [vmem:[%s5087_s18 + $0x16c] ss:$16 sps:$4 sm:$0xff]   ;;  %v610_v3 = vsub.s32 0, %v5140_v42 }
  0x27   : > { %v5151_v51 = vld [vmem:[%s5092_s21] sm:$0x77]  ;;  %v4456_v54 = vld [vmem:[%s5087_s18 + $0x168] ss:$16 sps:$4 sm:$0xff]   ;;  %v4459_v56 = vld [vmem:[%s5087_s18 + $0x18c] ss:$16 sps:$4 sm:$0xff]  }
  0x28   : > { %v4455_v52 = vld [vmem:[%s5087_s18 + $0x160] ss:$16 sps:$4 sm:$0xff]   ;;  %v615_v53 = vrot.slane %v5151_v51, %v614_v48  ;;  %v4457_v55 = vld [vmem:[%s5087_s18 + $0x184] ss:$16 sps:$4 sm:$0xff]   ;;  %v4462_v59 = vld [vmem:[%s5087_s18 + $0x188] ss:$16 sps:$4 sm:$0xff]   ;;  %v611_v8 = vrot.slane %v5151_v51, %v610_v3 }
  0x29   : > { %1281 = vmatpush1.bf16.msra.mxu0 %v4413_v20  ;;  %1363 = vmatpush1.bf16.msra.mxu1 %v4414_v21  ;;  %v4461_v58 = vld [vmem:[%s5087_s18 + $0x180] ss:$16 sps:$4 sm:$0xff]   ;;  %v4463_v60 = vld [vmem:[%s5087_s18 + $0x1a4] ss:$16 sps:$4 sm:$0xff]   ;;  %v4465_v61 = vld [vmem:[%s5087_s18 + $0x1ac] ss:$16 sps:$4 sm:$0xff]  }
  0x2a   : > { %1282 = vmatprep.subr.bf16.mxu0 %v4415_v22  ;;  %1364 = vmatprep.subr.bf16.mxu1 %v4417_v23  ;;  %v629_v57 = vpack.c.bf16 %v615_v53, %v615_v53  ;;  %v4467_v62 = vld [vmem:[%s5087_s18 + $0x1a0] ss:$16 sps:$4 sm:$0xff]   ;;  %v4468_v63 = vld [vmem:[%s5087_s18 + $0x1a8] ss:$16 sps:$4 sm:$0xff]   ;;  %v4469_v0 = vld [vmem:[%s5087_s18 + $0x1c4] ss:$16 sps:$4 sm:$0xff]   ;;  %v628_v13 = vpack.c.bf16 %v611_v8, %v611_v8 }
  0x2b   : > { %v4471_v1 = vld [vmem:[%s5087_s18 + $0x1cc] ss:$16 sps:$4 sm:$0xff]   ;;  %v4473_v2 = vld [vmem:[%s5087_s18 + $0x1c0] ss:$16 sps:$4 sm:$0xff]   ;;  %v4474_v4 = vld [vmem:[%s5087_s18 + $0x1c8] ss:$16 sps:$4 sm:$0xff]  }
  0x2c   : > { %1304 = vmatprep.mubr.bf16.mxu0 %v629_v57  ;;  %1386 = vmatprep.mubr.bf16.mxu1 %v629_v57  ;;  %v4475_v5 = vld [vmem:[%s5087_s18 + $0x1e4] ss:$16 sps:$4 sm:$0xff]   ;;  %v4477_v6 = vld [vmem:[%s5087_s18 + $0x1ec] ss:$16 sps:$4 sm:$0xff]   ;;  %v4479_v7 = vld [vmem:[%s5087_s18 + $0x1e0] ss:$16 sps:$4 sm:$0xff]  }
  0x2d   : > { %1283 = vmatpush1.bf16.msra.mxu0 %v4419_v24  ;;  %1365 = vmatpush1.bf16.msra.mxu1 %v4420_v25  ;;  %v4480_v9 = vld [vmem:[%s5087_s18 + $0x1e8] ss:$16 sps:$4 sm:$0xff]   ;;  %v4483_v10 = vld [vmem:[%s5087_s18 + $0x204] ss:$16 sps:$4 sm:$0xff]   ;;  %v4486_v11 = vld [vmem:[%s5087_s18 + $0x20c] ss:$16 sps:$4 sm:$0xff]  }
  0x2e   : > { %1284 = vmatprep.subr.bf16.mxu0 %v4421_v26  ;;  %1366 = vmatprep.subr.bf16.mxu1 %v4423_v27  ;;  %v4481_v12 = vld [vmem:[%s5087_s18 + $0x200] ss:$16 sps:$4 sm:$0xff]   ;;  %v4484_v14 = vld [vmem:[%s5087_s18 + $0x208] ss:$16 sps:$4 sm:$0xff]   ;;  %v4489_v15 = vld [vmem:[%s5087_s18 + $0x224] ss:$16 sps:$4 sm:$0xff]  }
  0x2f   : > { %v4492_v16 = vld [vmem:[%s5087_s18 + $0x22c] ss:$16 sps:$4 sm:$0xff]   ;;  %v4487_v17 = vld [vmem:[%s5087_s18 + $0x220] ss:$16 sps:$4 sm:$0xff]   ;;  %v4490_v18 = vld [vmem:[%s5087_s18 + $0x228] ss:$16 sps:$4 sm:$0xff]  }
  0x30   : > { %v4495_v19 = vld [vmem:[%s5087_s18 + $0x244] ss:$16 sps:$4 sm:$0xff]   ;;  %v4498_v20 = vld [vmem:[%s5087_s18 + $0x24c] ss:$16 sps:$4 sm:$0xff]   ;;  %v4493_v21 = vld [vmem:[%s5087_s18 + $0x240] ss:$16 sps:$4 sm:$0xff]  }
  0x31   : > { %1285 = vmatpush1.bf16.msra.mxu0 %v4425_v28  ;;  %1367 = vmatpush1.bf16.msra.mxu1 %v4426_v29  ;;  %v4496_v22 = vld [vmem:[%s5087_s18 + $0x248] ss:$16 sps:$4 sm:$0xff]   ;;  %v4501_v23 = vld [vmem:[%s5087_s18 + $0x264] ss:$16 sps:$4 sm:$0xff]   ;;  %v4504_v24 = vld [vmem:[%s5087_s18 + $0x26c] ss:$16 sps:$4 sm:$0xff]  }
  0x32   : > { %1286 = vmatprep.subr.bf16.mxu0 %v4427_v30  ;;  %1368 = vmatprep.subr.bf16.mxu1 %v4429_v31  ;;  %v4499_v25 = vld [vmem:[%s5087_s18 + $0x260] ss:$16 sps:$4 sm:$0xff]   ;;  %v4502_v26 = vld [vmem:[%s5087_s18 + $0x268] ss:$16 sps:$4 sm:$0xff]   ;;  %v4507_v27 = vld [vmem:[%s5087_s18 + $0x284] ss:$16 sps:$4 sm:$0xff]  }
  0x33   : > { %v4510_v28 = vld [vmem:[%s5087_s18 + $0x28c] ss:$16 sps:$4 sm:$0xff]   ;;  %v4505_v29 = vld [vmem:[%s5087_s18 + $0x280] ss:$16 sps:$4 sm:$0xff]   ;;  %v4508_v30 = vld [vmem:[%s5087_s18 + $0x288] ss:$16 sps:$4 sm:$0xff]  }
  0x34   : > { %v4513_v31 = vld [vmem:[%s5087_s18 + $0x2a4] ss:$16 sps:$4 sm:$0xff]   ;;  %v4559_v8 = vld [vmem:[%s5087_s18 + $0x3a0] ss:$16 sps:$4 sm:$0xff]   ;;  %p4314_p8 = scmp.ne.s32.totalorder %s4985_s24, 2 }
  0x35   : > { %1287 = vmatpush1.bf16.msra.mxu0 %v4431_v32  ;;  %1369 = vmatpush1.bf16.msra.mxu1 %v4432_v33  ;;  %v4516_v32 = vld [vmem:[%s5087_s18 + $0x2ac] ss:$16 sps:$4 sm:$0xff]   ;;  %v4511_v33 = vld [vmem:[%s5087_s18 + $0x2a0] ss:$16 sps:$4 sm:$0xff]   ;;  %v4537_v53 = vld [vmem:[%s5087_s18 + $0x324] ss:$16 sps:$4 sm:$0xff]  }
  0x36   : > { %1288 = vmatprep.subr.bf16.mxu0 %v4433_v34  ;;  %1370 = vmatprep.subr.bf16.mxu1 %v4435_v35  ;;  %v4514_v34 = vld [vmem:[%s5087_s18 + $0x2a8] ss:$16 sps:$4 sm:$0xff]   ;;  %v4519_v35 = vld [vmem:[%s5087_s18 + $0x2c4] ss:$16 sps:$4 sm:$0xff]   ;;  %v4919_v38 = vld [vmem:[%s5087_s18 + $0xb20] ss:$16 sps:$4 sm:$0xff]  }
  0x37   : > { %v4543_v57 = vld [vmem:[%s5087_s18 + $0x344] ss:$16 sps:$4 sm:$0xff]  }
  0x39   : > { %1289 = vmatpush1.bf16.msra.mxu0 %v4437_v36  ;;  %1371 = vmatpush1.bf16.msra.mxu1 %v4438_v37  ;;  %v4522_v36 = vld [vmem:[%s5087_s18 + $0x2cc] ss:$16 sps:$4 sm:$0xff]  }
  0x3a   : > { %1290 = vmatprep.subr.bf16.mxu0 %v4439_v39  ;;  %1372 = vmatprep.subr.bf16.mxu1 %v4441_v40  ;;  %v5205_v37 = vld [vmem:[%s5092_s21 + $0x8] sm:$0x77]  ;;  %v4517_v40 = vld [vmem:[%s5087_s18 + $0x2c0] ss:$16 sps:$4 sm:$0xff]  }
  0x3b   : > { %v623_v39 = vrot.slane %v5205_v37, %v614_v48  ;;  %v4531_v48 = vld [vmem:[%s5087_s18 + $0x304] ss:$16 sps:$4 sm:$0xff]  }
  0x3d   : > { %1291 = vmatpush1.bf16.msra.mxu0 %v4443_v41  ;;  %1373 = vmatpush1.bf16.msra.mxu1 %v4444_v43  ;;  %v4520_v41 = vld [vmem:[%s5087_s18 + $0x2c8] ss:$16 sps:$4 sm:$0xff]   ;;  %v631_v43 = vpack.c.bf16 %v623_v39, %v623_v39 }
  0x3e   : > { %1292 = vmatprep.subr.bf16.mxu0 %v4445_v44  ;;  %1374 = vmatprep.subr.bf16.mxu1 %v4447_v45  ;;  %v4525_v44 = vld [vmem:[%s5087_s18 + $0x2e4] ss:$16 sps:$4 sm:$0xff]   ;;  %v4528_v45 = vld [vmem:[%s5087_s18 + $0x2ec] ss:$16 sps:$4 sm:$0xff]   ;;  %v4598_v39 = vld [vmem:[%s5087_s18 + $0x468] ss:$16 sps:$4 sm:$0xff]  }
  0x41   : > { %1293 = vmatpush1.bf16.msra.mxu0 %v4449_v46  ;;  %1375 = vmatpush1.bf16.msra.mxu1 %v4450_v47  ;;  %v4523_v46 = vld [vmem:[%s5087_s18 + $0x2e0] ss:$16 sps:$4 sm:$0xff]   ;;  %v4526_v47 = vld [vmem:[%s5087_s18 + $0x2e8] ss:$16 sps:$4 sm:$0xff]  }
  0x42   : > { %1294 = vmatprep.subr.bf16.mxu0 %v4451_v49  ;;  %1376 = vmatprep.subr.bf16.mxu1 %v4453_v50  ;;  %v4534_v49 = vld [vmem:[%s5087_s18 + $0x30c] ss:$16 sps:$4 sm:$0xff]   ;;  %v4529_v50 = vld [vmem:[%s5087_s18 + $0x300] ss:$16 sps:$4 sm:$0xff]  }
  0x45   : > { %1295 = vmatpush1.bf16.msra.mxu0 %v4455_v52  ;;  %1377 = vmatpush1.bf16.msra.mxu1 %v4456_v54  ;;  %v4532_v52 = vld [vmem:[%s5087_s18 + $0x308] ss:$16 sps:$4 sm:$0xff]   ;;  %v4540_v54 = vld [vmem:[%s5087_s18 + $0x32c] ss:$16 sps:$4 sm:$0xff]  }
  0x46   : > { %1296 = vmatprep.subr.bf16.mxu0 %v4457_v55  ;;  %1378 = vmatprep.subr.bf16.mxu1 %v4459_v56  ;;  %v4535_v55 = vld [vmem:[%s5087_s18 + $0x320] ss:$16 sps:$4 sm:$0xff]   ;;  %v4538_v56 = vld [vmem:[%s5087_s18 + $0x328] ss:$16 sps:$4 sm:$0xff]  }
  0x49   : > { %1297 = vmatpush1.bf16.msra.mxu0 %v4461_v58  ;;  %1379 = vmatpush1.bf16.msra.mxu1 %v4462_v59  ;;  %v4546_v58 = vld [vmem:[%s5087_s18 + $0x34c] ss:$16 sps:$4 sm:$0xff]   ;;  %v4541_v59 = vld [vmem:[%s5087_s18 + $0x340] ss:$16 sps:$4 sm:$0xff]  }
  0x4a   : > { %1298 = vmatprep.subr.bf16.mxu0 %v4463_v60  ;;  %1380 = vmatprep.subr.bf16.mxu1 %v4465_v61  ;;  %v4544_v60 = vld [vmem:[%s5087_s18 + $0x348] ss:$16 sps:$4 sm:$0xff]   ;;  %v4549_v61 = vld [vmem:[%s5087_s18 + $0x364] ss:$16 sps:$4 sm:$0xff]  }
  0x4d   : > { %1299 = vmatpush1.bf16.msra.mxu0 %v4467_v62  ;;  %1381 = vmatpush1.bf16.msra.mxu1 %v4468_v63  ;;  %v4552_v62 = vld [vmem:[%s5087_s18 + $0x36c] ss:$16 sps:$4 sm:$0xff]   ;;  %v4547_v63 = vld [vmem:[%s5087_s18 + $0x360] ss:$16 sps:$4 sm:$0xff]  }
  0x4e   : > { %1300 = vmatprep.subr.bf16.mxu0 %v4469_v0  ;;  %1382 = vmatprep.subr.bf16.mxu1 %v4471_v1  ;;  %v4550_v0 = vld [vmem:[%s5087_s18 + $0x368] ss:$16 sps:$4 sm:$0xff]   ;;  %v4555_v1 = vld [vmem:[%s5087_s18 + $0x384] ss:$16 sps:$4 sm:$0xff]  }
  0x51   : > { %1301 = vmatpush1.bf16.msra.mxu0 %v4473_v2  ;;  %1383 = vmatpush1.bf16.msra.mxu1 %v4474_v4  ;;  %v4558_v2 = vld [vmem:[%s5087_s18 + $0x38c] ss:$16 sps:$4 sm:$0xff]   ;;  %v4553_v4 = vld [vmem:[%s5087_s18 + $0x380] ss:$16 sps:$4 sm:$0xff]  }
  0x52   : > { %1302 = vmatprep.subr.bf16.mxu0 %v4475_v5  ;;  %1384 = vmatprep.subr.bf16.mxu1 %v4477_v6  ;;  %v4556_v5 = vld [vmem:[%s5087_s18 + $0x388] ss:$16 sps:$4 sm:$0xff]   ;;  %v4561_v6 = vld [vmem:[%s5087_s18 + $0x3a4] ss:$16 sps:$4 sm:$0xff]  }
  0x55   : > { %1303 = vmatpush1.bf16.msra.mxu0 %v4479_v7  ;;  %1385 = vmatpush1.bf16.msra.mxu1 %v4480_v9  ;;  %v4564_v7 = vld [vmem:[%s5087_s18 + $0x3ac] ss:$16 sps:$4 sm:$0xff]   ;;  %v4562_v9 = vld [vmem:[%s5087_s18 + $0x3a8] ss:$16 sps:$4 sm:$0xff]  }
  0x56   : > { %1313 = vmatprep.subr.bf16.mxu0 %v4483_v10  ;;  %1395 = vmatprep.subr.bf16.mxu1 %v4486_v11  ;;  %v4567_v10 = vld [vmem:[%s5087_s18 + $0x3c4] ss:$16 sps:$4 sm:$0xff]   ;;  %v4570_v11 = vld [vmem:[%s5087_s18 + $0x3cc] ss:$16 sps:$4 sm:$0xff]  }
  0x58   : > { %1305 = vmatmul.mubr.bf16.vlgmr.msra.gmra.mrb[0].mxu0 %v628_v13  ;;  %1387 = vmatmul.mubr.bf16.vlgmr.msra.gmra.mrb[0].mxu1 %v628_v13  ;;  %v4565_v13 = vld [vmem:[%s5087_s18 + $0x3c0] ss:$16 sps:$4 sm:$0xff]  }
  0x59   : > { %1314 = vmatpush1.bf16.msra.mxu0 %v4481_v12  ;;  %1396 = vmatpush1.bf16.msra.mxu1 %v4484_v14  ;;  %v1607_v12 = vsub.s32 5, %v5140_v42  ;;  %v4568_v14 = vld [vmem:[%s5087_s18 + $0x3c8] ss:$16 sps:$4 sm:$0xff]  }
  0x5a   : > { %1315 = vmatprep.subr.bf16.mxu0 %v4489_v15  ;;  %1397 = vmatprep.subr.bf16.mxu1 %v4492_v16  ;;  %v4573_v15 = vld [vmem:[%s5087_s18 + $0x3e4] ss:$16 sps:$4 sm:$0xff]   ;;  %v4576_v16 = vld [vmem:[%s5087_s18 + $0x3ec] ss:$16 sps:$4 sm:$0xff]  }
  0x5b   : > { %1345 = vmatprep.mubr.bf16.mxu0 %v631_v43  ;;  %1427 = vmatprep.mubr.bf16.mxu1 %v631_v43  ;;  %v4601_v43 = vld [vmem:[%s5087_s18 + $0x480] ss:$16 sps:$4 sm:$0xff]  }
  0x5d   : > { %1316 = vmatpush1.bf16.msra.mxu0 %v4487_v17  ;;  %1398 = vmatpush1.bf16.msra.mxu1 %v4490_v18  ;;  %v1608_v17 = vrot.slane %v5151_v51, %v1607_v12  ;;  %v619_v18 = vrot.slane %v5205_v37, %v610_v3  ;;  %v4577_v51 = vld [vmem:[%s5087_s18 + $0x400] ss:$16 sps:$4 sm:$0xff]   ;;  %v4580_v3 = vld [vmem:[%s5087_s18 + $0x408] ss:$16 sps:$4 sm:$0xff]  }
  0x5e   : > { %1317 = vmatprep.subr.bf16.mxu0 %v4495_v19  ;;  %1399 = vmatprep.subr.bf16.mxu1 %v4498_v20  ;;  %v4571_v19 = vld [vmem:[%s5087_s18 + $0x3e0] ss:$16 sps:$4 sm:$0xff]   ;;  %v4574_v20 = vld [vmem:[%s5087_s18 + $0x3e8] ss:$16 sps:$4 sm:$0xff]  }
  0x61   : > { %1318 = vmatpush1.bf16.msra.mxu0 %v4493_v21  ;;  %1400 = vmatpush1.bf16.msra.mxu1 %v4496_v22  ;;  %v4579_v21 = vld [vmem:[%s5087_s18 + $0x404] ss:$16 sps:$4 sm:$0xff]   ;;  %v4582_v22 = vld [vmem:[%s5087_s18 + $0x40c] ss:$16 sps:$4 sm:$0xff]  }
  0x62   : > { %1319 = vmatprep.subr.bf16.mxu0 %v4501_v23  ;;  %1401 = vmatprep.subr.bf16.mxu1 %v4504_v24  ;;  %v1622_v23 = vpack.c.bf16 %v1608_v17, %v1608_v17  ;;  %v630_v24 = vpack.c.bf16 %v619_v18, %v619_v18  ;;  %v4660_v17 = vld [vmem:[%s5087_s18 + $0x5ac] ss:$16 sps:$4 sm:$0xff]   ;;  %v1603_v18 = vsub.s32 1, %v5140_v42 }
  0x65   : > { %1320 = vmatpush1.bf16.msra.mxu0 %v4499_v25  ;;  %1402 = vmatpush1.bf16.msra.mxu1 %v4502_v26  ;;  %v4585_v25 = vld [vmem:[%s5087_s18 + $0x424] ss:$16 sps:$4 sm:$0xff]   ;;  %v4588_v26 = vld [vmem:[%s5087_s18 + $0x42c] ss:$16 sps:$4 sm:$0xff]  }
  0x66   : > { %1321 = vmatprep.subr.bf16.mxu0 %v4507_v27  ;;  %1403 = vmatprep.subr.bf16.mxu1 %v4510_v28  ;;  %v1629_v27 = vshrl.u32 %v1622_v23, 16  ;;  %v4583_v28 = vld [vmem:[%s5087_s18 + $0x420] ss:$16 sps:$4 sm:$0xff]  }
  0x67   : > { %v5315_v23 = vld [vmem:[%s5092_s21] sm:$0x77] }
  0x69   : > { %1322 = vmatpush1.bf16.msra.mxu0 %v4505_v29  ;;  %1404 = vmatpush1.bf16.msra.mxu1 %v4508_v30  ;;  %v4586_v29 = vld [vmem:[%s5087_s18 + $0x428] ss:$16 sps:$4 sm:$0xff]   ;;  %v4591_v30 = vld [vmem:[%s5087_s18 + $0x444] ss:$16 sps:$4 sm:$0xff]  }
  0x6a   : > { %1323 = vmatprep.subr.bf16.mxu0 %v4513_v31  ;;  %1405 = vmatprep.subr.bf16.mxu1 %v4516_v32  ;;  %v4594_v31 = vld [vmem:[%s5087_s18 + $0x44c] ss:$16 sps:$4 sm:$0xff]   ;;  %v4589_v32 = vld [vmem:[%s5087_s18 + $0x440] ss:$16 sps:$4 sm:$0xff]  }
  0x6d   : > { %1324 = vmatpush1.bf16.msra.mxu0 %v4511_v33  ;;  %1406 = vmatpush1.bf16.msra.mxu1 %v4514_v34  ;;  %v4592_v33 = vld [vmem:[%s5087_s18 + $0x448] ss:$16 sps:$4 sm:$0xff]   ;;  %v4597_v34 = vld [vmem:[%s5087_s18 + $0x464] ss:$16 sps:$4 sm:$0xff]  }
  0x6e   : > { %1325 = vmatprep.subr.bf16.mxu0 %v4519_v35  ;;  %1407 = vmatprep.subr.bf16.mxu1 %v4522_v36  ;;  %v4600_v35 = vld [vmem:[%s5087_s18 + $0x46c] ss:$16 sps:$4 sm:$0xff]   ;;  %v4595_v36 = vld [vmem:[%s5087_s18 + $0x460] ss:$16 sps:$4 sm:$0xff]  }
  0x71   : > { %1326 = vmatpush1.bf16.msra.mxu0 %v4517_v40  ;;  %1408 = vmatpush1.bf16.msra.mxu1 %v4520_v41  ;;  %v4603_v40 = vld [vmem:[%s5087_s18 + $0x484] ss:$16 sps:$4 sm:$0xff]   ;;  %v4606_v41 = vld [vmem:[%s5087_s18 + $0x48c] ss:$16 sps:$4 sm:$0xff]  }
  0x72   : > { %1327 = vmatprep.subr.bf16.mxu0 %v4525_v44  ;;  %1409 = vmatprep.subr.bf16.mxu1 %v4528_v45  ;;  %v4604_v44 = vld [vmem:[%s5087_s18 + $0x488] ss:$16 sps:$4 sm:$0xff]   ;;  %v4609_v45 = vld [vmem:[%s5087_s18 + $0x4a4] ss:$16 sps:$4 sm:$0xff]  }
  0x75   : > { %1328 = vmatpush1.bf16.msra.mxu0 %v4523_v46  ;;  %1410 = vmatpush1.bf16.msra.mxu1 %v4526_v47  ;;  %v4612_v46 = vld [vmem:[%s5087_s18 + $0x4ac] ss:$16 sps:$4 sm:$0xff]   ;;  %v4607_v47 = vld [vmem:[%s5087_s18 + $0x4a0] ss:$16 sps:$4 sm:$0xff]  }
  0x76   : > { %1329 = vmatprep.subr.bf16.mxu0 %v4531_v48  ;;  %1411 = vmatprep.subr.bf16.mxu1 %v4534_v49  ;;  %v4610_v48 = vld [vmem:[%s5087_s18 + $0x4a8] ss:$16 sps:$4 sm:$0xff]   ;;  %v4615_v49 = vld [vmem:[%s5087_s18 + $0x4c4] ss:$16 sps:$4 sm:$0xff]  }
  0x79   : > { %1330 = vmatpush1.bf16.msra.mxu0 %v4529_v50  ;;  %1412 = vmatpush1.bf16.msra.mxu1 %v4532_v52  ;;  %v4618_v50 = vld [vmem:[%s5087_s18 + $0x4cc] ss:$16 sps:$4 sm:$0xff]   ;;  %v4613_v52 = vld [vmem:[%s5087_s18 + $0x4c0] ss:$16 sps:$4 sm:$0xff]  }
  0x7a   : > { %1331 = vmatprep.subr.bf16.mxu0 %v4537_v53  ;;  %1413 = vmatprep.subr.bf16.mxu1 %v4540_v54  ;;  %v4616_v53 = vld [vmem:[%s5087_s18 + $0x4c8] ss:$16 sps:$4 sm:$0xff]   ;;  %v4621_v54 = vld [vmem:[%s5087_s18 + $0x4e4] ss:$16 sps:$4 sm:$0xff]  }
  0x7d   : > { %1332 = vmatpush1.bf16.msra.mxu0 %v4535_v55  ;;  %1414 = vmatpush1.bf16.msra.mxu1 %v4538_v56  ;;  %v4624_v55 = vld [vmem:[%s5087_s18 + $0x4ec] ss:$16 sps:$4 sm:$0xff]   ;;  %v4619_v56 = vld [vmem:[%s5087_s18 + $0x4e0] ss:$16 sps:$4 sm:$0xff]  }
  0x7e   : > { %1333 = vmatprep.subr.bf16.mxu0 %v4543_v57  ;;  %1415 = vmatprep.subr.bf16.mxu1 %v4546_v58  ;;  %v4622_v57 = vld [vmem:[%s5087_s18 + $0x4e8] ss:$16 sps:$4 sm:$0xff]   ;;  %v4627_v58 = vld [vmem:[%s5087_s18 + $0x504] ss:$16 sps:$4 sm:$0xff]  }
  0x81   : > { %1334 = vmatpush1.bf16.msra.mxu0 %v4541_v59  ;;  %1416 = vmatpush1.bf16.msra.mxu1 %v4544_v60  ;;  %v4630_v59 = vld [vmem:[%s5087_s18 + $0x50c] ss:$16 sps:$4 sm:$0xff]   ;;  %v4625_v60 = vld [vmem:[%s5087_s18 + $0x500] ss:$16 sps:$4 sm:$0xff]  }
  0x82   : > { %1335 = vmatprep.subr.bf16.mxu0 %v4549_v61  ;;  %1417 = vmatprep.subr.bf16.mxu1 %v4552_v62  ;;  %v4628_v61 = vld [vmem:[%s5087_s18 + $0x508] ss:$16 sps:$4 sm:$0xff]   ;;  %v4633_v62 = vld [vmem:[%s5087_s18 + $0x524] ss:$16 sps:$4 sm:$0xff]  }
  0x85   : > { %1336 = vmatpush1.bf16.msra.mxu0 %v4547_v63  ;;  %1418 = vmatpush1.bf16.msra.mxu1 %v4550_v0  ;;  %v4636_v63 = vld [vmem:[%s5087_s18 + $0x52c] ss:$16 sps:$4 sm:$0xff]   ;;  %v4631_v0 = vld [vmem:[%s5087_s18 + $0x520] ss:$16 sps:$4 sm:$0xff]  }
  0x86   : > { %1337 = vmatprep.subr.bf16.mxu0 %v4555_v1  ;;  %1419 = vmatprep.subr.bf16.mxu1 %v4558_v2  ;;  %v4634_v1 = vld [vmem:[%s5087_s18 + $0x528] ss:$16 sps:$4 sm:$0xff]   ;;  %v4639_v2 = vld [vmem:[%s5087_s18 + $0x544] ss:$16 sps:$4 sm:$0xff]  }
  0x89   : > { %1338 = vmatpush1.bf16.msra.mxu0 %v4553_v4  ;;  %1420 = vmatpush1.bf16.msra.mxu1 %v4556_v5  ;;  %v4642_v4 = vld [vmem:[%s5087_s18 + $0x54c] ss:$16 sps:$4 sm:$0xff]   ;;  %v4637_v5 = vld [vmem:[%s5087_s18 + $0x540] ss:$16 sps:$4 sm:$0xff]  }
  0x8a   : > { %1339 = vmatprep.subr.bf16.mxu0 %v4561_v6  ;;  %1421 = vmatprep.subr.bf16.mxu1 %v4564_v7  ;;  %v4640_v6 = vld [vmem:[%s5087_s18 + $0x548] ss:$16 sps:$4 sm:$0xff]   ;;  %v4645_v7 = vld [vmem:[%s5087_s18 + $0x564] ss:$16 sps:$4 sm:$0xff]  }
  0x8d   : > { %1340 = vmatpush1.bf16.msra.mxu0 %v4559_v8  ;;  %1422 = vmatpush1.bf16.msra.mxu1 %v4562_v9  ;;  %v4648_v8 = vld [vmem:[%s5087_s18 + $0x56c] ss:$16 sps:$4 sm:$0xff]   ;;  %v4643_v9 = vld [vmem:[%s5087_s18 + $0x560] ss:$16 sps:$4 sm:$0xff]  }
  0x8e   : > { %1341 = vmatprep.subr.bf16.mxu0 %v4567_v10  ;;  %1423 = vmatprep.subr.bf16.mxu1 %v4570_v11  ;;  %v4646_v10 = vld [vmem:[%s5087_s18 + $0x568] ss:$16 sps:$4 sm:$0xff]   ;;  %v4651_v11 = vld [vmem:[%s5087_s18 + $0x584] ss:$16 sps:$4 sm:$0xff]  }
  0x91   : > { %1342 = vmatpush1.bf16.msra.mxu0 %v4565_v13  ;;  %1424 = vmatpush1.bf16.msra.mxu1 %v4568_v14  ;;  %v4654_v13 = vld [vmem:[%s5087_s18 + $0x58c] ss:$16 sps:$4 sm:$0xff]   ;;  %v4649_v14 = vld [vmem:[%s5087_s18 + $0x580] ss:$16 sps:$4 sm:$0xff]  }
  0x92   : > { %1343 = vmatprep.subr.bf16.mxu0 %v4573_v15  ;;  %1425 = vmatprep.subr.bf16.mxu1 %v4576_v16  ;;  %v4652_v15 = vld [vmem:[%s5087_s18 + $0x588] ss:$16 sps:$4 sm:$0xff]   ;;  %v4657_v16 = vld [vmem:[%s5087_s18 + $0x5a4] ss:$16 sps:$4 sm:$0xff]  }
  0x95   : > { %1344 = vmatpush1.bf16.msra.mxu0 %v4571_v19  ;;  %1426 = vmatpush1.bf16.msra.mxu1 %v4574_v20  ;;  %v4655_v19 = vld [vmem:[%s5087_s18 + $0x5a0] ss:$16 sps:$4 sm:$0xff]   ;;  %v4658_v20 = vld [vmem:[%s5087_s18 + $0x5a8] ss:$16 sps:$4 sm:$0xff]  }
  0x96   : > { %2281 = vmatprep.subr.bf16.mxu0 %v4579_v21  ;;  %2363 = vmatprep.subr.bf16.mxu1 %v4582_v22  ;;  %v4663_v21 = vld [vmem:[%s5087_s18 + $0x5c4] ss:$16 sps:$4 sm:$0xff]   ;;  %v4666_v22 = vld [vmem:[%s5087_s18 + $0x5cc] ss:$16 sps:$4 sm:$0xff]  }
  0x98   : > { %1346 = vmatmul.mubr.bf16.vlgmr.msra.gmra.mrb[0].mxu0 %v630_v24  ;;  %1428 = vmatmul.mubr.bf16.vlgmr.msra.gmra.mrb[0].mxu1 %v630_v24  ;;  %v1604_v24 = vrot.slane %v5315_v23, %v1603_v18 }
  0x99   : > { %2282 = vmatpush1.bf16.msra.mxu0 %v4577_v51  ;;  %2364 = vmatpush1.bf16.msra.mxu1 %v4580_v3  ;;  %v4661_v51 = vld [vmem:[%s5087_s18 + $0x5c0] ss:$16 sps:$4 sm:$0xff]   ;;  %v4664_v3 = vld [vmem:[%s5087_s18 + $0x5c8] ss:$16 sps:$4 sm:$0xff]  }
  0x9a   : > { %2283 = vmatprep.subr.bf16.mxu0 %v4585_v25  ;;  %2365 = vmatprep.subr.bf16.mxu1 %v4588_v26  ;;  %v4669_v25 = vld [vmem:[%s5087_s18 + $0x5e4] ss:$16 sps:$4 sm:$0xff]   ;;  %v4672_v26 = vld [vmem:[%s5087_s18 + $0x5ec] ss:$16 sps:$4 sm:$0xff]  }
  0x9b   : > { %2313 = vmatprep.mubr.bf16.mxu0 %v1629_v27  ;;  %2395 = vmatprep.mubr.bf16.mxu1 %v1629_v27  ;;  %v1616_v27 = vrot.slane %v5205_v37, %v1607_v12  ;;  %v4676_v37 = vld [vmem:[%s5087_s18 + $0x608] ss:$16 sps:$4 sm:$0xff]   ;;  %v4681_v12 = vld [vmem:[%s5087_s18 + $0x624] ss:$16 sps:$4 sm:$0xff]  }
  0x9d   : > { %2284 = vmatpush1.bf16.msra.mxu0 %v4583_v28  ;;  %2366 = vmatpush1.bf16.msra.mxu1 %v4586_v29  ;;  %v1621_v28 = vpack.c.bf16 %v1604_v24, %v1604_v24  ;;  %v4667_v29 = vld [vmem:[%s5087_s18 + $0x5e0] ss:$16 sps:$4 sm:$0xff]   ;;  %v4747_v24 = vld [vmem:[%s5087_s18 + $0x784] ss:$16 sps:$4 sm:$0xff]  }
  0x9e   : > { %2285 = vmatprep.subr.bf16.mxu0 %v4591_v30  ;;  %2367 = vmatprep.subr.bf16.mxu1 %v4594_v31  ;;  %v4670_v30 = vld [vmem:[%s5087_s18 + $0x5e8] ss:$16 sps:$4 sm:$0xff]   ;;  %v4675_v31 = vld [vmem:[%s5087_s18 + $0x604] ss:$16 sps:$4 sm:$0xff]  }
  0xa1   : > { %2286 = vmatpush1.bf16.msra.mxu0 %v4589_v32  ;;  %2368 = vmatpush1.bf16.msra.mxu1 %v4592_v33  ;;  %v4678_v32 = vld [vmem:[%s5087_s18 + $0x60c] ss:$16 sps:$4 sm:$0xff]   ;;  %v1624_v33 = vpack.c.bf16 %v1616_v27, %v1616_v27 }
  0xa2   : > { %2287 = vmatprep.subr.bf16.mxu0 %v4597_v34  ;;  %2369 = vmatprep.subr.bf16.mxu1 %v4600_v35  ;;  %v1626_v34 = vshrl.u32 %v1621_v28, 16  ;;  %v4673_v35 = vld [vmem:[%s5087_s18 + $0x600] ss:$16 sps:$4 sm:$0xff]   ;;  %v4756_v27 = vld [vmem:[%s5087_s18 + $0x7ac] ss:$16 sps:$4 sm:$0xff]  }
  0xa3   : > { %v4751_v28 = vld [vmem:[%s5087_s18 + $0x7a0] ss:$16 sps:$4 sm:$0xff]  }
  0xa5   : > { %2288 = vmatpush1.bf16.msra.mxu0 %v4595_v36  ;;  %2370 = vmatpush1.bf16.msra.mxu1 %v4598_v39  ;;  %v4684_v36 = vld [vmem:[%s5087_s18 + $0x62c] ss:$16 sps:$4 sm:$0xff]   ;;  %v1635_v39 = vshrl.u32 %v1624_v33, 16  ;;  %v4757_v33 = vld [vmem:[%s5087_s18 + $0x7c0] ss:$16 sps:$4 sm:$0xff]  }
  0xa6   : > { %2289 = vmatprep.subr.bf16.mxu0 %v4603_v40  ;;  %2371 = vmatprep.subr.bf16.mxu1 %v4606_v41  ;;  %v4679_v40 = vld [vmem:[%s5087_s18 + $0x620] ss:$16 sps:$4 sm:$0xff]   ;;  %v4682_v41 = vld [vmem:[%s5087_s18 + $0x628] ss:$16 sps:$4 sm:$0xff]  }
  0xa9   : > { %2290 = vmatpush1.bf16.msra.mxu0 %v4601_v43  ;;  %2372 = vmatpush1.bf16.msra.mxu1 %v4604_v44  ;;  %v4687_v43 = vld [vmem:[%s5087_s18 + $0x644] ss:$16 sps:$4 sm:$0xff]   ;;  %v4690_v44 = vld [vmem:[%s5087_s18 + $0x64c] ss:$16 sps:$4 sm:$0xff]  }
  0xaa   : > { %2291 = vmatprep.subr.bf16.mxu0 %v4609_v45  ;;  %2373 = vmatprep.subr.bf16.mxu1 %v4612_v46  ;;  %v4685_v45 = vld [vmem:[%s5087_s18 + $0x640] ss:$16 sps:$4 sm:$0xff]   ;;  %v4688_v46 = vld [vmem:[%s5087_s18 + $0x648] ss:$16 sps:$4 sm:$0xff]  }
  0xad   : > { %2292 = vmatpush1.bf16.msra.mxu0 %v4607_v47  ;;  %2374 = vmatpush1.bf16.msra.mxu1 %v4610_v48  ;;  %v4693_v47 = vld [vmem:[%s5087_s18 + $0x664] ss:$16 sps:$4 sm:$0xff]   ;;  %v4696_v48 = vld [vmem:[%s5087_s18 + $0x66c] ss:$16 sps:$4 sm:$0xff]  }
  0xae   : > { %2293 = vmatprep.subr.bf16.mxu0 %v4615_v49  ;;  %2375 = vmatprep.subr.bf16.mxu1 %v4618_v50  ;;  %v4691_v49 = vld [vmem:[%s5087_s18 + $0x660] ss:$16 sps:$4 sm:$0xff]   ;;  %v4694_v50 = vld [vmem:[%s5087_s18 + $0x668] ss:$16 sps:$4 sm:$0xff]  }
  0xb1   : > { %2294 = vmatpush1.bf16.msra.mxu0 %v4613_v52  ;;  %2376 = vmatpush1.bf16.msra.mxu1 %v4616_v53  ;;  %v4699_v52 = vld [vmem:[%s5087_s18 + $0x684] ss:$16 sps:$4 sm:$0xff]   ;;  %v4702_v53 = vld [vmem:[%s5087_s18 + $0x68c] ss:$16 sps:$4 sm:$0xff]  }
  0xb2   : > { %2295 = vmatprep.subr.bf16.mxu0 %v4621_v54  ;;  %2377 = vmatprep.subr.bf16.mxu1 %v4624_v55  ;;  %v4697_v54 = vld [vmem:[%s5087_s18 + $0x680] ss:$16 sps:$4 sm:$0xff]   ;;  %v4700_v55 = vld [vmem:[%s5087_s18 + $0x688] ss:$16 sps:$4 sm:$0xff]  }
  0xb5   : > { %2296 = vmatpush1.bf16.msra.mxu0 %v4619_v56  ;;  %2378 = vmatpush1.bf16.msra.mxu1 %v4622_v57  ;;  %v4705_v56 = vld [vmem:[%s5087_s18 + $0x6a4] ss:$16 sps:$4 sm:$0xff]   ;;  %v4708_v57 = vld [vmem:[%s5087_s18 + $0x6ac] ss:$16 sps:$4 sm:$0xff]  }
  0xb6   : > { %2297 = vmatprep.subr.bf16.mxu0 %v4627_v58  ;;  %2379 = vmatprep.subr.bf16.mxu1 %v4630_v59  ;;  %v4703_v58 = vld [vmem:[%s5087_s18 + $0x6a0] ss:$16 sps:$4 sm:$0xff]   ;;  %v4706_v59 = vld [vmem:[%s5087_s18 + $0x6a8] ss:$16 sps:$4 sm:$0xff]  }
  0xb9   : > { %2298 = vmatpush1.bf16.msra.mxu0 %v4625_v60  ;;  %2380 = vmatpush1.bf16.msra.mxu1 %v4628_v61  ;;  %v4711_v60 = vld [vmem:[%s5087_s18 + $0x6c4] ss:$16 sps:$4 sm:$0xff]   ;;  %v4714_v61 = vld [vmem:[%s5087_s18 + $0x6cc] ss:$16 sps:$4 sm:$0xff]  }
  0xba   : > { %2299 = vmatprep.subr.bf16.mxu0 %v4633_v62  ;;  %2381 = vmatprep.subr.bf16.mxu1 %v4636_v63  ;;  %v4709_v62 = vld [vmem:[%s5087_s18 + $0x6c0] ss:$16 sps:$4 sm:$0xff]   ;;  %v4712_v63 = vld [vmem:[%s5087_s18 + $0x6c8] ss:$16 sps:$4 sm:$0xff]  }
  0xbd   : > { %2300 = vmatpush1.bf16.msra.mxu0 %v4631_v0  ;;  %2382 = vmatpush1.bf16.msra.mxu1 %v4634_v1  ;;  %v4717_v0 = vld [vmem:[%s5087_s18 + $0x6e4] ss:$16 sps:$4 sm:$0xff]   ;;  %v4720_v1 = vld [vmem:[%s5087_s18 + $0x6ec] ss:$16 sps:$4 sm:$0xff]  }
  0xbe   : > { %2301 = vmatprep.subr.bf16.mxu0 %v4639_v2  ;;  %2383 = vmatprep.subr.bf16.mxu1 %v4642_v4  ;;  %v4715_v2 = vld [vmem:[%s5087_s18 + $0x6e0] ss:$16 sps:$4 sm:$0xff]   ;;  %v4718_v4 = vld [vmem:[%s5087_s18 + $0x6e8] ss:$16 sps:$4 sm:$0xff]  }
  0xc1   : > { %2302 = vmatpush1.bf16.msra.mxu0 %v4637_v5  ;;  %2384 = vmatpush1.bf16.msra.mxu1 %v4640_v6  ;;  %v4723_v5 = vld [vmem:[%s5087_s18 + $0x704] ss:$16 sps:$4 sm:$0xff]   ;;  %v4726_v6 = vld [vmem:[%s5087_s18 + $0x70c] ss:$16 sps:$4 sm:$0xff]  }
  0xc2   : > { %2303 = vmatprep.subr.bf16.mxu0 %v4645_v7  ;;  %2385 = vmatprep.subr.bf16.mxu1 %v4648_v8  ;;  %v4721_v7 = vld [vmem:[%s5087_s18 + $0x700] ss:$16 sps:$4 sm:$0xff]   ;;  %v4724_v8 = vld [vmem:[%s5087_s18 + $0x708] ss:$16 sps:$4 sm:$0xff]  }
  0xc5   : > { %2304 = vmatpush1.bf16.msra.mxu0 %v4643_v9  ;;  %2386 = vmatpush1.bf16.msra.mxu1 %v4646_v10  ;;  %v4729_v9 = vld [vmem:[%s5087_s18 + $0x724] ss:$16 sps:$4 sm:$0xff]   ;;  %v4732_v10 = vld [vmem:[%s5087_s18 + $0x72c] ss:$16 sps:$4 sm:$0xff]  }
  0xc6   : > { %2305 = vmatprep.subr.bf16.mxu0 %v4651_v11  ;;  %2387 = vmatprep.subr.bf16.mxu1 %v4654_v13  ;;  %v4727_v11 = vld [vmem:[%s5087_s18 + $0x720] ss:$16 sps:$4 sm:$0xff]   ;;  %v4730_v13 = vld [vmem:[%s5087_s18 + $0x728] ss:$16 sps:$4 sm:$0xff]  }
  0xc9   : > { %2306 = vmatpush1.bf16.msra.mxu0 %v4649_v14  ;;  %2388 = vmatpush1.bf16.msra.mxu1 %v4652_v15  ;;  %v4735_v14 = vld [vmem:[%s5087_s18 + $0x744] ss:$16 sps:$4 sm:$0xff]   ;;  %v4738_v15 = vld [vmem:[%s5087_s18 + $0x74c] ss:$16 sps:$4 sm:$0xff]  }
  0xca   : > { %2307 = vmatprep.subr.bf16.mxu0 %v4657_v16  ;;  %2389 = vmatprep.subr.bf16.mxu1 %v4660_v17  ;;  %v4733_v16 = vld [vmem:[%s5087_s18 + $0x740] ss:$16 sps:$4 sm:$0xff]   ;;  %v4736_v17 = vld [vmem:[%s5087_s18 + $0x748] ss:$16 sps:$4 sm:$0xff]  }
  0xcd   : > { %2308 = vmatpush1.bf16.msra.mxu0 %v4655_v19  ;;  %2390 = vmatpush1.bf16.msra.mxu1 %v4658_v20  ;;  %v4741_v19 = vld [vmem:[%s5087_s18 + $0x764] ss:$16 sps:$4 sm:$0xff]   ;;  %v4744_v20 = vld [vmem:[%s5087_s18 + $0x76c] ss:$16 sps:$4 sm:$0xff]  }
  0xce   : > { %2309 = vmatprep.subr.bf16.mxu0 %v4663_v21  ;;  %2391 = vmatprep.subr.bf16.mxu1 %v4666_v22  ;;  %v4739_v21 = vld [vmem:[%s5087_s18 + $0x760] ss:$16 sps:$4 sm:$0xff]   ;;  %v4742_v22 = vld [vmem:[%s5087_s18 + $0x768] ss:$16 sps:$4 sm:$0xff]  }
  0xd1   : > { %2310 = vmatpush1.bf16.msra.mxu0 %v4661_v51  ;;  %2392 = vmatpush1.bf16.msra.mxu1 %v4664_v3  ;;  %v4750_v51 = vld [vmem:[%s5087_s18 + $0x78c] ss:$16 sps:$4 sm:$0xff]   ;;  %v4745_v3 = vld [vmem:[%s5087_s18 + $0x780] ss:$16 sps:$4 sm:$0xff]  }
  0xd2   : > { %2311 = vmatprep.subr.bf16.mxu0 %v4669_v25  ;;  %2393 = vmatprep.subr.bf16.mxu1 %v4672_v26  ;;  %v4748_v25 = vld [vmem:[%s5087_s18 + $0x788] ss:$16 sps:$4 sm:$0xff]   ;;  %v4753_v26 = vld [vmem:[%s5087_s18 + $0x7a4] ss:$16 sps:$4 sm:$0xff]  }
  0xd5   : > { %2312 = vmatpush1.bf16.msra.mxu0 %v4667_v29  ;;  %2394 = vmatpush1.bf16.msra.mxu1 %v4670_v30  ;;  %v4754_v29 = vld [vmem:[%s5087_s18 + $0x7a8] ss:$16 sps:$4 sm:$0xff]   ;;  %v4759_v30 = vld [vmem:[%s5087_s18 + $0x7c4] ss:$16 sps:$4 sm:$0xff]  }
  0xd6   : > { %2322 = vmatprep.subr.bf16.mxu0 %v4675_v31  ;;  %2404 = vmatprep.subr.bf16.mxu1 %v4678_v32  ;;  %v4762_v31 = vld [vmem:[%s5087_s18 + $0x7cc] ss:$16 sps:$4 sm:$0xff]   ;;  %v2612_v32 = vsub.s32 6, %v5140_v42 }
  0xd8   : > { %2314 = vmatmul.mubr.bf16.vlgmr.msra.gmra.mrb[4].mxu0 %v1626_v34  ;;  %2396 = vmatmul.mubr.bf16.vlgmr.msra.gmra.mrb[4].mxu1 %v1626_v34  ;;  %v5390_v34 = vld [vmem:[%s5092_s21 + $0x8] sm:$0x77] }
  0xd9   : > { %2323 = vmatpush1.bf16.msra.mxu0 %v4673_v35  ;;  %2405 = vmatpush1.bf16.msra.mxu1 %v4676_v37  ;;  %v1612_v35 = vrot.slane %v5390_v34, %v1603_v18  ;;  %v4760_v37 = vld [vmem:[%s5087_s18 + $0x7c8] ss:$16 sps:$4 sm:$0xff]  }
  0xda   : > { %2324 = vmatprep.subr.bf16.mxu0 %v4681_v12  ;;  %2406 = vmatprep.subr.bf16.mxu1 %v4684_v36  ;;  %v4765_v12 = vld [vmem:[%s5087_s18 + $0x7e4] ss:$16 sps:$4 sm:$0xff]   ;;  %v4768_v36 = vld [vmem:[%s5087_s18 + $0x7ec] ss:$16 sps:$4 sm:$0xff]   ;;  %v4766_v18 = vld [vmem:[%s5087_s18 + $0x7e8] ss:$16 sps:$4 sm:$0xff]  }
  0xdb   : > { %2354 = vmatprep.mubr.bf16.mxu0 %v1635_v39  ;;  %2436 = vmatprep.mubr.bf16.mxu1 %v1635_v39  ;;  %v2613_v39 = vrot.slane %v5315_v23, %v2612_v32 }
  0xdd   : > { %2325 = vmatpush1.bf16.msra.mxu0 %v4679_v40  ;;  %2407 = vmatpush1.bf16.msra.mxu1 %v4682_v41  ;;  %v4763_v40 = vld [vmem:[%s5087_s18 + $0x7e0] ss:$16 sps:$4 sm:$0xff]   ;;  %v1623_v41 = vpack.c.bf16 %v1612_v35, %v1612_v35  ;;  %v4843_v35 = vld [vmem:[%s5087_s18 + $0x984] ss:$16 sps:$4 sm:$0xff]  }
  0xde   : > { %2326 = vmatprep.subr.bf16.mxu0 %v4687_v43  ;;  %2408 = vmatprep.subr.bf16.mxu1 %v4690_v44  ;;  %v4771_v43 = vld [vmem:[%s5087_s18 + $0x804] ss:$16 sps:$4 sm:$0xff]   ;;  %v4774_v44 = vld [vmem:[%s5087_s18 + $0x80c] ss:$16 sps:$4 sm:$0xff]  }
  0xe1   : > { %2327 = vmatpush1.bf16.msra.mxu0 %v4685_v45  ;;  %2409 = vmatpush1.bf16.msra.mxu1 %v4688_v46  ;;  %v2627_v45 = vpack.c.bf16 %v2613_v39, %v2613_v39  ;;  %v1632_v46 = vshrl.u32 %v1623_v41, 16  ;;  %v4849_v39 = vld [vmem:[%s5087_s18 + $0x9a4] ss:$16 sps:$4 sm:$0xff]   ;;  %v2608_v41 = vsub.s32 2, %v5140_v42 }
  0xe2   : > { %2328 = vmatprep.subr.bf16.mxu0 %v4693_v47  ;;  %2410 = vmatprep.subr.bf16.mxu1 %v4696_v48  ;;  %v4769_v47 = vld [vmem:[%s5087_s18 + $0x800] ss:$16 sps:$4 sm:$0xff]   ;;  %v4772_v48 = vld [vmem:[%s5087_s18 + $0x808] ss:$16 sps:$4 sm:$0xff]  }
  0xe5   : > { %2329 = vmatpush1.bf16.msra.mxu0 %v4691_v49  ;;  %2411 = vmatpush1.bf16.msra.mxu1 %v4694_v50  ;;  %v4777_v49 = vld [vmem:[%s5087_s18 + $0x824] ss:$16 sps:$4 sm:$0xff]   ;;  %v4780_v50 = vld [vmem:[%s5087_s18 + $0x82c] ss:$16 sps:$4 sm:$0xff]  }
  0xe6   : > { %2330 = vmatprep.subr.bf16.mxu0 %v4699_v52  ;;  %2412 = vmatprep.subr.bf16.mxu1 %v4702_v53  ;;  %v2635_v52 = vrot.slane %v2627_v45, 1  ;;  %v4775_v53 = vld [vmem:[%s5087_s18 + $0x820] ss:$16 sps:$4 sm:$0xff]   ;;  %v4858_v45 = vld [vmem:[%s5087_s18 + $0x9cc] ss:$16 sps:$4 sm:$0xff]  }
  0xe9   : > { %2331 = vmatpush1.bf16.msra.mxu0 %v4697_v54  ;;  %2413 = vmatpush1.bf16.msra.mxu1 %v4700_v55  ;;  %v4778_v54 = vld [vmem:[%s5087_s18 + $0x828] ss:$16 sps:$4 sm:$0xff]   ;;  %v4783_v55 = vld [vmem:[%s5087_s18 + $0x844] ss:$16 sps:$4 sm:$0xff]  }
  0xea   : > { %2332 = vmatprep.subr.bf16.mxu0 %v4705_v56  ;;  %2414 = vmatprep.subr.bf16.mxu1 %v4708_v57  ;;  %v4786_v56 = vld [vmem:[%s5087_s18 + $0x84c] ss:$16 sps:$4 sm:$0xff]   ;;  %v4781_v57 = vld [vmem:[%s5087_s18 + $0x840] ss:$16 sps:$4 sm:$0xff]  }
  0xed   : > { %2333 = vmatpush1.bf16.msra.mxu0 %v4703_v58  ;;  %2415 = vmatpush1.bf16.msra.mxu1 %v4706_v59  ;;  %v4784_v58 = vld [vmem:[%s5087_s18 + $0x848] ss:$16 sps:$4 sm:$0xff]   ;;  %v4789_v59 = vld [vmem:[%s5087_s18 + $0x864] ss:$16 sps:$4 sm:$0xff]  }
  0xee   : > { %2334 = vmatprep.subr.bf16.mxu0 %v4711_v60  ;;  %2416 = vmatprep.subr.bf16.mxu1 %v4714_v61  ;;  %v4792_v60 = vld [vmem:[%s5087_s18 + $0x86c] ss:$16 sps:$4 sm:$0xff]   ;;  %v4787_v61 = vld [vmem:[%s5087_s18 + $0x860] ss:$16 sps:$4 sm:$0xff]  }
  0xf1   : > { %2335 = vmatpush1.bf16.msra.mxu0 %v4709_v62  ;;  %2417 = vmatpush1.bf16.msra.mxu1 %v4712_v63  ;;  %v4790_v62 = vld [vmem:[%s5087_s18 + $0x868] ss:$16 sps:$4 sm:$0xff]   ;;  %v4795_v63 = vld [vmem:[%s5087_s18 + $0x884] ss:$16 sps:$4 sm:$0xff]  }
  0xf2   : > { %2336 = vmatprep.subr.bf16.mxu0 %v4717_v0  ;;  %2418 = vmatprep.subr.bf16.mxu1 %v4720_v1  ;;  %v4798_v0 = vld [vmem:[%s5087_s18 + $0x88c] ss:$16 sps:$4 sm:$0xff]   ;;  %v4793_v1 = vld [vmem:[%s5087_s18 + $0x880] ss:$16 sps:$4 sm:$0xff]  }
  0xf5   : > { %2337 = vmatpush1.bf16.msra.mxu0 %v4715_v2  ;;  %2419 = vmatpush1.bf16.msra.mxu1 %v4718_v4  ;;  %v4796_v2 = vld [vmem:[%s5087_s18 + $0x888] ss:$16 sps:$4 sm:$0xff]   ;;  %v4801_v4 = vld [vmem:[%s5087_s18 + $0x8a4] ss:$16 sps:$4 sm:$0xff]  }
  0xf6   : > { %2338 = vmatprep.subr.bf16.mxu0 %v4723_v5  ;;  %2420 = vmatprep.subr.bf16.mxu1 %v4726_v6  ;;  %v4804_v5 = vld [vmem:[%s5087_s18 + $0x8ac] ss:$16 sps:$4 sm:$0xff]   ;;  %v4799_v6 = vld [vmem:[%s5087_s18 + $0x8a0] ss:$16 sps:$4 sm:$0xff]  }
  0xf9   : > { %2339 = vmatpush1.bf16.msra.mxu0 %v4721_v7  ;;  %2421 = vmatpush1.bf16.msra.mxu1 %v4724_v8  ;;  %v4802_v7 = vld [vmem:[%s5087_s18 + $0x8a8] ss:$16 sps:$4 sm:$0xff]   ;;  %v4807_v8 = vld [vmem:[%s5087_s18 + $0x8c4] ss:$16 sps:$4 sm:$0xff]  }
  0xfa   : > { %2340 = vmatprep.subr.bf16.mxu0 %v4729_v9  ;;  %2422 = vmatprep.subr.bf16.mxu1 %v4732_v10  ;;  %v4810_v9 = vld [vmem:[%s5087_s18 + $0x8cc] ss:$16 sps:$4 sm:$0xff]   ;;  %v4805_v10 = vld [vmem:[%s5087_s18 + $0x8c0] ss:$16 sps:$4 sm:$0xff]  }
  0xfd   : > { %2341 = vmatpush1.bf16.msra.mxu0 %v4727_v11  ;;  %2423 = vmatpush1.bf16.msra.mxu1 %v4730_v13  ;;  %v4808_v11 = vld [vmem:[%s5087_s18 + $0x8c8] ss:$16 sps:$4 sm:$0xff]   ;;  %v4813_v13 = vld [vmem:[%s5087_s18 + $0x8e4] ss:$16 sps:$4 sm:$0xff]  }
  0xfe   : > { %2342 = vmatprep.subr.bf16.mxu0 %v4735_v14  ;;  %2424 = vmatprep.subr.bf16.mxu1 %v4738_v15  ;;  %v4816_v14 = vld [vmem:[%s5087_s18 + $0x8ec] ss:$16 sps:$4 sm:$0xff]   ;;  %v4811_v15 = vld [vmem:[%s5087_s18 + $0x8e0] ss:$16 sps:$4 sm:$0xff]  }
 0x101   : > { %2343 = vmatpush1.bf16.msra.mxu0 %v4733_v16  ;;  %2425 = vmatpush1.bf16.msra.mxu1 %v4736_v17  ;;  %v4814_v16 = vld [vmem:[%s5087_s18 + $0x8e8] ss:$16 sps:$4 sm:$0xff]   ;;  %v4819_v17 = vld [vmem:[%s5087_s18 + $0x904] ss:$16 sps:$4 sm:$0xff]  }
 0x102   : > { %2344 = vmatprep.subr.bf16.mxu0 %v4741_v19  ;;  %2426 = vmatprep.subr.bf16.mxu1 %v4744_v20  ;;  %v4822_v19 = vld [vmem:[%s5087_s18 + $0x90c] ss:$16 sps:$4 sm:$0xff]   ;;  %v4817_v20 = vld [vmem:[%s5087_s18 + $0x900] ss:$16 sps:$4 sm:$0xff]  }
 0x105   : > { %2345 = vmatpush1.bf16.msra.mxu0 %v4739_v21  ;;  %2427 = vmatpush1.bf16.msra.mxu1 %v4742_v22  ;;  %v4820_v21 = vld [vmem:[%s5087_s18 + $0x908] ss:$16 sps:$4 sm:$0xff]   ;;  %v4825_v22 = vld [vmem:[%s5087_s18 + $0x924] ss:$16 sps:$4 sm:$0xff]  }
 0x106   : > { %2346 = vmatprep.subr.bf16.mxu0 %v4747_v24  ;;  %2428 = vmatprep.subr.bf16.mxu1 %v4750_v51  ;;  %v4828_v24 = vld [vmem:[%s5087_s18 + $0x92c] ss:$16 sps:$4 sm:$0xff]   ;;  %v4823_v51 = vld [vmem:[%s5087_s18 + $0x920] ss:$16 sps:$4 sm:$0xff]  }
 0x109   : > { %2347 = vmatpush1.bf16.msra.mxu0 %v4745_v3  ;;  %2429 = vmatpush1.bf16.msra.mxu1 %v4748_v25  ;;  %v4826_v3 = vld [vmem:[%s5087_s18 + $0x928] ss:$16 sps:$4 sm:$0xff]   ;;  %v4831_v25 = vld [vmem:[%s5087_s18 + $0x944] ss:$16 sps:$4 sm:$0xff]  }
 0x10a   : > { %2348 = vmatprep.subr.bf16.mxu0 %v4753_v26  ;;  %2430 = vmatprep.subr.bf16.mxu1 %v4756_v27  ;;  %v4834_v26 = vld [vmem:[%s5087_s18 + $0x94c] ss:$16 sps:$4 sm:$0xff]   ;;  %v4829_v27 = vld [vmem:[%s5087_s18 + $0x940] ss:$16 sps:$4 sm:$0xff]  }
 0x10d   : > { %2349 = vmatpush1.bf16.msra.mxu0 %v4751_v28  ;;  %2431 = vmatpush1.bf16.msra.mxu1 %v4754_v29  ;;  %v4832_v28 = vld [vmem:[%s5087_s18 + $0x948] ss:$16 sps:$4 sm:$0xff]   ;;  %v4837_v29 = vld [vmem:[%s5087_s18 + $0x964] ss:$16 sps:$4 sm:$0xff]  }
 0x10e   : > { %2350 = vmatprep.subr.bf16.mxu0 %v4759_v30  ;;  %2432 = vmatprep.subr.bf16.mxu1 %v4762_v31  ;;  %v4840_v30 = vld [vmem:[%s5087_s18 + $0x96c] ss:$16 sps:$4 sm:$0xff]   ;;  %v4835_v31 = vld [vmem:[%s5087_s18 + $0x960] ss:$16 sps:$4 sm:$0xff]  }
 0x111   : > { %2351 = vmatpush1.bf16.msra.mxu0 %v4757_v33  ;;  %2433 = vmatpush1.bf16.msra.mxu1 %v4760_v37  ;;  %v4838_v33 = vld [vmem:[%s5087_s18 + $0x968] ss:$16 sps:$4 sm:$0xff]   ;;  %v4846_v37 = vld [vmem:[%s5087_s18 + $0x98c] ss:$16 sps:$4 sm:$0xff]  }
 0x112   : > { %2352 = vmatprep.subr.bf16.mxu0 %v4765_v12  ;;  %2434 = vmatprep.subr.bf16.mxu1 %v4768_v36  ;;  %v4841_v12 = vld [vmem:[%s5087_s18 + $0x980] ss:$16 sps:$4 sm:$0xff]   ;;  %v4844_v36 = vld [vmem:[%s5087_s18 + $0x988] ss:$16 sps:$4 sm:$0xff]  }
 0x115   : > { %2353 = vmatpush1.bf16.msra.mxu0 %v4763_v40  ;;  %2435 = vmatpush1.bf16.msra.mxu1 %v4766_v18  ;;  %v4852_v40 = vld [vmem:[%s5087_s18 + $0x9ac] ss:$16 sps:$4 sm:$0xff]   ;;  %v4847_v18 = vld [vmem:[%s5087_s18 + $0x9a0] ss:$16 sps:$4 sm:$0xff]  }
 0x116   : > { %3282 = vmatprep.subr.bf16.mxu0 %v4771_v43  ;;  %3364 = vmatprep.subr.bf16.mxu1 %v4774_v44  ;;  %v4850_v43 = vld [vmem:[%s5087_s18 + $0x9a8] ss:$16 sps:$4 sm:$0xff]   ;;  %v4855_v44 = vld [vmem:[%s5087_s18 + $0x9c4] ss:$16 sps:$4 sm:$0xff]  }
 0x118   : > { %2355 = vmatmul.mubr.bf16.vlgmr.msra.gmra.mrb[4].mxu0 %v1632_v46  ;;  %2437 = vmatmul.mubr.bf16.vlgmr.msra.gmra.mrb[4].mxu1 %v1632_v46  ;;  %v2609_v46 = vrot.slane %v5315_v23, %v2608_v41  ;;  %v4859_v23 = vld [vmem:[%s5087_s18 + $0x9e0] ss:$16 sps:$4 sm:$0xff]  }
 0x119   : > { %3283 = vmatpush1.bf16.msra.mxu0 %v4769_v47  ;;  %3365 = vmatpush1.bf16.msra.mxu1 %v4772_v48  ;;  %v4853_v47 = vld [vmem:[%s5087_s18 + $0x9c0] ss:$16 sps:$4 sm:$0xff]   ;;  %v4856_v48 = vld [vmem:[%s5087_s18 + $0x9c8] ss:$16 sps:$4 sm:$0xff]  }
 0x11a   : > { %3284 = vmatprep.subr.bf16.mxu0 %v4777_v49  ;;  %3366 = vmatprep.subr.bf16.mxu1 %v4780_v50  ;;  %v4861_v49 = vld [vmem:[%s5087_s18 + $0x9e4] ss:$16 sps:$4 sm:$0xff]   ;;  %v4864_v50 = vld [vmem:[%s5087_s18 + $0x9ec] ss:$16 sps:$4 sm:$0xff]  }
 0x11b   : > { %3314 = vmatprep.mubr.bf16.mxu0 %v2635_v52  ;;  %3396 = vmatprep.mubr.bf16.mxu1 %v2635_v52  ;;  %v2621_v52 = vrot.slane %v5390_v34, %v2612_v32  ;;  %v4868_v32 = vld [vmem:[%s5087_s18 + $0xa08] ss:$16 sps:$4 sm:$0xff]  }
 0x11d   : > { %3285 = vmatpush1.bf16.msra.mxu0 %v4775_v53  ;;  %3367 = vmatpush1.bf16.msra.mxu1 %v4778_v54  ;;  %v2626_v53 = vpack.c.bf16 %v2609_v46, %v2609_v46  ;;  %v4862_v54 = vld [vmem:[%s5087_s18 + $0x9e8] ss:$16 sps:$4 sm:$0xff]  }
 0x11e   : > { %3286 = vmatprep.subr.bf16.mxu0 %v4783_v55  ;;  %3368 = vmatprep.subr.bf16.mxu1 %v4786_v56  ;;  %v4867_v55 = vld [vmem:[%s5087_s18 + $0xa04] ss:$16 sps:$4 sm:$0xff]   ;;  %v4870_v56 = vld [vmem:[%s5087_s18 + $0xa0c] ss:$16 sps:$4 sm:$0xff]   ;;  %v4910_v46 = vld [vmem:[%s5087_s18 + $0xae8] ss:$16 sps:$4 sm:$0xff]  }
 0x121   : > { %3287 = vmatpush1.bf16.msra.mxu0 %v4781_v57  ;;  %3369 = vmatpush1.bf16.msra.mxu1 %v4784_v58  ;;  %v2629_v57 = vpack.c.bf16 %v2621_v52, %v2621_v52  ;;  %v2634_v58 = vrot.slane %v2626_v53, 1 }
 0x122   : > { %3288 = vmatprep.subr.bf16.mxu0 %v4789_v59  ;;  %3370 = vmatprep.subr.bf16.mxu1 %v4792_v60  ;;  %v4865_v59 = vld [vmem:[%s5087_s18 + $0xa00] ss:$16 sps:$4 sm:$0xff]   ;;  %v4873_v60 = vld [vmem:[%s5087_s18 + $0xa24] ss:$16 sps:$4 sm:$0xff]  }
 0x125   : > { %3289 = vmatpush1.bf16.msra.mxu0 %v4787_v61  ;;  %3371 = vmatpush1.bf16.msra.mxu1 %v4790_v62  ;;  %v4876_v61 = vld [vmem:[%s5087_s18 + $0xa2c] ss:$16 sps:$4 sm:$0xff]   ;;  %v2637_v62 = vrot.slane %v2629_v57, 1  ;;  %v4922_v57 = vld [vmem:[%s5087_s18 + $0xb28] ss:$16 sps:$4 sm:$0xff]  }
 0x126   : > { %3290 = vmatprep.subr.bf16.mxu0 %v4795_v63  ;;  %3372 = vmatprep.subr.bf16.mxu1 %v4798_v0  ;;  %v4871_v63 = vld [vmem:[%s5087_s18 + $0xa20] ss:$16 sps:$4 sm:$0xff]   ;;  %v4874_v0 = vld [vmem:[%s5087_s18 + $0xa28] ss:$16 sps:$4 sm:$0xff]  }
 0x129   : > { %3291 = vmatpush1.bf16.msra.mxu0 %v4793_v1  ;;  %3373 = vmatpush1.bf16.msra.mxu1 %v4796_v2  ;;  %v4879_v1 = vld [vmem:[%s5087_s18 + $0xa44] ss:$16 sps:$4 sm:$0xff]   ;;  %v4882_v2 = vld [vmem:[%s5087_s18 + $0xa4c] ss:$16 sps:$4 sm:$0xff]  }
 0x12a   : > { %3292 = vmatprep.subr.bf16.mxu0 %v4801_v4  ;;  %3374 = vmatprep.subr.bf16.mxu1 %v4804_v5  ;;  %v4877_v4 = vld [vmem:[%s5087_s18 + $0xa40] ss:$16 sps:$4 sm:$0xff]   ;;  %v4880_v5 = vld [vmem:[%s5087_s18 + $0xa48] ss:$16 sps:$4 sm:$0xff]  }
 0x12d   : > { %3293 = vmatpush1.bf16.msra.mxu0 %v4799_v6  ;;  %3375 = vmatpush1.bf16.msra.mxu1 %v4802_v7  ;;  %v4885_v6 = vld [vmem:[%s5087_s18 + $0xa64] ss:$16 sps:$4 sm:$0xff]   ;;  %v4888_v7 = vld [vmem:[%s5087_s18 + $0xa6c] ss:$16 sps:$4 sm:$0xff]  }
 0x12e   : > { %3294 = vmatprep.subr.bf16.mxu0 %v4807_v8  ;;  %3376 = vmatprep.subr.bf16.mxu1 %v4810_v9  ;;  %v4883_v8 = vld [vmem:[%s5087_s18 + $0xa60] ss:$16 sps:$4 sm:$0xff]   ;;  %v4886_v9 = vld [vmem:[%s5087_s18 + $0xa68] ss:$16 sps:$4 sm:$0xff]  }
 0x131   : > { %3295 = vmatpush1.bf16.msra.mxu0 %v4805_v10  ;;  %3377 = vmatpush1.bf16.msra.mxu1 %v4808_v11  ;;  %v4891_v10 = vld [vmem:[%s5087_s18 + $0xa84] ss:$16 sps:$4 sm:$0xff]   ;;  %v4894_v11 = vld [vmem:[%s5087_s18 + $0xa8c] ss:$16 sps:$4 sm:$0xff]  }
 0x132   : > { %3296 = vmatprep.subr.bf16.mxu0 %v4813_v13  ;;  %3378 = vmatprep.subr.bf16.mxu1 %v4816_v14  ;;  %v5004_v13 = vmov 1966171168  }
 0x133   : > { %v1443_v14 = vunpack.c.l.s4 %v5004_v13  ;;  %v2617_v13 = vrot.slane %v5390_v34, %v2608_v41 }
 0x135   : > { %3297 = vmatpush1.bf16.msra.mxu0 %v4811_v15  ;;  %3379 = vmatpush1.bf16.msra.mxu1 %v4814_v16  ;;  %v4889_v15 = vld [vmem:[%s5087_s18 + $0xa80] ss:$16 sps:$4 sm:$0xff]   ;;  %v4892_v16 = vld [vmem:[%s5087_s18 + $0xa88] ss:$16 sps:$4 sm:$0xff]  }
 0x136   : > { %3298 = vmatprep.subr.bf16.mxu0 %v4819_v17  ;;  %3380 = vmatprep.subr.bf16.mxu1 %v4822_v19  ;;  %v4897_v17 = vld [vmem:[%s5087_s18 + $0xaa4] ss:$16 sps:$4 sm:$0xff]   ;;  %v4900_v19 = vld [vmem:[%s5087_s18 + $0xaac] ss:$16 sps:$4 sm:$0xff]  }
 0x139   : > { %3299 = vmatpush1.bf16.msra.mxu0 %v4817_v20  ;;  %3381 = vmatpush1.bf16.msra.mxu1 %v4820_v21  ;;  %v1444_v20 = vunpack.c.0.s8 %v1443_v14  ;;  %v4895_v21 = vld [vmem:[%s5087_s18 + $0xaa0] ss:$16 sps:$4 sm:$0xff]  }
 0x13a   : > { %3300 = vmatprep.subr.bf16.mxu0 %v4825_v22  ;;  %3382 = vmatprep.subr.bf16.mxu1 %v4828_v24  ;;  %v4898_v22 = vld [vmem:[%s5087_s18 + $0xaa8] ss:$16 sps:$4 sm:$0xff]   ;;  %v4903_v24 = vld [vmem:[%s5087_s18 + $0xac4] ss:$16 sps:$4 sm:$0xff]   ;;  %v4949_v14 = vld [vmem:[%s5087_s18 + $0xbc0] ss:$16 sps:$4 sm:$0xff]  }
 0x13d   : > { %3301 = vmatpush1.bf16.msra.mxu0 %v4823_v51  ;;  %3383 = vmatpush1.bf16.msra.mxu1 %v4826_v3  ;;  %v4906_v51 = vld [vmem:[%s5087_s18 + $0xacc] ss:$16 sps:$4 sm:$0xff]  }
 0x13e   : > { %3302 = vmatprep.subr.bf16.mxu0 %v4831_v25  ;;  %3384 = vmatprep.subr.bf16.mxu1 %v4834_v26  ;;  %v5501_v26 = vsub.s32 %v1444_v20, %v5140_v42  ;;  %v4955_v20 = vld [vmem:[%s5087_s18 + $0xbe0] ss:$16 sps:$4 sm:$0xff]  }
 0x141   : > { %3303 = vmatpush1.bf16.msra.mxu0 %v4829_v27  ;;  %3385 = vmatpush1.bf16.msra.mxu1 %v4832_v28 }
 0x142   : > { %3304 = vmatprep.subr.bf16.mxu0 %v4837_v29  ;;  %3386 = vmatprep.subr.bf16.mxu1 %v4840_v30 }
 0x145   : > { %3305 = vmatpush1.bf16.msra.mxu0 %v4835_v31  ;;  %3387 = vmatpush1.bf16.msra.mxu1 %v4838_v33 }
 0x146   : > { %3306 = vmatprep.subr.bf16.mxu0 %v4843_v35  ;;  %3388 = vmatprep.subr.bf16.mxu1 %v4846_v37  ;;  %v4901_v35 = vld [vmem:[%s5087_s18 + $0xac0] ss:$16 sps:$4 sm:$0xff]   ;;  %v4904_v37 = vld [vmem:[%s5087_s18 + $0xac8] ss:$16 sps:$4 sm:$0xff]  }
 0x149   : > { %3307 = vmatpush1.bf16.msra.mxu0 %v4841_v12  ;;  %3389 = vmatpush1.bf16.msra.mxu1 %v4844_v36 }
 0x14a   : > { %3308 = vmatprep.subr.bf16.mxu0 %v4849_v39  ;;  %3390 = vmatprep.subr.bf16.mxu1 %v4852_v40  ;;  %v4909_v39 = vld [vmem:[%s5087_s18 + $0xae4] ss:$16 sps:$4 sm:$0xff]   ;;  %v4912_v40 = vld [vmem:[%s5087_s18 + $0xaec] ss:$16 sps:$4 sm:$0xff]  }
 0x14d   : > { %3309 = vmatpush1.bf16.msra.mxu0 %v4847_v18  ;;  %3391 = vmatpush1.bf16.msra.mxu1 %v4850_v43 }
 0x14e   : > { %3310 = vmatprep.subr.bf16.mxu0 %v4855_v44  ;;  %3392 = vmatprep.subr.bf16.mxu1 %v4858_v45  ;;  %v4907_v45 = vld [vmem:[%s5087_s18 + $0xae0] ss:$16 sps:$4 sm:$0xff]  }
 0x151   : > { %3311 = vmatpush1.bf16.msra.mxu0 %v4853_v47  ;;  %3393 = vmatpush1.bf16.msra.mxu1 %v4856_v48  ;;  %v605_v47 = vld [vmem:[#allocation2] sm:$0xf]  ;;  %v4915_v48 = vld [vmem:[%s5087_s18 + $0xb04] ss:$16 sps:$4 sm:$0xff]  }
 0x152   : > { %3312 = vmatprep.subr.bf16.mxu0 %v4861_v49  ;;  %3394 = vmatprep.subr.bf16.mxu1 %v4864_v50  ;;  %v4918_v49 = vld [vmem:[%s5087_s18 + $0xb0c] ss:$16 sps:$4 sm:$0xff]  }
 0x155   : > { %3313 = vmatpush1.bf16.msra.mxu0 %v4859_v23  ;;  %3395 = vmatpush1.bf16.msra.mxu1 %v4862_v54  ;;  %v4913_v23 = vld [vmem:[%s5087_s18 + $0xb00] ss:$16 sps:$4 sm:$0xff]   ;;  %v4916_v54 = vld [vmem:[%s5087_s18 + $0xb08] ss:$16 sps:$4 sm:$0xff]  }
 0x156   : > { %3323 = vmatprep.subr.bf16.mxu0 %v4867_v55  ;;  %3405 = vmatprep.subr.bf16.mxu1 %v4870_v56  ;;  %v4921_v55 = vld [vmem:[%s5087_s18 + $0xb24] ss:$16 sps:$4 sm:$0xff]   ;;  %v4924_v56 = vld [vmem:[%s5087_s18 + $0xb2c] ss:$16 sps:$4 sm:$0xff]  }
 0x158   : > { %3315 = vmatmul.mubr.bf16.vlgmr.msra.gmra.mrb[8].mxu0 %v2634_v58  ;;  %3397 = vmatmul.mubr.bf16.vlgmr.msra.gmra.mrb[8].mxu1 %v2634_v58  ;;  %v4927_v58 = vld [vmem:[%s5087_s18 + $0xb44] ss:$16 sps:$4 sm:$0xff]  }
 0x159   : > { %3324 = vmatpush1.bf16.msra.mxu0 %v4865_v59  ;;  %3406 = vmatpush1.bf16.msra.mxu1 %v4868_v32  ;;  %v4930_v59 = vld [vmem:[%s5087_s18 + $0xb4c] ss:$16 sps:$4 sm:$0xff]   ;;  %v4925_v32 = vld [vmem:[%s5087_s18 + $0xb40] ss:$16 sps:$4 sm:$0xff]  }
 0x15a   : > { %3325 = vmatprep.subr.bf16.mxu0 %v4873_v60  ;;  %3407 = vmatprep.subr.bf16.mxu1 %v4876_v61  ;;  %v4928_v60 = vld [vmem:[%s5087_s18 + $0xb48] ss:$16 sps:$4 sm:$0xff]   ;;  %v4933_v61 = vld [vmem:[%s5087_s18 + $0xb64] ss:$16 sps:$4 sm:$0xff]  }
 0x15b   : > { %3355 = vmatprep.mubr.bf16.mxu0 %v2637_v62  ;;  %3437 = vmatprep.mubr.bf16.mxu1 %v2637_v62  ;;  %v4936_v62 = vld [vmem:[%s5087_s18 + $0xb6c] ss:$16 sps:$4 sm:$0xff]  }
 0x15d   : > { %3326 = vmatpush1.bf16.msra.mxu0 %v4871_v63  ;;  %3408 = vmatpush1.bf16.msra.mxu1 %v4874_v0  ;;  %v4931_v63 = vld [vmem:[%s5087_s18 + $0xb60] ss:$16 sps:$4 sm:$0xff]   ;;  %v4934_v0 = vld [vmem:[%s5087_s18 + $0xb68] ss:$16 sps:$4 sm:$0xff]  }
 0x15e   : > { %3327 = vmatprep.subr.bf16.mxu0 %v4879_v1  ;;  %3409 = vmatprep.subr.bf16.mxu1 %v4882_v2  ;;  %v4939_v1 = vld [vmem:[%s5087_s18 + $0xb84] ss:$16 sps:$4 sm:$0xff]   ;;  %v4942_v2 = vld [vmem:[%s5087_s18 + $0xb8c] ss:$16 sps:$4 sm:$0xff]  }
 0x161   : > { %3328 = vmatpush1.bf16.msra.mxu0 %v4877_v4  ;;  %3410 = vmatpush1.bf16.msra.mxu1 %v4880_v5  ;;  %v4937_v4 = vld [vmem:[%s5087_s18 + $0xb80] ss:$16 sps:$4 sm:$0xff]   ;;  %v4940_v5 = vld [vmem:[%s5087_s18 + $0xb88] ss:$16 sps:$4 sm:$0xff]  }
 0x162   : > { %3329 = vmatprep.subr.bf16.mxu0 %v4885_v6  ;;  %3411 = vmatprep.subr.bf16.mxu1 %v4888_v7  ;;  %v4945_v6 = vld [vmem:[%s5087_s18 + $0xba4] ss:$16 sps:$4 sm:$0xff]   ;;  %v4948_v7 = vld [vmem:[%s5087_s18 + $0xbac] ss:$16 sps:$4 sm:$0xff]  }
 0x165   : > { %3330 = vmatpush1.bf16.msra.mxu0 %v4883_v8  ;;  %3412 = vmatpush1.bf16.msra.mxu1 %v4886_v9  ;;  %v4943_v8 = vld [vmem:[%s5087_s18 + $0xba0] ss:$16 sps:$4 sm:$0xff]   ;;  %v4946_v9 = vld [vmem:[%s5087_s18 + $0xba8] ss:$16 sps:$4 sm:$0xff]  }
 0x166   : > { %3331 = vmatprep.subr.bf16.mxu0 %v4891_v10  ;;  %3413 = vmatprep.subr.bf16.mxu1 %v4894_v11  ;;  %v4951_v10 = vld [vmem:[%s5087_s18 + $0xbc4] ss:$16 sps:$4 sm:$0xff]   ;;  %v4954_v11 = vld [vmem:[%s5087_s18 + $0xbcc] ss:$16 sps:$4 sm:$0xff]  }
 0x169   : > { %3332 = vmatpush1.bf16.msra.mxu0 %v4889_v15  ;;  %3414 = vmatpush1.bf16.msra.mxu1 %v4892_v16  ;;  %v4952_v15 = vld [vmem:[%s5087_s18 + $0xbc8] ss:$16 sps:$4 sm:$0xff]   ;;  %v4957_v16 = vld [vmem:[%s5087_s18 + $0xbe4] ss:$16 sps:$4 sm:$0xff]  }
 0x16a   : > { %3333 = vmatprep.subr.bf16.mxu0 %v4897_v17  ;;  %3415 = vmatprep.subr.bf16.mxu1 %v4900_v19  ;;  %v4960_v17 = vld [vmem:[%s5087_s18 + $0xbec] ss:$16 sps:$4 sm:$0xff]   ;;  %v2628_v19 = vpack.c.bf16 %v2617_v13, %v2617_v13 }
 0x16b   : > { %v1347_v3 = vpop.f32.mrb[0].mxu0  ;;  %v1429_v25 = vpop.f32.mrb[0].mxu1 }
 0x16c   : > { %v1349_v27 = vpop.f32.mrb[1].mxu0  ;;  %v1431_v28 = vpop.f32.mrb[1].mxu1 }
 0x16d   : > { %v1440_v29 = vcombine.low %v1347_v3, %v1349_v27  ;;  %v1441_v30 = vcombine.low %v1429_v25, %v1431_v28  ;;  %v1351_v31 = vpop.f32.mrb[2].mxu0  ;;  %v1433_v33 = vpop.f32.mrb[2].mxu1  ;;  %3334 = vmatpush1.bf16.msra.mxu0 %v4895_v21  ;;  %3416 = vmatpush1.bf16.msra.mxu1 %v4898_v22  ;;  %v4958_v21 = vld [vmem:[%s5087_s18 + $0xbe8] ss:$16 sps:$4 sm:$0xff]   ;;  %v2636_v22 = vrot.slane %v2628_v19, 1 }
 0x16e   : > { %v1352_v12 = vpop.f32.mrb[3].mxu0  ;;  %v1434_v36 = vpop.f32.mrb[3].mxu1  ;;  %3335 = vmatprep.subr.bf16.mxu0 %v4903_v24  ;;  %3417 = vmatprep.subr.bf16.mxu1 %v4906_v51 }
 0x16f   : > { %v1448_v18 = vrot.slane %v1440_v29, %v5501_v26  ;;  %v1455_v43 = vrot.slane %v1441_v30, %v5501_v26 }
 0x171   : > { %v1456_v44 = vcombine.low %v1448_v18, %v1455_v43  ;;  %3336 = vmatpush1.bf16.msra.mxu0 %v4901_v35  ;;  %3418 = vmatpush1.bf16.msra.mxu1 %v4904_v37 }
 0x172   : > { %3337 = vmatprep.subr.bf16.mxu0 %v4909_v39  ;;  %3419 = vmatprep.subr.bf16.mxu1 %v4912_v40 }
 0x173   : > { %v1463_v50 = vrot.slane %v1456_v44, %v5501_v26 }
 0x175   : > { %v1465_v53 = vadd.f32 %v1463_v50, %v605_v47  ;;  %3338 = vmatpush1.bf16.msra.mxu0 %v4907_v45  ;;  %3420 = vmatpush1.bf16.msra.mxu1 %v4910_v46 }
 0x176   : > { %3339 = vmatprep.subr.bf16.mxu0 %v4915_v48  ;;  %3421 = vmatprep.subr.bf16.mxu1 %v4918_v49 }
 0x177   : > { %1470 = vst.msk [vmem:[#allocation2] sm:$0xf] %vm5515_vm1, %v1465_v53 }
 0x179   : > { %3340 = vmatpush1.bf16.msra.mxu0 %v4913_v23  ;;  %3422 = vmatpush1.bf16.msra.mxu1 %v4916_v54 }
 0x17a   : > { %3341 = vmatprep.subr.bf16.mxu0 %v4921_v55  ;;  %3423 = vmatprep.subr.bf16.mxu1 %v4924_v56 }
 0x17d   : > { %3342 = vmatpush1.bf16.msra.mxu0 %v4919_v38  ;;  %3424 = vmatpush1.bf16.msra.mxu1 %v4922_v57  ;;  %v3482_v38 = vld [vmem:[%s5594_s4] sm:$0xf] (!%p4314_p8) }
 0x17e   : > { %3343 = vmatprep.subr.bf16.mxu0 %v4927_v58  ;;  %3425 = vmatprep.subr.bf16.mxu1 %v4930_v59  ;;  %v1600_v37 = vld [vmem:[#allocation2] sm:$0xf] }
 0x17f   : > { %v3484_v57 = vld [vmem:[%s5595_s5] sm:$0xf] (!%p4314_p8) }
 0x180   : > { %v3486_v58 = vld [vmem:[%s5082_s14] sm:$0xf] (!%p4314_p8) }
 0x181   : > { %3344 = vmatpush1.bf16.msra.mxu0 %v4925_v32  ;;  %3426 = vmatpush1.bf16.msra.mxu1 %v4928_v60 }
 0x182   : > { %3345 = vmatprep.subr.bf16.mxu0 %v4933_v61  ;;  %3427 = vmatprep.subr.bf16.mxu1 %v4936_v62 }
 0x185   : > { %3346 = vmatpush1.bf16.msra.mxu0 %v4931_v63  ;;  %3428 = vmatpush1.bf16.msra.mxu1 %v4934_v0 }
 0x186   : > { %3347 = vmatprep.subr.bf16.mxu0 %v4939_v1  ;;  %3429 = vmatprep.subr.bf16.mxu1 %v4942_v2 }
 0x189   : > { %3348 = vmatpush1.bf16.msra.mxu0 %v4937_v4  ;;  %3430 = vmatpush1.bf16.msra.mxu1 %v4940_v5 }
 0x18a   : > { %3349 = vmatprep.subr.bf16.mxu0 %v4945_v6  ;;  %3431 = vmatprep.subr.bf16.mxu1 %v4948_v7 }
 0x18d   : > { %3350 = vmatpush1.bf16.msra.mxu0 %v4943_v8  ;;  %3432 = vmatpush1.bf16.msra.mxu1 %v4946_v9 }
 0x18e   : > { %3351 = vmatprep.subr.bf16.mxu0 %v4951_v10  ;;  %3433 = vmatprep.subr.bf16.mxu1 %v4954_v11 }
 0x191   : > { %3352 = vmatpush1.bf16.msra.mxu0 %v4949_v14  ;;  %3434 = vmatpush1.bf16.msra.mxu1 %v4952_v15 }
 0x192   : > { %3353 = vmatprep.subr.bf16.mxu0 %v4957_v16  ;;  %3435 = vmatprep.subr.bf16.mxu1 %v4960_v17 }
 0x195   : > { %3354 = vmatpush1.bf16.msra.mxu0 %v4955_v20  ;;  %3436 = vmatpush1.bf16.msra.mxu1 %v4958_v21 }
 0x198   : > { %3356 = vmatmul.mubr.bf16.vlgmr.msra.gmra.mrb[8].mxu0 %v2636_v22  ;;  %3438 = vmatmul.mubr.bf16.vlgmr.msra.gmra.mrb[8].mxu1 %v2636_v22 }
 0x1eb   : > { %v2356_v42 = vpop.f32.mrb[4].mxu0  ;;  %v2438_v34 = vpop.f32.mrb[4].mxu1 }
 0x1ec   : > { %v2358_v41 = vpop.f32.mrb[5].mxu0  ;;  %v2440_v24 = vpop.f32.mrb[5].mxu1 }
 0x1ed   : > { %v2449_v51 = vcombine.low %v2356_v42, %v2358_v41  ;;  %v2450_v3 = vcombine.low %v2438_v34, %v2440_v24  ;;  %v2360_v25 = vpop.f32.mrb[6].mxu0  ;;  %v2442_v27 = vpop.f32.mrb[6].mxu1 }
 0x1ee   : > { %v2361_v28 = vpop.f32.mrb[7].mxu0  ;;  %v2443_v29 = vpop.f32.mrb[7].mxu1 }
 0x1ef   : > { %v2457_v30 = vrot.slane %v2449_v51, %v5501_v26  ;;  %v2464_v31 = vrot.slane %v2450_v3, %v5501_v26 }
 0x1f1   : > { %v2465_v33 = vcombine.low %v2457_v30, %v2464_v31 }
 0x1f3   : > { %v2472_v35 = vrot.slane %v2465_v33, %v5501_v26 }
 0x1f5   : > { %v2474_v12 = vadd.f32 %v2472_v35, %v1600_v37 }
 0x1f7   : > { %2475 = vst.msk [vmem:[#allocation2] sm:$0xf] %vm5515_vm1, %v2474_v12 }
 0x1fe   : > { %v2605_v54 = vld [vmem:[#allocation2] sm:$0xf] }
 0x26b   : > { %v3357_v36 = vpop.f32.mrb[8].mxu0  ;;  %v3439_v39 = vpop.f32.mrb[8].mxu1 }
 0x26c   : > { %v3359_v40 = vpop.f32.mrb[9].mxu0  ;;  %v3441_v18 = vpop.f32.mrb[9].mxu1 }
 0x26d   : > { %v3450_v43 = vcombine.low %v3357_v36, %v3359_v40  ;;  %v3451_v44 = vcombine.low %v3439_v39, %v3441_v18  ;;  %v3361_v45 = vpop.f32.mrb[10].mxu0  ;;  %v3443_v46 = vpop.f32.mrb[10].mxu1 }
 0x26e   : > { %v3362_v47 = vpop.f32.mrb[11].mxu0  ;;  %v3444_v48 = vpop.f32.mrb[11].mxu1 }
 0x26f   : > { %v3458_v49 = vrot.slane %v3450_v43, %v5501_v26  ;;  %v3465_v50 = vrot.slane %v3451_v44, %v5501_v26 }
 0x271   : > { %v3466_v53 = vcombine.low %v3458_v49, %v3465_v50  ;;  %3480 = sbr.rel (%p4314_p8) target bundleno = 646 (0x286), region = 56 }
 0x273   : > { %v3473_v23 = vrot.slane %v3466_v53, %v5501_v26 }
 0x275   : > { %v3475_v55 = vadd.f32 %v3473_v23, %v2605_v54 }
 0x277   : > { %3476 = vst.msk [vmem:[#allocation2] sm:$0xf] %vm5515_vm1, %v3475_v55 }
 0x27e   : > { %v3481_v56 = vld [vmem:[#allocation2] sm:$0xf] }
 0x27f   : > { %v3483_v26 = vmul.f32 %v3482_v38, %v3481_v56 }
 0x281   : > { %v3485_v59 = vadd.f32 %v3484_v57, %v3483_v26 }
 0x283   : > { %v3487_v32 = vadd.f32 %v3486_v58, %v3485_v59 }
 0x285   : > { %3488 = vst.msk [vmem:[%s5097_s25] sm:$0xf] %vm5515_vm1, %v3487_v32 }
 0x286 PF: > { %s17_s3 = sadd.s32 1, %s5001_s3   ;;  %s5600_s24 = smov %s4993_s2 }
 0x287   : > { %p14_p9 = scmp.ge.s32.totalorder %s17_s3, 8   ;;  %s5601_s25 = smov %s4997_s26 }
 0x288   : > { %s5602_s2 = smov %s5605_s27  ;;  %s5603_s26 = smov %s5609_s28 }
 0x289   :  { %16 = sbr.rel (!%p14_p9) target bundleno = 3 (0x3), region = 100 }

</bundles_post_ra>
